<compile_context>
chip_gen: v6e
topology: v6e:2x2x1
jax: 0.10.0
libtpu: 0.0.40
codegen_flags: <defaults>
</compile_context>

<pallas_src>
import functools

import jax
import jax.numpy as jnp
from jax import lax
from jax.experimental import pallas as pl
from jax.experimental.pallas import tpu as pltpu


def _round_up(a, b):
    return (a + b - 1) // b * b


def _vmem_limit_bytes():
    """Per-chip scoped-VMEM limit: ~75% of physical (48 MiB on v7x, 96 MiB on v5e/v6e)."""
    cap = 64 << 20                                  # conservative default (v7x per-TC)
    try:
        info = pltpu.get_tpu_info()
        cap = int(getattr(info, "vmem_capacity_bytes", cap) or cap)
    except Exception:
        pass
    return int(min(cap * 3 // 4, 96 << 20))


# ----------------------------------------------------------------- conv kernel
# Fused: [optional affine+ReLU on input] -> 3x3 conv (9 shifted bf16 MXU dots)
#        -> bf16 y write + f32 per-channel sum / sum-of-squares for BatchNorm.

def _conv3x3_bn_stats_kernel(x_ref, w_ref, scale_ref, shift_ref,
                             y_ref, sum_ref, ssq_ref,
                             zc_ref, zl_ref, zr_ref,
                             *, H, W, cin, pad, apply_affine, row_chunk):
    M = H * W
    n = pl.program_id(1)

    # Zero top/bottom halo rows once per Cout tile (scratch persists across grid steps;
    # the interiors are rewritten every step).
    @pl.when(n == 0)
    def _zero_halo():
        z = jnp.zeros((pad, cin), jnp.bfloat16)
        for buf in (zc_ref, zl_ref, zr_ref):
            buf[0:pad, :] = z
            buf[pad + M:pad + M + pad, :] = z

    @pl.when(n == 0)
    def _init_stats():
        sum_ref[...] = jnp.zeros_like(sum_ref)
        ssq_ref[...] = jnp.zeros_like(ssq_ref)

    # Load the sample, fuse the previous block's BN-affine + ReLU (f32 VPU math), and
    # stage three bf16 slabs:
    #   zc: unmasked
    #   zl: rows whose input column == W-1 zeroed  (used by kw=0 taps, "look left")
    #   zr: rows whose input column == 0   zeroed  (used by kw=2 taps, "look right")
    # Pre-masking here collapses the 6 per-tap mask multiplies into 2; the tap loop
    # below reads the slabs with no extra VPU / store work.
    x = x_ref[0].astype(jnp.float32)                           # (M, Cin)
    if apply_affine:
        x = jnp.maximum(x * scale_ref[...] + shift_ref[...], 0.0)

    col = lax.broadcasted_iota(jnp.int32, (M, 1), 0) % W
    not_last = (col < (W - 1)).astype(jnp.float32)
    not_first = (col > 0).astype(jnp.float32)
    zc_ref[pad:pad + M, :] = x.astype(jnp.bfloat16)
    zl_ref[pad:pad + M, :] = (x * not_last).astype(jnp.bfloat16)
    zr_ref[pad:pad + M, :] = (x * not_first).astype(jnp.bfloat16)

    cout_t = y_ref.shape[-1]
    srcs = (zl_ref, zc_ref, zr_ref)                            # indexed by kw

    s_acc = jnp.zeros((1, cout_t), jnp.float32)
    q_acc = jnp.zeros((1, cout_t), jnp.float32)

    # Row-chunked accumulator: each chunk's f32 acc (<= 32 vregs) is built across all
    # 9 taps, stored once, and feeds the BN stats.
    for r0 in range(0, M, row_chunk):
        rc = min(row_chunk, M - r0)
        acc = jnp.zeros((rc, cout_t), jnp.float32)
        for kh in range(3):
            for kw in range(3):
                d = (kh - 1) * W + (kw - 1)                    # flat tap offset
                xs = srcs[kw][pad + d + r0:pad + d + r0 + rc, :]   # (rc, Cin) bf16
                wk = w_ref[(kh * 3 + kw) * cin:(kh * 3 + kw + 1) * cin, :]
                acc = acc + jnp.dot(xs, wk, preferred_element_type=jnp.float32)
        y_ref[0, r0:r0 + rc, :] = acc.astype(y_ref.dtype)
        s_acc = s_acc + jnp.sum(acc, axis=0, keepdims=True)
        q_acc = q_acc + jnp.sum(acc * acc, axis=0, keepdims=True)

    # Resident (over the "arbitrary" N axis) BN batch-statistic accumulators.
    sum_ref[...] = sum_ref[...] + s_acc
    ssq_ref[...] = ssq_ref[...] + q_acc


def pallas_conv3x3_bn_stats(x_nmc, w_oihw, in_scale, in_shift, *, H, W, apply_affine):
    """x_nmc: (N, H*W, Cin) NHWC-flat (f32 or bf16). w_oihw: (Cout, Cin, 3, 3) PyTorch layout.
    Returns bf16 conv output y (N, H*W, Cout) and f32 per-channel sum / sum-of-squares.
    Conv bias intentionally omitted (cancels under training-mode BatchNorm)."""
    N, M, Cin = x_nmc.shape
    Cout = w_oihw.shape[0]

    # Weight slab rows ordered (kh, kw, cin) -> matches the kernel's tap slicing; bf16.
    w_mat = jnp.transpose(w_oihw, (2, 3, 1, 0)).reshape(9 * Cin, Cout).astype(jnp.bfloat16)

    pad = _round_up(W + 1, 16)                      # flat halo depth, bf16-sublane aligned
    vmem_limit = _vmem_limit_bytes()

    def footprint(tc_):                             # rough per-step VMEM need
        return (2 * M * Cin * x_nmc.dtype.itemsize  # x double-buffer
                + 2 * 9 * Cin * tc_ * 2             # bf16 weight double-buffer
                + 2 * M * tc_ * 2                   # bf16 y double-buffer
                + 3 * (M + 2 * pad) * Cin * 2       # staged slabs
                + (2 << 20))                        # acc temps / misc

    # Cout tile: 256 when it fits and still leaves >=2 parallel blocks, else 128.
    if Cout % 256 == 0 and Cout >= 512 and footprint(256) <= vmem_limit:
        tc = 256
    elif Cout % 128 == 0:
        tc = 128
    else:
        tc = Cout
    J = Cout // tc
    # TODO(synk): when J == 1 (Cout <= 128) the "parallel" axis cannot feed both v7x
    # TensorCores; splitting M with per-tile partial stats would fix that.

    row_chunk = max(8, min(M, (32768 // max(tc, 1)) // 8 * 8))

    if in_scale is None:                            # first block: no fused input affine
        in_scale = jnp.ones((Cin,), jnp.float32)
        in_shift = jnp.zeros((Cin,), jnp.float32)

    kern = functools.partial(_conv3x3_bn_stats_kernel, H=H, W=W, cin=Cin, pad=pad,
                             apply_affine=apply_affine, row_chunk=row_chunk)

    y, s, ss = pl.pallas_call(
        kern,
        out_shape=(jax.ShapeDtypeStruct((N, M, Cout), jnp.bfloat16),
                   jax.ShapeDtypeStruct((1, Cout), jnp.float32),
                   jax.ShapeDtypeStruct((1, Cout), jnp.float32)),
        grid=(J, N),
        in_specs=[pl.BlockSpec((1, M, Cin), lambda j, n: (n, 0, 0)),
                  pl.BlockSpec((9 * Cin, tc), lambda j, n: (0, j)),
                  pl.BlockSpec((1, Cin), lambda j, n: (0, 0)),
                  pl.BlockSpec((1, Cin), lambda j, n: (0, 0))],
        out_specs=(pl.BlockSpec((1, M, tc), lambda j, n: (n, 0, j)),
                   pl.BlockSpec((1, tc), lambda j, n: (0, j)),
                   pl.BlockSpec((1, tc), lambda j, n: (0, j))),
        scratch_shapes=[pltpu.VMEM((M + 2 * pad, Cin), jnp.bfloat16) for _ in range(3)],
        compiler_params=pltpu.CompilerParams(
            dimension_semantics=("parallel", "arbitrary"),
            vmem_limit_bytes=vmem_limit),
    )(x_nmc, w_mat,
      in_scale.reshape(1, Cin).astype(jnp.float32),
      in_shift.reshape(1, Cin).astype(jnp.float32))
    return y, s, ss


# --------------------------------------------------- lane-dense affine+ReLU pass

def _affine_relu_kernel(x_ref, s_ref, t_ref, o_ref):
    x = x_ref[...].astype(jnp.float32)
    o_ref[...] = jnp.maximum(x * s_ref[...] + t_ref[...], 0.0)


def pallas_affine_relu(y_flat, scale, shift):
    """y_flat: (R, C) (bf16 or f32). relu(y*scale+shift) per channel, f32 output, with a
    lane-dense layout and no pad/slice round trip."""
    R, C = y_flat.shape
    rep = 1
    if C < 128 and 128 % C == 0 and R % (128 // C) == 0:
        rep = 128 // C                              # pack 'rep' rows into 128 lanes
    R2, C2 = R // rep, C * rep
    y2 = y_flat.reshape(R2, C2)
    s2 = jnp.tile(scale, rep).reshape(1, C2).astype(jnp.float32)
    t2 = jnp.tile(shift, rep).reshape(1, C2).astype(jnp.float32)

    # ~16 MiB tile budget (double-buffered bf16 in + f32 out); trailing partial block is
    # handled by Pallas, so no jnp.pad / slice.  Fallback to a single full-dim block when
    # rows aren't sublane-aligned (fine at this module's sizes).
    per_row = (2 * y2.dtype.itemsize + 2 * 4) * C2
    tm = max(8, min(1024, (16 << 20) // per_row) // 8 * 8)
    if tm >= R2 or R2 % 8 != 0:
        tm = R2

    out = pl.pallas_call(
        _affine_relu_kernel,
        out_shape=jax.ShapeDtypeStruct((R2, C2), jnp.float32),
        grid=(pl.cdiv(R2, tm),),
        in_specs=[pl.BlockSpec((tm, C2), lambda i: (i, 0)),
                  pl.BlockSpec((1, C2), lambda i: (0, 0)),
                  pl.BlockSpec((1, C2), lambda i: (0, 0))],
        out_specs=pl.BlockSpec((tm, C2), lambda i: (i, 0)),
        compiler_params=pltpu.CompilerParams(
            dimension_semantics=("parallel",),
            vmem_limit_bytes=_vmem_limit_bytes()),
    )(y2, s2, t2)
    return out.reshape(R, C)


# ------------------------------------------------------------------ Bridge glue

def _bn_affine_from_stats(s, ss, gamma, beta, count, eps):
    mean = s[0] / count
    var = jnp.maximum(ss[0] / count - mean * mean, 0.0)   # biased (training-mode) var
    scale = gamma * lax.rsqrt(var + eps)
    shift = beta - mean * scale
    return scale, shift


def bridge_forward(x_nchw, p, eps=1e-5):
    N, Cin, H, W = x_nchw.shape
    M = H * W
    # TODO(synk): drop this boundary transpose if the surrounding model is NHWC.
    x = jnp.transpose(x_nchw, (0, 2, 3, 1)).reshape(N, M, Cin)     # NCHW -> NHWC-flat

    # ConvBlock 1: conv + fused batch-stat reduction (bias skipped: cancels in BN).
    y1, s1, ss1 = pallas_conv3x3_bn_stats(x, p['c1_w'], None, None,
                                          H=H, W=W, apply_affine=False)
    sc1, sh1 = _bn_affine_from_stats(s1, ss1, p['bn1_g'], p['bn1_b'], N * M, eps)

    # ConvBlock 2: block-1's BN-affine + ReLU fused into this conv's input load.
    y2, s2, ss2 = pallas_conv3x3_bn_stats(y1, p['c2_w'], sc1, sh1,
                                          H=H, W=W, apply_affine=True)
    sc2, sh2 = _bn_affine_from_stats(s2, ss2, p['bn2_g'], p['bn2_b'], N * M, eps)

    Cout = p['c2_w'].shape[0]
    out = pallas_affine_relu(y2.reshape(N * M, Cout), sc2, sh2)
    return jnp.transpose(out.reshape(N, H, W, Cout), (0, 3, 1, 2))  # back to NCHW


# --------------------------------------------------------- pure-JAX reference

def reference_forward(x, p, eps=1e-5):
    def block(x, w, b, g, be):
        y = lax.conv_general_dilated(x, w, (1, 1), ((1, 1), (1, 1)),
                                     dimension_numbers=('NCHW', 'OIHW', 'NCHW'))
        y = y + b[None, :, None, None]
        m = jnp.mean(y, axis=(0, 2, 3), keepdims=True)
        v = jnp.mean((y - m) ** 2, axis=(0, 2, 3), keepdims=True)
        y = (y - m) * lax.rsqrt(v + eps) * g[None, :, None, None] + be[None, :, None, None]
        return jnp.maximum(y, 0.0)

    x = block(x, p['c1_w'], p['c1_b'], p['bn1_g'], p['bn1_b'])
    x = block(x, p['c2_w'], p['c2_b'], p['bn2_g'], p['bn2_b'])
    return x


# ------------------------------------------------------------------------ main

if __name__ == "__main__":
    key = jax.random.PRNGKey(0)
    N = 2
    in_channels, out_channels = 16, 8
    H = W = 16

    ks = jax.random.split(key, 9)
    p = {
        'c1_w':  0.1 * jax.random.normal(ks[0], (out_channels, in_channels, 3, 3), jnp.float32),
        'c1_b':  0.1 * jax.random.normal(ks[1], (out_channels,), jnp.float32),
        'bn1_g': 1.0 + 0.1 * jax.random.normal(ks[2], (out_channels,), jnp.float32),
        'bn1_b': 0.1 * jax.random.normal(ks[3], (out_channels,), jnp.float32),
        'c2_w':  0.1 * jax.random.normal(ks[4], (out_channels, out_channels, 3, 3), jnp.float32),
        'c2_b':  0.1 * jax.random.normal(ks[5], (out_channels,), jnp.float32),
        'bn2_g': 1.0 + 0.1 * jax.random.normal(ks[6], (out_channels,), jnp.float32),
        'bn2_b': 0.1 * jax.random.normal(ks[7], (out_channels,), jnp.float32),
    }
    x = jax.random.normal(ks[8], (N, in_channels, H, W), jnp.float32)

    out = jax.block_until_ready(jax.jit(bridge_forward)(x, p))
    ref = reference_forward(x, p)

    assert out.shape == ref.shape == (N, out_channels, H, W)
    # bf16 MXU operands + bf16 inter-block activations set the tolerance here
    # (the all-f32 variant of this kernel held 1e-4).
    max_err = float(jnp.max(jnp.abs(out - ref)))
    assert jnp.allclose(out, ref, atol=8e-2, rtol=8e-2), max_err
    print("KERNEL_OK")
</pallas_src>

<mosaic_0001>
module attributes {stable_mosaic.version = 11 : i64} {
  func.func @_conv3x3_bn_stats_kernel(%arg0: i32, %arg1: i32, %arg2: memref<1x256x16xf32, #tpu.memory_space<vmem>>, %arg3: memref<144x8xbf16, #tpu.memory_space<vmem>>, %arg4: memref<1x16xf32, #tpu.memory_space<vmem>>, %arg5: memref<1x16xf32, #tpu.memory_space<vmem>>, %arg6: memref<1x256x8xbf16, #tpu.memory_space<vmem>>, %arg7: memref<1x8xf32, #tpu.memory_space<vmem>>, %arg8: memref<1x8xf32, #tpu.memory_space<vmem>>, %arg9: memref<320x16xbf16, #tpu.memory_space<vmem>>, %arg10: memref<320x16xbf16, #tpu.memory_space<vmem>>, %arg11: memref<320x16xbf16, #tpu.memory_space<vmem>>) attributes {dimension_semantics = [#tpu.dimension_semantics<parallel>, #tpu.dimension_semantics<arbitrary>], iteration_bounds = array<i64: 1, 2>, scalar_prefetch = 0 : i64, scratch_operands = 3 : i64, tpu.core_type = #tpu.core_type<tc>, window_params = [{transform_indices = @transform_0, window_bounds = array<i64: 1, 256, 16>}, {transform_indices = @transform_1, window_bounds = array<i64: 144, 8>}, {pipeline_mode = #tpu.pipeline_mode<synchronous>, transform_indices = @transform_2, window_bounds = array<i64: 1, 16>}, {pipeline_mode = #tpu.pipeline_mode<synchronous>, transform_indices = @transform_3, window_bounds = array<i64: 1, 16>}, {transform_indices = @transform_4, window_bounds = array<i64: 1, 256, 8>}, {transform_indices = @transform_5, window_bounds = array<i64: 1, 8>}, {transform_indices = @transform_6, window_bounds = array<i64: 1, 8>}]} {
    %c0_i32 = arith.constant 0 : i32
    %0 = arith.cmpi eq, %arg1, %c0_i32 : i32
    %1 = arith.extui %0 : i1 to i32
    %c0_i32_0 = arith.constant 0 : i32
    %2 = arith.cmpi ne, %1, %c0_i32_0 : i32
    scf.if %2 {
      %cst_62 = arith.constant 0.000000e+00 : bf16
      %99 = vector.broadcast %cst_62 : bf16 to vector<32x16xbf16>
      %c0_63 = arith.constant 0 : index
      %c0_64 = arith.constant 0 : index
      %100 = vector.load %arg9[%c0_63, %c0_64] : memref<320x16xbf16, #tpu.memory_space<vmem>>, vector<32x16xbf16>
      tpu.vector_store %arg9[%c0_63, %c0_64], %99 {strides = array<i32>} : memref<320x16xbf16, #tpu.memory_space<vmem>>, vector<32x16xbf16>,
      %c288 = arith.constant 288 : index
      %c0_65 = arith.constant 0 : index
      %101 = vector.load %arg9[%c288, %c0_65] : memref<320x16xbf16, #tpu.memory_space<vmem>>, vector<32x16xbf16>
      tpu.vector_store %arg9[%c288, %c0_65], %99 {strides = array<i32>} : memref<320x16xbf16, #tpu.memory_space<vmem>>, vector<32x16xbf16>,
      %c0_66 = arith.constant 0 : index
      %c0_67 = arith.constant 0 : index
      %102 = vector.load %arg10[%c0_66, %c0_67] : memref<320x16xbf16, #tpu.memory_space<vmem>>, vector<32x16xbf16>
      tpu.vector_store %arg10[%c0_66, %c0_67], %99 {strides = array<i32>} : memref<320x16xbf16, #tpu.memory_space<vmem>>, vector<32x16xbf16>,
      %c288_68 = arith.constant 288 : index
      %c0_69 = arith.constant 0 : index
      %103 = vector.load %arg10[%c288_68, %c0_69] : memref<320x16xbf16, #tpu.memory_space<vmem>>, vector<32x16xbf16>
      tpu.vector_store %arg10[%c288_68, %c0_69], %99 {strides = array<i32>} : memref<320x16xbf16, #tpu.memory_space<vmem>>, vector<32x16xbf16>,
      %c0_70 = arith.constant 0 : index
      %c0_71 = arith.constant 0 : index
      %104 = vector.load %arg11[%c0_70, %c0_71] : memref<320x16xbf16, #tpu.memory_space<vmem>>, vector<32x16xbf16>
      tpu.vector_store %arg11[%c0_70, %c0_71], %99 {strides = array<i32>} : memref<320x16xbf16, #tpu.memory_space<vmem>>, vector<32x16xbf16>,
      %c288_72 = arith.constant 288 : index
      %c0_73 = arith.constant 0 : index
      %105 = vector.load %arg11[%c288_72, %c0_73] : memref<320x16xbf16, #tpu.memory_space<vmem>>, vector<32x16xbf16>
      tpu.vector_store %arg11[%c288_72, %c0_73], %99 {strides = array<i32>} : memref<320x16xbf16, #tpu.memory_space<vmem>>, vector<32x16xbf16>,
    } else {
    }
    %c0_i32_1 = arith.constant 0 : i32
    %3 = arith.cmpi eq, %arg1, %c0_i32_1 : i32
    %4 = arith.extui %3 : i1 to i32
    %c0_i32_2 = arith.constant 0 : i32
    %5 = arith.cmpi ne, %4, %c0_i32_2 : i32
    scf.if %5 {
      %cst_62 = arith.constant 0.000000e+00 : f32
      %99 = vector.broadcast %cst_62 : f32 to vector<1x8xf32>
      %c0_63 = arith.constant 0 : index
      %c0_64 = arith.constant 0 : index
      %100 = vector.load %arg7[%c0_63, %c0_64] : memref<1x8xf32, #tpu.memory_space<vmem>>, vector<1x8xf32>
      tpu.vector_store %arg7[%c0_63, %c0_64], %99 {strides = array<i32>} : memref<1x8xf32, #tpu.memory_space<vmem>>, vector<1x8xf32>,
      %cst_65 = arith.constant 0.000000e+00 : f32
      %101 = vector.broadcast %cst_65 : f32 to vector<1x8xf32>
      %c0_66 = arith.constant 0 : index
      %c0_67 = arith.constant 0 : index
      %102 = vector.load %arg8[%c0_66, %c0_67] : memref<1x8xf32, #tpu.memory_space<vmem>>, vector<1x8xf32>
      tpu.vector_store %arg8[%c0_66, %c0_67], %101 {strides = array<i32>} : memref<1x8xf32, #tpu.memory_space<vmem>>, vector<1x8xf32>,
    } else {
    }
    %c0 = arith.constant 0 : index
    %c0_3 = arith.constant 0 : index
    %c0_4 = arith.constant 0 : index
    %6 = vector.load %arg2[%c0, %c0_3, %c0_4] : memref<1x256x16xf32, #tpu.memory_space<vmem>>, vector<1x256x16xf32>
    %7 = vector.shape_cast %6 : vector<1x256x16xf32> to vector<256x16xf32>
    %8 = tpu.iota {dimensions = array<i32: 0>} : vector<256x1xi32>
    %c16_i32 = arith.constant 16 : i32
    %c0_i32_5 = arith.constant 0 : i32
    %9 = arith.cmpi eq, %c16_i32, %c0_i32_5 : i32
    %c1_i32 = arith.constant 1 : i32
    %10 = arith.select %9, %c1_i32, %c16_i32 : i32
    %11 = vector.broadcast %10 : i32 to vector<256x1xi32>
    %12 = arith.remsi %8, %11 : vector<256x1xi32>
    %c0_i32_6 = arith.constant 0 : i32
    %13 = vector.broadcast %c0_i32_6 : i32 to vector<256x1xi32>
    %14 = arith.cmpi ne, %12, %13 : vector<256x1xi32>
    %c0_i32_7 = arith.constant 0 : i32
    %15 = vector.broadcast %c0_i32_7 : i32 to vector<256x1xi32>
    %16 = arith.cmpi slt, %12, %15 : vector<256x1xi32>
    %c0_i32_8 = arith.constant 0 : i32
    %17 = arith.cmpi slt, %10, %c0_i32_8 : i32
    %18 = vector.broadcast %17 : i1 to vector<256x1xi1>
    %19 = vector.broadcast %18 : vector<256x1xi1> to vector<256x1xi1>
    %20 = arith.xori %16, %19 : vector<256x1xi1>
    %21 = arith.andi %20, %14 : vector<256x1xi1>
    %22 = vector.broadcast %10 : i32 to vector<256x1xi32>
    %23 = arith.addi %12, %22 : vector<256x1xi32>
    %24 = arith.select %21, %23, %12 : vector<256x1xi1>, vector<256x1xi32>
    %c15_i32 = arith.constant 15 : i32
    %25 = vector.broadcast %c15_i32 : i32 to vector<256x1xi32>
    %26 = arith.cmpi slt, %24, %25 : vector<256x1xi32>
    %27 = arith.extui %26 : vector<256x1xi1> to vector<256x1xi32>
    %28 = arith.sitofp %27 : vector<256x1xi32> to vector<256x1xf32>
    %c0_i32_9 = arith.constant 0 : i32
    %29 = vector.broadcast %c0_i32_9 : i32 to vector<256x1xi32>
    %30 = arith.cmpi sgt, %24, %29 : vector<256x1xi32>
    %31 = arith.extui %30 : vector<256x1xi1> to vector<256x1xi32>
    %32 = arith.sitofp %31 : vector<256x1xi32> to vector<256x1xf32>
    %33 = arith.truncf %7 : vector<256x16xf32> to vector<256x16xbf16>
    %c32 = arith.constant 32 : index
    %c0_10 = arith.constant 0 : index
    %34 = vector.load %arg9[%c32, %c0_10] : memref<320x16xbf16, #tpu.memory_space<vmem>>, vector<256x16xbf16>
    tpu.vector_store %arg9[%c32, %c0_10], %33 {strides = array<i32>} : memref<320x16xbf16, #tpu.memory_space<vmem>>, vector<256x16xbf16>,
    %35 = vector.broadcast %28 : vector<256x1xf32> to vector<256x16xf32>
    %36 = arith.mulf %7, %35 : vector<256x16xf32>
    %37 = arith.truncf %36 : vector<256x16xf32> to vector<256x16xbf16>
    %c32_11 = arith.constant 32 : index
    %c0_12 = arith.constant 0 : index
    %38 = vector.load %arg10[%c32_11, %c0_12] : memref<320x16xbf16, #tpu.memory_space<vmem>>, vector<256x16xbf16>
    tpu.vector_store %arg10[%c32_11, %c0_12], %37 {strides = array<i32>} : memref<320x16xbf16, #tpu.memory_space<vmem>>, vector<256x16xbf16>,
    %39 = vector.broadcast %32 : vector<256x1xf32> to vector<256x16xf32>
    %40 = arith.mulf %7, %39 : vector<256x16xf32>
    %41 = arith.truncf %40 : vector<256x16xf32> to vector<256x16xbf16>
    %c32_13 = arith.constant 32 : index
    %c0_14 = arith.constant 0 : index
    %42 = vector.load %arg11[%c32_13, %c0_14] : memref<320x16xbf16, #tpu.memory_space<vmem>>, vector<256x16xbf16>
    tpu.vector_store %arg11[%c32_13, %c0_14], %41 {strides = array<i32>} : memref<320x16xbf16, #tpu.memory_space<vmem>>, vector<256x16xbf16>,
    %cst = arith.constant 0.000000e+00 : f32
    %43 = vector.broadcast %cst : f32 to vector<1x8xf32>
    %cst_15 = arith.constant 0.000000e+00 : f32
    %44 = vector.broadcast %cst_15 : f32 to vector<1x8xf32>
    %cst_16 = arith.constant 0.000000e+00 : f32
    %45 = vector.broadcast %cst_16 : f32 to vector<256x8xf32>
    %c15 = arith.constant 15 : index
    %c0_17 = arith.constant 0 : index
    %46 = vector.load %arg10[%c15, %c0_17] : memref<320x16xbf16, #tpu.memory_space<vmem>>, vector<256x16xbf16>
    %c0_18 = arith.constant 0 : index
    %c0_19 = arith.constant 0 : index
    %47 = vector.load %arg3[%c0_18, %c0_19] : memref<144x8xbf16, #tpu.memory_space<vmem>>, vector<16x8xbf16>
    %cst_20 = arith.constant dense<0.000000e+00> : vector<256x8xf32>
    %48 = tpu.matmul %46, %47, %cst_20 {dimension_numbers = #tpu.dot_dimension_numbers<[1], [0], [0], [1], [0, 0, 1, 1], [], []>} : vector<256x16xbf16>, vector<16x8xbf16>, vector<256x8xf32> -> vector<256x8xf32>
    %49 = arith.addf %45, %48 : vector<256x8xf32>
    %c16 = arith.constant 16 : index
    %c0_21 = arith.constant 0 : index
    %50 = vector.load %arg9[%c16, %c0_21] : memref<320x16xbf16, #tpu.memory_space<vmem>>, vector<256x16xbf16>
    %c16_22 = arith.constant 16 : index
    %c0_23 = arith.constant 0 : index
    %51 = vector.load %arg3[%c16_22, %c0_23] : memref<144x8xbf16, #tpu.memory_space<vmem>>, vector<16x8xbf16>
    %cst_24 = arith.constant dense<0.000000e+00> : vector<256x8xf32>
    %52 = tpu.matmul %50, %51, %cst_24 {dimension_numbers = #tpu.dot_dimension_numbers<[1], [0], [0], [1], [0, 0, 1, 1], [], []>} : vector<256x16xbf16>, vector<16x8xbf16>, vector<256x8xf32> -> vector<256x8xf32>
    %53 = arith.addf %49, %52 : vector<256x8xf32>
    %c17 = arith.constant 17 : index
    %c0_25 = arith.constant 0 : index
    %54 = vector.load %arg11[%c17, %c0_25] : memref<320x16xbf16, #tpu.memory_space<vmem>>, vector<256x16xbf16>
    %c32_26 = arith.constant 32 : index
    %c0_27 = arith.constant 0 : index
    %55 = vector.load %arg3[%c32_26, %c0_27] : memref<144x8xbf16, #tpu.memory_space<vmem>>, vector<16x8xbf16>
    %cst_28 = arith.constant dense<0.000000e+00> : vector<256x8xf32>
    %56 = tpu.matmul %54, %55, %cst_28 {dimension_numbers = #tpu.dot_dimension_numbers<[1], [0], [0], [1], [0, 0, 1, 1], [], []>} : vector<256x16xbf16>, vector<16x8xbf16>, vector<256x8xf32> -> vector<256x8xf32>
    %57 = arith.addf %53, %56 : vector<256x8xf32>
    %c31 = arith.constant 31 : index
    %c0_29 = arith.constant 0 : index
    %58 = vector.load %arg10[%c31, %c0_29] : memref<320x16xbf16, #tpu.memory_space<vmem>>, vector<256x16xbf16>
    %c48 = arith.constant 48 : index
    %c0_30 = arith.constant 0 : index
    %59 = vector.load %arg3[%c48, %c0_30] : memref<144x8xbf16, #tpu.memory_space<vmem>>, vector<16x8xbf16>
    %cst_31 = arith.constant dense<0.000000e+00> : vector<256x8xf32>
    %60 = tpu.matmul %58, %59, %cst_31 {dimension_numbers = #tpu.dot_dimension_numbers<[1], [0], [0], [1], [0, 0, 1, 1], [], []>} : vector<256x16xbf16>, vector<16x8xbf16>, vector<256x8xf32> -> vector<256x8xf32>
    %61 = arith.addf %57, %60 : vector<256x8xf32>
    %c32_32 = arith.constant 32 : index
    %c0_33 = arith.constant 0 : index
    %62 = vector.load %arg9[%c32_32, %c0_33] : memref<320x16xbf16, #tpu.memory_space<vmem>>, vector<256x16xbf16>
    %c64 = arith.constant 64 : index
    %c0_34 = arith.constant 0 : index
    %63 = vector.load %arg3[%c64, %c0_34] : memref<144x8xbf16, #tpu.memory_space<vmem>>, vector<16x8xbf16>
    %cst_35 = arith.constant dense<0.000000e+00> : vector<256x8xf32>
    %64 = tpu.matmul %62, %63, %cst_35 {dimension_numbers = #tpu.dot_dimension_numbers<[1], [0], [0], [1], [0, 0, 1, 1], [], []>} : vector<256x16xbf16>, vector<16x8xbf16>, vector<256x8xf32> -> vector<256x8xf32>
    %65 = arith.addf %61, %64 : vector<256x8xf32>
    %c33 = arith.constant 33 : index
    %c0_36 = arith.constant 0 : index
    %66 = vector.load %arg11[%c33, %c0_36] : memref<320x16xbf16, #tpu.memory_space<vmem>>, vector<256x16xbf16>
    %c80 = arith.constant 80 : index
    %c0_37 = arith.constant 0 : index
    %67 = vector.load %arg3[%c80, %c0_37] : memref<144x8xbf16, #tpu.memory_space<vmem>>, vector<16x8xbf16>
    %cst_38 = arith.constant dense<0.000000e+00> : vector<256x8xf32>
    %68 = tpu.matmul %66, %67, %cst_38 {dimension_numbers = #tpu.dot_dimension_numbers<[1], [0], [0], [1], [0, 0, 1, 1], [], []>} : vector<256x16xbf16>, vector<16x8xbf16>, vector<256x8xf32> -> vector<256x8xf32>
    %69 = arith.addf %65, %68 : vector<256x8xf32>
    %c47 = arith.constant 47 : index
    %c0_39 = arith.constant 0 : index
    %70 = vector.load %arg10[%c47, %c0_39] : memref<320x16xbf16, #tpu.memory_space<vmem>>, vector<256x16xbf16>
    %c96 = arith.constant 96 : index
    %c0_40 = arith.constant 0 : index
    %71 = vector.load %arg3[%c96, %c0_40] : memref<144x8xbf16, #tpu.memory_space<vmem>>, vector<16x8xbf16>
    %cst_41 = arith.constant dense<0.000000e+00> : vector<256x8xf32>
    %72 = tpu.matmul %70, %71, %cst_41 {dimension_numbers = #tpu.dot_dimension_numbers<[1], [0], [0], [1], [0, 0, 1, 1], [], []>} : vector<256x16xbf16>, vector<16x8xbf16>, vector<256x8xf32> -> vector<256x8xf32>
    %73 = arith.addf %69, %72 : vector<256x8xf32>
    %c48_42 = arith.constant 48 : index
    %c0_43 = arith.constant 0 : index
    %74 = vector.load %arg9[%c48_42, %c0_43] : memref<320x16xbf16, #tpu.memory_space<vmem>>, vector<256x16xbf16>
    %c112 = arith.constant 112 : index
    %c0_44 = arith.constant 0 : index
    %75 = vector.load %arg3[%c112, %c0_44] : memref<144x8xbf16, #tpu.memory_space<vmem>>, vector<16x8xbf16>
    %cst_45 = arith.constant dense<0.000000e+00> : vector<256x8xf32>
    %76 = tpu.matmul %74, %75, %cst_45 {dimension_numbers = #tpu.dot_dimension_numbers<[1], [0], [0], [1], [0, 0, 1, 1], [], []>} : vector<256x16xbf16>, vector<16x8xbf16>, vector<256x8xf32> -> vector<256x8xf32>
    %77 = arith.addf %73, %76 : vector<256x8xf32>
    %c49 = arith.constant 49 : index
    %c0_46 = arith.constant 0 : index
    %78 = vector.load %arg11[%c49, %c0_46] : memref<320x16xbf16, #tpu.memory_space<vmem>>, vector<256x16xbf16>
    %c128 = arith.constant 128 : index
    %c0_47 = arith.constant 0 : index
    %79 = vector.load %arg3[%c128, %c0_47] : memref<144x8xbf16, #tpu.memory_space<vmem>>, vector<16x8xbf16>
    %cst_48 = arith.constant dense<0.000000e+00> : vector<256x8xf32>
    %80 = tpu.matmul %78, %79, %cst_48 {dimension_numbers = #tpu.dot_dimension_numbers<[1], [0], [0], [1], [0, 0, 1, 1], [], []>} : vector<256x16xbf16>, vector<16x8xbf16>, vector<256x8xf32> -> vector<256x8xf32>
    %81 = arith.addf %77, %80 : vector<256x8xf32>
    %82 = arith.truncf %81 : vector<256x8xf32> to vector<256x8xbf16>
    %c0_49 = arith.constant 0 : index
    %c0_50 = arith.constant 0 : index
    %c0_51 = arith.constant 0 : index
    %83 = vector.load %arg6[%c0_49, %c0_50, %c0_51] : memref<1x256x8xbf16, #tpu.memory_space<vmem>>, vector<1x256x8xbf16>
    %84 = vector.shape_cast %83 : vector<1x256x8xbf16> to vector<256x8xbf16>
    %85 = vector.shape_cast %82 : vector<256x8xbf16> to vector<1x256x8xbf16>
    tpu.vector_store %arg6[%c0_49, %c0_50, %c0_51], %85 {strides = array<i32>} : memref<1x256x8xbf16, #tpu.memory_space<vmem>>, vector<1x256x8xbf16>,
    %cst_52 = arith.constant dense<0.000000e+00> : vector<8xf32>
    %86 = vector.multi_reduction <add>, %81, %cst_52 [0] : vector<256x8xf32> to vector<8xf32>
    %87 = vector.shape_cast %86 : vector<8xf32> to vector<1x8xf32>
    %88 = arith.addf %43, %87 : vector<1x8xf32>
    %89 = arith.mulf %81, %81 : vector<256x8xf32>
    %cst_53 = arith.constant dense<0.000000e+00> : vector<8xf32>
    %90 = vector.multi_reduction <add>, %89, %cst_53 [0] : vector<256x8xf32> to vector<8xf32>
    %91 = vector.shape_cast %90 : vector<8xf32> to vector<1x8xf32>
    %92 = arith.addf %44, %91 : vector<1x8xf32>
    %c0_54 = arith.constant 0 : index
    %c0_55 = arith.constant 0 : index
    %93 = vector.load %arg7[%c0_54, %c0_55] : memref<1x8xf32, #tpu.memory_space<vmem>>, vector<1x8xf32>
    %94 = arith.addf %93, %88 : vector<1x8xf32>
    %c0_56 = arith.constant 0 : index
    %c0_57 = arith.constant 0 : index
    %95 = vector.load %arg7[%c0_56, %c0_57] : memref<1x8xf32, #tpu.memory_space<vmem>>, vector<1x8xf32>
    tpu.vector_store %arg7[%c0_56, %c0_57], %94 {strides = array<i32>} : memref<1x8xf32, #tpu.memory_space<vmem>>, vector<1x8xf32>,
    %c0_58 = arith.constant 0 : index
    %c0_59 = arith.constant 0 : index
    %96 = vector.load %arg8[%c0_58, %c0_59] : memref<1x8xf32, #tpu.memory_space<vmem>>, vector<1x8xf32>
    %97 = arith.addf %96, %92 : vector<1x8xf32>
    %c0_60 = arith.constant 0 : index
    %c0_61 = arith.constant 0 : index
    %98 = vector.load %arg8[%c0_60, %c0_61] : memref<1x8xf32, #tpu.memory_space<vmem>>, vector<1x8xf32>
    tpu.vector_store %arg8[%c0_60, %c0_61], %97 {strides = array<i32>} : memref<1x8xf32, #tpu.memory_space<vmem>>, vector<1x8xf32>,
    return
  }
  func.func @transform_0(%arg0: i32, %arg1: i32) -> (i32, i32, i32) {
    %c0_i32 = arith.constant 0 : i32
    %c0_i32_0 = arith.constant 0 : i32
    %c0_i32_1 = arith.constant 0 : i32
    return %arg1, %c0_i32, %c0_i32_0 : i32, i32, i32
  }
  func.func @transform_1(%arg0: i32, %arg1: i32) -> (i32, i32) {
    %c0_i32 = arith.constant 0 : i32
    %c0_i32_0 = arith.constant 0 : i32
    return %c0_i32, %arg0 : i32, i32
  }
  func.func @transform_2(%arg0: i32, %arg1: i32) -> (i32, i32) {
    %c0_i32 = arith.constant 0 : i32
    %c0_i32_0 = arith.constant 0 : i32
    %c0_i32_1 = arith.constant 0 : i32
    return %c0_i32, %c0_i32_0 : i32, i32
  }
  func.func @transform_3(%arg0: i32, %arg1: i32) -> (i32, i32) {
    %c0_i32 = arith.constant 0 : i32
    %c0_i32_0 = arith.constant 0 : i32
    %c0_i32_1 = arith.constant 0 : i32
    return %c0_i32, %c0_i32_0 : i32, i32
  }
  func.func @transform_4(%arg0: i32, %arg1: i32) -> (i32, i32, i32) {
    %c0_i32 = arith.constant 0 : i32
    %c0_i32_0 = arith.constant 0 : i32
    return %arg1, %c0_i32, %arg0 : i32, i32, i32
  }
  func.func @transform_5(%arg0: i32, %arg1: i32) -> (i32, i32) {
    %c0_i32 = arith.constant 0 : i32
    %c0_i32_0 = arith.constant 0 : i32
    return %c0_i32, %arg0 : i32, i32
  }
  func.func @transform_6(%arg0: i32, %arg1: i32) -> (i32, i32) {
    %c0_i32 = arith.constant 0 : i32
    %c0_i32_0 = arith.constant 0 : i32
    return %c0_i32, %arg0 : i32, i32
  }
}

module attributes {stable_mosaic.version = 11 : i64} {
  func.func @_conv3x3_bn_stats_kernel(%arg0: i32, %arg1: i32, %arg2: memref<1x256x8xbf16, #tpu.memory_space<vmem>>, %arg3: memref<72x8xbf16, #tpu.memory_space<vmem>>, %arg4: memref<1x8xf32, #tpu.memory_space<vmem>>, %arg5: memref<1x8xf32, #tpu.memory_space<vmem>>, %arg6: memref<1x256x8xbf16, #tpu.memory_space<vmem>>, %arg7: memref<1x8xf32, #tpu.memory_space<vmem>>, %arg8: memref<1x8xf32, #tpu.memory_space<vmem>>, %arg9: memref<320x8xbf16, #tpu.memory_space<vmem>>, %arg10: memref<320x8xbf16, #tpu.memory_space<vmem>>, %arg11: memref<320x8xbf16, #tpu.memory_space<vmem>>) attributes {dimension_semantics = [#tpu.dimension_semantics<parallel>, #tpu.dimension_semantics<arbitrary>], iteration_bounds = array<i64: 1, 2>, scalar_prefetch = 0 : i64, scratch_operands = 3 : i64, tpu.core_type = #tpu.core_type<tc>, window_params = [{transform_indices = @transform_0, window_bounds = array<i64: 1, 256, 8>}, {transform_indices = @transform_1, window_bounds = array<i64: 72, 8>}, {pipeline_mode = #tpu.pipeline_mode<synchronous>, transform_indices = @transform_2, window_bounds = array<i64: 1, 8>}, {pipeline_mode = #tpu.pipeline_mode<synchronous>, transform_indices = @transform_3, window_bounds = array<i64: 1, 8>}, {transform_indices = @transform_4, window_bounds = array<i64: 1, 256, 8>}, {transform_indices = @transform_5, window_bounds = array<i64: 1, 8>}, {transform_indices = @transform_6, window_bounds = array<i64: 1, 8>}]} {
    %c0_i32 = arith.constant 0 : i32
    %0 = arith.cmpi eq, %arg1, %c0_i32 : i32
    %1 = arith.extui %0 : i1 to i32
    %c0_i32_0 = arith.constant 0 : i32
    %2 = arith.cmpi ne, %1, %c0_i32_0 : i32
    scf.if %2 {
      %cst_67 = arith.constant 0.000000e+00 : bf16
      %108 = vector.broadcast %cst_67 : bf16 to vector<32x8xbf16>
      %c0_68 = arith.constant 0 : index
      %c0_69 = arith.constant 0 : index
      %109 = vector.load %arg9[%c0_68, %c0_69] : memref<320x8xbf16, #tpu.memory_space<vmem>>, vector<32x8xbf16>
      tpu.vector_store %arg9[%c0_68, %c0_69], %108 {strides = array<i32>} : memref<320x8xbf16, #tpu.memory_space<vmem>>, vector<32x8xbf16>,
      %c288 = arith.constant 288 : index
      %c0_70 = arith.constant 0 : index
      %110 = vector.load %arg9[%c288, %c0_70] : memref<320x8xbf16, #tpu.memory_space<vmem>>, vector<32x8xbf16>
      tpu.vector_store %arg9[%c288, %c0_70], %108 {strides = array<i32>} : memref<320x8xbf16, #tpu.memory_space<vmem>>, vector<32x8xbf16>,
      %c0_71 = arith.constant 0 : index
      %c0_72 = arith.constant 0 : index
      %111 = vector.load %arg10[%c0_71, %c0_72] : memref<320x8xbf16, #tpu.memory_space<vmem>>, vector<32x8xbf16>
      tpu.vector_store %arg10[%c0_71, %c0_72], %108 {strides = array<i32>} : memref<320x8xbf16, #tpu.memory_space<vmem>>, vector<32x8xbf16>,
      %c288_73 = arith.constant 288 : index
      %c0_74 = arith.constant 0 : index
      %112 = vector.load %arg10[%c288_73, %c0_74] : memref<320x8xbf16, #tpu.memory_space<vmem>>, vector<32x8xbf16>
      tpu.vector_store %arg10[%c288_73, %c0_74], %108 {strides = array<i32>} : memref<320x8xbf16, #tpu.memory_space<vmem>>, vector<32x8xbf16>,
      %c0_75 = arith.constant 0 : index
      %c0_76 = arith.constant 0 : index
      %113 = vector.load %arg11[%c0_75, %c0_76] : memref<320x8xbf16, #tpu.memory_space<vmem>>, vector<32x8xbf16>
      tpu.vector_store %arg11[%c0_75, %c0_76], %108 {strides = array<i32>} : memref<320x8xbf16, #tpu.memory_space<vmem>>, vector<32x8xbf16>,
      %c288_77 = arith.constant 288 : index
      %c0_78 = arith.constant 0 : index
      %114 = vector.load %arg11[%c288_77, %c0_78] : memref<320x8xbf16, #tpu.memory_space<vmem>>, vector<32x8xbf16>
      tpu.vector_store %arg11[%c288_77, %c0_78], %108 {strides = array<i32>} : memref<320x8xbf16, #tpu.memory_space<vmem>>, vector<32x8xbf16>,
    } else {
    }
    %c0_i32_1 = arith.constant 0 : i32
    %3 = arith.cmpi eq, %arg1, %c0_i32_1 : i32
    %4 = arith.extui %3 : i1 to i32
    %c0_i32_2 = arith.constant 0 : i32
    %5 = arith.cmpi ne, %4, %c0_i32_2 : i32
    scf.if %5 {
      %cst_67 = arith.constant 0.000000e+00 : f32
      %108 = vector.broadcast %cst_67 : f32 to vector<1x8xf32>
      %c0_68 = arith.constant 0 : index
      %c0_69 = arith.constant 0 : index
      %109 = vector.load %arg7[%c0_68, %c0_69] : memref<1x8xf32, #tpu.memory_space<vmem>>, vector<1x8xf32>
      tpu.vector_store %arg7[%c0_68, %c0_69], %108 {strides = array<i32>} : memref<1x8xf32, #tpu.memory_space<vmem>>, vector<1x8xf32>,
      %cst_70 = arith.constant 0.000000e+00 : f32
      %110 = vector.broadcast %cst_70 : f32 to vector<1x8xf32>
      %c0_71 = arith.constant 0 : index
      %c0_72 = arith.constant 0 : index
      %111 = vector.load %arg8[%c0_71, %c0_72] : memref<1x8xf32, #tpu.memory_space<vmem>>, vector<1x8xf32>
      tpu.vector_store %arg8[%c0_71, %c0_72], %110 {strides = array<i32>} : memref<1x8xf32, #tpu.memory_space<vmem>>, vector<1x8xf32>,
    } else {
    }
    %c0 = arith.constant 0 : index
    %c0_3 = arith.constant 0 : index
    %c0_4 = arith.constant 0 : index
    %6 = vector.load %arg2[%c0, %c0_3, %c0_4] : memref<1x256x8xbf16, #tpu.memory_space<vmem>>, vector<1x256x8xbf16>
    %7 = vector.shape_cast %6 : vector<1x256x8xbf16> to vector<256x8xbf16>
    %8 = arith.extf %7 : vector<256x8xbf16> to vector<256x8xf32>
    %c0_5 = arith.constant 0 : index
    %c0_6 = arith.constant 0 : index
    %9 = vector.load %arg4[%c0_5, %c0_6] : memref<1x8xf32, #tpu.memory_space<vmem>>, vector<1x8xf32>
    %10 = vector.broadcast %9 : vector<1x8xf32> to vector<256x8xf32>
    %11 = arith.mulf %8, %10 : vector<256x8xf32>
    %c0_7 = arith.constant 0 : index
    %c0_8 = arith.constant 0 : index
    %12 = vector.load %arg5[%c0_7, %c0_8] : memref<1x8xf32, #tpu.memory_space<vmem>>, vector<1x8xf32>
    %13 = vector.broadcast %12 : vector<1x8xf32> to vector<256x8xf32>
    %14 = arith.addf %11, %13 : vector<256x8xf32>
    %cst = arith.constant 0.000000e+00 : f32
    %15 = vector.broadcast %cst : f32 to vector<256x8xf32>
    %16 = arith.maximumf %14, %15 : vector<256x8xf32>
    %17 = tpu.iota {dimensions = array<i32: 0>} : vector<256x1xi32>
    %c16_i32 = arith.constant 16 : i32
    %c0_i32_9 = arith.constant 0 : i32
    %18 = arith.cmpi eq, %c16_i32, %c0_i32_9 : i32
    %c1_i32 = arith.constant 1 : i32
    %19 = arith.select %18, %c1_i32, %c16_i32 : i32
    %20 = vector.broadcast %19 : i32 to vector<256x1xi32>
    %21 = arith.remsi %17, %20 : vector<256x1xi32>
    %c0_i32_10 = arith.constant 0 : i32
    %22 = vector.broadcast %c0_i32_10 : i32 to vector<256x1xi32>
    %23 = arith.cmpi ne, %21, %22 : vector<256x1xi32>
    %c0_i32_11 = arith.constant 0 : i32
    %24 = vector.broadcast %c0_i32_11 : i32 to vector<256x1xi32>
    %25 = arith.cmpi slt, %21, %24 : vector<256x1xi32>
    %c0_i32_12 = arith.constant 0 : i32
    %26 = arith.cmpi slt, %19, %c0_i32_12 : i32
    %27 = vector.broadcast %26 : i1 to vector<256x1xi1>
    %28 = vector.broadcast %27 : vector<256x1xi1> to vector<256x1xi1>
    %29 = arith.xori %25, %28 : vector<256x1xi1>
    %30 = arith.andi %29, %23 : vector<256x1xi1>
    %31 = vector.broadcast %19 : i32 to vector<256x1xi32>
    %32 = arith.addi %21, %31 : vector<256x1xi32>
    %33 = arith.select %30, %32, %21 : vector<256x1xi1>, vector<256x1xi32>
    %c15_i32 = arith.constant 15 : i32
    %34 = vector.broadcast %c15_i32 : i32 to vector<256x1xi32>
    %35 = arith.cmpi slt, %33, %34 : vector<256x1xi32>
    %36 = arith.extui %35 : vector<256x1xi1> to vector<256x1xi32>
    %37 = arith.sitofp %36 : vector<256x1xi32> to vector<256x1xf32>
    %c0_i32_13 = arith.constant 0 : i32
    %38 = vector.broadcast %c0_i32_13 : i32 to vector<256x1xi32>
    %39 = arith.cmpi sgt, %33, %38 : vector<256x1xi32>
    %40 = arith.extui %39 : vector<256x1xi1> to vector<256x1xi32>
    %41 = arith.sitofp %40 : vector<256x1xi32> to vector<256x1xf32>
    %42 = arith.truncf %16 : vector<256x8xf32> to vector<256x8xbf16>
    %c32 = arith.constant 32 : index
    %c0_14 = arith.constant 0 : index
    %43 = vector.load %arg9[%c32, %c0_14] : memref<320x8xbf16, #tpu.memory_space<vmem>>, vector<256x8xbf16>
    tpu.vector_store %arg9[%c32, %c0_14], %42 {strides = array<i32>} : memref<320x8xbf16, #tpu.memory_space<vmem>>, vector<256x8xbf16>,
    %44 = vector.broadcast %37 : vector<256x1xf32> to vector<256x8xf32>
    %45 = arith.mulf %16, %44 : vector<256x8xf32>
    %46 = arith.truncf %45 : vector<256x8xf32> to vector<256x8xbf16>
    %c32_15 = arith.constant 32 : index
    %c0_16 = arith.constant 0 : index
    %47 = vector.load %arg10[%c32_15, %c0_16] : memref<320x8xbf16, #tpu.memory_space<vmem>>, vector<256x8xbf16>
    tpu.vector_store %arg10[%c32_15, %c0_16], %46 {strides = array<i32>} : memref<320x8xbf16, #tpu.memory_space<vmem>>, vector<256x8xbf16>,
    %48 = vector.broadcast %41 : vector<256x1xf32> to vector<256x8xf32>
    %49 = arith.mulf %16, %48 : vector<256x8xf32>
    %50 = arith.truncf %49 : vector<256x8xf32> to vector<256x8xbf16>
    %c32_17 = arith.constant 32 : index
    %c0_18 = arith.constant 0 : index
    %51 = vector.load %arg11[%c32_17, %c0_18] : memref<320x8xbf16, #tpu.memory_space<vmem>>, vector<256x8xbf16>
    tpu.vector_store %arg11[%c32_17, %c0_18], %50 {strides = array<i32>} : memref<320x8xbf16, #tpu.memory_space<vmem>>, vector<256x8xbf16>,
    %cst_19 = arith.constant 0.000000e+00 : f32
    %52 = vector.broadcast %cst_19 : f32 to vector<1x8xf32>
    %cst_20 = arith.constant 0.000000e+00 : f32
    %53 = vector.broadcast %cst_20 : f32 to vector<1x8xf32>
    %cst_21 = arith.constant 0.000000e+00 : f32
    %54 = vector.broadcast %cst_21 : f32 to vector<256x8xf32>
    %c15 = arith.constant 15 : index
    %c0_22 = arith.constant 0 : index
    %55 = vector.load %arg10[%c15, %c0_22] : memref<320x8xbf16, #tpu.memory_space<vmem>>, vector<256x8xbf16>
    %c0_23 = arith.constant 0 : index
    %c0_24 = arith.constant 0 : index
    %56 = vector.load %arg3[%c0_23, %c0_24] : memref<72x8xbf16, #tpu.memory_space<vmem>>, vector<8x8xbf16>
    %cst_25 = arith.constant dense<0.000000e+00> : vector<256x8xf32>
    %57 = tpu.matmul %55, %56, %cst_25 {dimension_numbers = #tpu.dot_dimension_numbers<[1], [0], [0], [1], [0, 0, 1, 1], [], []>} : vector<256x8xbf16>, vector<8x8xbf16>, vector<256x8xf32> -> vector<256x8xf32>
    %58 = arith.addf %54, %57 : vector<256x8xf32>
    %c16 = arith.constant 16 : index
    %c0_26 = arith.constant 0 : index
    %59 = vector.load %arg9[%c16, %c0_26] : memref<320x8xbf16, #tpu.memory_space<vmem>>, vector<256x8xbf16>
    %c8 = arith.constant 8 : index
    %c0_27 = arith.constant 0 : index
    %60 = vector.load %arg3[%c8, %c0_27] : memref<72x8xbf16, #tpu.memory_space<vmem>>, vector<8x8xbf16>
    %cst_28 = arith.constant dense<0.000000e+00> : vector<256x8xf32>
    %61 = tpu.matmul %59, %60, %cst_28 {dimension_numbers = #tpu.dot_dimension_numbers<[1], [0], [0], [1], [0, 0, 1, 1], [], []>} : vector<256x8xbf16>, vector<8x8xbf16>, vector<256x8xf32> -> vector<256x8xf32>
    %62 = arith.addf %58, %61 : vector<256x8xf32>
    %c17 = arith.constant 17 : index
    %c0_29 = arith.constant 0 : index
    %63 = vector.load %arg11[%c17, %c0_29] : memref<320x8xbf16, #tpu.memory_space<vmem>>, vector<256x8xbf16>
    %c16_30 = arith.constant 16 : index
    %c0_31 = arith.constant 0 : index
    %64 = vector.load %arg3[%c16_30, %c0_31] : memref<72x8xbf16, #tpu.memory_space<vmem>>, vector<8x8xbf16>
    %cst_32 = arith.constant dense<0.000000e+00> : vector<256x8xf32>
    %65 = tpu.matmul %63, %64, %cst_32 {dimension_numbers = #tpu.dot_dimension_numbers<[1], [0], [0], [1], [0, 0, 1, 1], [], []>} : vector<256x8xbf16>, vector<8x8xbf16>, vector<256x8xf32> -> vector<256x8xf32>
    %66 = arith.addf %62, %65 : vector<256x8xf32>
    %c31 = arith.constant 31 : index
    %c0_33 = arith.constant 0 : index
    %67 = vector.load %arg10[%c31, %c0_33] : memref<320x8xbf16, #tpu.memory_space<vmem>>, vector<256x8xbf16>
    %c24 = arith.constant 24 : index
    %c0_34 = arith.constant 0 : index
    %68 = vector.load %arg3[%c24, %c0_34] : memref<72x8xbf16, #tpu.memory_space<vmem>>, vector<8x8xbf16>
    %cst_35 = arith.constant dense<0.000000e+00> : vector<256x8xf32>
    %69 = tpu.matmul %67, %68, %cst_35 {dimension_numbers = #tpu.dot_dimension_numbers<[1], [0], [0], [1], [0, 0, 1, 1], [], []>} : vector<256x8xbf16>, vector<8x8xbf16>, vector<256x8xf32> -> vector<256x8xf32>
    %70 = arith.addf %66, %69 : vector<256x8xf32>
    %c32_36 = arith.constant 32 : index
    %c0_37 = arith.constant 0 : index
    %71 = vector.load %arg9[%c32_36, %c0_37] : memref<320x8xbf16, #tpu.memory_space<vmem>>, vector<256x8xbf16>
    %c32_38 = arith.constant 32 : index
    %c0_39 = arith.constant 0 : index
    %72 = vector.load %arg3[%c32_38, %c0_39] : memref<72x8xbf16, #tpu.memory_space<vmem>>, vector<8x8xbf16>
    %cst_40 = arith.constant dense<0.000000e+00> : vector<256x8xf32>
    %73 = tpu.matmul %71, %72, %cst_40 {dimension_numbers = #tpu.dot_dimension_numbers<[1], [0], [0], [1], [0, 0, 1, 1], [], []>} : vector<256x8xbf16>, vector<8x8xbf16>, vector<256x8xf32> -> vector<256x8xf32>
    %74 = arith.addf %70, %73 : vector<256x8xf32>
    %c33 = arith.constant 33 : index
    %c0_41 = arith.constant 0 : index
    %75 = vector.load %arg11[%c33, %c0_41] : memref<320x8xbf16, #tpu.memory_space<vmem>>, vector<256x8xbf16>
    %c40 = arith.constant 40 : index
    %c0_42 = arith.constant 0 : index
    %76 = vector.load %arg3[%c40, %c0_42] : memref<72x8xbf16, #tpu.memory_space<vmem>>, vector<8x8xbf16>
    %cst_43 = arith.constant dense<0.000000e+00> : vector<256x8xf32>
    %77 = tpu.matmul %75, %76, %cst_43 {dimension_numbers = #tpu.dot_dimension_numbers<[1], [0], [0], [1], [0, 0, 1, 1], [], []>} : vector<256x8xbf16>, vector<8x8xbf16>, vector<256x8xf32> -> vector<256x8xf32>
    %78 = arith.addf %74, %77 : vector<256x8xf32>
    %c47 = arith.constant 47 : index
    %c0_44 = arith.constant 0 : index
    %79 = vector.load %arg10[%c47, %c0_44] : memref<320x8xbf16, #tpu.memory_space<vmem>>, vector<256x8xbf16>
    %c48 = arith.constant 48 : index
    %c0_45 = arith.constant 0 : index
    %80 = vector.load %arg3[%c48, %c0_45] : memref<72x8xbf16, #tpu.memory_space<vmem>>, vector<8x8xbf16>
    %cst_46 = arith.constant dense<0.000000e+00> : vector<256x8xf32>
    %81 = tpu.matmul %79, %80, %cst_46 {dimension_numbers = #tpu.dot_dimension_numbers<[1], [0], [0], [1], [0, 0, 1, 1], [], []>} : vector<256x8xbf16>, vector<8x8xbf16>, vector<256x8xf32> -> vector<256x8xf32>
    %82 = arith.addf %78, %81 : vector<256x8xf32>
    %c48_47 = arith.constant 48 : index
    %c0_48 = arith.constant 0 : index
    %83 = vector.load %arg9[%c48_47, %c0_48] : memref<320x8xbf16, #tpu.memory_space<vmem>>, vector<256x8xbf16>
    %c56 = arith.constant 56 : index
    %c0_49 = arith.constant 0 : index
    %84 = vector.load %arg3[%c56, %c0_49] : memref<72x8xbf16, #tpu.memory_space<vmem>>, vector<8x8xbf16>
    %cst_50 = arith.constant dense<0.000000e+00> : vector<256x8xf32>
    %85 = tpu.matmul %83, %84, %cst_50 {dimension_numbers = #tpu.dot_dimension_numbers<[1], [0], [0], [1], [0, 0, 1, 1], [], []>} : vector<256x8xbf16>, vector<8x8xbf16>, vector<256x8xf32> -> vector<256x8xf32>
    %86 = arith.addf %82, %85 : vector<256x8xf32>
    %c49 = arith.constant 49 : index
    %c0_51 = arith.constant 0 : index
    %87 = vector.load %arg11[%c49, %c0_51] : memref<320x8xbf16, #tpu.memory_space<vmem>>, vector<256x8xbf16>
    %c64 = arith.constant 64 : index
    %c0_52 = arith.constant 0 : index
    %88 = vector.load %arg3[%c64, %c0_52] : memref<72x8xbf16, #tpu.memory_space<vmem>>, vector<8x8xbf16>
    %cst_53 = arith.constant dense<0.000000e+00> : vector<256x8xf32>
    %89 = tpu.matmul %87, %88, %cst_53 {dimension_numbers = #tpu.dot_dimension_numbers<[1], [0], [0], [1], [0, 0, 1, 1], [], []>} : vector<256x8xbf16>, vector<8x8xbf16>, vector<256x8xf32> -> vector<256x8xf32>
    %90 = arith.addf %86, %89 : vector<256x8xf32>
    %91 = arith.truncf %90 : vector<256x8xf32> to vector<256x8xbf16>
    %c0_54 = arith.constant 0 : index
    %c0_55 = arith.constant 0 : index
    %c0_56 = arith.constant 0 : index
    %92 = vector.load %arg6[%c0_54, %c0_55, %c0_56] : memref<1x256x8xbf16, #tpu.memory_space<vmem>>, vector<1x256x8xbf16>
    %93 = vector.shape_cast %92 : vector<1x256x8xbf16> to vector<256x8xbf16>
    %94 = vector.shape_cast %91 : vector<256x8xbf16> to vector<1x256x8xbf16>
    tpu.vector_store %arg6[%c0_54, %c0_55, %c0_56], %94 {strides = array<i32>} : memref<1x256x8xbf16, #tpu.memory_space<vmem>>, vector<1x256x8xbf16>,
    %cst_57 = arith.constant dense<0.000000e+00> : vector<8xf32>
    %95 = vector.multi_reduction <add>, %90, %cst_57 [0] : vector<256x8xf32> to vector<8xf32>
    %96 = vector.shape_cast %95 : vector<8xf32> to vector<1x8xf32>
    %97 = arith.addf %52, %96 : vector<1x8xf32>
    %98 = arith.mulf %90, %90 : vector<256x8xf32>
    %cst_58 = arith.constant dense<0.000000e+00> : vector<8xf32>
    %99 = vector.multi_reduction <add>, %98, %cst_58 [0] : vector<256x8xf32> to vector<8xf32>
    %100 = vector.shape_cast %99 : vector<8xf32> to vector<1x8xf32>
    %101 = arith.addf %53, %100 : vector<1x8xf32>
    %c0_59 = arith.constant 0 : index
    %c0_60 = arith.constant 0 : index
    %102 = vector.load %arg7[%c0_59, %c0_60] : memref<1x8xf32, #tpu.memory_space<vmem>>, vector<1x8xf32>
    %103 = arith.addf %102, %97 : vector<1x8xf32>
    %c0_61 = arith.constant 0 : index
    %c0_62 = arith.constant 0 : index
    %104 = vector.load %arg7[%c0_61, %c0_62] : memref<1x8xf32, #tpu.memory_space<vmem>>, vector<1x8xf32>
    tpu.vector_store %arg7[%c0_61, %c0_62], %103 {strides = array<i32>} : memref<1x8xf32, #tpu.memory_space<vmem>>, vector<1x8xf32>,
    %c0_63 = arith.constant 0 : index
    %c0_64 = arith.constant 0 : index
    %105 = vector.load %arg8[%c0_63, %c0_64] : memref<1x8xf32, #tpu.memory_space<vmem>>, vector<1x8xf32>
    %106 = arith.addf %105, %101 : vector<1x8xf32>
    %c0_65 = arith.constant 0 : index
    %c0_66 = arith.constant 0 : index
    %107 = vector.load %arg8[%c0_65, %c0_66] : memref<1x8xf32, #tpu.memory_space<vmem>>, vector<1x8xf32>
    tpu.vector_store %arg8[%c0_65, %c0_66], %106 {strides = array<i32>} : memref<1x8xf32, #tpu.memory_space<vmem>>, vector<1x8xf32>,
    return
  }
  func.func @transform_0(%arg0: i32, %arg1: i32) -> (i32, i32, i32) {
    %c0_i32 = arith.constant 0 : i32
    %c0_i32_0 = arith.constant 0 : i32
    %c0_i32_1 = arith.constant 0 : i32
    return %arg1, %c0_i32, %c0_i32_0 : i32, i32, i32
  }
  func.func @transform_1(%arg0: i32, %arg1: i32) -> (i32, i32) {
    %c0_i32 = arith.constant 0 : i32
    %c0_i32_0 = arith.constant 0 : i32
    return %c0_i32, %arg0 : i32, i32
  }
  func.func @transform_2(%arg0: i32, %arg1: i32) -> (i32, i32) {
    %c0_i32 = arith.constant 0 : i32
    %c0_i32_0 = arith.constant 0 : i32
    %c0_i32_1 = arith.constant 0 : i32
    return %c0_i32, %c0_i32_0 : i32, i32
  }
  func.func @transform_3(%arg0: i32, %arg1: i32) -> (i32, i32) {
    %c0_i32 = arith.constant 0 : i32
    %c0_i32_0 = arith.constant 0 : i32
    %c0_i32_1 = arith.constant 0 : i32
    return %c0_i32, %c0_i32_0 : i32, i32
  }
  func.func @transform_4(%arg0: i32, %arg1: i32) -> (i32, i32, i32) {
    %c0_i32 = arith.constant 0 : i32
    %c0_i32_0 = arith.constant 0 : i32
    return %arg1, %c0_i32, %arg0 : i32, i32, i32
  }
  func.func @transform_5(%arg0: i32, %arg1: i32) -> (i32, i32) {
    %c0_i32 = arith.constant 0 : i32
    %c0_i32_0 = arith.constant 0 : i32
    return %c0_i32, %arg0 : i32, i32
  }
  func.func @transform_6(%arg0: i32, %arg1: i32) -> (i32, i32) {
    %c0_i32 = arith.constant 0 : i32
    %c0_i32_0 = arith.constant 0 : i32
    return %c0_i32, %arg0 : i32, i32
  }
}

module attributes {stable_mosaic.version = 11 : i64} {
  func.func @_affine_relu_kernel(%arg0: i32, %arg1: memref<32x128xbf16, #tpu.memory_space<vmem>>, %arg2: memref<1x128xf32, #tpu.memory_space<vmem>>, %arg3: memref<1x128xf32, #tpu.memory_space<vmem>>, %arg4: memref<32x128xf32, #tpu.memory_space<vmem>>) attributes {dimension_semantics = [#tpu.dimension_semantics<parallel>], iteration_bounds = array<i64: 1>, scalar_prefetch = 0 : i64, scratch_operands = 0 : i64, tpu.core_type = #tpu.core_type<tc>, window_params = [{transform_indices = @transform_0, window_bounds = array<i64: 32, 128>}, {pipeline_mode = #tpu.pipeline_mode<synchronous>, transform_indices = @transform_1, window_bounds = array<i64: 1, 128>}, {pipeline_mode = #tpu.pipeline_mode<synchronous>, transform_indices = @transform_2, window_bounds = array<i64: 1, 128>}, {transform_indices = @transform_3, window_bounds = array<i64: 32, 128>}]} {
    %c0 = arith.constant 0 : index
    %c0_0 = arith.constant 0 : index
    %0 = vector.load %arg1[%c0, %c0_0] : memref<32x128xbf16, #tpu.memory_space<vmem>>, vector<32x128xbf16>
    %1 = arith.extf %0 : vector<32x128xbf16> to vector<32x128xf32>
    %c0_1 = arith.constant 0 : index
    %c0_2 = arith.constant 0 : index
    %2 = vector.load %arg2[%c0_1, %c0_2] : memref<1x128xf32, #tpu.memory_space<vmem>>, vector<1x128xf32>
    %3 = vector.broadcast %2 : vector<1x128xf32> to vector<32x128xf32>
    %4 = arith.mulf %1, %3 : vector<32x128xf32>
    %c0_3 = arith.constant 0 : index
    %c0_4 = arith.constant 0 : index
    %5 = vector.load %arg3[%c0_3, %c0_4] : memref<1x128xf32, #tpu.memory_space<vmem>>, vector<1x128xf32>
    %6 = vector.broadcast %5 : vector<1x128xf32> to vector<32x128xf32>
    %7 = arith.addf %4, %6 : vector<32x128xf32>
    %cst = arith.constant 0.000000e+00 : f32
    %8 = vector.broadcast %cst : f32 to vector<32x128xf32>
    %9 = arith.maximumf %7, %8 : vector<32x128xf32>
    %c0_5 = arith.constant 0 : index
    %c0_6 = arith.constant 0 : index
    %10 = vector.load %arg4[%c0_5, %c0_6] : memref<32x128xf32, #tpu.memory_space<vmem>>, vector<32x128xf32>
    tpu.vector_store %arg4[%c0_5, %c0_6], %9 {strides = array<i32>} : memref<32x128xf32, #tpu.memory_space<vmem>>, vector<32x128xf32>,
    return
  }
  func.func @transform_0(%arg0: i32) -> (i32, i32) {
    %c0_i32 = arith.constant 0 : i32
    %c0_i32_0 = arith.constant 0 : i32
    return %arg0, %c0_i32 : i32, i32
  }
  func.func @transform_1(%arg0: i32) -> (i32, i32) {
    %c0_i32 = arith.constant 0 : i32
    %c0_i32_0 = arith.constant 0 : i32
    %c0_i32_1 = arith.constant 0 : i32
    return %c0_i32, %c0_i32_0 : i32, i32
  }
  func.func @transform_2(%arg0: i32) -> (i32, i32) {
    %c0_i32 = arith.constant 0 : i32
    %c0_i32_0 = arith.constant 0 : i32
    %c0_i32_1 = arith.constant 0 : i32
    return %c0_i32, %c0_i32_0 : i32, i32
  }
  func.func @transform_3(%arg0: i32) -> (i32, i32) {
    %c0_i32 = arith.constant 0 : i32
    %c0_i32_0 = arith.constant 0 : i32
    return %arg0, %c0_i32 : i32, i32
  }
}

</mosaic_0001>

<bundles_post_ra>
// kernel: tile.13
= control target key start
LH: loop header
LB: loop body
LE: loop exit
PB: predicated region body
PF: predicated region fallthrough
CT: control target
= control target key end

     0   :  { %s28_s0 = inlined_call_operand.vmem [shape: f32[8], index: 0, kind: input, shape index: {}]   ;;  %s29_s1 = inlined_call_operand.vmem [shape: f32[16,8], index: 1, kind: output, shape index: {}]  }
   0x1   :  { %v4_v0 = vld [vmem:[%s28_s0] ss:$0 sm:$0xff] }
   0x2   :  { %5 = vst [vmem:[%s29_s1] sm:$0xff] %v4_v0  ;;  %8 = vst [vmem:[%s29_s1 + $0x8] sm:$0xff] %v4_v0 }

// kernel: tile.14
= control target key start
LH: loop header
LB: loop body
LE: loop exit
PB: predicated region body
PF: predicated region fallthrough
CT: control target
= control target key end

     0   :  { %s133_s10 = smov 120   ;;  %s134_s11 = smov 104   ;;  %vm3_vm0 = vcmask 64512   ;;  %vm9_vm1 = vcmask 1048512   ;;  %vm15_vm2 = vcmask 982912   ;;  %vm21_vm3 = vcmask 917312   ;;  %s209_s0 = inlined_call_operand.vmem [shape: f32[16,8], index: 0, kind: input, shape index: {}]   ;;  %s210_s1 = inlined_call_operand.vmem [shape: f32[1,128], index: 1, kind: output, shape index: {}]  }
   0x1   :  { %v103_v0 = vld [vmem:[%s209_s0 + $0xf] sm:$0x1]   ;;  %v105_v1 = vld [vmem:[%s209_s0 + $0xd] sm:$0x1]   ;;  %v104_v2 = vld [vmem:[%s209_s0 + $0xe] sm:$0x1]  }
   0x2   :  { %7 = vrot.lane.b32.xlu0 %v103_v0, %s133_s10  ;;  %19 = vrot.lane.b32.xlu1 %v105_v1, %s134_s11  ;;  %v106_v3 = vld [vmem:[%s209_s0 + $0xc] sm:$0x1]   ;;  %s135_s16 = smov 112   ;;  %s136_s17 = smov 96   ;;  %v107_v4 = vld [vmem:[%s209_s0 + $0xb] sm:$0x1]  }
   0x3   :  { %v108_v5 = vld [vmem:[%s209_s0 + $0xa] sm:$0x1]   ;;  %v2_v6 = vld [vmem:[%s209_s0] sm:$0x1]   ;;  %s137_s24 = smov 88   ;;  %s138_s25 = smov 80  }
   0x4   :  { %4 = vst.msk [vmem:[#allocation0] sm:$0x1] %vm3_vm0, %v2_v6   ;;  %v109_v7 = vld [vmem:[%s209_s0 + $0x9] sm:$0x1]   ;;  %v110_v8 = vld [vmem:[%s209_s0 + $0x8] sm:$0x1]  }
   0x5   :  { %s139_s30 = smov 72   ;;  %s140_s2 = smov 64   ;;  %v111_v9 = vld [vmem:[%s209_s0 + $0x7] sm:$0x1]   ;;  %v112_v10 = vld [vmem:[%s209_s0 + $0x6] sm:$0x1]  }
   0x6   :  { %13 = vrot.lane.b32.xlu0 %v104_v2, %s135_s16  ;;  %25 = vrot.lane.b32.xlu1 %v106_v3, %s136_s17  ;;  %s141_s7 = smov 56   ;;  %s142_s8 = smov 48   ;;  %v113_v11 = vld [vmem:[%s209_s0 + $0x5] sm:$0x1]   ;;  %v114_v12 = vld [vmem:[%s209_s0 + $0x4] sm:$0x1]  }
   0x7   :  { %s143_s13 = smov 40   ;;  %s144_s14 = smov 32   ;;  %v115_v13 = vld [vmem:[%s209_s0 + $0x3] sm:$0x1]   ;;  %v116_v14 = vld [vmem:[%s209_s0 + $0x2] sm:$0x1]  }
   0x8   :  { %s145_s19 = smov 24   ;;  %s146_s20 = smov 16   ;;  %v117_v15 = vld [vmem:[%s209_s0 + $0x1] sm:$0x1]   ;;  %vm27_vm4 = vcmask 851712   ;;  %vm33_vm5 = vcmask 786112  }
   0x9   :  { %s147_s0 = smov 8   ;;  %vm39_vm6 = vcmask 720512   ;;  %vm45_vm7 = vcmask 654912   ;;  %vm51_vm8 = vcmask 589312   ;;  %vm57_vm9 = vcmask 523712  }
   0xa   :  { %31 = vrot.lane.b32.xlu0 %v107_v4, %s137_s24  ;;  %37 = vrot.lane.b32.xlu1 %v108_v5, %s138_s25  ;;  %vm63_vm10 = vcmask 458112   ;;  %vm69_vm11 = vcmask 392512   ;;  %vm75_vm12 = vcmask 326912   ;;  %vm81_vm13 = vcmask 261312  }
   0xb   :  { %vm87_vm14 = vcmask 195712   ;;  %vm93_vm15 = vcmask 130112  }
   0xe   :  { %43 = vrot.lane.b32.xlu0 %v109_v7, %s139_s30  ;;  %49 = vrot.lane.b32.xlu1 %v110_v8, %s140_s2 }
  0x12   :  { %55 = vrot.lane.b32.xlu0 %v111_v9, %s141_s7  ;;  %61 = vrot.lane.b32.xlu1 %v112_v10, %s142_s8 }
  0x16   :  { %67 = vrot.lane.b32.xlu0 %v113_v11, %s143_s13  ;;  %73 = vrot.lane.b32.xlu1 %v114_v12, %s144_s14 }
  0x1a   :  { %79 = vrot.lane.b32.xlu0 %v115_v13, %s145_s19  ;;  %85 = vrot.lane.b32.xlu1 %v116_v14, %s146_s20 }
  0x1e   :  { %91 = vrot.lane.b32.xlu0 %v117_v15, %s147_s0 }
  0x74   :  { %v8_v16 = vpop.permute.xlu0 %7   ;;  %v20_v17 = vpop.permute.xlu1 %19  }
  0x75   :  { %10 = vst.msk [vmem:[#allocation0] sm:$0x1] %vm9_vm1, %v8_v16  }
  0x78   :  { %v14_v18 = vpop.permute.xlu0 %13   ;;  %v26_v19 = vpop.permute.xlu1 %25  }
  0x79   :  { %16 = vst.msk [vmem:[#allocation0] sm:$0x1] %vm15_vm2, %v14_v18  }
  0x7a   :  { %22 = vst.msk [vmem:[#allocation0] sm:$0x1] %vm21_vm3, %v20_v17  }
  0x7b   :  { %28 = vst.msk [vmem:[#allocation0] sm:$0x1] %vm27_vm4, %v26_v19  }
  0x7c   :  { %v32_v20 = vpop.permute.xlu0 %31   ;;  %v38_v21 = vpop.permute.xlu1 %37  }
  0x7d   :  { %34 = vst.msk [vmem:[#allocation0] sm:$0x1] %vm33_vm5, %v32_v20  }
  0x7e   :  { %40 = vst.msk [vmem:[#allocation0] sm:$0x1] %vm39_vm6, %v38_v21  }
  0x80   :  { %v44_v22 = vpop.permute.xlu0 %43   ;;  %v50_v23 = vpop.permute.xlu1 %49  }
  0x81   :  { %46 = vst.msk [vmem:[#allocation0] sm:$0x1] %vm45_vm7, %v44_v22  }
  0x82   :  { %52 = vst.msk [vmem:[#allocation0] sm:$0x1] %vm51_vm8, %v50_v23  }
  0x84   :  { %v56_v24 = vpop.permute.xlu0 %55   ;;  %v62_v25 = vpop.permute.xlu1 %61  }
  0x85   :  { %58 = vst.msk [vmem:[#allocation0] sm:$0x1] %vm57_vm9, %v56_v24  }
  0x86   :  { %64 = vst.msk [vmem:[#allocation0] sm:$0x1] %vm63_vm10, %v62_v25  }
  0x88   :  { %v68_v26 = vpop.permute.xlu0 %67   ;;  %v74_v27 = vpop.permute.xlu1 %73  }
  0x89   :  { %70 = vst.msk [vmem:[#allocation0] sm:$0x1] %vm69_vm11, %v68_v26  }
  0x8a   :  { %76 = vst.msk [vmem:[#allocation0] sm:$0x1] %vm75_vm12, %v74_v27  }
  0x8c   :  { %v80_v28 = vpop.permute.xlu0 %79   ;;  %v86_v29 = vpop.permute.xlu1 %85  }
  0x8d   :  { %82 = vst.msk [vmem:[#allocation0] sm:$0x1] %vm81_vm13, %v80_v28  }
  0x8e   :  { %88 = vst.msk [vmem:[#allocation0] sm:$0x1] %vm87_vm14, %v86_v29  }
  0x90   :  { %v92_v30 = vpop.permute.xlu0 %91  }
  0x91   :  { %94 = vst.msk [vmem:[#allocation0] sm:$0x1] %vm93_vm15, %v92_v30  }
  0x98   :  { %v99_v31 = vld [vmem:[#allocation0] sm:$0x1] }
  0x99   :  { %102 = vst [vmem:[%s210_s1] sm:$0x1] %v99_v31 }

// kernel: bridge_forward.5
= control target key start
LH: loop header
LB: loop body
LE: loop exit
PB: predicated region body
PF: predicated region fallthrough
CT: control target
= control target key end

     0   :  { %s111_s0 = inlined_call_operand.vmem [shape: bf16[32,128], index: 0, kind: input, shape index: {}]   ;;  %s112_s1 = inlined_call_operand.vmem [shape: f32[1,128], index: 1, kind: input, shape index: {}]   ;;  %s113_s2 = inlined_call_operand.vmem [shape: f32[1,128], index: 2, kind: input, shape index: {}]   ;;  %s114_s3 = inlined_call_operand.vmem [shape: f32[32,128], index: 3, kind: output, shape index: {}]  }
   0x1   :  { %v59_v0 = vld [vmem:[%s111_s0] sm:$0xff]   ;;  %v66_v4 = vld [vmem:[%s111_s0 + $0x8] sm:$0xff]  }
   0x2   :  { %v56_v1 = vld [vmem:[%s112_s1] ss:$0 sm:$0xff]  ;;  %v60_v2 = vunpack.c.l.bf16 %v59_v0  ;;  %v61_v3 = vunpack.c.h.bf16 %v59_v0  ;;  %v64_v6 = vunpack.c.l.bf16 %v66_v4  ;;  %v65_v7 = vunpack.c.h.bf16 %v66_v4 }
   0x3   :  { %v57_v5 = vld [vmem:[%s113_s2] ss:$0 sm:$0xff] }
   0x4   :  { %v29_v8 = vmul.f32 %v60_v2, %v56_v1  ;;  %v30_v9 = vmul.f32 %v61_v3, %v56_v1  ;;  %v31_v10 = vmul.f32 %v64_v6, %v56_v1  ;;  %v32_v11 = vmul.f32 %v65_v7, %v56_v1 }
   0x6   :  { %v40_v12 = vadd.f32 %v57_v5, %v29_v8  ;;  %v41_v13 = vadd.f32 %v57_v5, %v30_v9  ;;  %v42_v14 = vadd.f32 %v57_v5, %v31_v10  ;;  %v43_v15 = vadd.f32 %v57_v5, %v32_v11 }
   0x8   :  { %v44_v16 = vmax.f32 %v40_v12, 0.0  ;;  %v45_v17 = vmax.f32 %v41_v13, 0.0  ;;  %v46_v18 = vmax.f32 %v42_v14, 0.0  ;;  %v47_v19 = vmax.f32 %v43_v15, 0.0 }
   0xa   :  { %48 = vst [vmem:[%s114_s3] sm:$0xff] %v44_v16  ;;  %49 = vst [vmem:[%s114_s3 + $0x8] sm:$0xff] %v45_v17 }
   0xb   :  { %50 = vst [vmem:[%s114_s3 + $0x10] sm:$0xff] %v46_v18  ;;  %51 = vst [vmem:[%s114_s3 + $0x18] sm:$0xff] %v47_v19 }

// kernel: bridge_forward.3
= control target key start
LH: loop header
LB: loop body
LE: loop exit
PB: predicated region body
PF: predicated region fallthrough
CT: control target
= control target key end

     0   :  { %s7384_s21 = smov 0   ;;  %s7386_s22 = smov 0   ;;  %s8709_s0 = inlined_call_operand.vmem [shape: f32[2,256,16], index: 0, kind: input, shape index: {}]   ;;  %s8710_s1 = inlined_call_operand.vmem [shape: bf16[144,8], index: 1, kind: input, shape index: {}]   ;;  %s8711_s2 = inlined_call_operand.vmem [shape: f32[1,16], index: 2, kind: input, shape index: {}]   ;;  %s8712_s3 = inlined_call_operand.vmem [shape: f32[1,16], index: 3, kind: input, shape index: {}]   ;;  %s8713_s4 = inlined_call_operand.vmem [shape: bf16[2,256,8], index: 4, kind: output, shape index: {0}]   ;;  %s8714_s5 = inlined_call_operand.vmem [shape: f32[1,8], index: 5, kind: output, shape index: {1}]   ;;  %s8715_s6 = inlined_call_operand.vmem [shape: f32[1,8], index: 6, kind: output, shape index: {2}]  }
   0x1   :  { %s7388_s23 = smov 0  }
   0x2 LB: > { %s26_s2 = sadd.s32 1, %s7340_s22  ;;  %p6072_p0 = scmp.ge.s32.totalorder %s7344_s23, 1  ;;  %s7344_s23 = sphi %s7388_s23, %s17_s23   ;;  %s7340_s22 = sphi %s7386_s22, %s8789_s22   ;;  %s7336_s21 = sphi %s7384_s21, %s8788_s21  }
   0x3   : > { %p27_p1 = scmp.ge.s32.totalorder %s26_s2, 2  ;;  %p240_p2 = scmp.lt.s32.totalorder %s7344_s23, 3 }
   0x5   : > { %s8791_s2 = smov (%p27_p1, %s26_s2), 0  ;;  %p241_p3 = pnand %p6072_p0, %p240_p2 }
   0x7   : > { %244 = sbr.rel (%p241_p3) target bundleno = 578 (0x242), region = 36 }
   0xc   : > { %p283_p4 = scmp.lt.s32.totalorder %s7336_s21, 1  ;;  %p6077_p5 = scmp.ne.s32.totalorder %s7336_s21, 0 }
   0xe   : > { %s284_s3 = scalar_select %p283_p4, %s7336_s21, 1 }
   0xf   : > { %310 = sbr.rel (%p6077_p5) target bundleno = 29 (0x1d), region = 40 }
  0x10   : > { %s6545_s24 = sshll.u32 %s284_s3, 8  ;;  %s6546_s25 = sshll.u32 %s284_s3, 7 }
  0x11   : > { %s7405_s28 = scalar_lea.vmem %s8709_s0, %s6545_s24  ;;  %s7410_s7 = scalar_lea.vmem %s8713_s4, %s6546_s25 }
  0x14   : > { %vm311_vm0 = vcmask 125952   ;;  %vm336_vm1 = vcmask 57344   ;;  %v7346_v0 = vmov 0   ;;  %v7347_v1 = vmov 0.0  }
  0x15   : > { %314 = vst.msk [vmem:[#allocation2 + $0x8] sm:$0xf] %vm311_vm0, %v7346_v0  ;;  %315 = vst.msk [vmem:[#allocation2 + $0xc] sm:$0xf] %vm311_vm0, %v7346_v0 }
  0x16   : > { %316 = vst.msk [vmem:[#allocation2 + $0x90] sm:$0xf] %vm311_vm0, %v7346_v0  ;;  %317 = vst.msk [vmem:[#allocation2 + $0x94] sm:$0xf] %vm311_vm0, %v7346_v0 }
  0x17   : > { %321 = vst.msk [vmem:[#allocation3 + $0x4] sm:$0xf] %vm311_vm0, %v7346_v0  ;;  %322 = vst.msk [vmem:[#allocation3 + $0x8] sm:$0xf] %vm311_vm0, %v7346_v0 }
  0x18   : > { %323 = vst.msk [vmem:[#allocation3 + $0xc] sm:$0xf] %vm311_vm0, %v7346_v0  ;;  %324 = vst.msk [vmem:[#allocation3 + $0x90] sm:$0xf] %vm311_vm0, %v7346_v0 }
  0x19   : > { %325 = vst.msk [vmem:[#allocation3 + $0x94] sm:$0xf] %vm311_vm0, %v7346_v0  ;;  %330 = vst.msk [vmem:[#allocation4 + $0x8] sm:$0xf] %vm311_vm0, %v7346_v0 }
  0x1a   : > { %331 = vst.msk [vmem:[#allocation4 + $0xc] sm:$0xf] %vm311_vm0, %v7346_v0  ;;  %332 = vst.msk [vmem:[#allocation4 + $0x90] sm:$0xf] %vm311_vm0, %v7346_v0 }
  0x1b   : > { %333 = vst.msk [vmem:[#allocation4 + $0x94] sm:$0xf] %vm311_vm0, %v7346_v0  ;;  %334 = vst.msk [vmem:[#allocation4 + $0x98] sm:$0xf] %vm311_vm0, %v7346_v0 }
  0x1c   : > { %337 = vst.msk [vmem:[%s8714_s5] sm:$0x1] %vm336_vm1, %v7347_v1  ;;  %338 = vst.msk [vmem:[%s8715_s6] sm:$0x1] %vm336_vm1, %v7347_v1 }
  0x1d PF: > { %v7163_v2 = vld [vmem:[%s8710_s1 + $0x8] sm:$0xff]   ;;  %v371_v3 = vlaneseq  ;;  %vm1680_vm2 = vcmask 130048   ;;  %v339_v5 = vld [vmem:[%s7405_s28] sm:$0xff]  ;;  %vm1108_vm3 = vcmask 125952   ;;  %v353_v8 = vld [vmem:[%s7405_s28 + $0x70] sm:$0xff]  ;;  %v7348_v28 = vmov 0.0  }
  0x1e   : > { %v7164_v4 = vld [vmem:[#allocation2 + $0x8] sm:$0xff]   ;;  %6828 = vmatprep.subr.bf16.mxu0 %v7163_v2  ;;  %7134 = vmatprep.subr.bf16.mxu1 %v7163_v2  ;;  %v6547_v9 = vpack.c.bf16 %v339_v5, %v339_v5  ;;  %v354_v11 = vld [vmem:[%s7405_s28 + $0x78] sm:$0xff]  ;;  %v6561_v12 = vpack.c.bf16 %v353_v8, %v353_v8  ;;  %v7451_v17 = vld [vmem:[%s8710_s1] sm:$0xff]  }
  0x1f   : > { %v340_v6 = vld [vmem:[%s7405_s28 + $0x8] sm:$0xff]  ;;  %v7439_v7 = vshrl.u32 %v371_v3, 7  ;;  %6829 = vmatpush3.bf16.msra.mxu0 %v7163_v2  ;;  %7135 = vmatpush3.bf16.msra.mxu1 %v7163_v2  ;;  %v355_v18 = vld [vmem:[%s7405_s28 + $0x80] sm:$0xff]  ;;  %v6562_v19 = vpack.c.bf16 %v354_v11, %v354_v11  ;;  %v7169_v24 = vld [vmem:[%s8710_s1 + $0x10] sm:$0xff]  }
  0x20   : > { %v6548_v10 = vpack.c.bf16 %v340_v6, %v340_v6  ;;  %6830 = vmatprep.mubr.msk.bf16.mxu0 %vm1680_vm2, %v7164_v4  ;;  %1109 = vst.msk [vmem:[#allocation2 + $0x10] sm:$0xf] %vm1108_vm3, %v6547_v9  ;;  %1301 = vst.msk [vmem:[#allocation3 + $0x10] sm:$0xf] %vm1108_vm3, %v6547_v9  ;;  %v356_v20 = vld [vmem:[%s7405_s28 + $0x88] sm:$0xff]  ;;  %v6563_v23 = vpack.c.bf16 %v355_v18, %v355_v18  ;;  %6862 = vmatprep.subr.bf16.mxu1 %v7451_v17  ;;  %v341_v41 = vld [vmem:[%s7405_s28 + $0x10] sm:$0xff] }
  0x21   : > { %v373_v13 = vadd.s32 8, %v7439_v7  ;;  %v408_v14 = vand.u32 15, %v7439_v7  ;;  %v386_v15 = vadd.s32 112, %v7439_v7  ;;  %v387_v16 = vadd.s32 120, %v7439_v7  ;;  %1123 = vst.msk [vmem:[#allocation2 + $0x48] sm:$0xf] %vm1108_vm3, %v6561_v12  ;;  %6896 = vmatprep.subr.bf16.mxu0 %v7169_v24 }
  0x22   : > { %1110 = vst.msk [vmem:[#allocation2 + $0x14] sm:$0xf] %vm1108_vm3, %v6548_v10  ;;  %1494 = vst.msk [vmem:[#allocation4 + $0x14] sm:$0xf] %vm1108_vm3, %v6548_v10  ;;  %v388_v21 = vadd.s32 128, %v7439_v7  ;;  %v389_v22 = vadd.s32 136, %v7439_v7  ;;  %v6564_v32 = vpack.c.bf16 %v356_v20, %v356_v20  ;;  %v6549_v58 = vpack.c.bf16 %v341_v41, %v341_v41 }
  0x23   : > { %1315 = vst.msk [vmem:[#allocation3 + $0x48] sm:$0xf] %vm1108_vm3, %v6561_v12  ;;  %v415_v25 = vand.u32 15, %v373_v13  ;;  %vm884_vm4 = vcmp.gt.s32.totalorder %v408_v14, 0  ;;  %v506_v26 = vand.u32 15, %v386_v15  ;;  %v513_v27 = vand.u32 15, %v387_v16 }
  0x24   : > { %v6094_v29 = vsel %vm884_vm4, 1.0, %v7348_v28  ;;  %1124 = vst.msk [vmem:[#allocation2 + $0x4c] sm:$0xf] %vm1108_vm3, %v6562_v19  ;;  %1508 = vst.msk [vmem:[#allocation4 + $0x4c] sm:$0xf] %vm1108_vm3, %v6562_v19  ;;  %v520_v30 = vand.u32 15, %v388_v21 }
  0x25   : > { %v527_v31 = vand.u32 15, %v389_v22  ;;  %1125 = vst.msk [vmem:[#allocation2 + $0x50] sm:$0xf] %vm1108_vm3, %v6563_v23  ;;  %1317 = vst.msk [vmem:[#allocation3 + $0x50] sm:$0xf] %vm1108_vm3, %v6563_v23  ;;  %vm789_vm5 = vcmp.lt.s32.totalorder %v415_v25, 15  ;;  %v1333_v33 = vmul.f32 %v6094_v29, %v339_v5 }
  0x26   : > { %vm803_vm6 = vcmp.lt.s32.totalorder %v513_v27, 15  ;;  %vm898_vm7 = vcmp.gt.s32.totalorder %v506_v26, 0  ;;  %v6078_v34 = vsel %vm789_vm5, 1.0, %v7348_v28  ;;  %1126 = vst.msk [vmem:[#allocation2 + $0x54] sm:$0xf] %vm1108_vm3, %v6564_v32  ;;  %vm900_vm9 = vcmp.gt.s32.totalorder %v520_v30, 0 }
  0x27   : > { %v6085_v35 = vsel %vm803_vm6, 1.0, %v7348_v28  ;;  %v6101_v36 = vsel %vm898_vm7, 1.0, %v7348_v28  ;;  %vm805_vm8 = vcmp.lt.s32.totalorder %v527_v31, 15  ;;  %1510 = vst.msk [vmem:[#allocation4 + $0x54] sm:$0xf] %vm1108_vm3, %v6564_v32  ;;  %v1142_v37 = vmul.f32 %v6078_v34, %v340_v6  ;;  %v342_v43 = vld [vmem:[%s7405_s28 + $0x18] sm:$0xff] }
  0x28   : > { %v6611_v38 = vpack.c.bf16 %v1333_v33, %v1333_v33  ;;  %v1156_v39 = vmul.f32 %v6085_v35, %v354_v11  ;;  %v1347_v40 = vmul.f32 %v6101_v36, %v353_v8  ;;  %v6086_v42 = vsel %vm805_vm8, 1.0, %v7348_v28  ;;  %v7483_v46 = vld [vmem:[%s7405_s28 + $0x20] sm:$0xff]  ;;  %v7488_v56 = vld [vmem:[%s7405_s28 + $0x28] sm:$0xff]  ;;  %v357_v0 = vld [vmem:[%s7405_s28 + $0x90] sm:$0xff]  ;;  %1111 = vst.msk [vmem:[#allocation2 + $0x18] sm:$0xf] %vm1108_vm3, %v6549_v58 }
  0x29   : > { %v374_v44 = vadd.s32 16, %v7439_v7  ;;  %v375_v45 = vadd.s32 24, %v7439_v7  ;;  %v6580_v47 = vpack.c.bf16 %v1142_v37, %v1142_v37  ;;  %v7165_v48 = vld [vmem:[#allocation2 + $0x10] sm:$0xff]   ;;  %v6102_v51 = vsel %vm900_vm9, 1.0, %v7348_v28  ;;  %v358_v1 = vld [vmem:[%s7405_s28 + $0x98] sm:$0xff]  ;;  %v359_v16 = vld [vmem:[%s7405_s28 + $0xa0] sm:$0xff] }
  0x2a   : > { %1493 = vst.msk [vmem:[#allocation4 + $0x10] sm:$0xf] %vm1108_vm3, %v6611_v38  ;;  %v6594_v49 = vpack.c.bf16 %v1156_v39, %v1156_v39  ;;  %v6625_v50 = vpack.c.bf16 %v1347_v40, %v1347_v40  ;;  %v1158_v52 = vmul.f32 %v6086_v42, %v356_v20  ;;  %v1349_v53 = vmul.f32 %v6102_v51, %v355_v18  ;;  %v360_v25 = vld [vmem:[%s7405_s28 + $0xa8] sm:$0xff]  ;;  %v7535_v31 = vld [vmem:[%s7405_s28 + $0x30] sm:$0xff]  ;;  %v7538_v32 = vld [vmem:[%s7405_s28 + $0x38] sm:$0xff] }
  0x2b   : > { %v422_v54 = vand.u32 15, %v374_v44  ;;  %v429_v55 = vand.u32 15, %v375_v45  ;;  %1302 = vst.msk [vmem:[#allocation3 + $0x14] sm:$0xf] %vm1108_vm3, %v6580_v47  ;;  %6831 = vmatmul.mubr.msk.bf16.vlgmr.msra.gmra.mxu0 %vm1680_vm2, %v7165_v48  ;;  %v7166_v57 = vld [vmem:[#allocation2 + $0x48] sm:$0xff]   ;;  %v6550_v59 = vpack.c.bf16 %v342_v43, %v342_v43  ;;  %v376_v60 = vadd.s32 32, %v7439_v7 }
  0x2c   : > { %1316 = vst.msk [vmem:[#allocation3 + $0x4c] sm:$0xf] %vm1108_vm3, %v6594_v49  ;;  %1507 = vst.msk [vmem:[#allocation4 + $0x48] sm:$0xf] %vm1108_vm3, %v6625_v50  ;;  %v6551_v61 = vpack.c.bf16 %v7483_v46, %v7483_v46  ;;  %v6596_v62 = vpack.c.bf16 %v1158_v52, %v1158_v52  ;;  %v6627_v63 = vpack.c.bf16 %v1349_v53, %v1349_v53  ;;  %6897 = vmatpush3.bf16.msra.mxu0 %v7169_v24  ;;  %v7541_v33 = vld [vmem:[%s7405_s28 + $0x40] sm:$0xff]  ;;  %v7551_v47 = vld [vmem:[%s7405_s28 + $0x48] sm:$0xff] }
  0x2d   : > { %vm791_vm10 = vcmp.lt.s32.totalorder %v429_v55, 15  ;;  %vm886_vm11 = vcmp.gt.s32.totalorder %v422_v54, 0  ;;  %6846 = vmatprep.mubr.msk.bf16.mxu1 %vm1680_vm2, %v7166_v57  ;;  %v7168_v2 = vld [vmem:[#allocation2 + $0x50] sm:$0xff]   ;;  %1112 = vst.msk [vmem:[#allocation2 + $0x1c] sm:$0xf] %vm1108_vm3, %v6550_v59  ;;  %v377_v5 = vadd.s32 40, %v7439_v7  ;;  %v6552_v6 = vpack.c.bf16 %v7488_v56, %v7488_v56 }
  0x2e   : > { %v6079_v3 = vsel %vm791_vm10, 1.0, %v7348_v28  ;;  %v6095_v4 = vsel %vm886_vm11, 1.0, %v7348_v28  ;;  %1303 = vst.msk [vmem:[#allocation3 + $0x18] sm:$0xf] %vm1108_vm3, %v6549_v58  ;;  %1496 = vst.msk [vmem:[#allocation4 + $0x1c] sm:$0xf] %vm1108_vm3, %v6550_v59  ;;  %6847 = vmatmul.mubr.msk.bf16.vlgmr.msra.gmra.mxu1 %vm1680_vm2, %v7168_v2  ;;  %v6565_v14 = vpack.c.bf16 %v357_v0, %v357_v0  ;;  %v6566_v15 = vpack.c.bf16 %v358_v1, %v358_v1 }
  0x2f   : > { %1113 = vst.msk [vmem:[#allocation2 + $0x20] sm:$0xf] %vm1108_vm3, %v6551_v61  ;;  %1305 = vst.msk [vmem:[#allocation3 + $0x20] sm:$0xf] %vm1108_vm3, %v6551_v61  ;;  %v1144_v8 = vmul.f32 %v6079_v3, %v342_v43  ;;  %v1335_v9 = vmul.f32 %v6095_v4, %v341_v41  ;;  %v436_v10 = vand.u32 15, %v376_v60  ;;  %v390_v11 = vadd.s32 144, %v7439_v7  ;;  %6863 = vmatpush3.bf16.msra.mxu1 %v7451_v17 }
  0x30   : > { %1318 = vst.msk [vmem:[#allocation3 + $0x54] sm:$0xf] %vm1108_vm3, %v6596_v62  ;;  %1509 = vst.msk [vmem:[#allocation4 + $0x50] sm:$0xf] %vm1108_vm3, %v6627_v63  ;;  %v443_v12 = vand.u32 15, %v377_v5  ;;  %v391_v13 = vadd.s32 152, %v7439_v7  ;;  %v6567_v38 = vpack.c.bf16 %v359_v16, %v359_v16  ;;  %v6568_v45 = vpack.c.bf16 %v360_v25, %v360_v25 }
  0x31   : > { %1114 = vst.msk [vmem:[#allocation2 + $0x24] sm:$0xf] %vm1108_vm3, %v6552_v6  ;;  %1498 = vst.msk [vmem:[#allocation4 + $0x24] sm:$0xf] %vm1108_vm3, %v6552_v6  ;;  %v6582_v18 = vpack.c.bf16 %v1144_v8, %v1144_v8  ;;  %v6613_v19 = vpack.c.bf16 %v1335_v9, %v1335_v9  ;;  %vm888_vm12 = vcmp.gt.s32.totalorder %v436_v10, 0  ;;  %v534_v20 = vand.u32 15, %v390_v11 }
  0x32   : > { %vm793_vm13 = vcmp.lt.s32.totalorder %v443_v12, 15  ;;  %v6096_v21 = vsel %vm888_vm12, 1.0, %v7348_v28  ;;  %v541_v22 = vand.u32 15, %v391_v13  ;;  %1127 = vst.msk [vmem:[#allocation2 + $0x58] sm:$0xf] %vm1108_vm3, %v6565_v14  ;;  %v392_v17 = vadd.s32 160, %v7439_v7 }
  0x33   : > { %1128 = vst.msk [vmem:[#allocation2 + $0x5c] sm:$0xf] %vm1108_vm3, %v6566_v15  ;;  %1319 = vst.msk [vmem:[#allocation3 + $0x58] sm:$0xf] %vm1108_vm3, %v6565_v14  ;;  %v6080_v23 = vsel %vm793_vm13, 1.0, %v7348_v28  ;;  %v1337_v24 = vmul.f32 %v6096_v21, %v7483_v46  ;;  %vm902_vm14 = vcmp.gt.s32.totalorder %v534_v20, 0  ;;  %v6553_v53 = vpack.c.bf16 %v7535_v31, %v7535_v31 }
  0x34   : > { %1512 = vst.msk [vmem:[#allocation4 + $0x5c] sm:$0xf] %vm1108_vm3, %v6566_v15  ;;  %1495 = vst.msk [vmem:[#allocation4 + $0x18] sm:$0xf] %vm1108_vm3, %v6613_v19  ;;  %v393_v26 = vadd.s32 168, %v7439_v7  ;;  %v1146_v27 = vmul.f32 %v6080_v23, %v7488_v56  ;;  %vm807_vm15 = vcmp.lt.s32.totalorder %v541_v22, 15  ;;  %v6554_v54 = vpack.c.bf16 %v7538_v32, %v7538_v32 }
  0x35   : > { %1304 = vst.msk [vmem:[#allocation3 + $0x1c] sm:$0xf] %vm1108_vm3, %v6582_v18  ;;  %v6103_v29 = vsel %vm902_vm14, 1.0, %v7348_v28  ;;  %v548_v30 = vand.u32 15, %v392_v17  ;;  %v7170_v34 = vld [vmem:[#allocation2 + $0x18] sm:$0xff]   ;;  %v6615_v35 = vpack.c.bf16 %v1337_v24, %v1337_v24  ;;  %v6087_v36 = vsel %vm807_vm15, 1.0, %v7348_v28 }
  0x36   : > { %v1351_v37 = vmul.f32 %v6103_v29, %v357_v0  ;;  %v6584_v39 = vpack.c.bf16 %v1146_v27, %v1146_v27  ;;  %v1160_v40 = vmul.f32 %v6087_v36, %v358_v1  ;;  %v555_v41 = vand.u32 15, %v393_v26  ;;  %6834 = vmatprep.mubr.msk.bf16.mxu0 %vm1680_vm2, %v7170_v34  ;;  %1129 = vst.msk [vmem:[#allocation2 + $0x60] sm:$0xf] %vm1108_vm3, %v6567_v38  ;;  %v7568_v60 = vld [vmem:[%s7405_s28 + $0xb0] sm:$0xff]  ;;  %v362_v0 = vld [vmem:[%s7405_s28 + $0xb8] sm:$0xff]  ;;  %v7595_v10 = vld [vmem:[%s7405_s28 + $0xc0] sm:$0xff] }
  0x37   : > { %vm904_vm0 = vcmp.gt.s32.totalorder %v548_v30, 0  ;;  %1497 = vst.msk [vmem:[#allocation4 + $0x20] sm:$0xf] %vm1108_vm3, %v6615_v35  ;;  %1321 = vst.msk [vmem:[#allocation3 + $0x60] sm:$0xf] %vm1108_vm3, %v6567_v38  ;;  %v378_v46 = vadd.s32 48, %v7439_v7  ;;  %v6555_v55 = vpack.c.bf16 %v7541_v33, %v7541_v33  ;;  %v6556_v63 = vpack.c.bf16 %v7551_v47, %v7551_v47 }
  0x38   : > { %v7171_v42 = vld [vmem:[#allocation2 + $0x20] sm:$0xff]   ;;  %v6629_v43 = vpack.c.bf16 %v1351_v37, %v1351_v37  ;;  %v6104_v44 = vsel %vm904_vm0, 1.0, %v7348_v28  ;;  %1306 = vst.msk [vmem:[#allocation3 + $0x24] sm:$0xf] %vm1108_vm3, %v6584_v39  ;;  %v6598_v48 = vpack.c.bf16 %v1160_v40, %v1160_v40  ;;  %vm809_vm1 = vcmp.lt.s32.totalorder %v555_v41, 15  ;;  %v7588_v4 = vld [vmem:[%s8710_s1 + $0x18] sm:$0xff]  }
  0x39   : > { %v1353_v49 = vmul.f32 %v6104_v44, %v359_v16  ;;  %v379_v50 = vadd.s32 56, %v7439_v7  ;;  %6835 = vmatmul.mubr.msk.bf16.gmra.mxu0 %vm1680_vm2, %v7171_v42  ;;  %v6088_v52 = vsel %vm809_vm1, 1.0, %v7348_v28  ;;  %1130 = vst.msk [vmem:[#allocation2 + $0x64] sm:$0xf] %vm1108_vm3, %v6568_v45  ;;  %1514 = vst.msk [vmem:[#allocation4 + $0x64] sm:$0xf] %vm1108_vm3, %v6568_v45  ;;  %6930 = vmatprep.subr.bf16.mxu1 %v7588_v4 }
  0x3a   : > { %v7172_v51 = vld [vmem:[#allocation2 + $0x58] sm:$0xff]   ;;  %1511 = vst.msk [vmem:[#allocation4 + $0x58] sm:$0xf] %vm1108_vm3, %v6629_v43  ;;  %1320 = vst.msk [vmem:[#allocation3 + $0x5c] sm:$0xf] %vm1108_vm3, %v6598_v48  ;;  %v1162_v56 = vmul.f32 %v6088_v52, %v360_v25  ;;  %v450_v58 = vand.u32 15, %v378_v46  ;;  %v6569_v16 = vpack.c.bf16 %v7568_v60, %v7568_v60  ;;  %v6570_v18 = vpack.c.bf16 %v362_v0, %v362_v0 }
  0x3b   : > { %v6631_v57 = vpack.c.bf16 %v1353_v49, %v1353_v49  ;;  %v457_v59 = vand.u32 15, %v379_v50  ;;  %6850 = vmatprep.mubr.msk.bf16.mxu1 %vm1680_vm2, %v7172_v51  ;;  %1115 = vst.msk [vmem:[#allocation2 + $0x28] sm:$0xf] %vm1108_vm3, %v6553_v53  ;;  %1116 = vst.msk [vmem:[#allocation2 + $0x2c] sm:$0xf] %vm1108_vm3, %v6554_v54  ;;  %v380_v61 = vadd.s32 64, %v7439_v7 }
  0x3c   : > { %1307 = vst.msk [vmem:[#allocation3 + $0x28] sm:$0xf] %vm1108_vm3, %v6553_v53  ;;  %1500 = vst.msk [vmem:[#allocation4 + $0x2c] sm:$0xf] %vm1108_vm3, %v6554_v54  ;;  %v381_v62 = vadd.s32 72, %v7439_v7  ;;  %v394_v1 = vadd.s32 176, %v7439_v7  ;;  %v6600_v2 = vpack.c.bf16 %v1162_v56, %v1162_v56 }
  0x3d   : > { %1117 = vst.msk [vmem:[#allocation2 + $0x30] sm:$0xf] %vm1108_vm3, %v6555_v55  ;;  %1309 = vst.msk [vmem:[#allocation3 + $0x30] sm:$0xf] %vm1108_vm3, %v6555_v55  ;;  %vm795_vm4 = vcmp.lt.s32.totalorder %v457_v59, 15  ;;  %vm890_vm5 = vcmp.gt.s32.totalorder %v450_v58, 0 }
  0x3e   : > { %1513 = vst.msk [vmem:[#allocation4 + $0x60] sm:$0xf] %vm1108_vm3, %v6631_v57  ;;  %v395_v3 = vadd.s32 184, %v7439_v7  ;;  %v6081_v5 = vsel %vm795_vm4, 1.0, %v7348_v28  ;;  %v6097_v6 = vsel %vm890_vm5, 1.0, %v7348_v28  ;;  %v464_v8 = vand.u32 15, %v380_v61 }
  0x3f   : > { %v471_v9 = vand.u32 15, %v381_v62  ;;  %1118 = vst.msk [vmem:[#allocation2 + $0x34] sm:$0xf] %vm1108_vm3, %v6556_v63  ;;  %1502 = vst.msk [vmem:[#allocation4 + $0x34] sm:$0xf] %vm1108_vm3, %v6556_v63  ;;  %v7598_v11 = vld [vmem:[%s7405_s28 + $0xc8] sm:$0xff]  ;;  %v1148_v12 = vmul.f32 %v6081_v5, %v7538_v32  ;;  %v1339_v13 = vmul.f32 %v6097_v6, %v7535_v31  ;;  %v6571_v32 = vpack.c.bf16 %v7595_v10, %v7595_v10 }
  0x40   : > { %1322 = vst.msk [vmem:[#allocation3 + $0x64] sm:$0xf] %vm1108_vm3, %v6600_v2  ;;  %v562_v14 = vand.u32 15, %v394_v1  ;;  %v569_v15 = vand.u32 15, %v395_v3  ;;  %vm892_vm7 = vcmp.gt.s32.totalorder %v464_v8, 0  ;;  %v7607_v19 = vld [vmem:[%s7405_s28 + $0x50] sm:$0xff] }
  0x41   : > { %vm797_vm6 = vcmp.lt.s32.totalorder %v471_v9, 15  ;;  %v7612_v20 = vld [vmem:[%s8710_s1 + $0x20] sm:$0xff]   ;;  %v6586_v22 = vpack.c.bf16 %v1148_v12, %v1148_v12  ;;  %v6617_v17 = vpack.c.bf16 %v1339_v13, %v1339_v13  ;;  %v6098_v24 = vsel %vm892_vm7, 1.0, %v7348_v28  ;;  %v7617_v25 = vld [vmem:[%s7405_s28 + $0x58] sm:$0xff]  ;;  %1131 = vst.msk [vmem:[#allocation2 + $0x68] sm:$0xf] %vm1108_vm3, %v6569_v16 }
  0x42   : > { %v7173_v21 = vld [vmem:[#allocation2 + $0x60] sm:$0xff]   ;;  %v6082_v23 = vsel %vm797_vm6, 1.0, %v7348_v28  ;;  %v1341_v27 = vmul.f32 %v6098_v24, %v7541_v33  ;;  %vm811_vm8 = vcmp.lt.s32.totalorder %v569_v15, 15  ;;  %vm7621_vm9 = vcmp.gt.s32.totalorder %v562_v14, 0  ;;  %1132 = vst.msk [vmem:[#allocation2 + $0x6c] sm:$0xf] %vm1108_vm3, %v6570_v18  ;;  %6964 = vmatprep.subr.bf16.mxu0 %v7612_v20 }
  0x43   : > { %v1150_v26 = vmul.f32 %v6082_v23, %v7551_v47  ;;  %1323 = vst.msk [vmem:[#allocation3 + $0x68] sm:$0xf] %vm1108_vm3, %v6569_v16  ;;  %1516 = vst.msk [vmem:[#allocation4 + $0x6c] sm:$0xf] %vm1108_vm3, %v6570_v18  ;;  %6851 = vmatmul.mubr.msk.bf16.gmra.mxu1 %vm1680_vm2, %v7173_v21  ;;  %v7174_v30 = vld [vmem:[#allocation2 + $0x28] sm:$0xff]   ;;  %v6089_v31 = vsel %vm811_vm8, 1.0, %v7348_v28  ;;  %v6572_v33 = vpack.c.bf16 %v7598_v11, %v7598_v11 }
  0x44   : > { %1308 = vst.msk [vmem:[#allocation3 + $0x2c] sm:$0xf] %vm1108_vm3, %v6586_v22  ;;  %1499 = vst.msk [vmem:[#allocation4 + $0x28] sm:$0xf] %vm1108_vm3, %v6617_v17  ;;  %v6557_v34 = vpack.c.bf16 %v7607_v19, %v7607_v19  ;;  %v7641_v35 = vld [vmem:[%s7405_s28 + $0x60] sm:$0xff]  ;;  %v6619_v37 = vpack.c.bf16 %v1341_v27, %v1341_v27  ;;  %v6105_v38 = vsel %vm7621_vm9, 1.0, %v7348_v28  ;;  %v1164_v39 = vmul.f32 %v6089_v31, %v362_v0 }
  0x45   : > { %v6588_v36 = vpack.c.bf16 %v1150_v26, %v1150_v26  ;;  %v7647_v40 = vld [vmem:[%s7405_s28 + $0x68] sm:$0xff]  ;;  %v7650_v41 = vld [vmem:[%s7405_s28 + $0xd0] sm:$0xff]  ;;  %v7653_v42 = vld [vmem:[%s7405_s28 + $0xd8] sm:$0xff]  ;;  %6838 = vmatprep.mubr.msk.bf16.mxu0 %vm1680_vm2, %v7174_v30  ;;  %v1355_v44 = vmul.f32 %v6105_v38, %v7568_v60  ;;  %v396_v45 = vadd.s32 192, %v7439_v7  ;;  %v397_v46 = vadd.s32 200, %v7439_v7 }
  0x46   : > { %v7175_v43 = vld [vmem:[#allocation2 + $0x30] sm:$0xff]   ;;  %1133 = vst.msk [vmem:[#allocation2 + $0x70] sm:$0xf] %vm1108_vm3, %v6571_v32  ;;  %1134 = vst.msk [vmem:[#allocation2 + $0x74] sm:$0xf] %vm1108_vm3, %v6572_v33  ;;  %v382_v47 = vadd.s32 80, %v7439_v7  ;;  %v6602_v48 = vpack.c.bf16 %v1164_v39, %v1164_v39  ;;  %v6558_v50 = vpack.c.bf16 %v7617_v25, %v7617_v25  ;;  %v6559_v59 = vpack.c.bf16 %v7641_v35, %v7641_v35 }
  0x47   : > { %1325 = vst.msk [vmem:[#allocation3 + $0x70] sm:$0xf] %vm1108_vm3, %v6571_v32  ;;  %1518 = vst.msk [vmem:[#allocation4 + $0x74] sm:$0xf] %vm1108_vm3, %v6572_v33  ;;  %v383_v49 = vadd.s32 88, %v7439_v7  ;;  %v384_v51 = vadd.s32 96, %v7439_v7  ;;  %6839 = vmatmul.mubr.msk.bf16.gmra.mxu0 %vm1680_vm2, %v7175_v43  ;;  %v6633_v52 = vpack.c.bf16 %v1355_v44, %v1355_v44  ;;  %v6560_v61 = vpack.c.bf16 %v7647_v40, %v7647_v40 }
  0x48   : > { %1119 = vst.msk [vmem:[#allocation2 + $0x38] sm:$0xf] %vm1108_vm3, %v6557_v34  ;;  %1311 = vst.msk [vmem:[#allocation3 + $0x38] sm:$0xf] %vm1108_vm3, %v6557_v34  ;;  %v576_v53 = vand.u32 15, %v396_v45  ;;  %v583_v54 = vand.u32 15, %v397_v46  ;;  %v6573_v62 = vpack.c.bf16 %v7650_v41, %v7650_v41  ;;  %v6574_v63 = vpack.c.bf16 %v7653_v42, %v7653_v42 }
  0x49   : > { %1310 = vst.msk [vmem:[#allocation3 + $0x34] sm:$0xf] %vm1108_vm3, %v6588_v36  ;;  %1501 = vst.msk [vmem:[#allocation4 + $0x30] sm:$0xf] %vm1108_vm3, %v6619_v37  ;;  %v478_v55 = vand.u32 15, %v382_v47  ;;  %v485_v56 = vand.u32 15, %v383_v49 }
  0x4a   : > { %1324 = vst.msk [vmem:[#allocation3 + $0x6c] sm:$0xf] %vm1108_vm3, %v6602_v48  ;;  %1120 = vst.msk [vmem:[#allocation2 + $0x3c] sm:$0xf] %vm1108_vm3, %v6558_v50  ;;  %v385_v57 = vadd.s32 104, %v7439_v7  ;;  %v492_v58 = vand.u32 15, %v384_v51 }
  0x4b   : > { %1504 = vst.msk [vmem:[#allocation4 + $0x3c] sm:$0xf] %vm1108_vm3, %v6558_v50  ;;  %v7176_v60 = vld [vmem:[#allocation2 + $0x68] sm:$0xff]   ;;  %1515 = vst.msk [vmem:[#allocation4 + $0x68] sm:$0xf] %vm1108_vm3, %v6633_v52  ;;  %vm813_vm10 = vcmp.lt.s32.totalorder %v583_v54, 15 }
  0x4c   : > { %v6090_v0 = vsel %vm813_vm10, 1.0, %v7348_v28  ;;  %vm908_vm11 = vcmp.gt.s32.totalorder %v576_v53, 0  ;;  %vm799_vm12 = vcmp.lt.s32.totalorder %v485_v56, 15  ;;  %vm894_vm13 = vcmp.gt.s32.totalorder %v478_v55, 0  ;;  %1121 = vst.msk [vmem:[#allocation2 + $0x40] sm:$0xf] %vm1108_vm3, %v6559_v59  ;;  %6854 = vmatprep.mubr.msk.bf16.mxu1 %vm1680_vm2, %v7176_v60 }
  0x4d   : > { %1313 = vst.msk [vmem:[#allocation3 + $0x40] sm:$0xf] %vm1108_vm3, %v6559_v59  ;;  %v6106_v1 = vsel %vm908_vm11, 1.0, %v7348_v28  ;;  %v1166_v2 = vmul.f32 %v6090_v0, %v7598_v11  ;;  %v6083_v3 = vsel %vm799_vm12, 1.0, %v7348_v28  ;;  %v6099_v5 = vsel %vm894_vm13, 1.0, %v7348_v28  ;;  %v7701_v6 = vld [vmem:[%s7405_s28 + $0xe0] sm:$0xff] }
  0x4e   : > { %1122 = vst.msk [vmem:[#allocation2 + $0x44] sm:$0xf] %vm1108_vm3, %v6560_v61  ;;  %1506 = vst.msk [vmem:[#allocation4 + $0x44] sm:$0xf] %vm1108_vm3, %v6560_v61  ;;  %v1357_v8 = vmul.f32 %v6106_v1, %v7595_v10  ;;  %v7177_v9 = vld [vmem:[#allocation2 + $0x70] sm:$0xff]   ;;  %v1152_v11 = vmul.f32 %v6083_v3, %v7617_v25  ;;  %v1343_v12 = vmul.f32 %v6099_v5, %v7607_v19  ;;  %v499_v13 = vand.u32 15, %v385_v57 }
  0x4f   : > { %1135 = vst.msk [vmem:[#allocation2 + $0x78] sm:$0xf] %vm1108_vm3, %v6573_v62  ;;  %1136 = vst.msk [vmem:[#allocation2 + $0x7c] sm:$0xf] %vm1108_vm3, %v6574_v63  ;;  %v6604_v14 = vpack.c.bf16 %v1166_v2, %v1166_v2  ;;  %vm896_vm14 = vcmp.gt.s32.totalorder %v492_v58, 0  ;;  %v398_v15 = vadd.s32 208, %v7439_v7  ;;  %6855 = vmatmul.mubr.msk.bf16.gmra.mxu1 %vm1680_vm2, %v7177_v9  ;;  %v6575_v26 = vpack.c.bf16 %v7701_v6, %v7701_v6 }
  0x50   : > { %1327 = vst.msk [vmem:[#allocation3 + $0x78] sm:$0xf] %vm1108_vm3, %v6573_v62  ;;  %1520 = vst.msk [vmem:[#allocation4 + $0x7c] sm:$0xf] %vm1108_vm3, %v6574_v63  ;;  %v399_v16 = vadd.s32 216, %v7439_v7  ;;  %v7709_v18 = vld [vmem:[%s7405_s28 + $0xe8] sm:$0xff]  ;;  %v6635_v21 = vpack.c.bf16 %v1357_v8, %v1357_v8  ;;  %v6590_v22 = vpack.c.bf16 %v1152_v11, %v1152_v11  ;;  %v6621_v17 = vpack.c.bf16 %v1343_v12, %v1343_v12 }
  0x51   : > { %vm801_vm15 = vcmp.lt.s32.totalorder %v499_v13, 15  ;;  %v7182_v10 = vld [vmem:[#allocation4 + $0x8] sm:$0xff]   ;;  %1326 = vst.msk [vmem:[#allocation3 + $0x74] sm:$0xf] %vm1108_vm3, %v6604_v14  ;;  %v7178_v23 = vld [vmem:[#allocation2 + $0x38] sm:$0xff]   ;;  %v6100_v24 = vsel %vm896_vm14, 1.0, %v7348_v28  ;;  %v6576_v34 = vpack.c.bf16 %v7709_v18, %v7709_v18 }
  0x52   : > { %v6084_v19 = vsel %vm801_vm15, 1.0, %v7348_v28  ;;  %v590_v25 = vand.u32 15, %v398_v15  ;;  %v7183_v27 = vld [vmem:[#allocation4 + $0x10] sm:$0xff]   ;;  %1517 = vst.msk [vmem:[#allocation4 + $0x70] sm:$0xf] %vm1108_vm3, %v6635_v21  ;;  %v1345_v30 = vmul.f32 %v6100_v24, %v7641_v35  ;;  %v597_v31 = vand.u32 15, %v399_v16  ;;  %6842 = vmatprep.mubr.msk.bf16.mxu0 %vm1680_vm2, %v7178_v23 }
  0x53   : > { %1312 = vst.msk [vmem:[#allocation3 + $0x3c] sm:$0xf] %vm1108_vm3, %v6590_v22  ;;  %1503 = vst.msk [vmem:[#allocation4 + $0x38] sm:$0xf] %vm1108_vm3, %v6621_v17  ;;  %v1154_v29 = vmul.f32 %v6084_v19, %v7647_v40  ;;  %v400_v32 = vadd.s32 224, %v7439_v7  ;;  %v401_v33 = vadd.s32 232, %v7439_v7 }
  0x54   : > { %vm910_vm0 = vcmp.gt.s32.totalorder %v590_v25, 0  ;;  %1137 = vst.msk [vmem:[#allocation2 + $0x80] sm:$0xf] %vm1108_vm3, %v6575_v26  ;;  %1329 = vst.msk [vmem:[#allocation3 + $0x80] sm:$0xf] %vm1108_vm3, %v6575_v26  ;;  %v6623_v37 = vpack.c.bf16 %v1345_v30, %v1345_v30  ;;  %vm815_vm4 = vcmp.lt.s32.totalorder %v597_v31, 15 }
  0x55   : > { %vm2459_vm1 = vsmask.f32 7424  ;;  %v6592_v36 = vpack.c.bf16 %v1154_v29, %v1154_v29  ;;  %v7179_v38 = vld [vmem:[#allocation2 + $0x40] sm:$0xff]   ;;  %v6107_v35 = vsel %vm910_vm0, 1.0, %v7348_v28  ;;  %v6091_v43 = vsel %vm815_vm4, 1.0, %v7348_v28  ;;  %v7185_v50 = vld [vmem:[#allocation3 + $0xc] sm:$0xff]  }
  0x56   : > { %v7180_v39 = vld [vmem:[#allocation2 + $0x78] sm:$0xff]   ;;  %v7184_v40 = vld [vmem:[#allocation3 + $0x4] sm:$0xf8]   ;;  %v1359_v44 = vmul.f32 %v6107_v35, %v7650_v41  ;;  %v604_v45 = vand.u32 15, %v400_v32  ;;  %1138 = vst.msk [vmem:[#allocation2 + $0x84] sm:$0xf] %vm1108_vm3, %v6576_v34  ;;  %6843 = vmatmul.mubr.msk.bf16.gmra.mxu0 %vm1680_vm2, %v7179_v38  ;;  %v1168_v46 = vmul.f32 %v6091_v43, %v7653_v42 }
  0x57   : > { %1522 = vst.msk [vmem:[#allocation4 + $0x84] sm:$0xf] %vm1108_vm3, %v6576_v34  ;;  %1314 = vst.msk [vmem:[#allocation3 + $0x44] sm:$0xf] %vm1108_vm3, %v6592_v36  ;;  %6858 = vmatprep.mubr.msk.bf16.mxu1 %vm1680_vm2, %v7180_v39  ;;  %v611_v47 = vand.u32 15, %v401_v33  ;;  %v2461_v48 = vshrl.u32 %v7182_v10, 16 }
  0x58   : > { %1505 = vst.msk [vmem:[#allocation4 + $0x40] sm:$0xf] %vm1108_vm3, %v6623_v37  ;;  %v2463_v49 = vshll.u32 %v7182_v10, 16  ;;  %v6637_v41 = vpack.c.bf16 %v1359_v44, %v1359_v44  ;;  %vm912_vm5 = vcmp.gt.s32.totalorder %v604_v45, 0  ;;  %v2468_v51 = vshll.u32 %v7183_v27, 16  ;;  %v7186_v53 = vld [vmem:[#allocation4 + $0x18] sm:$0xff]  }
  0x59   : > { %v2472_v52 = vshrl.u32 %v7183_v27, 16  ;;  %v6606_v54 = vpack.c.bf16 %v1168_v46, %v1168_v46  ;;  %vm817_vm6 = vcmp.lt.s32.totalorder %v611_v47, 15  ;;  %v6108_v55 = vsel %vm912_vm5, 1.0, %v7348_v28  ;;  %v7188_v57 = vld [vmem:[#allocation3 + $0x14] sm:$0xff]   ;;  %v7190_v0 = vld [vmem:[#allocation4 + $0x20] sm:$0xff]   ;;  %v7192_v19 = vld [vmem:[#allocation4 + $0x28] sm:$0xff]  }
  0x5a   : > { %v2465_v56 = vrot.slane %v2463_v49, 1  ;;  %1519 = vst.msk [vmem:[#allocation4 + $0x78] sm:$0xf] %vm1108_vm3, %v6637_v41  ;;  %v6092_v42 = vsel %vm817_vm6, 1.0, %v7348_v28  ;;  %v1361_v58 = vmul.f32 %v6108_v55, %v7701_v6  ;;  %v2470_v59 = vrot.slane %v2468_v51, 1  ;;  %v7191_v1 = vld [vmem:[#allocation3 + $0x1c] sm:$0xff]  }
  0x5b   : > { %vm1973_vm7 = vsmask.f32 4352  ;;  %1328 = vst.msk [vmem:[#allocation3 + $0x7c] sm:$0xf] %vm1108_vm3, %v6606_v54  ;;  %v1170_v60 = vmul.f32 %v6092_v42, %v7709_v18  ;;  %v1975_v62 = vshrl.u32 %v7184_v40, 16  ;;  %v1978_v63 = vshll.u32 %v7184_v40, 16 }
  0x5c   : > { %v2466_v61 = vor.u32 %v2465_v56, %v2461_v48  ;;  %v6639_v2 = vpack.c.bf16 %v1361_v58, %v1361_v58  ;;  %v2474_v3 = vor.u32 %v2472_v52, %v2470_v59  ;;  %v1983_v5 = vshrl.u32 %v7185_v50, 16  ;;  %v7193_v21 = vld [vmem:[#allocation3 + $0x24] sm:$0xff]   ;;  %v7194_v29 = vld [vmem:[#allocation4 + $0x30] sm:$0xff]  }
  0x5d   : > { %v1986_v8 = vshll.u32 %v7185_v50, 16  ;;  %v6608_v9 = vpack.c.bf16 %v1170_v60, %v1170_v60  ;;  %v7181_v11 = vld [vmem:[#allocation2 + $0x80] sm:$0xff]   ;;  %v1977_v6 = vrot.slane %v1975_v62, 3  ;;  %v1980_v13 = vrot.slane %v1978_v63, 4  ;;  %v7195_v35 = vld [vmem:[#allocation3 + $0x2c] sm:$0xff]   ;;  %v7197_v45 = vld [vmem:[#allocation3 + $0x34] sm:$0xff]  }
  0x5e   : > { %v2471_v12 = vsel %vm2459_vm1, %v2466_v61, %v2470_v59  ;;  %1521 = vst.msk [vmem:[#allocation4 + $0x80] sm:$0xf] %vm1108_vm3, %v6639_v2  ;;  %v1985_v14 = vrot.slane %v1983_v5, 3  ;;  %v2476_v16 = vshll.u32 %v7186_v53, 16  ;;  %v1992_v18 = vshrl.u32 %v7188_v57, 16  ;;  %6859 = vmatmul.mubr.msk.bf16.gmra.mxu1 %vm1680_vm2, %v7181_v11  ;;  %v7196_v50 = vld [vmem:[#allocation4 + $0x38] sm:$0xff]  }
  0x5f   : > { %6898 = vmatprep.mubr.msk.bf16.mxu0 %vm1680_vm2, %v2471_v12  ;;  %v1988_v15 = vrot.slane %v1986_v8, 4  ;;  %1330 = vst.msk [vmem:[#allocation3 + $0x84] sm:$0xf] %vm1108_vm3, %v6608_v9  ;;  %v1981_v22 = vor.u32 %v1980_v13, %v1977_v6  ;;  %v1995_v17 = vshll.u32 %v7188_v57, 16  ;;  %v2480_v10 = vshrl.u32 %v7186_v53, 16  ;;  %v7198_v60 = vld [vmem:[#allocation4 + $0x40] sm:$0xff]  }
  0x60   : > { %v2484_v23 = vshll.u32 %v7190_v0, 16  ;;  %v2478_v25 = vrot.slane %v2476_v16, 1  ;;  %v1994_v26 = vrot.slane %v1992_v18, 3  ;;  %v2001_v27 = vshrl.u32 %v7191_v1, 16  ;;  %v7200_v9 = vld [vmem:[#allocation4 + $0x48] sm:$0xff]  }
  0x61   : > { %v1989_v24 = vor.u32 %v1988_v15, %v1985_v14  ;;  %v1997_v30 = vrot.slane %v1995_v17, 4  ;;  %v2004_v32 = vshll.u32 %v7191_v1, 16  ;;  %v2488_v33 = vshrl.u32 %v7190_v0, 16  ;;  %v7199_v1 = vld [vmem:[#allocation3 + $0x3c] sm:$0xff]   ;;  %v7201_v6 = vld [vmem:[#allocation3 + $0x44] sm:$0xff]   ;;  %v7767_v17 = vld [vmem:[#allocation4 + $0x50] sm:$0xff]  }
  0x62   : > { %v2486_v31 = vrot.slane %v2484_v23, 1  ;;  %v2479_v36 = vsel %vm2459_vm1, %v2474_v3, %v2478_v25  ;;  %v2482_v37 = vor.u32 %v2480_v10, %v2478_v25  ;;  %v2003_v38 = vrot.slane %v2001_v27, 3 }
  0x63   : > { %v1990_v34 = vsel %vm1973_vm7, %v1981_v22, %v1989_v24  ;;  %6899 = vmatmul.mubr.msk.bf16.vlgmr.msra.gmra.mxu0 %vm1680_vm2, %v2479_v36  ;;  %v1998_v39 = vor.u32 %v1997_v30, %v1994_v26  ;;  %v2006_v40 = vrot.slane %v2004_v32, 4  ;;  %v2492_v44 = vshll.u32 %v7192_v19, 16 }
  0x64   : > { %6864 = vmatprep.mubr.msk.bf16.mxu1 %vm1680_vm2, %v1990_v34  ;;  %v2490_v43 = vor.u32 %v2488_v33, %v2486_v31  ;;  %6965 = vmatpush3.bf16.msra.mxu0 %v7612_v20  ;;  %v2487_v46 = vsel %vm2459_vm1, %v2482_v37, %v2486_v31  ;;  %v2010_v47 = vshrl.u32 %v7193_v21, 16  ;;  %v2013_v48 = vshll.u32 %v7193_v21, 16 }
  0x65   : > { %v2496_v49 = vshrl.u32 %v7192_v19, 16  ;;  %v1999_v41 = vsel %vm1973_vm7, %v1989_v24, %v1998_v39  ;;  %6902 = vmatprep.mubr.msk.bf16.mxu0 %vm1680_vm2, %v2487_v46  ;;  %v2007_v51 = vor.u32 %v2006_v40, %v2003_v38  ;;  %v2494_v52 = vrot.slane %v2492_v44, 1  ;;  %v7203_v24 = vld [vmem:[#allocation3 + $0x4c] sm:$0xff]   ;;  %v7204_v40 = vld [vmem:[#allocation4 + $0x58] sm:$0xff]  }
  0x66   : > { %v2500_v53 = vshll.u32 %v7194_v29, 16  ;;  %v2012_v54 = vrot.slane %v2010_v47, 3  ;;  %v2015_v55 = vrot.slane %v2013_v48, 4  ;;  %v2019_v56 = vshrl.u32 %v7195_v35, 16  ;;  %6865 = vmatmul.mubr.msk.bf16.vlgmr.msra.gmra.mxu1 %vm1680_vm2, %v1999_v41  ;;  %v7206_v48 = vld [vmem:[#allocation4 + $0x60] sm:$0xff]  }
  0x67   : > { %v2022_v57 = vshll.u32 %v7195_v35, 16  ;;  %v2008_v20 = vsel %vm1973_vm7, %v1998_v39, %v2007_v51  ;;  %v2495_v42 = vsel %vm2459_vm1, %v2490_v43, %v2494_v52  ;;  %v2498_v58 = vor.u32 %v2496_v49, %v2494_v52  ;;  %6931 = vmatpush3.bf16.msra.mxu1 %v7588_v4  ;;  %v7205_v43 = vld [vmem:[#allocation3 + $0x54] sm:$0xff]   ;;  %v7207_v49 = vld [vmem:[#allocation3 + $0x5c] sm:$0xff]  }
  0x68   : > { %v2502_v59 = vrot.slane %v2500_v53, 1  ;;  %6868 = vmatprep.mubr.msk.bf16.mxu1 %vm1680_vm2, %v2008_v20  ;;  %v2016_v61 = vor.u32 %v2015_v55, %v2012_v54  ;;  %v2021_v62 = vrot.slane %v2019_v56, 3  ;;  %v2504_v0 = vshrl.u32 %v7194_v29, 16 }
  0x69   : > { %v2024_v63 = vrot.slane %v2022_v57, 4  ;;  %v2508_v3 = vshll.u32 %v7196_v50, 16  ;;  %v2028_v5 = vshrl.u32 %v7197_v45, 16  ;;  %v2031_v8 = vshll.u32 %v7197_v45, 16 }
  0x6a   : > { %v2503_v2 = vsel %vm2459_vm1, %v2498_v58, %v2502_v59  ;;  %v2512_v12 = vshrl.u32 %v7196_v50, 16  ;;  %v2516_v15 = vshll.u32 %v7198_v60, 16  ;;  %v2017_v16 = vsel %vm1973_vm7, %v2007_v51, %v2016_v61 }
  0x6b   : > { %v2025_v11 = vor.u32 %v2024_v63, %v2021_v62  ;;  %6903 = vmatmul.mubr.msk.bf16.gmra.mxu0 %vm1680_vm2, %v2495_v42  ;;  %v2510_v13 = vrot.slane %v2508_v3, 1  ;;  %v2030_v4 = vrot.slane %v2028_v5, 3  ;;  %v2033_v14 = vrot.slane %v2031_v8, 4 }
  0x6c   : > { %6906 = vmatprep.mubr.msk.bf16.mxu0 %vm1680_vm2, %v2503_v2  ;;  %v2506_v18 = vor.u32 %v2504_v0, %v2502_v59  ;;  %v2037_v21 = vshrl.u32 %v7199_v1, 16  ;;  %v2040_v22 = vshll.u32 %v7199_v1, 16  ;;  %v2518_v19 = vrot.slane %v2516_v15, 1  ;;  %v7209_v2 = vld [vmem:[#allocation3 + $0x64] sm:$0xff]  }
  0x6d   : > { %v2026_v10 = vsel %vm1973_vm7, %v2016_v61, %v2025_v11  ;;  %v2514_v23 = vor.u32 %v2512_v12, %v2510_v13  ;;  %v2520_v27 = vshrl.u32 %v7198_v60, 16  ;;  %v2034_v29 = vor.u32 %v2033_v14, %v2030_v4  ;;  %v7208_v61 = vld [vmem:[#allocation4 + $0x68] sm:$0xff]  }
  0x6e   : > { %v2039_v25 = vrot.slane %v2037_v21, 3  ;;  %v2042_v26 = vrot.slane %v2040_v22, 4  ;;  %6869 = vmatmul.mubr.msk.bf16.gmra.mxu1 %vm1680_vm2, %v2017_v16  ;;  %v2524_v30 = vshll.u32 %v7200_v9, 16  ;;  %v2046_v31 = vshrl.u32 %v7201_v6, 16 }
  0x6f   : > { %6872 = vmatprep.mubr.msk.bf16.mxu1 %vm1680_vm2, %v2026_v10  ;;  %v2511_v32 = vsel %vm2459_vm1, %v2506_v18, %v2510_v13  ;;  %v2519_v33 = vsel %vm2459_vm1, %v2514_v23, %v2518_v19  ;;  %v2049_v36 = vshll.u32 %v7201_v6, 16  ;;  %v2528_v37 = vshrl.u32 %v7200_v9, 16  ;;  %v7211_v9 = vld [vmem:[#allocation3 + $0x6c] sm:$0xff]  }
  0x70   : > { %v2043_v34 = vor.u32 %v2042_v26, %v2039_v25  ;;  %v2532_v38 = vshll.u32 %v7767_v17, 16  ;;  %v2055_v35 = vshrl.u32 %v7203_v24, 16  ;;  %v2058_v39 = vshll.u32 %v7203_v24, 16  ;;  %v7793_v18 = vld [vmem:[#allocation4 + $0x70] sm:$0xff]  }
  0x71   : > { %v2035_v44 = vsel %vm1973_vm7, %v2025_v11, %v2034_v29  ;;  %v2522_v45 = vor.u32 %v2520_v27, %v2518_v19  ;;  %v2526_v46 = vrot.slane %v2524_v30, 1  ;;  %v2048_v47 = vrot.slane %v2046_v31, 3  ;;  %v7788_v11 = vld [vmem:[%s8710_s1 + $0x28] sm:$0xff]   ;;  %v7799_v10 = vld [vmem:[%s8710_s1 + $0x30] sm:$0xff]  }
  0x72   : > { %v2051_v50 = vrot.slane %v2049_v36, 4  ;;  %v2534_v41 = vrot.slane %v2532_v38, 1  ;;  %v2057_v51 = vrot.slane %v2055_v35, 3  ;;  %v2060_v52 = vrot.slane %v2058_v39, 4  ;;  %6998 = vmatprep.subr.bf16.mxu1 %v7788_v11  ;;  %7032 = vmatprep.subr.bf16.mxu0 %v7799_v10  ;;  %v7213_v36 = vld [vmem:[#allocation3 + $0x74] sm:$0xff]  }
  0x73   : > { %6907 = vmatmul.mubr.msk.bf16.gmra.mxu0 %vm1680_vm2, %v2511_v32  ;;  %v2044_v53 = vsel %vm1973_vm7, %v2034_v29, %v2043_v34  ;;  %v2530_v54 = vor.u32 %v2528_v37, %v2526_v46  ;;  %v2064_v55 = vshrl.u32 %v7205_v43, 16  ;;  %v2067_v56 = vshll.u32 %v7205_v43, 16  ;;  %v7212_v32 = vld [vmem:[#allocation4 + $0x78] sm:$0xff]   ;;  %v369_v37 = vld [vmem:[%s7405_s28 + $0xf0] sm:$0xff] }
  0x74   : > { %6910 = vmatprep.mubr.msk.bf16.mxu0 %vm1680_vm2, %v2519_v33  ;;  %v2527_v57 = vsel %vm2459_vm1, %v2522_v45, %v2526_v46  ;;  %v2540_v20 = vshll.u32 %v7204_v40, 16  ;;  %v2052_v42 = vor.u32 %v2051_v50, %v2048_v47  ;;  %v2061_v58 = vor.u32 %v2060_v52, %v2057_v51  ;;  %v7812_v45 = vld [vmem:[#allocation4 + $0x80] sm:$0xff]  }
  0x75   : > { %v2536_v59 = vshrl.u32 %v7767_v17, 16  ;;  %v2544_v60 = vshrl.u32 %v7204_v40, 16  ;;  %v2535_v62 = vsel %vm2459_vm1, %v2530_v54, %v2534_v41  ;;  %v2548_v63 = vshll.u32 %v7206_v48, 16 }
  0x76   : > { %6873 = vmatmul.mubr.msk.bf16.gmra.mxu1 %vm1680_vm2, %v2035_v44  ;;  %v2073_v0 = vshrl.u32 %v7207_v49, 16  ;;  %v2076_v1 = vshll.u32 %v7207_v49, 16  ;;  %v2066_v3 = vrot.slane %v2064_v55, 3  ;;  %v2069_v5 = vrot.slane %v2067_v56, 4 }
  0x77   : > { %6876 = vmatprep.mubr.msk.bf16.mxu1 %vm1680_vm2, %v2044_v53  ;;  %v2542_v8 = vrot.slane %v2540_v20, 1  ;;  %v2053_v12 = vsel %vm1973_vm7, %v2043_v34, %v2052_v42  ;;  %v2062_v6 = vsel %vm1973_vm7, %v2052_v42, %v2061_v58  ;;  %v2538_v13 = vor.u32 %v2536_v59, %v2534_v41  ;;  %v7215_v41 = vld [vmem:[#allocation3 + $0x7c] sm:$0xff]  }
  0x78   : > { %v2550_v14 = vrot.slane %v2548_v63, 1  ;;  %v2075_v15 = vrot.slane %v2073_v0, 3  ;;  %v2078_v16 = vrot.slane %v2076_v1, 4  ;;  %v2070_v21 = vor.u32 %v2069_v5, %v2066_v3  ;;  %v7217_v63 = vld [vmem:[#allocation3 + $0x84] ss:$0 sps:$4 sm:$0xff]  }
  0x79   : > { %v2546_v4 = vor.u32 %v2544_v60, %v2542_v8  ;;  %v2552_v22 = vshrl.u32 %v7206_v48, 16  ;;  %v2556_v17 = vshll.u32 %v7208_v61, 16  ;;  %v2082_v23 = vshrl.u32 %v7209_v2, 16  ;;  %v7219_v1 = vld [vmem:[#allocation3 + $0xc] sm:$0xf8]  }
  0x7a   : > { %v2085_v19 = vshll.u32 %v7209_v2, 16  ;;  %v2091_v24 = vshrl.u32 %v7211_v9, 16  ;;  %v2094_v25 = vshll.u32 %v7211_v9, 16  ;;  %v2543_v26 = vsel %vm2459_vm1, %v2538_v13, %v2542_v8 }
  0x7b   : > { %6911 = vmatmul.mubr.msk.bf16.gmra.mxu0 %vm1680_vm2, %v2527_v57  ;;  %v2551_v27 = vsel %vm2459_vm1, %v2546_v4, %v2550_v14  ;;  %v2079_v29 = vor.u32 %v2078_v16, %v2075_v15  ;;  %v2560_v30 = vshrl.u32 %v7208_v61, 16  ;;  %v2564_v31 = vshll.u32 %v7793_v18, 16 }
  0x7c   : > { %6914 = vmatprep.mubr.msk.bf16.mxu0 %vm1680_vm2, %v2535_v62  ;;  %v2554_v33 = vor.u32 %v2552_v22, %v2550_v14  ;;  %v2558_v34 = vrot.slane %v2556_v17, 1  ;;  %v402_v38 = vadd.s32 240, %v7439_v7  ;;  %v2071_v35 = vsel %vm1973_vm7, %v2061_v58, %v2070_v21 }
  0x7d   : > { %v2084_v39 = vrot.slane %v2082_v23, 3  ;;  %v2087_v40 = vrot.slane %v2085_v19, 4  ;;  %v2093_v43 = vrot.slane %v2091_v24, 3  ;;  %v2096_v44 = vrot.slane %v2094_v25, 4 }
  0x7e   : > { %6877 = vmatmul.mubr.msk.bf16.gmra.mxu1 %vm1680_vm2, %v2053_v12  ;;  %v618_v46 = vand.u32 15, %v402_v38  ;;  %v6577_v47 = vpack.c.bf16 %v369_v37, %v369_v37  ;;  %v2080_v48 = vsel %vm1973_vm7, %v2070_v21, %v2079_v29  ;;  %v2562_v49 = vor.u32 %v2560_v30, %v2558_v34  ;;  %v7226_v30 = vld [vmem:[#allocation3 + $0x24] sm:$0xff]  }
  0x7f   : > { %6880 = vmatprep.mubr.msk.bf16.mxu1 %vm1680_vm2, %v2062_v6  ;;  %v2566_v50 = vrot.slane %v2564_v31, 1  ;;  %v2559_v51 = vsel %vm2459_vm1, %v2554_v33, %v2558_v34  ;;  %v2568_v52 = vshrl.u32 %v7793_v18, 16  ;;  %v2572_v53 = vshll.u32 %v7212_v32, 16  ;;  %v7220_v6 = vld [vmem:[#allocation3 + $0x14] sm:$0xff]  }
  0x80   : > { %vm914_vm8 = vcmp.gt.s32.totalorder %v618_v46, 0  ;;  %1139 = vst.msk [vmem:[#allocation2 + $0x88] sm:$0xf] %vm1108_vm3, %v6577_v47  ;;  %1331 = vst.msk [vmem:[#allocation3 + $0x88] sm:$0xf] %vm1108_vm3, %v6577_v47  ;;  %v2100_v54 = vshrl.u32 %v7213_v36, 16  ;;  %v2088_v57 = vor.u32 %v2087_v40, %v2084_v39  ;;  %v2097_v20 = vor.u32 %v2096_v44, %v2093_v43 }
  0x81   : > { %v2103_v55 = vshll.u32 %v7213_v36, 16  ;;  %v6109_v56 = vsel %vm914_vm8, 1.0, %v7348_v28  ;;  %v2576_v42 = vshrl.u32 %v7212_v32, 16  ;;  %v2567_v59 = vsel %vm2459_vm1, %v2562_v49, %v2566_v50 }
  0x82   : > { %v1363_v58 = vmul.f32 %v6109_v56, %v369_v37  ;;  %v2580_v60 = vshll.u32 %v7812_v45, 16  ;;  %v2109_v61 = vshrl.u32 %v7215_v41, 16  ;;  %v2112_v62 = vshll.u32 %v7215_v41, 16 }
  0x83   : > { %6915 = vmatmul.mubr.msk.bf16.gmra.mxu0 %vm1680_vm2, %v2543_v26  ;;  %v2574_v2 = vrot.slane %v2572_v53, 1  ;;  %v2102_v3 = vrot.slane %v2100_v54, 3  ;;  %v2105_v5 = vrot.slane %v2103_v55, 4  ;;  %v2089_v8 = vsel %vm1973_vm7, %v2079_v29, %v2088_v57  ;;  %v7223_v29 = vld [vmem:[#allocation3 + $0x1c] sm:$0xff]   ;;  %v7228_v55 = vld [vmem:[#allocation3 + $0x2c] sm:$0xff]  }
  0x84   : > { %6918 = vmatprep.mubr.msk.bf16.mxu0 %vm1680_vm2, %v2551_v27  ;;  %v6641_v0 = vpack.c.bf16 %v1363_v58, %v1363_v58  ;;  %v2098_v9 = vsel %vm1973_vm7, %v2088_v57, %v2097_v20  ;;  %v2570_v12 = vor.u32 %v2568_v52, %v2566_v50  ;;  %v2582_v4 = vrot.slane %v2580_v60, 1  ;;  %v7230_v58 = vld [vmem:[#allocation3 + $0x34] sm:$0xff]   ;;  %v7225_v60 = vld [vmem:[#allocation2 + $0x20] sm:$0xff]  }
  0x85   : > { %v2578_v13 = vor.u32 %v2576_v42, %v2574_v2  ;;  %v2111_v14 = vrot.slane %v2109_v61, 3  ;;  %v2114_v15 = vrot.slane %v2112_v62, 4  ;;  %v2106_v16 = vor.u32 %v2105_v5, %v2102_v3  ;;  %v7232_v3 = vld [vmem:[#allocation3 + $0x3c] sm:$0xff]  }
  0x86   : > { %6881 = vmatmul.mubr.msk.bf16.gmra.mxu1 %vm1680_vm2, %v2071_v35  ;;  %1523 = vst.msk [vmem:[#allocation4 + $0x88] sm:$0xf] %vm1108_vm3, %v6641_v0  ;;  %v2118_v18 = vshrl.u32 %v7217_v63, 16  ;;  %v2121_v21 = vshll.u32 %v7217_v63, 16  ;;  %v2958_v22 = vshrl.u32 %v7219_v1, 16  ;;  %v2575_v17 = vsel %vm2459_vm1, %v2570_v12, %v2574_v2 }
  0x87   : > { %6884 = vmatprep.mubr.msk.bf16.mxu1 %vm1680_vm2, %v2080_v48  ;;  %v2961_v23 = vshll.u32 %v7219_v1, 16  ;;  %v2966_v19 = vshrl.u32 %v7220_v6, 16  ;;  %v2583_v24 = vsel %vm2459_vm1, %v2578_v13, %v2582_v4  ;;  %v2115_v25 = vor.u32 %v2114_v15, %v2111_v14  ;;  %v7218_v48 = vld [vmem:[#allocation2 + $0x10] sm:$0xff]   ;;  %v370_v14 = vld [vmem:[%s7405_s28 + $0xf8] sm:$0xff] }
  0x88   : > { %v2584_v26 = vshrl.u32 %v7812_v45, 16  ;;  %v2969_v27 = vshll.u32 %v7220_v6, 16  ;;  %v2107_v31 = vsel %vm1973_vm7, %v2097_v20, %v2106_v16  ;;  %v2120_v33 = vrot.slane %v2118_v18, 3  ;;  %v7227_v18 = vld [vmem:[#allocation2 + $0x28] sm:$0xff]  }
  0x89   : > { %v2123_v34 = vrot.slane %v2121_v21, 4  ;;  %v2960_v36 = vrot.slane %v2958_v22, 3  ;;  %v2963_v37 = vrot.slane %v2961_v23, 4  ;;  %v2968_v38 = vrot.slane %v2966_v19, 3  ;;  %v7229_v22 = vld [vmem:[#allocation2 + $0x30] sm:$0xff]  }
  0x8a   : > { %v2116_v35 = vsel %vm1973_vm7, %v2106_v16, %v2115_v25  ;;  %v2586_v39 = vor.u32 %v2584_v26, %v2582_v4  ;;  %v2971_v43 = vrot.slane %v2969_v27, 4  ;;  %v2975_v45 = vshrl.u32 %v7223_v29, 16  ;;  %v7234_v4 = vld [vmem:[#allocation3 + $0x44] sm:$0xff]   ;;  %v7236_v26 = vld [vmem:[#allocation3 + $0x4c] sm:$0xff]  }
  0x8b   : > { %6919 = vmatmul.mubr.msk.bf16.gmra.mxu0 %vm1680_vm2, %v2559_v51  ;;  %v2978_v46 = vshll.u32 %v7223_v29, 16  ;;  %v2124_v47 = vor.u32 %v2123_v34, %v2120_v33  ;;  %v2984_v49 = vshrl.u32 %v7226_v30, 16  ;;  %v2964_v41 = vor.u32 %v2963_v37, %v2960_v36  ;;  %v7867_v36 = vld [vmem:[%s8710_s1 + $0x38] sm:$0xff]  }
  0x8c   : > { %6922 = vmatprep.mubr.msk.bf16.mxu0 %vm1680_vm2, %v2567_v59  ;;  %v2972_v51 = vor.u32 %v2971_v43, %v2968_v38  ;;  %v2987_v52 = vshll.u32 %v7226_v30, 16  ;;  %v2977_v53 = vrot.slane %v2975_v45, 3  ;;  %v7221_v59 = vld [vmem:[#allocation2 + $0x18] sm:$0xff]   ;;  %v2993_v62 = vshrl.u32 %v7228_v55, 16  ;;  %v7233_v38 = vld [vmem:[#allocation2 + $0x40] sm:$0xff]  }
  0x8d   : > { %v7216_v32 = vld [vmem:[#allocation4 + $0x88] ss:$0 sps:$4 sm:$0x11]   ;;  %v2980_v54 = vrot.slane %v2978_v46, 4  ;;  %v2125_v56 = vsel %vm1973_vm7, %v2115_v25, %v2124_v47  ;;  %v2986_v20 = vrot.slane %v2984_v49, 3  ;;  %v2996_v63 = vshll.u32 %v7228_v55, 16 }
  0x8e   : > { %6885 = vmatmul.mubr.msk.bf16.gmra.mxu1 %vm1680_vm2, %v2089_v8  ;;  %v2588_v40 = vshll.u32 %v7216_v32, 16  ;;  %v2973_v57 = vsel %vm1973_vm7, %v2964_v41, %v2972_v51  ;;  %v2989_v42 = vrot.slane %v2987_v52, 4  ;;  %v3002_v1 = vshrl.u32 %v7230_v58, 16  ;;  %v7238_v30 = vld [vmem:[#allocation3 + $0x54] sm:$0xff]   ;;  %v7876_v46 = vld [vmem:[%s8710_s1 + $0x40] sm:$0xff]  }
  0x8f   : > { %6888 = vmatprep.mubr.msk.bf16.mxu1 %vm1680_vm2, %v2098_v9  ;;  %v2981_v61 = vor.u32 %v2980_v54, %v2977_v53  ;;  %v3005_v2 = vshll.u32 %v7230_v58, 16  ;;  %v2995_v8 = vrot.slane %v2993_v62, 3  ;;  %v2998_v9 = vrot.slane %v2996_v63, 4  ;;  %v7240_v47 = vld [vmem:[#allocation3 + $0x5c] sm:$0xff]   ;;  %v7242_v53 = vld [vmem:[#allocation3 + $0x64] sm:$0xff]  }
  0x90   : > { %v2590_v44 = vrot.slane %v2588_v40, 1  ;;  %v2990_v0 = vor.u32 %v2989_v42, %v2986_v20  ;;  %v3004_v6 = vrot.slane %v3002_v1, 3  ;;  %v403_v15 = vadd.s32 248, %v7439_v7  ;;  %v7235_v54 = vld [vmem:[#allocation2 + $0x48] sm:$0xff]  }
  0x91   : > { %v2982_v5 = vsel %vm1973_vm7, %v2972_v51, %v2981_v61  ;;  %v3007_v13 = vrot.slane %v3005_v2, 4  ;;  %v6578_v16 = vpack.c.bf16 %v370_v14, %v370_v14  ;;  %v3011_v21 = vshrl.u32 %v7232_v3, 16 }
  0x92   : > { %v2591_v50 = vsel %vm2459_vm1, %v2586_v39, %v2590_v44  ;;  %v2991_v12 = vsel %vm1973_vm7, %v2981_v61, %v2990_v0  ;;  %v625_v23 = vand.u32 15, %v403_v15  ;;  %v3023_v7 = vshll.u32 %v7234_v4, 16  ;;  %v7244_v61 = vld [vmem:[#allocation3 + $0x6c] sm:$0xff]   ;;  %v7248_v15 = vld [vmem:[#allocation3 + $0x7c] sm:$0xff]  }
  0x93   : > { %6923 = vmatmul.mubr.msk.bf16.gmra.mxu0 %vm1680_vm2, %v2575_v17  ;;  %v3014_v17 = vshll.u32 %v7232_v3, 16  ;;  %1140 = vst.msk [vmem:[#allocation2 + $0x8c] sm:$0xf] %vm1108_vm3, %v6578_v16  ;;  %1524 = vst.msk [vmem:[#allocation4 + $0x8c] sm:$0xf] %vm1108_vm3, %v6578_v16  ;;  %v3008_v19 = vor.u32 %v3007_v13, %v3004_v6  ;;  %v3013_v25 = vrot.slane %v3011_v21, 3 }
  0x94   : > { %6926 = vmatprep.mubr.msk.bf16.mxu0 %vm1680_vm2, %v2583_v24  ;;  %v3020_v24 = vshrl.u32 %v7234_v4, 16  ;;  %vm819_vm9 = vcmp.lt.s32.totalorder %v625_v23, 15  ;;  %v3025_v34 = vrot.slane %v3023_v7, 4  ;;  %v3032_v40 = vshll.u32 %v7236_v26, 16 }
  0x95   : > { %v3016_v29 = vrot.slane %v3014_v17, 4  ;;  %v3038_v43 = vshrl.u32 %v7238_v30, 16  ;;  %v3041_v45 = vshll.u32 %v7238_v30, 16  ;;  %v3047_v55 = vshrl.u32 %v7240_v47, 16 }
  0x96   : > { %6889 = vmatmul.mubr.msk.bf16.gmra.mxu1 %vm1680_vm2, %v2107_v31  ;;  %v3022_v33 = vrot.slane %v3020_v24, 3  ;;  %v3050_v20 = vshll.u32 %v7240_v47, 16  ;;  %v3056_v58 = vshrl.u32 %v7242_v53, 16  ;;  %v3068_v6 = vshll.u32 %v7244_v61, 16  ;;  %v7250_v24 = vld [vmem:[#allocation3 + $0x84] sm:$0xff]   ;;  %v7255_v47 = vld [vmem:[#allocation4 + $0x10] sm:$0xff]  }
  0x97   : > { %6892 = vmatprep.mubr.msk.bf16.mxu1 %vm1680_vm2, %v2116_v35  ;;  %v3029_v35 = vshrl.u32 %v7236_v26, 16  ;;  %v3017_v39 = vor.u32 %v3016_v29, %v3013_v25  ;;  %v3040_v41 = vrot.slane %v3038_v43, 3  ;;  %v3043_v52 = vrot.slane %v3041_v45, 4  ;;  %v7254_v25 = vld [vmem:[#allocation3 + $0x1c] sm:$0xff]   ;;  %v7253_v26 = vld [vmem:[#allocation3 + $0x14] sm:$0xf8]  }
  0x98   : > { %v3026_v44 = vor.u32 %v3025_v34, %v3022_v33  ;;  %v3052_v63 = vrot.slane %v3050_v20, 4  ;;  %v3058_v2 = vrot.slane %v3056_v58, 3  ;;  %v3070_v21 = vrot.slane %v3068_v6, 4  ;;  %v7247_v43 = vld [vmem:[#allocation2 + $0x78] sm:$0xff]   ;;  %v7907_v6 = vld [vmem:[#allocation4 + $0x28] sm:$0xff]  }
  0x99   : > { %v3031_v49 = vrot.slane %v3029_v35, 3  ;;  %v3044_v42 = vor.u32 %v3043_v52, %v3040_v41  ;;  %v3086_v7 = vshll.u32 %v7248_v15, 16  ;;  %v3092_v30 = vshrl.u32 %v7250_v24, 16  ;;  %v7257_v52 = vld [vmem:[#allocation3 + $0x24] sm:$0xff]  }
  0x9a   : > { %v3027_v51 = vsel %vm1973_vm7, %v3017_v39, %v3026_v44  ;;  %v4341_v34 = vshrl.u32 %v7254_v25, 16  ;;  %v3838_v20 = vshll.u32 %v7255_v47, 16  ;;  %vm5925_vm10 = vcmask 57344  }
  0x9b   : > { %6927 = vmatmul.mubr.msk.bf16.gmra.mxu0 %vm1680_vm2, %v2591_v50  ;;  %v3034_v50 = vrot.slane %v3032_v40, 4  ;;  %v3088_v33 = vrot.slane %v3086_v7, 4  ;;  %v7264_v7 = vld [vmem:[#allocation4 + $0x30] sm:$0xff]  }
  0x9c   : > { %6966 = vmatprep.mubr.msk.bf16.mxu0 %vm1680_vm2, %v7218_v48  ;;  %v3018_v48 = vsel %vm1973_vm7, %v3008_v19, %v3017_v39 }
  0x9e   : > { %6893 = vmatmul.mubr.msk.bf16.gmra.mxu1 %vm1680_vm2, %v2125_v56  ;;  %v3035_v56 = vor.u32 %v3034_v50, %v3031_v49  ;;  %v7249_v49 = vld [vmem:[#allocation2 + $0x80] sm:$0xff]   ;;  %v4343_v50 = vrot.slane %v4341_v34, 3 }
  0x9f   : > { %6932 = vmatprep.mubr.msk.bf16.mxu1 %vm1680_vm2, %v2973_v57  ;;  %v7237_v57 = vld [vmem:[#allocation2 + $0x50] sm:$0xff]  }
  0xa0   : > { %v3036_v62 = vsel %vm1973_vm7, %v3026_v44, %v3035_v56  ;;  %v3045_v1 = vsel %vm1973_vm7, %v3035_v56, %v3044_v42  ;;  %v3094_v44 = vrot.slane %v3092_v30, 3 }
  0xa3   : > { %6967 = vmatmul.mubr.msk.bf16.vlgmr.msra.gmra.mxu0 %vm1680_vm2, %v7221_v59  ;;  %v3059_v59 = vshll.u32 %v7242_v53, 16 }
  0xa4   : > { %7033 = vmatpush3.bf16.msra.mxu0 %v7799_v10  ;;  %6970 = vmatprep.mubr.msk.bf16.mxu0 %vm1680_vm2, %v7225_v60  ;;  %v2999_v10 = vor.u32 %v2998_v9, %v2995_v8  ;;  %v3049_v60 = vrot.slane %v3047_v55, 3  ;;  %v7241_v9 = vld [vmem:[#allocation2 + $0x60] sm:$0xff]  }
  0xa5   : > { %7100 = vmatprep.subr.bf16.mxu0 %v7876_v46  ;;  %v3061_v3 = vrot.slane %v3059_v59, 4  ;;  %v3836_v59 = vshrl.u32 %v7255_v47, 16 }
  0xa6   : > { %6933 = vmatmul.mubr.msk.bf16.vlgmr.msra.gmra.mxu1 %vm1680_vm2, %v2982_v5  ;;  %v3000_v27 = vsel %vm1973_vm7, %v2990_v0, %v2999_v10  ;;  %v3009_v32 = vsel %vm1973_vm7, %v2999_v10, %v3008_v19  ;;  %v7246_v0 = vld [vmem:[#allocation3 + $0x74] sm:$0xff]   ;;  %v3053_v8 = vor.u32 %v3052_v63, %v3049_v60  ;;  %v3083_v19 = vshrl.u32 %v7248_v15, 16 }
  0xa7   : > { %6999 = vmatpush3.bf16.msra.mxu1 %v7788_v11  ;;  %6936 = vmatprep.mubr.msk.bf16.mxu1 %vm1680_vm2, %v2991_v12  ;;  %v6093_v11 = vsel %vm819_vm9, 1.0, %v7348_v28  ;;  %v7231_v28 = vld [vmem:[#allocation2 + $0x38] sm:$0xff]   ;;  %v3065_v12 = vshrl.u32 %v7244_v61, 16  ;;  %v3074_v13 = vshrl.u32 %v7246_v0, 16  ;;  %v3062_v4 = vor.u32 %v3061_v3, %v3058_v2 }
  0xa8   : > { %v1172_v31 = vmul.f32 %v6093_v11, %v370_v14  ;;  %7066 = vmatprep.subr.bf16.mxu1 %v7867_v36  ;;  %v7239_v5 = vld [vmem:[#allocation2 + $0x58] sm:$0xff]   ;;  %v3077_v14 = vshll.u32 %v7246_v0, 16  ;;  %v3054_v16 = vsel %vm1973_vm7, %v3044_v42, %v3053_v8  ;;  %v7261_v42 = vld [vmem:[#allocation3 + $0x2c] sm:$0xff]   ;;  %v4350_v61 = vshrl.u32 %v7257_v52, 16 }
  0xa9   : > { %v3063_v10 = vsel %vm1973_vm7, %v3053_v8, %v3062_v4  ;;  %v3076_v17 = vrot.slane %v3074_v13, 3  ;;  %v7259_v8 = vld [vmem:[#allocation4 + $0x20] sm:$0xff]   ;;  %v7251_v13 = vld [vmem:[#allocation2 + $0x88] sm:$0xff]   ;;  %v7263_v15 = vld [vmem:[#allocation3 + $0x34] sm:$0xff]  }
  0xaa   : > { %v6610_v37 = vpack.c.bf16 %v1172_v31, %v1172_v31  ;;  %v3079_v23 = vrot.slane %v3077_v14, 4  ;;  %v3095_v31 = vshll.u32 %v7250_v24, 16  ;;  %v3859_v24 = vshll.u32 %v7907_v6, 16 }
  0xab   : > { %6971 = vmatmul.mubr.msk.bf16.gmra.mxu0 %vm1680_vm2, %v7227_v18  ;;  %v3067_v18 = vrot.slane %v3065_v12, 3  ;;  %v4362_v12 = vshll.u32 %v7261_v42, 16  ;;  %v4371_v30 = vshll.u32 %v7263_v15, 16 }
  0xac   : > { %6974 = vmatprep.mubr.msk.bf16.mxu0 %vm1680_vm2, %v7229_v22  ;;  %1332 = vst.msk [vmem:[#allocation3 + $0x8c] sm:$0xf] %vm1108_vm3, %v6610_v37  ;;  %v7243_v22 = vld [vmem:[#allocation2 + $0x68] sm:$0xff]   ;;  %v3080_v29 = vor.u32 %v3079_v23, %v3076_v17  ;;  %v4344_v37 = vshll.u32 %v7254_v25, 16  ;;  %v3097_v45 = vrot.slane %v3095_v31, 4  ;;  %v3851_v17 = vshll.u32 %v7259_v8, 16 }
  0xad   : > { %v3071_v11 = vor.u32 %v3070_v21, %v3067_v18  ;;  %v4373_v47 = vrot.slane %v4371_v30, 4  ;;  %vm5750_vm3 = vcmask 64512  }
  0xae   : > { %6937 = vmatmul.mubr.msk.bf16.gmra.mxu1 %vm1680_vm2, %v3000_v27  ;;  %v7245_v27 = vld [vmem:[#allocation2 + $0x70] sm:$0xff]   ;;  %v4346_v41 = vrot.slane %v4344_v37, 4  ;;  %v3853_v37 = vrot.slane %v3851_v17, 1 }
  0xaf   : > { %6940 = vmatprep.mubr.msk.bf16.mxu1 %vm1680_vm2, %v3009_v32  ;;  %v3085_v32 = vrot.slane %v3083_v19, 3  ;;  %v3072_v35 = vsel %vm1973_vm7, %v3062_v4, %v3071_v11  ;;  %v3081_v40 = vsel %vm1973_vm7, %v3071_v11, %v3080_v29  ;;  %v4352_v4 = vrot.slane %v4350_v61, 3 }
  0xb0   : > { %v4347_v2 = vor.u32 %v4346_v41, %v4343_v50  ;;  %v4364_v19 = vrot.slane %v4362_v12, 4  ;;  %v4368_v11 = vshrl.u32 %v7263_v15, 16  ;;  %v7269_v41 = vld [vmem:[#allocation3 + $0x4c] sm:$0xff]  }
  0xb1   : > { %v4398_v61 = vshll.u32 %v7269_v41, 16 }
  0xb3   : > { %6975 = vmatmul.mubr.msk.bf16.gmra.mxu0 %vm1680_vm2, %v7231_v28  ;;  %v4333_v28 = vshrl.u32 %v7253_v26, 16  ;;  %v7252_v39 = vld [vmem:[#allocation3 + $0x8c] ss:$0 sps:$4 sm:$0xff]  }
  0xb4   : > { %6978 = vmatprep.mubr.msk.bf16.mxu0 %vm1680_vm2, %v7233_v38  ;;  %v4336_v38 = vshll.u32 %v7253_v26, 16  ;;  %v3101_v53 = vshrl.u32 %v7252_v39, 16 }
  0xb5   : > { %v4335_v55 = vrot.slane %v4333_v28, 3  ;;  %v3861_v28 = vrot.slane %v3859_v24, 1 }
  0xb6   : > { %6941 = vmatmul.mubr.msk.bf16.gmra.mxu1 %vm1680_vm2, %v3018_v48  ;;  %v3089_v48 = vor.u32 %v3088_v33, %v3085_v32  ;;  %v4338_v56 = vrot.slane %v4336_v38, 4  ;;  %v3103_v63 = vrot.slane %v3101_v53, 3  ;;  %v3867_v38 = vshll.u32 %v7264_v7, 16 }
  0xb7   : > { %6944 = vmatprep.mubr.msk.bf16.mxu1 %vm1680_vm2, %v3027_v51  ;;  %v7256_v51 = vld [vmem:[#allocation4 + $0x18] sm:$0xff]  }
  0xb8   : > { %v3090_v58 = vsel %vm1973_vm7, %v3080_v29, %v3089_v48  ;;  %v3843_v60 = vshll.u32 %v7256_v51, 16  ;;  %v3847_v25 = vshrl.u32 %v7256_v51, 16  ;;  %v3855_v29 = vshrl.u32 %v7259_v8, 16  ;;  %v7273_v8 = vld [vmem:[#allocation3 + $0x5c] sm:$0xff]  }
  0xb9   : > { %v3863_v51 = vshrl.u32 %v7907_v6, 16  ;;  %v4416_v17 = vshll.u32 %v7273_v8, 16 }
  0xba   : > { %v3845_v21 = vrot.slane %v3843_v60, 1  ;;  %v4395_v60 = vshrl.u32 %v7269_v41, 16 }
  0xbb   : > { %6979 = vmatmul.mubr.msk.bf16.gmra.mxu0 %vm1680_vm2, %v7235_v54  ;;  %v3104_v54 = vshll.u32 %v7252_v39, 16 }
  0xbc   : > { %6982 = vmatprep.mubr.msk.bf16.mxu0 %vm1680_vm2, %v7237_v57  ;;  %v3098_v57 = vor.u32 %v3097_v45, %v3094_v44  ;;  %v3849_v39 = vor.u32 %v3847_v25, %v3845_v21  ;;  %v3857_v45 = vor.u32 %v3855_v29, %v3853_v37  ;;  %v4397_v6 = vrot.slane %v4395_v60, 3  ;;  %v7943_v25 = vld [vmem:[#allocation4 + $0x58] sm:$0xff]  }
  0xbd   : > { %v3106_v0 = vrot.slane %v3104_v54, 4 }
  0xbe   : > { %6945 = vmatmul.mubr.msk.bf16.gmra.mxu1 %vm1680_vm2, %v3036_v62  ;;  %v4353_v62 = vshll.u32 %v7257_v52, 16  ;;  %v3099_v3 = vsel %vm1973_vm7, %v3089_v48, %v3098_v57  ;;  %v3869_v52 = vrot.slane %v3867_v38, 1  ;;  %v4418_v38 = vrot.slane %v4416_v17, 4 }
  0xbf   : > { %6948 = vmatprep.mubr.msk.bf16.mxu1 %vm1680_vm2, %v3045_v1  ;;  %v4339_v1 = vor.u32 %v4338_v56, %v4335_v55  ;;  %v3854_v55 = vsel %vm2459_vm1, %v3849_v39, %v3853_v37  ;;  %v3862_v56 = vsel %vm2459_vm1, %v3857_v45, %v3861_v28  ;;  %v3907_v39 = vshll.u32 %v7943_v25, 16 }
  0xc0   : > { %v4355_v14 = vrot.slane %v4353_v62, 4  ;;  %v7271_v62 = vld [vmem:[#allocation3 + $0x54] sm:$0xff]  }
  0xc1   : > { %v4348_v18 = vsel %vm1973_vm7, %v4339_v1, %v4347_v2 }
  0xc2   : > { %v4356_v26 = vor.u32 %v4355_v14, %v4352_v4  ;;  %v4404_v14 = vshrl.u32 %v7271_v62, 16 }
  0xc3   : > { %6983 = vmatmul.mubr.msk.bf16.gmra.mxu0 %vm1680_vm2, %v7239_v5  ;;  %v3840_v5 = vrot.slane %v3838_v20, 1 }
  0xc4   : > { %6986 = vmatprep.mubr.msk.bf16.mxu0 %vm1680_vm2, %v7241_v9  ;;  %v4359_v9 = vshrl.u32 %v7261_v42, 16  ;;  %v4357_v44 = vsel %vm1973_vm7, %v4347_v2, %v4356_v26  ;;  %v7268_v42 = vld [vmem:[#allocation4 + $0x40] sm:$0xff]  }
  0xc5   : > { %v3883_v4 = vshll.u32 %v7268_v42, 16 }
  0xc6   : > { %6949 = vmatmul.mubr.msk.bf16.gmra.mxu1 %vm1680_vm2, %v3054_v16  ;;  %v3107_v16 = vor.u32 %v3106_v0, %v3103_v63  ;;  %v4361_v23 = vrot.slane %v4359_v9, 3  ;;  %v3865_v63 = vor.u32 %v3863_v51, %v3861_v28 }
  0xc7   : > { %6952 = vmatprep.mubr.msk.bf16.mxu1 %vm1680_vm2, %v3063_v10  ;;  %v7265_v10 = vld [vmem:[#allocation3 + $0x3c] sm:$0xff]   ;;  %v3885_v24 = vrot.slane %v3883_v4, 1 }
  0xc8   : > { %v4377_v31 = vshrl.u32 %v7265_v10, 16  ;;  %v4365_v33 = vor.u32 %v4364_v19, %v4361_v23  ;;  %v4380_v34 = vshll.u32 %v7265_v10, 16  ;;  %v3870_v15 = vsel %vm2459_vm1, %v3865_v63, %v3869_v52  ;;  %v7272_v10 = vld [vmem:[#allocation4 + $0x50] sm:$0xff]  }
  0xca   : > { %v4379_v48 = vrot.slane %v4377_v31, 3  ;;  %v4382_v50 = vrot.slane %v4380_v34, 4  ;;  %v3899_v31 = vshll.u32 %v7272_v10, 16 }
  0xcb   : > { %6987 = vmatmul.mubr.msk.bf16.gmra.mxu0 %vm1680_vm2, %v7243_v22  ;;  %v3841_v22 = vor.u32 %v3840_v5, %v3836_v59  ;;  %v3871_v59 = vshrl.u32 %v7264_v7, 16  ;;  %v4406_v7 = vrot.slane %v4404_v14, 3 }
  0xcc   : > { %6990 = vmatprep.mubr.msk.bf16.mxu0 %vm1680_vm2, %v7245_v27  ;;  %v3108_v27 = vsel %vm1973_vm7, %v3098_v57, %v3107_v16  ;;  %v3887_v16 = vshrl.u32 %v7268_v42, 16  ;;  %v3901_v51 = vrot.slane %v3899_v31, 1 }
  0xcd   : > { %v3846_v32 = vsel %vm2459_vm1, %v3841_v22, %v3845_v21  ;;  %v3873_v12 = vor.u32 %v3871_v59, %v3869_v52  ;;  %v4413_v22 = vshrl.u32 %v7273_v8, 16  ;;  %v7279_v59 = vld [vmem:[#allocation3 + $0x74] sm:$0xff]  }
  0xce   : > { %6953 = vmatmul.mubr.msk.bf16.gmra.mxu1 %vm1680_vm2, %v3072_v35  ;;  %v7917_v35 = vld [vmem:[#allocation4 + $0x38] sm:$0xff]   ;;  %v3889_v37 = vor.u32 %v3887_v16, %v3885_v24  ;;  %v4440_v8 = vshrl.u32 %v7279_v59, 16 }
  0xcf   : > { %6956 = vmatprep.mubr.msk.bf16.mxu1 %vm1680_vm2, %v3081_v40  ;;  %v4370_v40 = vrot.slane %v4368_v11, 3  ;;  %v3875_v53 = vshll.u32 %v7917_v35, 16  ;;  %v3879_v2 = vshrl.u32 %v7917_v35, 16  ;;  %v7275_v11 = vld [vmem:[#allocation3 + $0x64] sm:$0xff]   ;;  %v4415_v28 = vrot.slane %v4413_v22, 3  ;;  %v7280_v22 = vld [vmem:[#allocation4 + $0x70] sm:$0xff]  }
  0xd0   : > { %v4422_v45 = vshrl.u32 %v7275_v11, 16 }
  0xd1   : > { %v4374_v57 = vor.u32 %v4373_v47, %v4370_v40  ;;  %v3877_v0 = vrot.slane %v3875_v53, 1  ;;  %v4425_v47 = vshll.u32 %v7275_v11, 16  ;;  %v4419_v52 = vor.u32 %v4418_v38, %v4415_v28  ;;  %v7283_v11 = vld [vmem:[#allocation3 + $0x84] sm:$0xff]  }
  0xd2   : > { %v4424_v42 = vrot.slane %v4422_v45, 3  ;;  %v4458_v45 = vshrl.u32 %v7283_v11, 16 }
  0xd3   : > { %6991 = vmatmul.mubr.msk.bf16.gmra.mxu0 %vm1680_vm2, %v7247_v43  ;;  %v7267_v43 = vld [vmem:[#allocation3 + $0x44] sm:$0xff]   ;;  %v3878_v23 = vsel %vm2459_vm1, %v3873_v12, %v3877_v0  ;;  %v3881_v29 = vor.u32 %v3879_v2, %v3877_v0  ;;  %v7281_v0 = vld [vmem:[#allocation3 + $0x7c] sm:$0xff]  }
  0xd4   : > { %6994 = vmatprep.mubr.msk.bf16.mxu0 %vm1680_vm2, %v7249_v49  ;;  %v4366_v49 = vsel %vm1973_vm7, %v4356_v26, %v4365_v33  ;;  %v4386_v54 = vshrl.u32 %v7267_v43, 16  ;;  %v4389_v20 = vshll.u32 %v7267_v43, 16 }
  0xd6   : > { %6957 = vmatmul.mubr.msk.bf16.gmra.mxu1 %vm1680_vm2, %v3090_v58  ;;  %v4383_v58 = vor.u32 %v4382_v50, %v4379_v48  ;;  %v4388_v1 = vrot.slane %v4386_v54, 3  ;;  %v4391_v5 = vrot.slane %v4389_v20, 4  ;;  %v3886_v48 = vsel %vm2459_vm1, %v3881_v29, %v3885_v24 }
  0xd7   : > { %6960 = vmatprep.mubr.msk.bf16.mxu1 %vm1680_vm2, %v3099_v3  ;;  %v4375_v3 = vsel %vm1973_vm7, %v4365_v33, %v4374_v57  ;;  %v7277_v33 = vld [vmem:[#allocation3 + $0x6c] sm:$0xff]   ;;  %v3909_v54 = vrot.slane %v3907_v39, 1 }
  0xd8   : > { %v4384_v9 = vsel %vm1973_vm7, %v4374_v57, %v4383_v58  ;;  %v4434_v50 = vshll.u32 %v7277_v33, 16 }
  0xda   : > { %v4436_v63 = vrot.slane %v4434_v50, 4  ;;  %v7284_v50 = vld [vmem:[#allocation4 + $0x80] sm:$0xff]  }
  0xdb   : > { %6995 = vmatmul.mubr.msk.bf16.gmra.mxu0 %vm1680_vm2, %v7251_v13  ;;  %v4400_v13 = vrot.slane %v4398_v61, 4  ;;  %v4427_v61 = vrot.slane %v4425_v47, 4  ;;  %v4461_v47 = vshll.u32 %v7283_v11, 16 }
  0xdc   : > { %7034 = vmatprep.mubr.msk.bf16.mxu0 %vm1680_vm2, %v4348_v18  ;;  %v4407_v18 = vshll.u32 %v7271_v62, 16 }
  0xdd   : > { %v4401_v19 = vor.u32 %v4400_v13, %v4397_v6  ;;  %v4428_v13 = vor.u32 %v4427_v61, %v4424_v42  ;;  %v4463_v61 = vrot.slane %v4461_v47, 4 }
  0xde   : > { %6961 = vmatmul.mubr.msk.bf16.gmra.mxu1 %vm1680_vm2, %v3108_v27  ;;  %v4409_v26 = vrot.slane %v4407_v18, 4  ;;  %v4449_v18 = vshrl.u32 %v7281_v0, 16 }
  0xdf   : > { %7000 = vmatprep.mubr.msk.bf16.mxu1 %vm1680_vm2, %v3846_v32 }
  0xe0   : > { %v4410_v43 = vor.u32 %v4409_v26, %v4406_v7  ;;  %v4429_v7 = vsel %vm1973_vm7, %v4419_v52, %v4428_v13  ;;  %v7988_v26 = vld [vmem:[#allocation4 + $0x78] sm:$0xff]  }
  0xe2   : > { %v4411_v57 = vsel %vm1973_vm7, %v4401_v19, %v4410_v43 }
  0xe3   : > { %7035 = vmatmul.mubr.msk.bf16.vlgmr.msra.gmra.mxu0 %vm1680_vm2, %v4357_v44  ;;  %v3903_v44 = vshrl.u32 %v7272_v10, 16 }
  0xe4   : > { %7101 = vmatpush3.bf16.msra.mxu0 %v7876_v46  ;;  %7038 = vmatprep.mubr.msk.bf16.mxu0 %vm1680_vm2, %v4366_v49  ;;  %v7932_v46 = vld [vmem:[#allocation4 + $0x48] sm:$0xff]   ;;  %v4431_v49 = vshrl.u32 %v7277_v33, 16 }
  0xe5   : > { %v3891_v21 = vshll.u32 %v7932_v46, 16  ;;  %v3895_v35 = vshrl.u32 %v7932_v46, 16  ;;  %v3905_v60 = vor.u32 %v3903_v44, %v3901_v51  ;;  %v3911_v46 = vshrl.u32 %v7943_v25, 16  ;;  %v7285_v33 = vld [vmem:[#allocation3 + $0x8c] sm:$0xff]  }
  0xe6   : > { %7001 = vmatmul.mubr.msk.bf16.vlgmr.msra.gmra.mxu1 %vm1680_vm2, %v3854_v55  ;;  %v4433_v62 = vrot.slane %v4431_v49, 3  ;;  %v3939_v44 = vshll.u32 %v7988_v26, 16 }
  0xe7   : > { %7067 = vmatpush3.bf16.msra.mxu1 %v7867_v36  ;;  %7004 = vmatprep.mubr.msk.bf16.mxu1 %vm1680_vm2, %v3862_v56  ;;  %v4392_v36 = vor.u32 %v4391_v5, %v4388_v1  ;;  %v3893_v30 = vrot.slane %v3891_v21, 1  ;;  %v7276_v56 = vld [vmem:[#allocation4 + $0x60] sm:$0xff]   ;;  %v4420_v1 = vsel %vm1973_vm7, %v4410_v43, %v4419_v52  ;;  %v3910_v6 = vsel %vm2459_vm1, %v3905_v60, %v3909_v54 }
  0xe8   : > { %v3919_v4 = vshrl.u32 %v7276_v56, 16  ;;  %v4437_v14 = vor.u32 %v4436_v63, %v4433_v62  ;;  %v3913_v17 = vor.u32 %v3911_v46, %v3909_v54  ;;  %v3935_v43 = vshrl.u32 %v7280_v22, 16  ;;  %v7286_v62 = vld [vmem:[#allocation4 + $0x88] sm:$0xff]   ;;  %v7287_v63 = vld [vmem:[#allocation3 + $0x94] ss:$0 sps:$4 sm:$0xff]  }
  0xe9   : > { %v4393_v27 = vsel %vm1973_vm7, %v4383_v58, %v4392_v36  ;;  %v4402_v34 = vsel %vm1973_vm7, %v4392_v36, %v4401_v19  ;;  %v3894_v41 = vsel %vm2459_vm1, %v3889_v37, %v3893_v30  ;;  %v3897_v20 = vor.u32 %v3895_v35, %v3893_v30  ;;  %v7965_v58 = vld [vmem:[#allocation4 + $0x68] sm:$0xff]  }
  0xea   : > { %v3923_v16 = vshll.u32 %v7965_v58, 16  ;;  %v4452_v36 = vshll.u32 %v7281_v0, 16  ;;  %v4451_v30 = vrot.slane %v4449_v18, 3  ;;  %v3931_v37 = vshll.u32 %v7280_v22, 16 }
  0xeb   : > { %7039 = vmatmul.mubr.msk.bf16.gmra.mxu0 %vm1680_vm2, %v4375_v3  ;;  %v7948_v32 = vpop.f32.mrf.mxu0  ;;  %v3915_v3 = vshll.u32 %v7276_v56, 16  ;;  %v3902_v12 = vsel %vm2459_vm1, %v3897_v20, %v3901_v51  ;;  %v3927_v39 = vshrl.u32 %v7965_v58, 16  ;;  %v4470_v51 = vshll.u32 %v7285_v33, 16 }
  0xec   : > { %7042 = vmatprep.mubr.msk.bf16.mxu0 %vm1680_vm2, %v4384_v9  ;;  %v4443_v9 = vshll.u32 %v7279_v59, 16  ;;  %v3925_v29 = vrot.slane %v3923_v16, 1  ;;  %v4454_v31 = vrot.slane %v4452_v36, 4  ;;  %v3933_v54 = vrot.slane %v3931_v37, 1 }
  0xed   : > { %v7953_v40 = vpop.f32.mrf.mxu0  ;;  %v3917_v21 = vrot.slane %v3915_v3, 1  ;;  %v3941_v59 = vrot.slane %v3939_v44, 1  ;;  %v4460_v60 = vrot.slane %v4458_v45, 3  ;;  %v4472_v3 = vrot.slane %v4470_v51, 4 }
  0xee   : > { %7005 = vmatmul.mubr.msk.bf16.gmra.mxu1 %vm1680_vm2, %v3870_v15  ;;  %v7961_v55 = vpop.f32.mrf.mxu1  ;;  %v4445_v19 = vrot.slane %v4443_v9, 4  ;;  %v4455_v49 = vor.u32 %v4454_v31, %v4451_v30  ;;  %v3929_v20 = vor.u32 %v3927_v39, %v3925_v29  ;;  %v3937_v58 = vor.u32 %v3935_v43, %v3933_v54  ;;  %v7288_v37 = vld [vmem:[#allocation4 + $0x90] ss:$0 sps:$4 sm:$0x11]  }
  0xef   : > { %7008 = vmatprep.mubr.msk.bf16.mxu1 %vm1680_vm2, %v3878_v23  ;;  %v7959_v53 = vpop.f32.mrf.mxu0  ;;  %v4442_v23 = vrot.slane %v4440_v8, 3  ;;  %v3921_v25 = vor.u32 %v3919_v4, %v3917_v21  ;;  %v3918_v38 = vsel %vm2459_vm1, %v3913_v17, %v3917_v21  ;;  %v7289_v8 = vld [vmem:[#allocation4 + $0x18] sm:$0xff]   ;;  %v3951_v4 = vshrl.u32 %v7284_v50, 16 }
  0xf0   : > { %v7972_v5 = vpop.f32.mrf.mxu1  ;;  %v3955_v18 = vshll.u32 %v7286_v62, 16  ;;  %v4476_v36 = vshrl.u32 %v7287_v63, 16  ;;  %v4479_v21 = vshll.u32 %v7287_v63, 16  ;;  %v3942_v17 = vsel %vm2459_vm1, %v3937_v58, %v3941_v59  ;;  %v7294_v58 = vld [vmem:[#allocation4 + $0x30] sm:$0xff]  }
  0xf1   : > { %v7969_v2 = vpop.f32.mrf.mxu0  ;;  %v4446_v35 = vor.u32 %v4445_v19, %v4442_v23  ;;  %v5211_v39 = vshrl.u32 %v7289_v8, 16  ;;  %v3963_v51 = vshll.u32 %v7288_v37, 16 }
  0xf2   : > { %v7981_v10 = vpop.f32.mrf.mxu1  ;;  %v3957_v30 = vrot.slane %v3955_v18, 1  ;;  %v4478_v31 = vrot.slane %v4476_v36, 3  ;;  %v7296_v18 = vld [vmem:[#allocation4 + $0x38] sm:$0xff]  }
  0xf3   : > { %7043 = vmatmul.mubr.msk.bf16.gmra.mxu0 %vm1680_vm2, %v4393_v27  ;;  %v4438_v27 = vsel %vm1973_vm7, %v4428_v13, %v4437_v14  ;;  %v4456_v0 = vsel %vm1973_vm7, %v4446_v35, %v4455_v49  ;;  %v3943_v13 = vshrl.u32 %v7988_v26, 16  ;;  %v5246_v37 = vshrl.u32 %v7296_v18, 16 }
  0xf4   : > { %7046 = vmatprep.mubr.msk.bf16.mxu0 %vm1680_vm2, %v4402_v34  ;;  %v7991_v34 = vpop.f32.mrf.mxu1 }
  0xf5   : > { %v3945_v26 = vor.u32 %v3943_v13, %v3941_v59 }
  0xf6   : > { %7009 = vmatmul.mubr.msk.bf16.gmra.mxu1 %vm1680_vm2, %v3886_v48  ;;  %v3926_v48 = vsel %vm2459_vm1, %v3921_v25, %v3925_v29  ;;  %v5213_v25 = vshll.u32 %v7289_v8, 16 }
  0xf7   : > { %7012 = vmatprep.mubr.msk.bf16.mxu1 %vm1680_vm2, %v3894_v41  ;;  %v4467_v41 = vshrl.u32 %v7285_v33, 16  ;;  %v4481_v33 = vrot.slane %v4479_v21, 4 }
  0xf8   : > { %v5215_v43 = vrot.slane %v5213_v25, 1 }
  0xf9   : > { %v7978_v15 = vpop.f32.mrf.mxu0  ;;  %v4469_v46 = vrot.slane %v4467_v41, 3  ;;  %v3959_v41 = vshrl.u32 %v7286_v62, 16 }
  0xfb   : > { %7047 = vmatmul.mubr.msk.bf16.gmra.mxu0 %vm1680_vm2, %v4411_v57  ;;  %v7984_v24 = vpop.f32.mrf.mxu0  ;;  %v4447_v57 = vsel %vm1973_vm7, %v4437_v14, %v4446_v35  ;;  %v4464_v14 = vor.u32 %v4463_v61, %v4460_v60  ;;  %v4473_v19 = vor.u32 %v4472_v3, %v4469_v46 }
  0xfc   : > { %7050 = vmatprep.mubr.msk.bf16.mxu0 %vm1680_vm2, %v4420_v1  ;;  %v3947_v1 = vshll.u32 %v7284_v50, 16  ;;  %v4482_v50 = vor.u32 %v4481_v33, %v4478_v31 }
  0xfd   : > { %v7993_v28 = vpop.f32.mrf.mxu0  ;;  %v4465_v29 = vsel %vm1973_vm7, %v4455_v49, %v4464_v14  ;;  %v4474_v35 = vsel %vm1973_vm7, %v4464_v14, %v4473_v19 }
  0xfe   : > { %7013 = vmatmul.mubr.msk.bf16.gmra.mxu1 %vm1680_vm2, %v3902_v12  ;;  %v3949_v23 = vrot.slane %v3947_v1, 1  ;;  %v4483_v63 = vsel %vm1973_vm7, %v4473_v19, %v4482_v50  ;;  %v3965_v1 = vrot.slane %v3963_v51, 1 }
  0xff   : > { %7016 = vmatprep.mubr.msk.bf16.mxu1 %vm1680_vm2, %v3910_v6  ;;  %v8003_v56 = vpop.f32.mrf.mxu0  ;;  %v3934_v6 = vsel %vm2459_vm1, %v3929_v20, %v3933_v54 }
 0x100   : > { %v3950_v49 = vsel %vm2459_vm1, %v3945_v26, %v3949_v23 }
 0x103   : > { %7051 = vmatmul.mubr.msk.bf16.gmra.mxu0 %vm1680_vm2, %v4429_v7  ;;  %v8001_v52 = vpop.f32.mrf.mxu1  ;;  %v7290_v7 = vld [vmem:[#allocation4 + $0x20] sm:$0xff]  }
 0x104   : > { %7054 = vmatprep.mubr.msk.bf16.mxu0 %vm1680_vm2, %v4438_v27  ;;  %v3953_v27 = vor.u32 %v3951_v4, %v3949_v23  ;;  %v5218_v44 = vshll.u32 %v7290_v7, 16  ;;  %v5222_v62 = vshrl.u32 %v7290_v7, 16  ;;  %v7298_v7 = vld [vmem:[#allocation4 + $0x40] sm:$0xff]  }
 0x105   : > { %v8008_v42 = vpop.f32.mrf.mxu1 }
 0x106   : > { %7017 = vmatmul.mubr.msk.bf16.gmra.mxu1 %vm1680_vm2, %v3918_v38  ;;  %v3958_v54 = vsel %vm2459_vm1, %v3953_v27, %v3957_v30  ;;  %v5220_v20 = vrot.slane %v5218_v44, 1  ;;  %v5242_v27 = vshll.u32 %v7296_v18, 16  ;;  %v7293_v44 = vld [vmem:[#allocation2 + $0x20] sm:$0xff]  }
 0x107   : > { %7020 = vmatprep.mubr.msk.bf16.mxu1 %vm1680_vm2, %v3926_v48  ;;  %v8011_v9 = vpop.f32.mrf.mxu1  ;;  %v8013_v12 = vpop.f32.mrf.mxu0  ;;  %v7292_v48 = vld [vmem:[#allocation4 + $0x28] sm:$0xff]  }
 0x108   : > { %v5226_v61 = vshll.u32 %v7292_v48, 16  ;;  %v5230_v8 = vshrl.u32 %v7292_v48, 16  ;;  %v5224_v21 = vor.u32 %v5222_v62, %v5220_v20  ;;  %v5244_v48 = vrot.slane %v5242_v27, 1 }
 0x109   : > { %v8019_v16 = vpop.f32.mrf.mxu0  ;;  %v8021_v22 = vpop.f32.mrf.mxu1 }
 0x10a   : > { %v5228_v14 = vrot.slane %v5226_v61, 1 }
 0x10b   : > { %7055 = vmatmul.mubr.msk.bf16.gmra.mxu0 %vm1680_vm2, %v4447_v57  ;;  %v8025_v11 = vpop.f32.mrf.mxu0  ;;  %v5216_v57 = vor.u32 %v5215_v43, %v5211_v39 }
 0x10c   : > { %7058 = vmatprep.mubr.msk.bf16.mxu0 %vm1680_vm2, %v4456_v0  ;;  %v3961_v0 = vor.u32 %v3959_v41, %v3957_v30  ;;  %v5232_v23 = vor.u32 %v5230_v8, %v5228_v14  ;;  %v5238_v30 = vshrl.u32 %v7294_v58, 16  ;;  %v7295_v41 = vld [vmem:[#allocation2 + $0x28] sm:$0xff]  }
 0x10d   : > { %v8035_v47 = vpop.f32.mrf.mxu0  ;;  %v5221_v3 = vsel %vm2459_vm1, %v5216_v57, %v5220_v20  ;;  %v5248_v57 = vor.u32 %v5246_v37, %v5244_v48 }
 0x10e   : > { %7021 = vmatmul.mubr.msk.bf16.gmra.mxu1 %vm1680_vm2, %v3934_v6  ;;  %v5234_v6 = vshll.u32 %v7294_v58, 16  ;;  %v3966_v36 = vsel %vm2459_vm1, %v3961_v0, %v3965_v1  ;;  %v7302_v58 = vld [vmem:[#allocation4 + $0x50] sm:$0xff]  }
 0x10f   : > { %7024 = vmatprep.mubr.msk.bf16.mxu1 %vm1680_vm2, %v3942_v17  ;;  %v8029_v38 = vpop.f32.mrf.mxu1  ;;  %v7291_v17 = vld [vmem:[#allocation2 + $0x18] sm:$0xff]  }
 0x110   : > { %v5236_v19 = vrot.slane %v5234_v6, 1 }
 0x111   : > { %v8033_v45 = vpop.f32.mrf.mxu1 }
 0x112   : > { %v5237_v33 = vsel %vm2459_vm1, %v5232_v23, %v5236_v19  ;;  %v5240_v50 = vor.u32 %v5238_v30, %v5236_v19 }
 0x113   : > { %7059 = vmatmul.mubr.msk.bf16.gmra.mxu0 %vm1680_vm2, %v4465_v29  ;;  %v8041_v59 = vpop.f32.mrf.mxu1  ;;  %v5229_v29 = vsel %vm2459_vm1, %v5224_v21, %v5228_v14 }
 0x114   : > { %7062 = vmatprep.mubr.msk.bf16.mxu0 %vm1680_vm2, %v4474_v35  ;;  %v5250_v35 = vshll.u32 %v7298_v7, 16  ;;  %v5245_v62 = vsel %vm2459_vm1, %v5240_v50, %v5244_v48  ;;  %v7306_v48 = vld [vmem:[#allocation4 + $0x60] sm:$0xff]  }
 0x115   : > { %v8050_v13 = vpop.f32.mrf.mxu1 }
 0x116   : > { %7025 = vmatmul.mubr.msk.bf16.gmra.mxu1 %vm1680_vm2, %v3950_v49  ;;  %v8043_v60 = vpop.f32.mrf.mxu0  ;;  %v7300_v49 = vld [vmem:[#allocation4 + $0x48] sm:$0xff]   ;;  %v5252_v20 = vrot.slane %v5250_v35, 1 }
 0x117   : > { %7028 = vmatprep.mubr.msk.bf16.mxu1 %vm1680_vm2, %v3958_v54  ;;  %v5258_v0 = vshll.u32 %v7300_v49, 16  ;;  %v5262_v18 = vshrl.u32 %v7300_v49, 16 }
 0x118   : > { %v8047_v46 = vpop.f32.mrf.mxu0  ;;  %v5253_v14 = vsel %vm2459_vm1, %v5248_v57, %v5252_v20 }
 0x119   : > { %v5260_v27 = vrot.slane %v5258_v0, 1 }
 0x11a   : > { %v8053_v4 = vpop.f32.mrf.mxu0 }
 0x11b   : > { %7063 = vmatmul.mubr.msk.bf16.gmra.mxu0 %vm1680_vm2, %v4483_v63 }
 0x11c   : > { %7102 = vmatprep.mubr.msk.bf16.mxu0 %vm1680_vm2, %v5221_v3  ;;  %v8060_v26 = vpop.f32.mrf.mxu0  ;;  %v5254_v3 = vshrl.u32 %v7298_v7, 16 }
 0x11e   : > { %v8057_v25 = vpop.f32.mrf.mxu1  ;;  %7029 = vmatmul.mubr.msk.bf16.gmra.mxu1 %vm1680_vm2, %v3966_v36  ;;  %v5266_v36 = vshll.u32 %v7302_v58, 16  ;;  %v5256_v7 = vor.u32 %v5254_v3, %v5252_v20  ;;  %v5282_v3 = vshll.u32 %v7306_v48, 16 }
 0x11f   : > { %7068 = vmatprep.mubr.msk.bf16.mxu1 %vm1680_vm2, %v7291_v17 }
 0x120   : > { %v8064_v31 = vpop.f32.mrf.mxu1 }
 0x122   : > { %v8067_v39 = vpop.f32.mrf.mxu1 }
 0x123   : > { %v6900_v43 = vpop.f32.mrf.mxu0  ;;  %7103 = vmatmul.mubr.msk.bf16.vlgmr.msra.gmra.mxu0 %vm1680_vm2, %v5229_v29  ;;  %v7304_v29 = vld [vmem:[#allocation4 + $0x58] sm:$0xff]  }
 0x124   : > { %7106 = vmatprep.mubr.msk.bf16.mxu0 %vm1680_vm2, %v5237_v33  ;;  %v8071_v51 = vpop.f32.mrf.mxu1  ;;  %v7299_v33 = vld [vmem:[#allocation2 + $0x38] sm:$0xff]  }
 0x125   : > { %v2680_v54 = vpop.f32.mrf.mxu0 }
 0x126   : > { %v6866_v61 = vpop.f32.mrf.mxu1  ;;  %7069 = vmatmul.mubr.msk.bf16.vlgmr.msra.gmra.mxu1 %vm1680_vm2, %v7293_v44 }
 0x127   : > { %v6901_v63 = vpop.f32.mrf.mxu0  ;;  %v2223_v1 = vadd.f32 %v6866_v61, %v7948_v32  ;;  %7072 = vmatprep.mubr.msk.bf16.mxu1 %vm1680_vm2, %v7295_v41  ;;  %v7297_v32 = vld [vmem:[#allocation2 + $0x30] sm:$0xff]   ;;  %v5270_v61 = vshrl.u32 %v7302_v58, 16 }
 0x128   : > { %v2214_v8 = vpop.f32.mrf.mxu1 }
 0x129   : > { %v2683_v6 = vpop.f32.mrf.mxu0  ;;  %v2215_v21 = vadd.f32 %v2214_v8, %v7953_v40  ;;  %v8079_v17 = vadd.f32 %v6900_v43, %v2223_v1  ;;  %v5264_v40 = vor.u32 %v5262_v18, %v5260_v27  ;;  %v5268_v43 = vrot.slane %v5266_v36, 1 }
 0x12a   : > { %v6867_v23 = vpop.f32.mrf.mxu1 }
 0x12b   : > { %v6904_v19 = vpop.f32.mrf.mxu0  ;;  %7107 = vmatmul.mubr.msk.bf16.gmra.mxu0 %vm1680_vm2, %v5245_v62  ;;  %v2226_v30 = vadd.f32 %v6867_v23, %v7959_v53  ;;  %v8084_v37 = vadd.f32 %v2680_v54, %v2215_v21  ;;  %v5274_v53 = vshll.u32 %v7304_v29, 16  ;;  %v5261_v54 = vsel %vm2459_vm1, %v5256_v7, %v5260_v27  ;;  %v7308_v23 = vld [vmem:[#allocation4 + $0x68] sm:$0xff]   ;;  %v7310_v7 = vld [vmem:[#allocation4 + $0x70] sm:$0xff]  }
 0x12c   : > { %7110 = vmatprep.mubr.msk.bf16.mxu0 %vm1680_vm2, %v5253_v14  ;;  %v2217_v35 = vpop.f32.mrf.mxu1 }
 0x12d   : > { %v2696_v44 = vpop.f32.mrf.mxu0  ;;  %v2218_v49 = vadd.f32 %v2217_v35, %v7969_v2  ;;  %v8087_v50 = vadd.f32 %v6901_v63, %v2226_v30  ;;  %v5269_v2 = vsel %vm2459_vm1, %v5264_v40, %v5268_v43  ;;  %v5278_v63 = vshrl.u32 %v7304_v29, 16 }
 0x12e   : > { %v6870_v41 = vpop.f32.mrf.mxu1  ;;  %7073 = vmatmul.mubr.msk.bf16.gmra.mxu1 %vm1680_vm2, %v7297_v32  ;;  %v5276_v21 = vrot.slane %v5274_v53, 1  ;;  %v7303_v32 = vld [vmem:[#allocation2 + $0x48] sm:$0xff]  }
 0x12f   : > { %v6905_v57 = vpop.f32.mrf.mxu0  ;;  %v2239_v20 = vadd.f32 %v6870_v41, %v7978_v15  ;;  %7076 = vmatprep.mubr.msk.bf16.mxu1 %vm1680_vm2, %v7299_v33  ;;  %v8093_v0 = vadd.f32 %v2683_v6, %v2218_v49  ;;  %v7301_v15 = vld [vmem:[#allocation2 + $0x40] sm:$0xff]   ;;  %v5272_v6 = vor.u32 %v5270_v61, %v5268_v43  ;;  %v5286_v41 = vshrl.u32 %v7306_v48, 16 }
 0x130   : > { %v2230_v1 = vpop.f32.mrf.mxu1  ;;  %v5298_v61 = vshll.u32 %v7310_v7, 16 }
 0x131   : > { %v2699_v62 = vpop.f32.mrf.mxu0  ;;  %v2231_v8 = vadd.f32 %v2230_v1, %v7984_v24  ;;  %v8097_v14 = vadd.f32 %v6904_v19, %v2239_v20  ;;  %v5280_v24 = vor.u32 %v5278_v63, %v5276_v21  ;;  %v5284_v19 = vrot.slane %v5282_v3, 1 }
 0x132   : > { %v6871_v18 = vpop.f32.mrf.mxu1 }
 0x133   : > { %v6908_v36 = vpop.f32.mrf.mxu0  ;;  %7111 = vmatmul.mubr.msk.bf16.gmra.mxu0 %vm1680_vm2, %v5261_v54  ;;  %v2242_v58 = vadd.f32 %v6871_v18, %v7993_v28  ;;  %v8102_v27 = vadd.f32 %v2696_v44, %v2231_v8  ;;  %v5290_v28 = vshll.u32 %v7308_v23, 16  ;;  %v5277_v44 = vsel %vm2459_vm1, %v5272_v6, %v5276_v21  ;;  %v7312_v18 = vld [vmem:[#allocation4 + $0x78] sm:$0xff]   ;;  %v7314_v6 = vld [vmem:[#allocation4 + $0x80] sm:$0xff]  }
 0x134   : > { %7114 = vmatprep.mubr.msk.bf16.mxu0 %vm1680_vm2, %v5269_v2  ;;  %v2233_v29 = vpop.f32.mrf.mxu1 }
 0x135   : > { %v2712_v30 = vpop.f32.mrf.mxu0  ;;  %v2234_v33 = vadd.f32 %v2233_v29, %v8003_v56  ;;  %v8105_v35 = vadd.f32 %v6905_v57, %v2242_v58  ;;  %v5285_v56 = vsel %vm2459_vm1, %v5280_v24, %v5284_v19  ;;  %v5294_v57 = vshrl.u32 %v7308_v23, 16 }
 0x136   : > { %v6874_v40 = vpop.f32.mrf.mxu1  ;;  %7077 = vmatmul.mubr.msk.bf16.gmra.mxu1 %vm1680_vm2, %v7301_v15  ;;  %v5292_v8 = vrot.slane %v5290_v28, 1  ;;  %v7307_v15 = vld [vmem:[#allocation2 + $0x58] sm:$0xff]  }
 0x137   : > { %v6909_v49 = vpop.f32.mrf.mxu0  ;;  %v2255_v43 = vadd.f32 %v6874_v40, %v8013_v12  ;;  %7080 = vmatprep.mubr.msk.bf16.mxu1 %vm1680_vm2, %v7303_v32  ;;  %v8111_v53 = vadd.f32 %v2699_v62, %v2234_v33  ;;  %v7305_v12 = vld [vmem:[#allocation2 + $0x50] sm:$0xff]   ;;  %v5288_v62 = vor.u32 %v5286_v41, %v5284_v19  ;;  %v5302_v40 = vshrl.u32 %v7310_v7, 16 }
 0x138   : > { %v2246_v20 = vpop.f32.mrf.mxu1  ;;  %v5314_v41 = vshll.u32 %v7314_v6, 16 }
 0x139   : > { %v2715_v54 = vpop.f32.mrf.mxu0  ;;  %v2247_v1 = vadd.f32 %v2246_v20, %v8019_v16  ;;  %v8115_v2 = vadd.f32 %v6908_v36, %v2255_v43  ;;  %v5296_v16 = vor.u32 %v5294_v57, %v5292_v8  ;;  %v5300_v36 = vrot.slane %v5298_v61, 1 }
 0x13a   : > { %v6875_v63 = vpop.f32.mrf.mxu1 }
 0x13b   : > { %v6912_v3 = vpop.f32.mrf.mxu0  ;;  %7115 = vmatmul.mubr.msk.bf16.gmra.mxu0 %vm1680_vm2, %v5277_v44  ;;  %v2258_v48 = vadd.f32 %v6875_v63, %v8025_v11  ;;  %v8120_v21 = vadd.f32 %v2712_v30, %v2247_v1  ;;  %v5306_v11 = vshll.u32 %v7312_v18, 16  ;;  %v5293_v30 = vsel %vm2459_vm1, %v5288_v62, %v5292_v8  ;;  %v7316_v63 = vld [vmem:[#allocation4 + $0x88] sm:$0xff]   ;;  %v7318_v62 = vld [vmem:[#allocation4 + $0x90] sm:$0xff]  }
 0x13c   : > { %7118 = vmatprep.mubr.msk.bf16.mxu0 %vm1680_vm2, %v5285_v56  ;;  %v2249_v23 = vpop.f32.mrf.mxu1 }
 0x13d   : > { %v2728_v58 = vpop.f32.mrf.mxu0  ;;  %v2250_v32 = vadd.f32 %v2249_v23, %v8035_v47  ;;  %v8123_v29 = vadd.f32 %v6909_v49, %v2258_v48  ;;  %v5301_v47 = vsel %vm2459_vm1, %v5296_v16, %v5300_v36  ;;  %v5310_v49 = vshrl.u32 %v7312_v18, 16 }
 0x13e   : > { %v6878_v24 = vpop.f32.mrf.mxu1  ;;  %7081 = vmatmul.mubr.msk.bf16.gmra.mxu1 %vm1680_vm2, %v7305_v12  ;;  %v5308_v1 = vrot.slane %v5306_v11, 1  ;;  %v7311_v12 = vld [vmem:[#allocation2 + $0x68] sm:$0xff]  }
 0x13f   : > { %v6913_v33 = vpop.f32.mrf.mxu0  ;;  %v2271_v19 = vadd.f32 %v6878_v24, %v8043_v60  ;;  %7084 = vmatprep.mubr.msk.bf16.mxu1 %vm1680_vm2, %v7307_v15  ;;  %v8129_v28 = vadd.f32 %v2715_v54, %v2250_v32  ;;  %v7309_v60 = vld [vmem:[#allocation2 + $0x60] sm:$0xff]   ;;  %v5304_v54 = vor.u32 %v5302_v40, %v5300_v36  ;;  %v5318_v24 = vshrl.u32 %v7314_v6, 16 }
 0x140   : > { %v2262_v43 = vpop.f32.mrf.mxu1  ;;  %v5330_v40 = vshll.u32 %v7318_v62, 16 }
 0x141   : > { %v2731_v44 = vpop.f32.mrf.mxu0  ;;  %v2263_v20 = vadd.f32 %v2262_v43, %v8047_v46  ;;  %v8133_v56 = vadd.f32 %v6912_v3, %v2271_v19  ;;  %v5312_v46 = vor.u32 %v5310_v49, %v5308_v1  ;;  %v5316_v3 = vrot.slane %v5314_v41, 1 }
 0x142   : > { %v6879_v57 = vpop.f32.mrf.mxu1 }
 0x143   : > { %v6916_v61 = vpop.f32.mrf.mxu0  ;;  %7119 = vmatmul.mubr.msk.bf16.gmra.mxu0 %vm1680_vm2, %v5293_v30  ;;  %v2274_v7 = vadd.f32 %v6879_v57, %v8053_v4  ;;  %v8138_v8 = vadd.f32 %v2728_v58, %v2263_v20  ;;  %v5322_v4 = vshll.u32 %v7316_v63, 16  ;;  %v5309_v58 = vsel %vm2459_vm1, %v5304_v54, %v5308_v1  ;;  %v7315_v57 = vld [vmem:[#allocation2 + $0x78] sm:$0xff]  }
 0x144   : > { %7122 = vmatprep.mubr.msk.bf16.mxu0 %vm1680_vm2, %v5301_v47  ;;  %v2265_v18 = vpop.f32.mrf.mxu1 }
 0x145   : > { %v2744_v48 = vpop.f32.mrf.mxu0  ;;  %v2266_v15 = vadd.f32 %v2265_v18, %v8060_v26  ;;  %v8141_v23 = vadd.f32 %v6913_v33, %v2274_v7  ;;  %v5317_v26 = vsel %vm2459_vm1, %v5312_v46, %v5316_v3  ;;  %v5326_v33 = vshrl.u32 %v7316_v63, 16 }
 0x146   : > { %v6882_v16 = vpop.f32.mrf.mxu1  ;;  %7085 = vmatmul.mubr.msk.bf16.gmra.mxu1 %vm1680_vm2, %v7309_v60  ;;  %v5324_v20 = vrot.slane %v5322_v4, 1  ;;  %v7320_v60 = vld [vmem:[#allocation4 + $0x98] ss:$0 sps:$4 sm:$0x11]  }
 0x147   : > { %v6917_v32 = vpop.f32.mrf.mxu0  ;;  %v2287_v36 = vadd.f32 %v6882_v16, %v7961_v55  ;;  %7088 = vmatprep.mubr.msk.bf16.mxu1 %vm1680_vm2, %v7311_v12  ;;  %v8147_v11 = vadd.f32 %v2731_v44, %v2266_v15  ;;  %v7313_v55 = vld [vmem:[#allocation2 + $0x70] sm:$0xff]   ;;  %v5320_v44 = vor.u32 %v5318_v24, %v5316_v3  ;;  %v5338_v15 = vshll.u32 %v7320_v60, 16 }
 0x148   : > { %v2278_v19 = vpop.f32.mrf.mxu1 }
 0x149   : > { %v2747_v30 = vpop.f32.mrf.mxu0  ;;  %v2279_v43 = vadd.f32 %v2278_v19, %v7972_v5  ;;  %v8151_v47 = vadd.f32 %v6916_v61, %v2287_v36  ;;  %v5328_v5 = vor.u32 %v5326_v33, %v5324_v20  ;;  %v5332_v61 = vrot.slane %v5330_v40, 1 }
 0x14a   : > { %v6883_v49 = vpop.f32.mrf.mxu1  ;;  %v5340_v33 = vrot.slane %v5338_v15, 1 }
 0x14b   : > { %v6920_v41 = vpop.f32.mrf.mxu0  ;;  %7123 = vmatmul.mubr.msk.bf16.gmra.mxu0 %vm1680_vm2, %v5309_v58  ;;  %v2290_v6 = vadd.f32 %v6883_v49, %v7981_v10  ;;  %v8156_v1 = vadd.f32 %v2744_v48, %v2279_v43  ;;  %v5334_v10 = vshrl.u32 %v7318_v62, 16  ;;  %v5325_v48 = vsel %vm2459_vm1, %v5320_v44, %v5324_v20 }
 0x14c   : > { %7126 = vmatprep.mubr.msk.bf16.mxu0 %vm1680_vm2, %v5317_v26  ;;  %v2281_v63 = vpop.f32.mrf.mxu1 }
 0x14d   : > { %v2760_v7 = vpop.f32.mrf.mxu0  ;;  %v2282_v54 = vadd.f32 %v2281_v63, %v7991_v34  ;;  %v8159_v12 = vadd.f32 %v6917_v32, %v2290_v6  ;;  %v5333_v34 = vsel %vm2459_vm1, %v5328_v5, %v5332_v61  ;;  %v5336_v26 = vor.u32 %v5334_v10, %v5332_v61  ;;  %v7321_v61 = vld [vmem:[#allocation2 + $0x90] sm:$0xff]  }
 0x14e   : > { %v6886_v18 = vpop.f32.mrf.mxu1  ;;  %7089 = vmatmul.mubr.msk.bf16.gmra.mxu1 %vm1680_vm2, %v7313_v55 }
 0x14f   : > { %v6921_v46 = vpop.f32.mrf.mxu0  ;;  %v2303_v3 = vadd.f32 %v6886_v18, %v8001_v52  ;;  %7092 = vmatprep.mubr.msk.bf16.mxu1 %vm1680_vm2, %v7315_v57  ;;  %v8165_v16 = vadd.f32 %v2747_v30, %v2282_v54  ;;  %v7317_v52 = vld [vmem:[#allocation2 + $0x80] sm:$0xff]   ;;  %v7319_v30 = vld [vmem:[#allocation2 + $0x88] sm:$0xff]  }
 0x150   : > { %v2294_v4 = vpop.f32.mrf.mxu1 }
 0x151   : > { %v2763_v36 = vpop.f32.mrf.mxu0  ;;  %v2295_v32 = vadd.f32 %v2294_v4, %v8008_v42  ;;  %v8169_v58 = vadd.f32 %v6920_v41, %v2303_v3 }
 0x152   : > { %v6887_v24 = vpop.f32.mrf.mxu1 }
 0x153   : > { %v6924_v19 = vpop.f32.mrf.mxu0  ;;  %7127 = vmatmul.mubr.msk.bf16.gmra.mxu0 %vm1680_vm2, %v5325_v48  ;;  %v2306_v62 = vadd.f32 %v6887_v24, %v8011_v9  ;;  %v8174_v40 = vadd.f32 %v2760_v7, %v2295_v32  ;;  %v5341_v9 = vsel %vm2459_vm1, %v5336_v26, %v5340_v33 }
 0x154   : > { %7130 = vmatprep.mubr.msk.bf16.mxu0 %vm1680_vm2, %v5333_v34  ;;  %v2297_v43 = vpop.f32.mrf.mxu1 }
 0x155   : > { %v2776_v49 = vpop.f32.mrf.mxu0  ;;  %v2298_v42 = vadd.f32 %v2297_v43, %v8021_v22  ;;  %v8177_v41 = vadd.f32 %v6921_v46, %v2306_v62 }
 0x156   : > { %v6890_v55 = vpop.f32.mrf.mxu1  ;;  %7093 = vmatmul.mubr.msk.bf16.gmra.mxu1 %vm1680_vm2, %v7317_v52 }
 0x157   : > { %v6925_v20 = vpop.f32.mrf.mxu0  ;;  %v2319_v6 = vadd.f32 %v6890_v55, %v8029_v38  ;;  %7096 = vmatprep.mubr.msk.bf16.mxu1 %vm1680_vm2, %v7319_v30  ;;  %v8183_v44 = vadd.f32 %v2763_v36, %v2298_v42 }
 0x158   : > { %v2310_v57 = vpop.f32.mrf.mxu1 }
 0x159   : > { %v2779_v60 = vpop.f32.mrf.mxu0  ;;  %v2311_v63 = vadd.f32 %v2310_v57, %v8033_v45  ;;  %v8186_v7 = vadd.f32 %v6924_v19, %v2319_v6 }
 0x15a   : > { %v6891_v22 = vpop.f32.mrf.mxu1 }
 0x15b   : > { %v6928_v5 = vpop.f32.mrf.mxu0  ;;  %7131 = vmatmul.mubr.msk.bf16.gmra.mxu0 %vm1680_vm2, %v5341_v9  ;;  %v2322_v54 = vadd.f32 %v6891_v22, %v8041_v59  ;;  %v8190_v38 = vadd.f32 %v2776_v49, %v2311_v63 }
 0x15c   : > { %v2313_v18 = vpop.f32.mrf.mxu1 }
 0x15d   : > { %v2792_v46 = vpop.f32.mrf.mxu0  ;;  %v2314_v10 = vadd.f32 %v2313_v18, %v8050_v13  ;;  %v8193_v3 = vadd.f32 %v6925_v20, %v2322_v54 }
 0x15e   : > { %v6894_v48 = vpop.f32.mrf.mxu1  ;;  %7097 = vmatmul.mubr.msk.bf16.gmra.mxu1 %vm1680_vm2, %v7321_v61  ;;  %vm5717_vm2 = vcmask 60416  }
 0x15f   : > { %v6929_v45 = vpop.f32.mrf.mxu0  ;;  %v2335_v15 = vadd.f32 %v6894_v48, %v8057_v25  ;;  %v8197_v4 = vadd.f32 %v2779_v60, %v2314_v10 }
 0x160   : > { %v2326_v36 = vpop.f32.mrf.mxu1 }
 0x161   : > { %v2795_v34 = vpop.f32.mrf.mxu0  ;;  %v2327_v59 = vadd.f32 %v2326_v36, %v8064_v31  ;;  %v8200_v32 = vadd.f32 %v6928_v5, %v2335_v15 }
 0x162   : > { %v6895_v24 = vpop.f32.mrf.mxu1 }
 0x163   : > { %v6968_v19 = vpop.f32.mrf.mxu0  ;;  %v2338_v13 = vadd.f32 %v6895_v24, %v8067_v39  ;;  %v8203_v52 = vadd.f32 %v2792_v46, %v2327_v59 }
 0x164   : > { %v2329_v62 = vpop.f32.mrf.mxu1 }
 0x165   : > { %v3558_v26 = vpop.f32.mrf.mxu0  ;;  %v2330_v30 = vadd.f32 %v2329_v62, %v8071_v51  ;;  %v8206_v33 = vadd.f32 %v6929_v45, %v2338_v13 }
 0x166   : > { %v6934_v25 = vpop.f32.mrf.mxu1 }
 0x167   : > { %v6969_v43 = vpop.f32.mrf.mxu0  ;;  %v3326_v49 = vadd.f32 %v6934_v25, %v8079_v17  ;;  %v8209_v42 = vadd.f32 %v2795_v34, %v2330_v30 }
 0x168   : > { %v3197_v31 = vpop.f32.mrf.mxu1 }
 0x169   : > { %v3561_v55 = vpop.f32.mrf.mxu0  ;;  %v3324_v20 = vadd.f32 %v3197_v31, %v8084_v37  ;;  %v8212_v6 = vadd.f32 %v6968_v19, %v3326_v49 }
 0x16a   : > { %v6935_v39 = vpop.f32.mrf.mxu1 }
 0x16b   : > { %v6972_v9 = vpop.f32.mrf.mxu0  ;;  %v3327_v57 = vadd.f32 %v6935_v39, %v8087_v50  ;;  %v8215_v60 = vadd.f32 %v3558_v26, %v3324_v20 }
 0x16c   : > { %v3200_v51 = vpop.f32.mrf.mxu1 }
 0x16d   : > { %v3574_v63 = vpop.f32.mrf.mxu0  ;;  %v3325_v22 = vadd.f32 %v3200_v51, %v8093_v0  ;;  %v8218_v5 = vadd.f32 %v6969_v43, %v3327_v57 }
 0x16e   : > { %v6938_v17 = vpop.f32.mrf.mxu1 }
 0x16f   : > { %v6973_v61 = vpop.f32.mrf.mxu0  ;;  %v3330_v54 = vadd.f32 %v6938_v17, %v8097_v14  ;;  %v8221_v18 = vadd.f32 %v3561_v55, %v3325_v22 }
 0x170   : > { %v3213_v37 = vpop.f32.mrf.mxu1 }
 0x171   : > { %v3577_v46 = vpop.f32.mrf.mxu0  ;;  %v3328_v10 = vadd.f32 %v3213_v37, %v8102_v27  ;;  %v8224_v48 = vadd.f32 %v6972_v9, %v3330_v54 }
 0x172   : > { %v6939_v50 = vpop.f32.mrf.mxu1 }
 0x173   : > { %v6976_v45 = vpop.f32.mrf.mxu0  ;;  %v3331_v15 = vadd.f32 %v6939_v50, %v8105_v35  ;;  %v8227_v36 = vadd.f32 %v3574_v63, %v3328_v10 }
 0x174   : > { %v3216_v0 = vpop.f32.mrf.mxu1 }
 0x175   : > { %v3590_v34 = vpop.f32.mrf.mxu0  ;;  %v3329_v59 = vadd.f32 %v3216_v0, %v8111_v53  ;;  %v8230_v24 = vadd.f32 %v6973_v61, %v3331_v15 }
 0x176   : > { %v6942_v14 = vpop.f32.mrf.mxu1 }
 0x177   : > { %v6977_v19 = vpop.f32.mrf.mxu0  ;;  %v3334_v13 = vadd.f32 %v6942_v14, %v8115_v2  ;;  %v8233_v62 = vadd.f32 %v3577_v46, %v3329_v59 }
 0x178   : > { %v3229_v27 = vpop.f32.mrf.mxu1 }
 0x179   : > { %v3593_v26 = vpop.f32.mrf.mxu0  ;;  %v3332_v30 = vadd.f32 %v3229_v27, %v8120_v21  ;;  %v8236_v25 = vadd.f32 %v6976_v45, %v3334_v13 }
 0x17a   : > { %v6943_v35 = vpop.f32.mrf.mxu1 }
 0x17b   : > { %v6980_v43 = vpop.f32.mrf.mxu0  ;;  %v3335_v49 = vadd.f32 %v6943_v35, %v8123_v29  ;;  %v8239_v31 = vadd.f32 %v3590_v34, %v3332_v30 }
 0x17c   : > { %v3232_v53 = vpop.f32.mrf.mxu1 }
 0x17d   : > { %v3606_v55 = vpop.f32.mrf.mxu0  ;;  %v3333_v20 = vadd.f32 %v3232_v53, %v8129_v28  ;;  %v8242_v39 = vadd.f32 %v6977_v19, %v3335_v49 }
 0x17e   : > { %v6946_v2 = vpop.f32.mrf.mxu1 }
 0x17f   : > { %v6981_v9 = vpop.f32.mrf.mxu0  ;;  %v3338_v57 = vadd.f32 %v6946_v2, %v8133_v56  ;;  %v8245_v51 = vadd.f32 %v3593_v26, %v3333_v20 }
 0x180   : > { %v3245_v21 = vpop.f32.mrf.mxu1 }
 0x181   : > { %v3609_v63 = vpop.f32.mrf.mxu0  ;;  %v3336_v22 = vadd.f32 %v3245_v21, %v8138_v8  ;;  %v8248_v17 = vadd.f32 %v6980_v43, %v3338_v57 }
 0x182   : > { %v6947_v29 = vpop.f32.mrf.mxu1 }
 0x183   : > { %v6984_v61 = vpop.f32.mrf.mxu0  ;;  %v3339_v54 = vadd.f32 %v6947_v29, %v8141_v23  ;;  %v8251_v37 = vadd.f32 %v3606_v55, %v3336_v22 }
 0x184   : > { %v3248_v28 = vpop.f32.mrf.mxu1 }
 0x185   : > { %v3622_v46 = vpop.f32.mrf.mxu0  ;;  %v3337_v10 = vadd.f32 %v3248_v28, %v8147_v11  ;;  %v8254_v50 = vadd.f32 %v6981_v9, %v3339_v54 }
 0x186   : > { %v6950_v56 = vpop.f32.mrf.mxu1 }
 0x187   : > { %v6985_v45 = vpop.f32.mrf.mxu0  ;;  %v3342_v15 = vadd.f32 %v6950_v56, %v8151_v47  ;;  %v8257_v0 = vadd.f32 %v3609_v63, %v3337_v10 }
 0x188   : > { %v3261_v8 = vpop.f32.mrf.mxu1 }
 0x189   : > { %v3625_v34 = vpop.f32.mrf.mxu0  ;;  %v3340_v59 = vadd.f32 %v3261_v8, %v8156_v1  ;;  %v8260_v14 = vadd.f32 %v6984_v61, %v3342_v15 }
 0x18a   : > { %v6951_v23 = vpop.f32.mrf.mxu1 }
 0x18b   : > { %v6988_v19 = vpop.f32.mrf.mxu0  ;;  %v3343_v13 = vadd.f32 %v6951_v23, %v8159_v12  ;;  %v8263_v27 = vadd.f32 %v3622_v46, %v3340_v59 }
 0x18c   : > { %v3264_v11 = vpop.f32.mrf.mxu1 }
 0x18d   : > { %v3638_v26 = vpop.f32.mrf.mxu0  ;;  %v3341_v30 = vadd.f32 %v3264_v11, %v8165_v16  ;;  %v8266_v35 = vadd.f32 %v6985_v45, %v3343_v13 }
 0x18e   : > { %v6954_v47 = vpop.f32.mrf.mxu1 }
 0x18f   : > { %v6989_v43 = vpop.f32.mrf.mxu0  ;;  %v3346_v49 = vadd.f32 %v6954_v47, %v8169_v58  ;;  %v8269_v53 = vadd.f32 %v3625_v34, %v3341_v30 }
 0x190   : > { %v3277_v1 = vpop.f32.mrf.mxu1 }
 0x191   : > { %8718 = vst [vmem:[#allocation5_spill] sm:$0xff] %v8269_v53  ;;  %v3641_v55 = vpop.f32.mrf.mxu0  ;;  %v3344_v20 = vadd.f32 %v3277_v1, %v8174_v40  ;;  %v8272_v2 = vadd.f32 %v6988_v19, %v3346_v49 }
 0x192   : > { %v6955_v12 = vpop.f32.mrf.mxu1 }
 0x193   : > { %8719 = vst [vmem:[#allocation6_spill] sm:$0xff] %v8272_v2  ;;  %v6992_v9 = vpop.f32.mrf.mxu0  ;;  %v3347_v57 = vadd.f32 %v6955_v12, %v8177_v41  ;;  %v8275_v21 = vadd.f32 %v3638_v26, %v3344_v20 }
 0x194   : > { %v3280_v16 = vpop.f32.mrf.mxu1 }
 0x195   : > { %8720 = vst [vmem:[#allocation7_spill] sm:$0xff] %v8275_v21  ;;  %v3654_v63 = vpop.f32.mrf.mxu0  ;;  %v3345_v22 = vadd.f32 %v3280_v16, %v8183_v44  ;;  %v8278_v29 = vadd.f32 %v6989_v43, %v3347_v57 }
 0x196   : > { %v6958_v58 = vpop.f32.mrf.mxu1 }
 0x197   : > { %8721 = vst [vmem:[#allocation8_spill] sm:$0xff] %v8278_v29  ;;  %v6993_v61 = vpop.f32.mrf.mxu0  ;;  %v3350_v54 = vadd.f32 %v6958_v58, %v8186_v7  ;;  %v8281_v28 = vadd.f32 %v3641_v55, %v3345_v22 }
 0x198   : > { %v3293_v40 = vpop.f32.mrf.mxu1 }
 0x199   : > { %8722 = vst [vmem:[#allocation9_spill] sm:$0xff] %v8281_v28  ;;  %v3657_v46 = vpop.f32.mrf.mxu0  ;;  %v3348_v10 = vadd.f32 %v3293_v40, %v8190_v38  ;;  %v8284_v56 = vadd.f32 %v6992_v9, %v3350_v54 }
 0x19a   : > { %v6959_v41 = vpop.f32.mrf.mxu1 }
 0x19b   : > { %8723 = vst [vmem:[#allocation10_spill] sm:$0xff] %v8284_v56  ;;  %v6996_v45 = vpop.f32.mrf.mxu0  ;;  %v3351_v15 = vadd.f32 %v6959_v41, %v8193_v3  ;;  %v8287_v8 = vadd.f32 %v3654_v63, %v3348_v10 }
 0x19c   : > { %v3296_v44 = vpop.f32.mrf.mxu1 }
 0x19d   : > { %8724 = vst [vmem:[#allocation11_spill] sm:$0xff] %v8287_v8  ;;  %v3670_v34 = vpop.f32.mrf.mxu0  ;;  %v3349_v59 = vadd.f32 %v3296_v44, %v8197_v4  ;;  %v8290_v23 = vadd.f32 %v6993_v61, %v3351_v15 }
 0x19e   : > { %v6962_v7 = vpop.f32.mrf.mxu1 }
 0x19f   : > { %8725 = vst [vmem:[#allocation12_spill] sm:$0xff] %v8290_v23  ;;  %v6997_v19 = vpop.f32.mrf.mxu0  ;;  %v3354_v13 = vadd.f32 %v6962_v7, %v8200_v32  ;;  %v8293_v11 = vadd.f32 %v3657_v46, %v3349_v59 }
 0x1a0   : > { %v3309_v38 = vpop.f32.mrf.mxu1 }
 0x1a1   : > { %8726 = vst [vmem:[#allocation13_spill] sm:$0xff] %v8293_v11  ;;  %v3673_v26 = vpop.f32.mrf.mxu0  ;;  %v3352_v30 = vadd.f32 %v3309_v38, %v8203_v52  ;;  %v8296_v47 = vadd.f32 %v6996_v45, %v3354_v13 }
 0x1a2   : > { %v6963_v3 = vpop.f32.mrf.mxu1 }
 0x1a3   : > { %8727 = vst [vmem:[#allocation14_spill] sm:$0xff] %v8296_v47  ;;  %v8298_v43 = vpop.f32.mrf.mxu0  ;;  %v3355_v49 = vadd.f32 %v6963_v3, %v8206_v33  ;;  %v8301_v4 = vadd.f32 %v3670_v34, %v3352_v30 }
 0x1a4   : > { %v3312_v1 = vpop.f32.mrf.mxu1 }
 0x1a5   : > { %8728 = vst [vmem:[#allocation15_spill] sm:$0xff] %v8301_v4  ;;  %v8303_v55 = vpop.f32.mrf.mxu0  ;;  %v3353_v32 = vadd.f32 %v3312_v1, %v8209_v42  ;;  %v8306_v20 = vadd.f32 %v6997_v19, %v3355_v49 }
 0x1a6   : > { %v7002_v12 = vpop.f32.mrf.mxu1 }
 0x1a7   : > { %8729 = vst [vmem:[#allocation16_spill] sm:$0xff] %v8306_v20  ;;  %v8308_v9 = vpop.f32.mrf.mxu0  ;;  %v8310_v52 = vadd.f32 %v3673_v26, %v3353_v32 }
 0x1a8   : > { %v4055_v57 = vpop.f32.mrf.mxu1 }
 0x1a9   : > { %8730 = vst [vmem:[#allocation17_spill] sm:$0xff] %v8310_v52  ;;  %v8312_v16 = vpop.f32.mrf.mxu0 }
 0x1aa   : > { %v7003_v63 = vpop.f32.mrf.mxu1 }
 0x1ab   : > { %v8314_v22 = vpop.f32.mrf.mxu0 }
 0x1ac   : > { %v4058_v33 = vpop.f32.mrf.mxu1 }
 0x1ad   : > { %v8316_v58 = vpop.f32.mrf.mxu0 }
 0x1ae   : > { %v7006_v61 = vpop.f32.mrf.mxu1 }
 0x1af   : > { %v8318_v54 = vpop.f32.mrf.mxu0 }
 0x1b0   : > { %v4071_v42 = vpop.f32.mrf.mxu1 }
 0x1b1   : > { %v8320_v40 = vpop.f32.mrf.mxu0 }
 0x1b2   : > { %v7007_v46 = vpop.f32.mrf.mxu1 }
 0x1b3   : > { %v8322_v10 = vpop.f32.mrf.mxu0 }
 0x1b4   : > { %v4074_v41 = vpop.f32.mrf.mxu1 }
 0x1b5   : > { %v8324_v45 = vpop.f32.mrf.mxu0 }
 0x1b6   : > { %v7010_v15 = vpop.f32.mrf.mxu1 }
 0x1b7   : > { %v8326_v44 = vpop.f32.mrf.mxu0 }
 0x1b8   : > { %v4087_v34 = vpop.f32.mrf.mxu1 }
 0x1b9   : > { %v8328_v59 = vpop.f32.mrf.mxu0 }
 0x1ba   : > { %v7011_v7 = vpop.f32.mrf.mxu1 }
 0x1bb   : > { %v8330_v19 = vpop.f32.mrf.mxu0 }
 0x1bc   : > { %v4090_v13 = vpop.f32.mrf.mxu1 }
 0x1bd   : > { %v8332_v38 = vpop.f32.mrf.mxu0 }
 0x1be   : > { %v7014_v26 = vpop.f32.mrf.mxu1 }
 0x1bf   : > { %v8334_v30 = vpop.f32.mrf.mxu0 }
 0x1c0   : > { %v4103_v3 = vpop.f32.mrf.mxu1 }
 0x1c1   : > { %v8336_v49 = vpop.f32.mrf.mxu0 }
 0x1c2   : > { %8731 = vst [vmem:[#allocation18_spill] sm:$0xff] %v8336_v49  ;;  %v7015_v1 = vpop.f32.mrf.mxu1 }
 0x1c3   : > { %v8338_v32 = vpop.f32.mrf.mxu0 }
 0x1c4   : > { %8732 = vst [vmem:[#allocation19_spill] sm:$0xff] %v8338_v32  ;;  %v4106_v52 = vpop.f32.mrf.mxu1 }
 0x1c5   : > { %v8340_v20 = vpop.f32.mrf.mxu0 }
 0x1c6   : > { %8733 = vst [vmem:[#allocation20_spill] sm:$0xff] %v8340_v20  ;;  %v7018_v4 = vpop.f32.mrf.mxu1 }
 0x1c7   : > { %v8342_v47 = vpop.f32.mrf.mxu0 }
 0x1c8   : > { %8734 = vst [vmem:[#allocation21_spill] sm:$0xff] %v8342_v47  ;;  %v4119_v11 = vpop.f32.mrf.mxu1 }
 0x1c9   : > { %v8344_v23 = vpop.f32.mrf.mxu0 }
 0x1ca   : > { %8735 = vst [vmem:[#allocation22_spill] sm:$0xff] %v8344_v23  ;;  %v7019_v8 = vpop.f32.mrf.mxu1 }
 0x1cb   : > { %v8346_v56 = vpop.f32.mrf.mxu0 }
 0x1cc   : > { %8736 = vst [vmem:[#allocation23_spill] sm:$0xff] %v8346_v56  ;;  %v8348_v28 = vpop.f32.mrf.mxu1 }
 0x1cd   : > { %8737 = vst [vmem:[#allocation24_spill] sm:$0xff] %v8348_v28  ;;  %v8350_v29 = vpop.f32.mrf.mxu0 }
 0x1ce   : > { %8738 = vst [vmem:[#allocation25_spill] sm:$0xff] %v8350_v29  ;;  %v8352_v21 = vpop.f32.mrf.mxu1 }
 0x1cf   : > { %8739 = vst [vmem:[#allocation26_spill] sm:$0xff] %v8352_v21  ;;  %v8354_v2 = vpop.f32.mrf.mxu0 }
 0x1d0   : > { %8740 = vst [vmem:[#allocation27_spill] sm:$0xff] %v8354_v2  ;;  %v8356_v32 = vpop.f32.mrf.mxu1 }
 0x1d1   : > { %8741 = vst [vmem:[#allocation28_spill] sm:$0xff] %v8356_v32  ;;  %v8358_v20 = vpop.f32.mrf.mxu0 }
 0x1d2   : > { %8742 = vst [vmem:[#allocation29_spill] sm:$0xff] %v8358_v20  ;;  %v8360_v53 = vpop.f32.mrf.mxu1  ;;  %v4184_v20 = vadd.f32 %v7002_v12, %v8212_v6  ;;  %v4189_v6 = vadd.f32 %v7007_v46, %v8230_v24 }
 0x1d3   : > { %8743 = vst [vmem:[#allocation30_spill] sm:$0xff] %v8360_v53  ;;  %v8362_v47 = vpop.f32.mrf.mxu0 }
 0x1d4   : > { %8744 = vst [vmem:[#allocation31_spill] sm:$0xff] %v8362_v47  ;;  %v8364_v23 = vpop.f32.mrf.mxu1 }
 0x1d5   : > { %8745 = vst [vmem:[#allocation32_spill] sm:$0xff] %v8364_v23  ;;  %v8366_v49 = vpop.f32.mrf.mxu0 }
 0x1d6   : > { %8746 = vst [vmem:[#allocation33_spill] sm:$0xff] %v8366_v49  ;;  %v8368_v56 = vpop.f32.mrf.mxu1  ;;  %v4182_v49 = vadd.f32 %v4055_v57, %v8215_v60  ;;  %v4701_v60 = vadd.f32 %v8298_v43, %v4184_v20  ;;  %v4192_v57 = vadd.f32 %v7010_v15, %v8236_v25  ;;  %v4197_v25 = vadd.f32 %v7015_v1, %v8254_v50 }
 0x1d7   : > { %8747 = vst [vmem:[#allocation34_spill] sm:$0xff] %v8368_v56  ;;  %v8370_v28 = vpop.f32.mrf.mxu0  ;;  %v4185_v56 = vadd.f32 %v7003_v63, %v8218_v5  ;;  %v4187_v5 = vadd.f32 %v4074_v41, %v8233_v62  ;;  %v4190_v63 = vadd.f32 %v4087_v34, %v8239_v31  ;;  %v4194_v62 = vadd.f32 %v4103_v3, %v8251_v37 }
 0x1d8   : > { %8748 = vst [vmem:[#allocation35_spill] sm:$0xff] %v8370_v28  ;;  %v8372_v29 = vpop.f32.mrf.mxu1  ;;  %v4195_v31 = vadd.f32 %v4106_v52, %v8257_v0  ;;  %v8428_v50 = vadd.f32 %v8322_v10, %v4192_v57  ;;  %v8757_v10 = vld [vmem:[#allocation26_spill] sm:$0xff]  ;;  %v8759_v15 = vld [vmem:[#allocation28_spill] sm:$0xff]  ;;  %v8767_v57 = vld [vmem:[#allocation11_spill] sm:$0xff] }
 0x1d9   : > { %v8374_v21 = vpop.f32.mrf.mxu0  ;;  %v4702_v43 = vadd.f32 %v8308_v9, %v4185_v56  ;;  %v8422_v56 = vadd.f32 %v8318_v54, %v4189_v6  ;;  %v8425_v37 = vadd.f32 %v8320_v40, %v4187_v5  ;;  %v8431_v0 = vadd.f32 %v8324_v45, %v4190_v63  ;;  %v8753_v54 = vld [vmem:[#allocation18_spill] sm:$0xff]  ;;  %v8758_v45 = vld [vmem:[#allocation7_spill] sm:$0xff] }
 0x1da   : > { %8749 = vst [vmem:[#allocation36_spill] sm:$0xff] %v8374_v21  ;;  %v8376_v2 = vpop.f32.mrf.mxu1  ;;  %v4183_v21 = vadd.f32 %v4058_v33, %v8221_v18  ;;  %v4193_v18 = vadd.f32 %v7011_v7, %v8242_v39  ;;  %v8451_v40 = vadd.f32 %v8753_v54, %v4195_v31  ;;  %v8760_v7 = vld [vmem:[#allocation19_spill] sm:$0xff]  ;;  %v8765_v6 = vld [vmem:[#allocation10_spill] sm:$0xff]  ;;  %v4206_v63 = vadd.f32 %v8372_v29, %v8767_v57 }
 0x1db   : > { %8750 = vst [vmem:[#allocation37_spill] sm:$0xff] %v8376_v2  ;;  %v8378_v32 = vpop.f32.mrf.mxu0  ;;  %v4188_v2 = vadd.f32 %v7006_v61, %v8224_v48  ;;  %v4191_v48 = vadd.f32 %v4090_v13, %v8245_v51  ;;  %v4699_v61 = vadd.f32 %v8303_v55, %v4182_v49  ;;  %v4200_v51 = vadd.f32 %v7018_v4, %v8260_v14  ;;  %v8761_v13 = vld [vmem:[#allocation8_spill] sm:$0xff]  ;;  %v8780_v57 = vld [vmem:[#allocation31_spill] sm:$0xff] }
 0x1dc   : > { %8751 = vst [vmem:[#allocation38_spill] sm:$0xff] %v8378_v32  ;;  %v8381_v53 = vpop.f32.mrf.mxu1  ;;  %v4186_v32 = vadd.f32 %v4071_v42, %v8227_v36  ;;  %v4196_v36 = vadd.f32 %v7014_v26, %v8248_v17  ;;  %v4700_v39 = vadd.f32 %v8312_v16, %v4183_v21  ;;  %v8434_v14 = vadd.f32 %v8326_v44, %v4193_v18  ;;  %v8764_v3 = vld [vmem:[#allocation32_spill] sm:$0xff] }
 0x1dd   : > { %8752 = vst [vmem:[#allocation39_spill] sm:$0xff] %v8381_v53  ;;  %v8383_v47 = vpop.f32.mrf.mxu0  ;;  %v4705_v42 = vadd.f32 %v8314_v22, %v4188_v2  ;;  %v4198_v2 = vadd.f32 %v4119_v11, %v8263_v27  ;;  %v4201_v21 = vadd.f32 %v7019_v8, %v8266_v35  ;;  %v8439_v9 = vadd.f32 %v8328_v59, %v4191_v48  ;;  %v8754_v27 = vld [vmem:[#allocation5_spill] sm:$0xff]  ;;  %v8755_v35 = vld [vmem:[#allocation24_spill] sm:$0xff]  ;;  %v8756_v11 = vld [vmem:[#allocation6_spill] sm:$0xff] }
 0x1de   : > { %v8387_v23 = vpop.f32.mrf.mxu1  ;;  %v8419_v46 = vadd.f32 %v8316_v58, %v4186_v32  ;;  %v8442_v52 = vadd.f32 %v8330_v19, %v4196_v36  ;;  %v8445_v22 = vadd.f32 %v8332_v38, %v4194_v62  ;;  %v8448_v58 = vadd.f32 %v8334_v30, %v4197_v25  ;;  %v8762_v38 = vld [vmem:[#allocation30_spill] sm:$0xff]  ;;  %v8763_v30 = vld [vmem:[#allocation9_spill] sm:$0xff]  ;;  %v8768_v36 = vld [vmem:[#allocation20_spill] sm:$0xff] }
 0x1df   : > { %v8389_v28 = vpop.f32.mrf.mxu0  ;;  %v4199_v8 = vadd.f32 %v8755_v35, %v8754_v27  ;;  %v4204_v41 = vadd.f32 %v8757_v10, %v8756_v11  ;;  %v4202_v44 = vadd.f32 %v8759_v15, %v8758_v45  ;;  %v8460_v19 = vadd.f32 %v8760_v7, %v4200_v51  ;;  %v8769_v25 = vld [vmem:[#allocation21_spill] sm:$0xff]  ;;  %v8770_v51 = vld [vmem:[#allocation12_spill] sm:$0xff]  ;;  %v8774_v11 = vld [vmem:[#allocation14_spill] sm:$0xff] }
 0x1e0   : > { %v8395_v12 = vpop.f32.mrf.mxu1  ;;  %v4205_v26 = vadd.f32 %v8762_v38, %v8761_v13  ;;  %v4203_v49 = vadd.f32 %v8764_v3, %v8763_v30  ;;  %v8471_v62 = vadd.f32 %v8768_v36, %v4198_v2  ;;  %v8474_v31 = vadd.f32 %v8769_v25, %v4201_v21  ;;  %v8775_v2 = vld [vmem:[#allocation22_spill] sm:$0xff]  ;;  %v8776_v21 = vld [vmem:[#allocation23_spill] sm:$0xff]  ;;  %v8777_v38 = vld [vmem:[#allocation25_spill] sm:$0xff] }
 0x1e1   : > { %v8397_v53 = vpop.f32.mrf.mxu0  ;;  %v4212_v10 = vadd.f32 %v8387_v23, %v8774_v11  ;;  %v8486_v7 = vadd.f32 %v8776_v21, %v4204_v41  ;;  %v8491_v30 = vadd.f32 %v8777_v38, %v4202_v44  ;;  %v8779_v23 = vld [vmem:[#allocation29_spill] sm:$0xff] }
 0x1e2   : > { %v8406_v33 = vpop.f32.mrf.mxu1  ;;  %v8781_v41 = vld [vmem:[#allocation33_spill] sm:$0xff] }
 0x1e3   : > { %v7104_v24 = vpop.f32.mrf.mxu0  ;;  %v8503_v36 = vadd.f32 %v8781_v41, %v4206_v63 }
 0x1e4   : > { %v8415_v20 = vpop.f32.mrf.mxu1 }
 0x1e5   : > { %v5430_v17 = vpop.f32.mrf.mxu0 }
 0x1e6   : > { %v7070_v4 = vpop.f32.mrf.mxu1 }
 0x1e7   : > { %v7105_v55 = vpop.f32.mrf.mxu0  ;;  %v5062_v16 = vadd.f32 %v7070_v4, %v4701_v60  ;;  %v8766_v60 = vld [vmem:[#allocation34_spill] sm:$0xff]  ;;  %v8771_v4 = vld [vmem:[#allocation37_spill] sm:$0xff] }
 0x1e8   : > { %v4933_v34 = vpop.f32.mrf.mxu1  ;;  %v4208_v5 = vadd.f32 %v8766_v60, %v8765_v6  ;;  %v4209_v54 = vadd.f32 %v8771_v4, %v8770_v51 }
 0x1e9   : > { %v5433_v59 = vpop.f32.mrf.mxu0  ;;  %v5559_v1 = vadd.f32 %v7104_v24, %v5062_v16  ;;  %v5060_v32 = vadd.f32 %v4933_v34, %v4699_v61  ;;  %v8772_v24 = vld [vmem:[#allocation13_spill] sm:$0xff]  ;;  %v8773_v61 = vld [vmem:[#allocation39_spill] sm:$0xff]  ;;  %v8483_v34 = vadd.f32 %v8775_v2, %v4199_v8 }
 0x1ea   : > { %v7071_v18 = vpop.f32.mrf.mxu1  ;;  %v4207_v16 = vadd.f32 %v8773_v61, %v8772_v24 }
 0x1eb   : > { %v7108_v48 = vpop.f32.mrf.mxu0  ;;  %v6645_v27 = vpack.c.bf16 %v5559_v1, %v5559_v1  ;;  %v5557_v35 = vadd.f32 %v5430_v17, %v5060_v32  ;;  %v5063_v29 = vadd.f32 %v7071_v18, %v4702_v43  ;;  %v8778_v17 = vld [vmem:[#allocation27_spill] sm:$0xff]  ;;  %v8497_v43 = vadd.f32 %v8779_v23, %v4203_v49  ;;  %v8783_v49 = vld [vmem:[#allocation36_spill] sm:$0xff] }
 0x1ec   : > { %v4936_v45 = vpop.f32.mrf.mxu1  ;;  %v8494_v3 = vadd.f32 %v8778_v17, %v4205_v26  ;;  %v8500_v18 = vadd.f32 %v8780_v57, %v4208_v5  ;;  %v8782_v26 = vld [vmem:[#allocation35_spill] sm:$0xff]  ;;  %v8511_v4 = vadd.f32 %v8783_v49, %v4207_v16  ;;  %v5754_v38 = vsel %vm5750_vm3, %v5559_v1, 0.0 }
 0x1ed   : > { %v5446_v15 = vpop.f32.mrf.mxu0  ;;  %5720 = vst.msk [vmem:[%s7410_s7 + $0x8] sm:$0xf] %vm5717_vm2, %v6645_v27  ;;  %v6643_v13 = vpack.c.bf16 %v5557_v35, %v5557_v35  ;;  %v5560_v32 = vadd.f32 %v7105_v55, %v5063_v29  ;;  %v5061_v6 = vadd.f32 %v4936_v45, %v4700_v39  ;;  %v5821_v44 = vmul.f32 %v5557_v35, %v5557_v35  ;;  %v8784_v39 = vld [vmem:[#allocation15_spill] sm:$0xff]  ;;  %v8785_v27 = vld [vmem:[#allocation38_spill] sm:$0xff]  ;;  %v8786_v29 = vld [vmem:[#allocation16_spill] sm:$0xff] }
 0x1ee   : > { %v7074_v60 = vpop.f32.mrf.mxu1  ;;  %v8508_v51 = vadd.f32 %v8782_v26, %v4209_v54  ;;  %v8515_v55 = vadd.f32 %v8395_v12, %v8784_v39  ;;  %v8518_v11 = vadd.f32 %v8785_v27, %v4212_v10  ;;  %v5823_v54 = vmul.f32 %v5559_v1, %v5559_v1 }
 0x1ef   : > { %v7109_v8 = vpop.f32.mrf.mxu0  ;;  %5718 = vst.msk [vmem:[%s7410_s7] sm:$0xf] %vm5717_vm2, %v6643_v13  ;;  %v5066_v25 = vadd.f32 %v7074_v60, %v4705_v42  ;;  %v6646_v5 = vpack.c.bf16 %v5560_v32, %v5560_v32  ;;  %v5558_v24 = vadd.f32 %v5433_v59, %v5061_v6  ;;  %v8522_v42 = vadd.f32 %v8406_v33, %v8786_v29 }
 0x1f0   : > { %v4949_v61 = vpop.f32.mrf.mxu1  ;;  %v5751_v2 = vsel %vm5750_vm3, %v5557_v35, 0.0  ;;  %v5853_v33 = vsel %vm5750_vm3, %v5821_v44, 0.0  ;;  %v5856_v41 = vsel %vm5750_vm3, %v5823_v54, 0.0  ;;  %v5756_v44 = vsel %vm5750_vm3, %v5560_v32, 0.0 }
 0x1f1   : > { %v5449_v63 = vpop.f32.mrf.mxu0  ;;  %v5563_v45 = vadd.f32 %v7108_v48, %v5066_v25  ;;  %v5064_v16 = vadd.f32 %v4949_v61, %v8419_v46  ;;  %5721 = vst.msk [vmem:[%s7410_s7 + $0xc] sm:$0xf] %vm5717_vm2, %v6646_v5  ;;  %v6644_v12 = vpack.c.bf16 %v5558_v24, %v5558_v24  ;;  %v5752_v59 = vsel %vm5750_vm3, %v5558_v24, 0.0 }
 0x1f2   : > { %v5822_v21 = vmul.f32 %v5558_v24, %v5558_v24  ;;  %v7075_v13 = vpop.f32.mrf.mxu1  ;;  %v5753_v17 = vadd.f32 %v5752_v59, %v5751_v2  ;;  %v5824_v48 = vmul.f32 %v5560_v32, %v5560_v32 }
 0x1f3   : > { %v7112_v10 = vpop.f32.mrf.mxu0  ;;  %v6649_v23 = vpack.c.bf16 %v5563_v45, %v5563_v45  ;;  %5719 = vst.msk [vmem:[%s7410_s7 + $0x4] sm:$0xf] %vm5717_vm2, %v6644_v12  ;;  %v5561_v35 = vadd.f32 %v5446_v15, %v5064_v16  ;;  %v5067_v6 = vadd.f32 %v7075_v13, %v8422_v56  ;;  %v5827_v16 = vmul.f32 %v5563_v45, %v5563_v45 }
 0x1f4   : > { %v5854_v46 = vsel %vm5750_vm3, %v5822_v21, 0.0  ;;  %v4952_v60 = vpop.f32.mrf.mxu1  ;;  %v5755_v25 = vadd.f32 %v5754_v38, %v5753_v17  ;;  %v5858_v54 = vsel %vm5750_vm3, %v5824_v48, 0.0 }
 0x1f5   : > { %v5462_v57 = vpop.f32.mrf.mxu0  ;;  %v5855_v26 = vadd.f32 %v5854_v46, %v5853_v33  ;;  %5724 = vst.msk [vmem:[%s7410_s7 + $0x18] sm:$0xf] %vm5717_vm2, %v6649_v23  ;;  %v5065_v1 = vadd.f32 %v4952_v60, %v8425_v37  ;;  %v6647_v49 = vpack.c.bf16 %v5561_v35, %v5561_v35  ;;  %v5825_v39 = vmul.f32 %v5561_v35, %v5561_v35 }
 0x1f6   : > { %v5564_v5 = vadd.f32 %v7109_v8, %v5067_v6  ;;  %v7078_v24 = vpop.f32.mrf.mxu1  ;;  %v5757_v56 = vadd.f32 %v5756_v44, %v5755_v25  ;;  %v5758_v37 = vsel %vm5750_vm3, %v5561_v35, 0.0  ;;  %v8555_v6 = vadd.f32 %v8383_v47, %v8515_v55 }
 0x1f7   : > { %v7113_v15 = vpop.f32.mrf.mxu0  ;;  %v5857_v61 = vadd.f32 %v5856_v41, %v5855_v26  ;;  %v5562_v27 = vadd.f32 %v5449_v63, %v5065_v1  ;;  %v5070_v29 = vadd.f32 %v7078_v24, %v8428_v50  ;;  %5722 = vst.msk [vmem:[%s7410_s7 + $0x10] sm:$0xf] %vm5717_vm2, %v6647_v49  ;;  %v5860_v63 = vsel %vm5750_vm3, %v5825_v39, 0.0  ;;  %v8787_v24 = vld [vmem:[#allocation17_spill] sm:$0xff] }
 0x1f8   : > { %v6650_v32 = vpack.c.bf16 %v5564_v5, %v5564_v5  ;;  %v4965_v2 = vpop.f32.mrf.mxu1  ;;  %v5759_v8 = vadd.f32 %v5758_v37, %v5757_v56  ;;  %v5762_v60 = vsel %vm5750_vm3, %v5563_v45, 0.0  ;;  %v5828_v41 = vmul.f32 %v5564_v5, %v5564_v5 }
 0x1f9   : > { %v5465_v12 = vpop.f32.mrf.mxu0  ;;  %v5859_v59 = vadd.f32 %v5858_v54, %v5857_v61  ;;  %v6648_v21 = vpack.c.bf16 %v5562_v27, %v5562_v27  ;;  %v5760_v13 = vsel %vm5750_vm3, %v5562_v27, 0.0  ;;  %v5826_v50 = vmul.f32 %v5562_v27, %v5562_v27 }
 0x1fa   : > { %5725 = vst.msk [vmem:[%s7410_s7 + $0x1c] sm:$0xf] %vm5717_vm2, %v6650_v32  ;;  %v5567_v38 = vadd.f32 %v7112_v10, %v5070_v29  ;;  %v5068_v33 = vadd.f32 %v4965_v2, %v8431_v0  ;;  %v7079_v17 = vpop.f32.mrf.mxu1  ;;  %v5761_v46 = vadd.f32 %v5760_v13, %v5759_v8  ;;  %v4211_v61 = vadd.f32 %v8415_v20, %v8787_v24 }
 0x1fb   : > { %v7116_v23 = vpop.f32.mrf.mxu0  ;;  %v5861_v48 = vadd.f32 %v5860_v63, %v5859_v59  ;;  %5723 = vst.msk [vmem:[%s7410_s7 + $0x14] sm:$0xf] %vm5717_vm2, %v6648_v21  ;;  %v5071_v35 = vadd.f32 %v7079_v17, %v8434_v14  ;;  %v5862_v10 = vsel %vm5750_vm3, %v5826_v50, 0.0  ;;  %v5864_v14 = vsel %vm5750_vm3, %v5827_v16, 0.0 }
 0x1fc   : > { %v6653_v25 = vpack.c.bf16 %v5567_v38, %v5567_v38  ;;  %v4968_v0 = vpop.f32.mrf.mxu1  ;;  %v5763_v1 = vadd.f32 %v5762_v60, %v5761_v46  ;;  %v5565_v49 = vadd.f32 %v5462_v57, %v5068_v33  ;;  %v5764_v47 = vsel %vm5750_vm3, %v5564_v5, 0.0 }
 0x1fd   : > { %v5478_v26 = vpop.f32.mrf.mxu0  ;;  %v5863_v44 = vadd.f32 %v5862_v10, %v5861_v48  ;;  %v5568_v39 = vadd.f32 %v7113_v15, %v5071_v35  ;;  %v5069_v55 = vadd.f32 %v4968_v0, %v8439_v9  ;;  %v8568_v57 = vadd.f32 %v8389_v28, %v8522_v42 }
 0x1fe   : > { %5728 = vst.msk [vmem:[%s7410_s7 + $0x28] sm:$0xf] %vm5717_vm2, %v6653_v25  ;;  %v7082_v45 = vpop.f32.mrf.mxu1  ;;  %v6651_v29 = vpack.c.bf16 %v5565_v49, %v5565_v49  ;;  %v5765_v54 = vadd.f32 %v5764_v47, %v5763_v1  ;;  %v5866_v20 = vsel %vm5750_vm3, %v5828_v41, 0.0  ;;  %v5766_v15 = vsel %vm5750_vm3, %v5565_v49, 0.0 }
 0x1ff   : > { %v7117_v56 = vpop.f32.mrf.mxu0  ;;  %v5865_v27 = vadd.f32 %v5864_v14, %v5863_v44  ;;  %v5829_v16 = vmul.f32 %v5565_v49, %v5565_v49  ;;  %v6654_v5 = vpack.c.bf16 %v5568_v39, %v5568_v39  ;;  %v5566_v8 = vadd.f32 %v5465_v12, %v5069_v55 }
 0x200   : > { %v4981_v37 = vpop.f32.mrf.mxu1  ;;  %5726 = vst.msk [vmem:[%s7410_s7 + $0x20] sm:$0xf] %vm5717_vm2, %v6651_v29  ;;  %v5767_v9 = vadd.f32 %v5766_v15, %v5765_v54  ;;  %v5074_v59 = vadd.f32 %v7082_v45, %v8442_v52  ;;  %v5831_v21 = vmul.f32 %v5567_v38, %v5567_v38  ;;  %v5832_v28 = vmul.f32 %v5568_v39, %v5568_v39 }
 0x201   : > { %v5481_v32 = vpop.f32.mrf.mxu0  ;;  %v5867_v2 = vadd.f32 %v5866_v20, %v5865_v27  ;;  %v5868_v13 = vsel %vm5750_vm3, %v5829_v16, 0.0  ;;  %5729 = vst.msk [vmem:[%s7410_s7 + $0x2c] sm:$0xf] %vm5717_vm2, %v6654_v5  ;;  %v5072_v42 = vadd.f32 %v4981_v37, %v8445_v22  ;;  %v6652_v17 = vpack.c.bf16 %v5566_v8, %v5566_v8 }
 0x202   : > { %v7083_v63 = vpop.f32.mrf.mxu1  ;;  %v5768_v48 = vsel %vm5750_vm3, %v5566_v8, 0.0  ;;  %v5830_v46 = vmul.f32 %v5566_v8, %v5566_v8  ;;  %v5571_v12 = vadd.f32 %v7116_v23, %v5074_v59  ;;  %v5770_v25 = vsel %vm5750_vm3, %v5567_v38, 0.0 }
 0x203   : > { %v7120_v50 = vpop.f32.mrf.mxu0  ;;  %v5869_v33 = vadd.f32 %v5868_v13, %v5867_v2  ;;  %v5769_v35 = vadd.f32 %v5768_v48, %v5767_v9  ;;  %v5569_v60 = vadd.f32 %v5478_v26, %v5072_v42  ;;  %v5075_v52 = vadd.f32 %v7083_v63, %v8448_v58  ;;  %5727 = vst.msk [vmem:[%s7410_s7 + $0x24] sm:$0xf] %vm5717_vm2, %v6652_v17 }
 0x204   : > { %v4984_v41 = vpop.f32.mrf.mxu1  ;;  %v5870_v22 = vsel %vm5750_vm3, %v5830_v46, 0.0  ;;  %v8587_v1 = vadd.f32 %v8397_v53, %v4211_v61  ;;  %v5872_v44 = vsel %vm5750_vm3, %v5831_v21, 0.0  ;;  %v6657_v58 = vpack.c.bf16 %v5571_v12, %v5571_v12 }
 0x205   : > { %v5494_v10 = vpop.f32.mrf.mxu0  ;;  %v5073_v0 = vadd.f32 %v4984_v41, %v8451_v40  ;;  %v5771_v23 = vadd.f32 %v5770_v25, %v5769_v35  ;;  %v5871_v26 = vadd.f32 %v5870_v22, %v5869_v33  ;;  %v5772_v38 = vsel %vm5750_vm3, %v5568_v39, 0.0 }
 0x206   : > { %v7086_v49 = vpop.f32.mrf.mxu1  ;;  %v5874_v14 = vsel %vm5750_vm3, %v5832_v28, 0.0  ;;  %v6655_v47 = vpack.c.bf16 %v5569_v60, %v5569_v60  ;;  %v5833_v55 = vmul.f32 %v5569_v60, %v5569_v60  ;;  %5732 = vst.msk [vmem:[%s7410_s7 + $0x38] sm:$0xf] %vm5717_vm2, %v6657_v58  ;;  %v5572_v53 = vadd.f32 %v7117_v56, %v5075_v52 }
 0x207   : > { %v7121_v24 = vpop.f32.mrf.mxu0  ;;  %v5873_v45 = vadd.f32 %v5872_v44, %v5871_v26  ;;  %v5773_v40 = vadd.f32 %v5772_v38, %v5771_v23  ;;  %v5570_v61 = vadd.f32 %v5481_v32, %v5073_v0  ;;  %v5835_v54 = vmul.f32 %v5571_v12, %v5571_v12 }
 0x208   : > { %v4997_v27 = vpop.f32.mrf.mxu1  ;;  %5730 = vst.msk [vmem:[%s7410_s7 + $0x30] sm:$0xf] %vm5717_vm2, %v6655_v47  ;;  %v5774_v20 = vsel %vm5750_vm3, %v5569_v60, 0.0  ;;  %v5078_v39 = vadd.f32 %v7086_v49, %v8460_v19  ;;  %v5876_v37 = vsel %vm5750_vm3, %v5833_v55, 0.0  ;;  %v6658_v9 = vpack.c.bf16 %v5572_v53, %v5572_v53 }
 0x209   : > { %v5497_v29 = vpop.f32.mrf.mxu0  ;;  %v5076_v15 = vadd.f32 %v4997_v27, %v8471_v62  ;;  %v5775_v16 = vadd.f32 %v5774_v20, %v5773_v40  ;;  %v5875_v5 = vadd.f32 %v5874_v14, %v5873_v45  ;;  %v5836_v2 = vmul.f32 %v5572_v53, %v5572_v53 }
 0x20a   : > { %v7087_v56 = vpop.f32.mrf.mxu1  ;;  %v6656_v8 = vpack.c.bf16 %v5570_v61, %v5570_v61  ;;  %v5776_v59 = vsel %vm5750_vm3, %v5570_v61, 0.0  ;;  %v5834_v21 = vmul.f32 %v5570_v61, %v5570_v61  ;;  %5733 = vst.msk [vmem:[%s7410_s7 + $0x3c] sm:$0xf] %vm5717_vm2, %v6658_v9  ;;  %v5575_v19 = vadd.f32 %v7120_v50, %v5078_v39 }
 0x20b   : > { %v7124_v32 = vpop.f32.mrf.mxu0  ;;  %v5877_v13 = vadd.f32 %v5876_v37, %v5875_v5  ;;  %v5777_v28 = vadd.f32 %v5776_v59, %v5775_v16  ;;  %v5573_v42 = vadd.f32 %v5494_v10, %v5076_v15  ;;  %v5778_v33 = vsel %vm5750_vm3, %v5571_v12, 0.0 }
 0x20c   : > { %v5000_v62 = vpop.f32.mrf.mxu1  ;;  %5731 = vst.msk [vmem:[%s7410_s7 + $0x34] sm:$0xf] %vm5717_vm2, %v6656_v8  ;;  %v5878_v17 = vsel %vm5750_vm3, %v5834_v21, 0.0  ;;  %v5079_v48 = vadd.f32 %v7087_v56, %v8474_v31  ;;  %v5880_v35 = vsel %vm5750_vm3, %v5835_v54, 0.0  ;;  %v6661_v50 = vpack.c.bf16 %v5575_v19, %v5575_v19 }
 0x20d   : > { %v5510_v63 = vpop.f32.mrf.mxu0  ;;  %v5077_v46 = vadd.f32 %v5000_v62, %v8483_v34  ;;  %v5779_v60 = vadd.f32 %v5778_v33, %v5777_v28  ;;  %v5879_v52 = vadd.f32 %v5878_v17, %v5877_v13  ;;  %v5780_v25 = vsel %vm5750_vm3, %v5572_v53, 0.0 }
 0x20e   : > { %v7090_v41 = vpop.f32.mrf.mxu1  ;;  %v5882_v12 = vsel %vm5750_vm3, %v5836_v2, 0.0  ;;  %v6659_v22 = vpack.c.bf16 %v5573_v42, %v5573_v42  ;;  %v5837_v0 = vmul.f32 %v5573_v42, %v5573_v42  ;;  %5736 = vst.msk [vmem:[%s7410_s7 + $0x48] sm:$0xf] %vm5717_vm2, %v6661_v50  ;;  %v5576_v23 = vadd.f32 %v7121_v24, %v5079_v48 }
 0x20f   : > { %v7125_v10 = vpop.f32.mrf.mxu0  ;;  %v5881_v44 = vadd.f32 %v5880_v35, %v5879_v52  ;;  %v5781_v31 = vadd.f32 %v5780_v25, %v5779_v60  ;;  %v5574_v34 = vadd.f32 %v5497_v29, %v5077_v46  ;;  %v5839_v49 = vmul.f32 %v5575_v19, %v5575_v19 }
 0x210   : > { %v5013_v26 = vpop.f32.mrf.mxu1  ;;  %5734 = vst.msk [vmem:[%s7410_s7 + $0x40] sm:$0xf] %vm5717_vm2, %v6659_v22  ;;  %v5782_v38 = vsel %vm5750_vm3, %v5573_v42, 0.0  ;;  %v5082_v14 = vadd.f32 %v7090_v41, %v8486_v7  ;;  %v5884_v40 = vsel %vm5750_vm3, %v5837_v0, 0.0  ;;  %v6662_v53 = vpack.c.bf16 %v5576_v23, %v5576_v23 }
 0x211   : > { %v5513_v58 = vpop.f32.mrf.mxu0  ;;  %v5080_v47 = vadd.f32 %v5013_v26, %v8491_v30  ;;  %v5783_v55 = vadd.f32 %v5782_v38, %v5781_v31  ;;  %v5883_v45 = vadd.f32 %v5882_v12, %v5881_v44  ;;  %v5840_v27 = vmul.f32 %v5576_v23, %v5576_v23 }
 0x212   : > { %v7091_v24 = vpop.f32.mrf.mxu1  ;;  %v6660_v29 = vpack.c.bf16 %v5574_v34, %v5574_v34  ;;  %v5784_v54 = vsel %vm5750_vm3, %v5574_v34, 0.0  ;;  %v5838_v20 = vmul.f32 %v5574_v34, %v5574_v34  ;;  %5737 = vst.msk [vmem:[%s7410_s7 + $0x4c] sm:$0xf] %vm5717_vm2, %v6662_v53  ;;  %v5579_v7 = vadd.f32 %v7124_v32, %v5082_v14 }
 0x213   : > { %v7128_v61 = vpop.f32.mrf.mxu0  ;;  %v5885_v39 = vadd.f32 %v5884_v40, %v5883_v45  ;;  %v5785_v15 = vadd.f32 %v5784_v54, %v5783_v55  ;;  %v5577_v16 = vadd.f32 %v5510_v63, %v5080_v47  ;;  %v5786_v37 = vsel %vm5750_vm3, %v5575_v19, 0.0 }
 0x214   : > { %v5016_v30 = vpop.f32.mrf.mxu1  ;;  %5735 = vst.msk [vmem:[%s7410_s7 + $0x44] sm:$0xf] %vm5717_vm2, %v6660_v29  ;;  %v5886_v9 = vsel %vm5750_vm3, %v5838_v20, 0.0  ;;  %v5083_v56 = vadd.f32 %v7091_v24, %v8494_v3  ;;  %v5888_v8 = vsel %vm5750_vm3, %v5839_v49, 0.0  ;;  %v6665_v32 = vpack.c.bf16 %v5579_v7, %v5579_v7 }
 0x215   : > { %v5526_v5 = vpop.f32.mrf.mxu0  ;;  %v5081_v2 = vadd.f32 %v5016_v30, %v8497_v43  ;;  %v5787_v59 = vadd.f32 %v5786_v37, %v5785_v15  ;;  %v5887_v21 = vadd.f32 %v5886_v9, %v5885_v39  ;;  %v5788_v42 = vsel %vm5750_vm3, %v5576_v23, 0.0 }
 0x216   : > { %v7094_v13 = vpop.f32.mrf.mxu1  ;;  %v5890_v19 = vsel %vm5750_vm3, %v5840_v27, 0.0  ;;  %v6663_v62 = vpack.c.bf16 %v5577_v16, %v5577_v16  ;;  %v5841_v63 = vmul.f32 %v5577_v16, %v5577_v16  ;;  %5740 = vst.msk [vmem:[%s7410_s7 + $0x58] sm:$0xf] %vm5717_vm2, %v6665_v32  ;;  %v5580_v17 = vadd.f32 %v7125_v10, %v5083_v56 }
 0x217   : > { %v7129_v28 = vpop.f32.mrf.mxu0  ;;  %v5889_v33 = vadd.f32 %v5888_v8, %v5887_v21  ;;  %v5789_v3 = vadd.f32 %v5788_v42, %v5787_v59  ;;  %v5578_v43 = vadd.f32 %v5513_v58, %v5081_v2  ;;  %v5843_v35 = vmul.f32 %v5579_v7, %v5579_v7 }
 0x218   : > { %v5029_v48 = vpop.f32.mrf.mxu1  ;;  %5738 = vst.msk [vmem:[%s7410_s7 + $0x50] sm:$0xf] %vm5717_vm2, %v6663_v62  ;;  %v5790_v60 = vsel %vm5750_vm3, %v5577_v16, 0.0  ;;  %v5086_v52 = vadd.f32 %v7094_v13, %v8500_v18  ;;  %v5892_v12 = vsel %vm5750_vm3, %v5841_v63, 0.0  ;;  %v6666_v22 = vpack.c.bf16 %v5580_v17, %v5580_v17 }
 0x219   : > { %v5529_v46 = vpop.f32.mrf.mxu0  ;;  %v5084_v50 = vadd.f32 %v5029_v48, %v8503_v36  ;;  %v5791_v41 = vadd.f32 %v5790_v60, %v5789_v3  ;;  %v5891_v25 = vadd.f32 %v5890_v19, %v5889_v33  ;;  %v5844_v0 = vmul.f32 %v5580_v17, %v5580_v17 }
 0x21a   : > { %v7095_v10 = vpop.f32.mrf.mxu1  ;;  %v6664_v44 = vpack.c.bf16 %v5578_v43, %v5578_v43  ;;  %v5792_v31 = vsel %vm5750_vm3, %v5578_v43, 0.0  ;;  %v5842_v23 = vmul.f32 %v5578_v43, %v5578_v43  ;;  %5741 = vst.msk [vmem:[%s7410_s7 + $0x5c] sm:$0xf] %vm5717_vm2, %v6666_v22  ;;  %v5583_v18 = vadd.f32 %v7128_v61, %v5086_v52 }
 0x21b   : > { %v7132_v34 = vpop.f32.mrf.mxu0  ;;  %v5893_v26 = vadd.f32 %v5892_v12, %v5891_v25  ;;  %v5793_v58 = vadd.f32 %v5792_v31, %v5791_v41  ;;  %v5581_v49 = vadd.f32 %v5526_v5, %v5084_v50  ;;  %v5794_v38 = vsel %vm5750_vm3, %v5579_v7, 0.0 }
 0x21c   : > { %v5032_v36 = vpop.f32.mrf.mxu1  ;;  %5739 = vst.msk [vmem:[%s7410_s7 + $0x54] sm:$0xf] %vm5717_vm2, %v6664_v44  ;;  %v5894_v14 = vsel %vm5750_vm3, %v5842_v23, 0.0  ;;  %v5087_v47 = vadd.f32 %v7095_v10, %v8508_v51  ;;  %v5896_v45 = vsel %vm5750_vm3, %v5843_v35, 0.0  ;;  %v6669_v24 = vpack.c.bf16 %v5583_v18, %v5583_v18 }
 0x21d   : > { %v5085_v55 = vadd.f32 %v5032_v36, %v8511_v4  ;;  %v5795_v40 = vadd.f32 %v5794_v38, %v5793_v58  ;;  %v5895_v53 = vadd.f32 %v5894_v14, %v5893_v26  ;;  %v5796_v27 = vsel %vm5750_vm3, %v5580_v17, 0.0  ;;  %v5542_v39 = vpop.f32.mrf.mxu0 }
 0x21e   : > { %v7098_v61 = vpop.f32.mrf.mxu1  ;;  %v5898_v29 = vsel %vm5750_vm3, %v5844_v0, 0.0  ;;  %v6667_v54 = vpack.c.bf16 %v5581_v49, %v5581_v49  ;;  %v5845_v20 = vmul.f32 %v5581_v49, %v5581_v49  ;;  %5744 = vst.msk [vmem:[%s7410_s7 + $0x68] sm:$0xf] %vm5717_vm2, %v6669_v24  ;;  %v5584_v7 = vadd.f32 %v7129_v28, %v5087_v47 }
 0x21f   : > { %v5897_v15 = vadd.f32 %v5896_v45, %v5895_v53  ;;  %v5797_v51 = vadd.f32 %v5796_v27, %v5795_v40  ;;  %v5582_v4 = vadd.f32 %v5529_v46, %v5085_v55  ;;  %v5802_v30 = vsel %vm5750_vm3, %v5583_v18, 0.0  ;;  %v7133_v19 = vpop.f32.mrf.mxu0 }
 0x220   : > { %v5045_v16 = vpop.f32.mrf.mxu1  ;;  %5742 = vst.msk [vmem:[%s7410_s7 + $0x60] sm:$0xf] %vm5717_vm2, %v6667_v54  ;;  %v5798_v5 = vsel %vm5750_vm3, %v5581_v49, 0.0  ;;  %v5090_v37 = vadd.f32 %v7098_v61, %v8518_v11  ;;  %v5847_v56 = vmul.f32 %v5583_v18, %v5583_v18  ;;  %v6670_v59 = vpack.c.bf16 %v5584_v7, %v5584_v7 }
 0x221   : > { %v5088_v9 = vadd.f32 %v5045_v16, %v8555_v6  ;;  %v5799_v2 = vadd.f32 %v5798_v5, %v5797_v51  ;;  %v5899_v8 = vadd.f32 %v5898_v29, %v5897_v15  ;;  %v5900_v32 = vsel %vm5750_vm3, %v5845_v20, 0.0  ;;  %v5545_v12 = vpop.f32.mrf.mxu0 }
 0x222   : > { %v7099_v21 = vpop.f32.mrf.mxu1  ;;  %v6668_v13 = vpack.c.bf16 %v5582_v4, %v5582_v4  ;;  %v5800_v28 = vsel %vm5750_vm3, %v5582_v4, 0.0  ;;  %v5846_v42 = vmul.f32 %v5582_v4, %v5582_v4  ;;  %5745 = vst.msk [vmem:[%s7410_s7 + $0x6c] sm:$0xf] %vm5717_vm2, %v6670_v59  ;;  %v5587_v11 = vadd.f32 %v7132_v34, %v5090_v37 }
 0x223   : > { %v5901_v62 = vadd.f32 %v5900_v32, %v5899_v8  ;;  %v5801_v63 = vadd.f32 %v5800_v28, %v5799_v2  ;;  %v5585_v33 = vadd.f32 %v5542_v39, %v5088_v9  ;;  %v5848_v3 = vmul.f32 %v5584_v7, %v5584_v7  ;;  %v5923_v9 = vld [vmem:[%s8714_s5] sm:$0x1] }
 0x224   : > { %v5048_v6 = vpop.f32.mrf.mxu1  ;;  %5743 = vst.msk [vmem:[%s7410_s7 + $0x64] sm:$0xf] %vm5717_vm2, %v6668_v13  ;;  %v5902_v17 = vsel %vm5750_vm3, %v5846_v42, 0.0  ;;  %v5091_v43 = vadd.f32 %v7099_v21, %v8568_v57  ;;  %v6673_v60 = vpack.c.bf16 %v5587_v11, %v5587_v11  ;;  %v5904_v52 = vsel %vm5750_vm3, %v5847_v56, 0.0  ;;  %v5927_v8 = vld [vmem:[%s8715_s6] sm:$0x1] }
 0x225   : > { %v5089_v48 = vadd.f32 %v5048_v6, %v8587_v1  ;;  %v5803_v46 = vadd.f32 %v5802_v30, %v5801_v63  ;;  %v5903_v35 = vadd.f32 %v5902_v17, %v5901_v62  ;;  %v5804_v50 = vsel %vm5750_vm3, %v5584_v7, 0.0 }
 0x226   : > { %v6671_v41 = vpack.c.bf16 %v5585_v33, %v5585_v33  ;;  %v5849_v25 = vmul.f32 %v5585_v33, %v5585_v33  ;;  %5748 = vst.msk [vmem:[%s7410_s7 + $0x78] sm:$0xf] %vm5717_vm2, %v6673_v60  ;;  %v5588_v0 = vadd.f32 %v7133_v19, %v5091_v43  ;;  %v5906_v44 = vsel %vm5750_vm3, %v5848_v3, 0.0 }
 0x227   : > { %v5905_v22 = vadd.f32 %v5904_v52, %v5903_v35  ;;  %v5805_v10 = vadd.f32 %v5804_v50, %v5803_v46  ;;  %v5586_v57 = vadd.f32 %v5545_v12, %v5089_v48  ;;  %v5806_v1 = vsel %vm5750_vm3, %v5585_v33, 0.0 }
 0x228   : > { %5746 = vst.msk [vmem:[%s7410_s7 + $0x70] sm:$0xf] %vm5717_vm2, %v6671_v41  ;;  %v5851_v31 = vmul.f32 %v5587_v11, %v5587_v11  ;;  %v6674_v26 = vpack.c.bf16 %v5588_v0, %v5588_v0  ;;  %v5908_v58 = vsel %vm5750_vm3, %v5849_v25, 0.0  ;;  %v5810_v47 = vsel %vm5750_vm3, %v5587_v11, 0.0 }
 0x229   : > { %v5807_v23 = vadd.f32 %v5806_v1, %v5805_v10  ;;  %v5907_v34 = vadd.f32 %v5906_v44, %v5905_v22  ;;  %v6672_v18 = vpack.c.bf16 %v5586_v57, %v5586_v57  ;;  %v5808_v49 = vsel %vm5750_vm3, %v5586_v57, 0.0 }
 0x22a   : > { %v5850_v36 = vmul.f32 %v5586_v57, %v5586_v57  ;;  %5749 = vst.msk [vmem:[%s7410_s7 + $0x7c] sm:$0xf] %vm5717_vm2, %v6674_v26  ;;  %v5852_v55 = vmul.f32 %v5588_v0, %v5588_v0  ;;  %v5912_v24 = vsel %vm5750_vm3, %v5851_v31, 0.0  ;;  %v5812_v61 = vsel %vm5750_vm3, %v5588_v0, 0.0 }
 0x22b   : > { %v5909_v38 = vadd.f32 %v5908_v58, %v5907_v34  ;;  %v5809_v14 = vadd.f32 %v5808_v49, %v5807_v23  ;;  %5747 = vst.msk [vmem:[%s7410_s7 + $0x74] sm:$0xf] %vm5717_vm2, %v6672_v18 }
 0x22c   : > { %v5910_v45 = vsel %vm5750_vm3, %v5850_v36, 0.0  ;;  %v5914_v54 = vsel %vm5750_vm3, %v5852_v55, 0.0 }
 0x22d   : > { %v5811_v40 = vadd.f32 %v5810_v47, %v5809_v14  ;;  %v5911_v53 = vadd.f32 %v5910_v45, %v5909_v38 }
 0x22f   : > { %v5813_v27 = vadd.f32 %v5812_v61, %v5811_v40  ;;  %v5913_v29 = vadd.f32 %v5912_v24, %v5911_v53 }
 0x231   : > { %v5814_v20 = vrot.slane %v5813_v27, 4  ;;  %v5915_v39 = vadd.f32 %v5914_v54, %v5913_v29 }
 0x233   : > { %v5815_v15 = vadd.f32 %v5814_v20, %v5813_v27  ;;  %v5916_v51 = vrot.slane %v5915_v39, 4 }
 0x235   : > { %v5816_v7 = vrot.slane %v5815_v15, 2  ;;  %v5917_v4 = vadd.f32 %v5916_v51, %v5915_v39 }
 0x237   : > { %v5817_v16 = vadd.f32 %v5816_v7, %v5815_v15  ;;  %v5918_v30 = vrot.slane %v5917_v4, 2 }
 0x239   : > { %v5818_v5 = vrot.slane %v5817_v16, 1  ;;  %v5919_v37 = vadd.f32 %v5918_v30, %v5917_v4 }
 0x23b   : > { %v5819_v56 = vadd.f32 %v5818_v5, %v5817_v16  ;;  %v5920_v2 = vrot.slane %v5919_v37, 1 }
 0x23d   : > { %v5921_v59 = vadd.f32 %v5920_v2, %v5919_v37  ;;  %v5924_v21 = vadd.f32 %v5923_v9, %v5819_v56 }
 0x23f   : > { %5926 = vst.msk [vmem:[%s8714_s5] sm:$0x1] %vm5925_vm10, %v5924_v21  ;;  %v5928_v32 = vadd.f32 %v5927_v8, %v5921_v59 }
 0x241   : > { %5929 = vst.msk [vmem:[%s8715_s6] sm:$0x1] %vm5925_vm10, %v5928_v32 }
 0x242 PF: > { %s17_s23 = sadd.s32 1, %s7344_s23   ;;  %s8788_s21 = smov %s7340_s22 }
 0x243   : > { %p14_p6 = scmp.ge.s32.totalorder %s17_s23, 4   ;;  %s8789_s22 = smov %s8791_s2 }
 0x245   :  { %16 = sbr.rel (!%p14_p6) target bundleno = 2 (0x2), region = 97 }

// kernel: bridge_forward.4
= control target key start
LH: loop header
LB: loop body
LE: loop exit
PB: predicated region body
PF: predicated region fallthrough
CT: control target
= control target key end

     0   :  { %s7564_s21 = smov 0   ;;  %s7566_s22 = smov 0   ;;  %s8984_s0 = inlined_call_operand.vmem [shape: bf16[2,256,8], index: 0, kind: input, shape index: {}]   ;;  %s8985_s1 = inlined_call_operand.vmem [shape: bf16[72,8], index: 1, kind: input, shape index: {}]   ;;  %s8986_s2 = inlined_call_operand.vmem [shape: f32[1,8], index: 2, kind: input, shape index: {}]   ;;  %s8987_s3 = inlined_call_operand.vmem [shape: f32[1,8], index: 3, kind: input, shape index: {}]   ;;  %s8988_s4 = inlined_call_operand.vmem [shape: bf16[2,256,8], index: 4, kind: output, shape index: {0}]   ;;  %s8989_s5 = inlined_call_operand.vmem [shape: f32[1,8], index: 5, kind: output, shape index: {1}]   ;;  %s8990_s6 = inlined_call_operand.vmem [shape: f32[1,8], index: 6, kind: output, shape index: {2}]  }
   0x1   :  { %s7568_s23 = smov 0  }
   0x2 LB: > { %s26_s24 = sadd.s32 1, %s7520_s22  ;;  %p6177_p0 = scmp.ge.s32.totalorder %s7524_s23, 1  ;;  %s7524_s23 = sphi %s7568_s23, %s17_s23   ;;  %s7520_s22 = sphi %s7566_s22, %s9058_s22   ;;  %s7516_s21 = sphi %s7564_s21, %s9057_s21  }
   0x3   : > { %p27_p1 = scmp.ge.s32.totalorder %s26_s24, 2  ;;  %p240_p2 = scmp.lt.s32.totalorder %s7524_s23, 3 }
   0x5   : > { %s9060_s24 = smov (%p27_p1, %s26_s24), 0  ;;  %p241_p3 = pnand %p6177_p0, %p240_p2 }
   0x7   : > { %244 = sbr.rel (%p241_p3) target bundleno = 593 (0x251), region = 36 }
   0xc   : > { %p283_p4 = scmp.lt.s32.totalorder %s7516_s21, 1  ;;  %p6182_p5 = scmp.ne.s32.totalorder %s7516_s21, 0 }
   0xe   : > { %s284_s25 = scalar_select %p283_p4, %s7516_s21, 1 }
   0xf   : > { %310 = sbr.rel (%p6182_p5) target bundleno = 29 (0x1d), region = 40 }
  0x10   : > { %s6643_s26 = sshll.u32 %s284_s25, 7 }
  0x11   : > { %s7585_s29 = scalar_lea.vmem %s8984_s0, %s6643_s26  ;;  %s7590_s8 = scalar_lea.vmem %s8988_s4, %s6643_s26 }
  0x14   : > { %vm311_vm0 = vcmask 60416   ;;  %vm336_vm1 = vcmask 57344   ;;  %v7526_v0 = vmov 0   ;;  %v7527_v1 = vmov 0.0  }
  0x15   : > { %314 = vst.msk [vmem:[#allocation2 + $0x8] sm:$0xf] %vm311_vm0, %v7526_v0  ;;  %315 = vst.msk [vmem:[#allocation2 + $0xc] sm:$0xf] %vm311_vm0, %v7526_v0 }
  0x16   : > { %316 = vst.msk [vmem:[#allocation2 + $0x90] sm:$0xf] %vm311_vm0, %v7526_v0  ;;  %317 = vst.msk [vmem:[#allocation2 + $0x94] sm:$0xf] %vm311_vm0, %v7526_v0 }
  0x17   : > { %321 = vst.msk [vmem:[#allocation3 + $0x4] sm:$0xf] %vm311_vm0, %v7526_v0  ;;  %322 = vst.msk [vmem:[#allocation3 + $0x8] sm:$0xf] %vm311_vm0, %v7526_v0 }
  0x18   : > { %323 = vst.msk [vmem:[#allocation3 + $0xc] sm:$0xf] %vm311_vm0, %v7526_v0  ;;  %324 = vst.msk [vmem:[#allocation3 + $0x90] sm:$0xf] %vm311_vm0, %v7526_v0 }
  0x19   : > { %325 = vst.msk [vmem:[#allocation3 + $0x94] sm:$0xf] %vm311_vm0, %v7526_v0  ;;  %330 = vst.msk [vmem:[#allocation4 + $0x8] sm:$0xf] %vm311_vm0, %v7526_v0 }
  0x1a   : > { %331 = vst.msk [vmem:[#allocation4 + $0xc] sm:$0xf] %vm311_vm0, %v7526_v0  ;;  %332 = vst.msk [vmem:[#allocation4 + $0x90] sm:$0xf] %vm311_vm0, %v7526_v0 }
  0x1b   : > { %333 = vst.msk [vmem:[#allocation4 + $0x94] sm:$0xf] %vm311_vm0, %v7526_v0  ;;  %334 = vst.msk [vmem:[#allocation4 + $0x98] sm:$0xf] %vm311_vm0, %v7526_v0 }
  0x1c   : > { %337 = vst.msk [vmem:[%s8989_s5] sm:$0x1] %vm336_vm1, %v7527_v1  ;;  %338 = vst.msk [vmem:[%s8990_s6] sm:$0x1] %vm336_vm1, %v7527_v1 }
  0x1d PF: > { %v1733_v2 = vld [vmem:[%s8985_s1 + $0x4] sm:$0xf]  ;;  %vm1863_vm2 = vcmask 1043456   ;;  %v7350_v3 = vld [vmem:[#allocation2 + $0x8] sm:$0xff]   ;;  %v513_v4 = vlaneseq  ;;  %vm1814_vm3 = vcmask 64512   ;;  %vm1250_vm4 = vcmask 60416  }
  0x1e   : > { %7313 = vmatprep.subr.msk.bf16.mxu0 %vm1863_vm2, %v1733_v2  ;;  %7314 = vmatprep.subr.msk.bf16.mxu1 %vm1863_vm2, %v1733_v2  ;;  %v1865_v5 = vsel %vm1863_vm2, %v1733_v2, 0  ;;  %v6774_v6 = vld [vmem:[%s7585_s29] sm:$0xff]   ;;  %v6843_v12 = vld [vmem:[%s7585_s29 + $0x38] sm:$0xff]   ;;  %v2509_v19 = vld [vmem:[%s8985_s1 + $0x8] sm:$0xf]  ;;  %v7528_v35 = vmov 0.0  }
  0x1f   : > { %7006 = vmatpush3.bf16.msra.mxu0 %v1865_v5  ;;  %7312 = vmatpush3.bf16.msra.mxu1 %v1865_v5  ;;  %v6775_v7 = vunpack.c.l.bf16 %v6774_v6  ;;  %v6776_v8 = vunpack.c.h.bf16 %v6774_v6  ;;  %v7624_v9 = vld [vmem:[%s8986_s2] ss:$0 sm:$0xff]  ;;  %v7631_v11 = vshrl.u32 %v513_v4, 7  ;;  %v6803_v18 = vunpack.c.l.bf16 %v6843_v12  ;;  %v6837_v50 = vld [vmem:[%s7585_s29 + $0x8] sm:$0xff]   ;;  %v6838_v55 = vld [vmem:[%s7585_s29 + $0x10] sm:$0xff]  }
  0x20   : > { %v7629_v10 = vld [vmem:[%s8987_s3] ss:$0 sm:$0xff]  ;;  %7007 = vmatprep.mubr.msk.bf16.mxu0 %vm1814_vm3, %v7350_v3  ;;  %v6804_v20 = vunpack.c.h.bf16 %v6843_v12  ;;  %7316 = vmatprep.subr.msk.bf16.mxu0 %vm1863_vm2, %v2509_v19  ;;  %v2775_v59 = vsel %vm1863_vm2, %v2509_v19, 0  ;;  %v6779_v63 = vunpack.c.l.bf16 %v6837_v50  ;;  %v6780_v1 = vunpack.c.h.bf16 %v6837_v50 }
  0x21   : > { %v1700_v13 = vld [vmem:[%s8985_s1] sm:$0xf]  ;;  %v410_v15 = vmul.f32 %v6775_v7, %v7624_v9  ;;  %v411_v16 = vmul.f32 %v6776_v8, %v7624_v9  ;;  %v515_v17 = vadd.s32 8, %v7631_v11  ;;  %v528_v21 = vadd.s32 112, %v7631_v11 }
  0x22   : > { %v6844_v14 = vld [vmem:[%s7585_s29 + $0x40] sm:$0xff]   ;;  %7315 = vmatprep.subr.msk.bf16.mxu1 %vm1863_vm2, %v1700_v13  ;;  %v529_v22 = vadd.s32 120, %v7631_v11  ;;  %v424_v27 = vmul.f32 %v6803_v18, %v7624_v9  ;;  %v425_v28 = vmul.f32 %v6804_v20, %v7624_v9  ;;  %v531_v54 = vadd.s32 136, %v7631_v11 }
  0x23   : > { %v6807_v23 = vunpack.c.l.bf16 %v6844_v14  ;;  %v449_v24 = vadd.f32 %v7629_v10, %v410_v15  ;;  %v450_v25 = vadd.f32 %v7629_v10, %v411_v16  ;;  %v557_v26 = vand.u32 15, %v515_v17  ;;  %v7697_v15 = vld [vmem:[%s8985_s1 + $0x10] sm:$0xf] }
  0x24   : > { %v648_v29 = vand.u32 15, %v528_v21  ;;  %v655_v30 = vand.u32 15, %v529_v22  ;;  %v6808_v31 = vunpack.c.h.bf16 %v6844_v14  ;;  %v463_v34 = vadd.f32 %v7629_v10, %v424_v27  ;;  %v6845_v14 = vld [vmem:[%s7585_s29 + $0x48] sm:$0xff]  }
  0x25   : > { %v7653_v32 = vmax.f32 %v449_v24, 0.0  ;;  %v482_v33 = vmax.f32 %v450_v25, 0.0  ;;  %vm931_vm5 = vcmp.lt.s32.totalorder %v557_v26, 15  ;;  %v464_v37 = vadd.f32 %v7629_v10, %v425_v28 }
  0x26   : > { %v6185_v36 = vsel %vm931_vm5, 1.0, %v7528_v35  ;;  %vm945_vm6 = vcmp.lt.s32.totalorder %v655_v30, 15  ;;  %vm1040_vm7 = vcmp.gt.s32.totalorder %v648_v29, 0  ;;  %v495_v41 = vmax.f32 %v463_v34, 0.0 }
  0x27   : > { %v6645_v38 = vpack.c.bf16 %v7653_v32, %v7653_v32  ;;  %v6646_v39 = vpack.c.bf16 %v482_v33, %v482_v33  ;;  %v1284_v40 = vmul.f32 %v6185_v36, %v482_v33  ;;  %v496_v42 = vmax.f32 %v464_v37, 0.0 }
  0x28   : > { %v6192_v43 = vsel %vm945_vm6, 1.0, %v7528_v35  ;;  %v6208_v44 = vsel %vm1040_vm7, 1.0, %v7528_v35  ;;  %v426_v45 = vmul.f32 %v6807_v23, %v7624_v9  ;;  %v6659_v47 = vpack.c.bf16 %v495_v41, %v495_v41 }
  0x29   : > { %1251 = vst.msk [vmem:[#allocation2 + $0x10] sm:$0xf] %vm1250_vm4, %v6645_v38  ;;  %1252 = vst.msk [vmem:[#allocation2 + $0x14] sm:$0xf] %vm1250_vm4, %v6646_v39  ;;  %v6678_v46 = vpack.c.bf16 %v1284_v40, %v1284_v40  ;;  %v1489_v48 = vmul.f32 %v6208_v44, %v495_v41  ;;  %v427_v49 = vmul.f32 %v6808_v31, %v7624_v9  ;;  %v7677_v58 = vsel %vm1863_vm2, %v1700_v13, 0 }
  0x2a   : > { %1443 = vst.msk [vmem:[#allocation3 + $0x10] sm:$0xf] %vm1250_vm4, %v6645_v38  ;;  %1636 = vst.msk [vmem:[#allocation4 + $0x14] sm:$0xf] %vm1250_vm4, %v6646_v39  ;;  %v6660_v51 = vpack.c.bf16 %v496_v42, %v496_v42  ;;  %v1298_v52 = vmul.f32 %v6192_v43, %v496_v42  ;;  %v465_v53 = vadd.f32 %v7629_v10, %v426_v45  ;;  %v669_v62 = vand.u32 15, %v531_v54  ;;  %v6846_v42 = vld [vmem:[%s7585_s29 + $0x50] sm:$0xff]  }
  0x2b   : > { %1444 = vst.msk [vmem:[#allocation3 + $0x14] sm:$0xf] %vm1250_vm4, %v6678_v46  ;;  %1265 = vst.msk [vmem:[#allocation2 + $0x48] sm:$0xf] %vm1250_vm4, %v6659_v47  ;;  %v6723_v56 = vpack.c.bf16 %v1489_v48, %v1489_v48  ;;  %v466_v57 = vadd.f32 %v7629_v10, %v427_v49  ;;  %v516_v2 = vadd.s32 16, %v7631_v11  ;;  %v517_v3 = vadd.s32 24, %v7631_v11 }
  0x2c   : > { %1457 = vst.msk [vmem:[#allocation3 + $0x48] sm:$0xf] %vm1250_vm4, %v6659_v47  ;;  %1266 = vst.msk [vmem:[#allocation2 + $0x4c] sm:$0xf] %vm1250_vm4, %v6660_v51  ;;  %v6692_v60 = vpack.c.bf16 %v1298_v52, %v1298_v52  ;;  %v7682_v61 = vmax.f32 %v465_v53, 0.0  ;;  %vm947_vm8 = vcmp.lt.s32.totalorder %v669_v62, 15  ;;  %v412_v5 = vmul.f32 %v6779_v63, %v7624_v9 }
  0x2d   : > { %1650 = vst.msk [vmem:[#allocation4 + $0x4c] sm:$0xf] %vm1250_vm4, %v6660_v51  ;;  %1649 = vst.msk [vmem:[#allocation4 + $0x48] sm:$0xf] %vm1250_vm4, %v6723_v56  ;;  %v498_v0 = vmax.f32 %v466_v57, 0.0  ;;  %v6783_v6 = vunpack.c.l.bf16 %v6838_v55  ;;  %v6193_v7 = vsel %vm947_vm8, 1.0, %v7528_v35  ;;  %v413_v12 = vmul.f32 %v6780_v1, %v7624_v9 }
  0x2e   : > { %1458 = vst.msk [vmem:[#allocation3 + $0x4c] sm:$0xf] %vm1250_vm4, %v6692_v60  ;;  %v6661_v4 = vpack.c.bf16 %v7682_v61, %v7682_v61  ;;  %v564_v13 = vand.u32 15, %v516_v2  ;;  %v451_v18 = vadd.f32 %v7629_v10, %v412_v5  ;;  %v571_v19 = vand.u32 15, %v517_v3  ;;  %v6839_v46 = vld [vmem:[%s7585_s29 + $0x18] sm:$0xff]  }
  0x2f   : > { %v6662_v8 = vpack.c.bf16 %v498_v0, %v498_v0  ;;  %v1300_v17 = vmul.f32 %v6193_v7, %v498_v0  ;;  %v6784_v20 = vunpack.c.h.bf16 %v6838_v55  ;;  %v452_v21 = vadd.f32 %v7629_v10, %v413_v12  ;;  %v7732_v51 = vld [vmem:[%s8985_s1 + $0xc] sm:$0xf] }
  0x30   : > { %v7351_v16 = vld [vmem:[#allocation2 + $0x10] sm:$0xff]   ;;  %1267 = vst.msk [vmem:[#allocation2 + $0x50] sm:$0xf] %vm1250_vm4, %v6661_v4  ;;  %1459 = vst.msk [vmem:[#allocation3 + $0x50] sm:$0xf] %vm1250_vm4, %v6661_v4  ;;  %vm1028_vm9 = vcmp.gt.s32.totalorder %v564_v13, 0  ;;  %v414_v22 = vmul.f32 %v6783_v6, %v7624_v9  ;;  %v6811_v37 = vunpack.c.l.bf16 %v6845_v14  ;;  %v6812_v44 = vunpack.c.h.bf16 %v6845_v14 }
  0x31   : > { %1268 = vst.msk [vmem:[#allocation2 + $0x54] sm:$0xf] %vm1250_vm4, %v6662_v8  ;;  %1652 = vst.msk [vmem:[#allocation4 + $0x54] sm:$0xf] %vm1250_vm4, %v6662_v8  ;;  %v519_v23 = vadd.s32 40, %v7631_v11  ;;  %7008 = vmatmul.mubr.msk.bf16.vlgmr.msra.gmra.mxu0 %vm1814_vm3, %v7351_v16  ;;  %v6694_v24 = vpack.c.bf16 %v1300_v17, %v1300_v17  ;;  %v483_v25 = vmax.f32 %v451_v18, 0.0  ;;  %v415_v30 = vmul.f32 %v6784_v20, %v7624_v9 }
  0x32   : > { %vm933_vm10 = vcmp.lt.s32.totalorder %v571_v19, 15  ;;  %v6202_v26 = vsel %vm1028_vm9, 1.0, %v7528_v35  ;;  %7074 = vmatpush3.bf16.msra.mxu0 %v2775_v59  ;;  %v484_v28 = vmax.f32 %v452_v21, 0.0  ;;  %v453_v31 = vadd.f32 %v7629_v10, %v414_v22  ;;  %v6840_v13 = vld [vmem:[%s7585_s29 + $0x20] sm:$0xff]  }
  0x33   : > { %v7352_v27 = vld [vmem:[#allocation2 + $0x48] sm:$0xff]   ;;  %v6186_v29 = vsel %vm933_vm10, 1.0, %v7528_v35  ;;  %1460 = vst.msk [vmem:[#allocation3 + $0x54] sm:$0xf] %vm1250_vm4, %v6694_v24  ;;  %v6647_v33 = vpack.c.bf16 %v483_v25, %v483_v25  ;;  %v1477_v34 = vmul.f32 %v6202_v26, %v483_v25  ;;  %v585_v36 = vand.u32 15, %v519_v23  ;;  %7318 = vmatprep.subr.msk.bf16.mxu0 %vm1863_vm2, %v7697_v15 }
  0x34   : > { %7023 = vmatprep.mubr.msk.bf16.mxu1 %vm1814_vm3, %v7352_v27  ;;  %v6648_v38 = vpack.c.bf16 %v484_v28, %v484_v28  ;;  %v1286_v39 = vmul.f32 %v6186_v29, %v484_v28  ;;  %v454_v40 = vadd.f32 %v7629_v10, %v415_v30  ;;  %v7717_v41 = vmax.f32 %v453_v31, 0.0  ;;  %v6847_v30 = vld [vmem:[%s7585_s29 + $0x58] sm:$0xff]  }
  0x35   : > { %1253 = vst.msk [vmem:[#allocation2 + $0x18] sm:$0xf] %vm1250_vm4, %v6647_v33  ;;  %1445 = vst.msk [vmem:[#allocation3 + $0x18] sm:$0xf] %vm1250_vm4, %v6647_v33  ;;  %v6711_v43 = vpack.c.bf16 %v1477_v34, %v1477_v34  ;;  %vm935_vm11 = vcmp.lt.s32.totalorder %v585_v36, 15  ;;  %v428_v45 = vmul.f32 %v6811_v37, %v7624_v9  ;;  %v429_v53 = vmul.f32 %v6812_v44, %v7624_v9 }
  0x36   : > { %1254 = vst.msk [vmem:[#allocation2 + $0x1c] sm:$0xf] %vm1250_vm4, %v6648_v38  ;;  %v6680_v47 = vpack.c.bf16 %v1286_v39, %v1286_v39  ;;  %1638 = vst.msk [vmem:[#allocation4 + $0x1c] sm:$0xf] %vm1250_vm4, %v6648_v38  ;;  %v486_v48 = vmax.f32 %v454_v40, 0.0  ;;  %v6187_v49 = vsel %vm935_vm11, 1.0, %v7528_v35  ;;  %v6649_v50 = vpack.c.bf16 %v7717_v41, %v7717_v41 }
  0x37   : > { %1637 = vst.msk [vmem:[#allocation4 + $0x18] sm:$0xf] %vm1250_vm4, %v6711_v43  ;;  %v467_v54 = vadd.f32 %v7629_v10, %v428_v45  ;;  %v533_v55 = vadd.s32 152, %v7631_v11  ;;  %v6815_v56 = vunpack.c.l.bf16 %v6846_v42  ;;  %v6816_v60 = vunpack.c.h.bf16 %v6846_v42 }
  0x38   : > { %v7353_v52 = vld [vmem:[#allocation2 + $0x50] sm:$0xff]   ;;  %1446 = vst.msk [vmem:[#allocation3 + $0x1c] sm:$0xf] %vm1250_vm4, %v6680_v47  ;;  %v6650_v57 = vpack.c.bf16 %v486_v48, %v486_v48  ;;  %1255 = vst.msk [vmem:[#allocation2 + $0x20] sm:$0xf] %vm1250_vm4, %v6649_v50  ;;  %v1288_v59 = vmul.f32 %v6187_v49, %v486_v48  ;;  %v535_v62 = vadd.s32 168, %v7631_v11  ;;  %v468_v63 = vadd.f32 %v7629_v10, %v429_v53 }
  0x39   : > { %1447 = vst.msk [vmem:[#allocation3 + $0x20] sm:$0xf] %vm1250_vm4, %v6649_v50  ;;  %7024 = vmatmul.mubr.msk.bf16.vlgmr.msra.gmra.mxu1 %vm1814_vm3, %v7353_v52  ;;  %v7744_v0 = vmax.f32 %v467_v54, 0.0  ;;  %v683_v1 = vand.u32 15, %v533_v55  ;;  %v430_v2 = vmul.f32 %v6815_v56, %v7624_v9  ;;  %v431_v4 = vmul.f32 %v6816_v60, %v7624_v9 }
  0x3a   : > { %7040 = vmatpush3.bf16.msra.mxu1 %v7677_v58  ;;  %1256 = vst.msk [vmem:[#allocation2 + $0x24] sm:$0xf] %vm1250_vm4, %v6650_v57  ;;  %v6682_v3 = vpack.c.bf16 %v1288_v59, %v1288_v59  ;;  %1640 = vst.msk [vmem:[#allocation4 + $0x24] sm:$0xf] %vm1250_vm4, %v6650_v57  ;;  %v697_v5 = vand.u32 15, %v535_v62  ;;  %v6787_v6 = vunpack.c.l.bf16 %v6839_v46  ;;  %v500_v7 = vmax.f32 %v468_v63, 0.0 }
  0x3b   : > { %vm949_vm12 = vcmp.lt.s32.totalorder %v683_v1, 15  ;;  %v6663_v8 = vpack.c.bf16 %v7744_v0, %v7744_v0  ;;  %v469_v12 = vadd.f32 %v7629_v10, %v430_v2  ;;  %7317 = vmatprep.subr.msk.bf16.mxu1 %vm1863_vm2, %v7732_v51  ;;  %v470_v14 = vadd.f32 %v7629_v10, %v431_v4  ;;  %v6848_v59 = vld [vmem:[%s7585_s29 + $0x60] sm:$0xff]  }
  0x3c   : > { %1448 = vst.msk [vmem:[#allocation3 + $0x24] sm:$0xf] %vm1250_vm4, %v6682_v3  ;;  %v6194_v58 = vsel %vm949_vm12, 1.0, %v7528_v35  ;;  %vm951_vm13 = vcmp.lt.s32.totalorder %v697_v5, 15  ;;  %v6788_v16 = vunpack.c.h.bf16 %v6839_v46  ;;  %v6664_v18 = vpack.c.bf16 %v500_v7, %v500_v7  ;;  %v6841_v3 = vld [vmem:[%s7585_s29 + $0x28] sm:$0xff]  }
  0x3d   : > { %v7354_v17 = vld [vmem:[#allocation2 + $0x18] sm:$0xff]   ;;  %1269 = vst.msk [vmem:[#allocation2 + $0x58] sm:$0xf] %vm1250_vm4, %v6663_v8  ;;  %v1302_v19 = vmul.f32 %v6194_v58, %v500_v7  ;;  %1461 = vst.msk [vmem:[#allocation3 + $0x58] sm:$0xf] %vm1250_vm4, %v6663_v8  ;;  %v7762_v20 = vmax.f32 %v469_v12, 0.0  ;;  %v416_v23 = vmul.f32 %v6787_v6, %v7624_v9  ;;  %v6791_v28 = vunpack.c.l.bf16 %v6840_v13 }
  0x3e   : > { %v6195_v21 = vsel %vm951_vm13, 1.0, %v7528_v35  ;;  %v502_v22 = vmax.f32 %v470_v14, 0.0  ;;  %v417_v24 = vmul.f32 %v6788_v16, %v7624_v9  ;;  %v521_v25 = vadd.s32 56, %v7631_v11  ;;  %7011 = vmatprep.mubr.msk.bf16.mxu0 %vm1814_vm3, %v7354_v17  ;;  %1270 = vst.msk [vmem:[#allocation2 + $0x5c] sm:$0xf] %vm1250_vm4, %v6664_v18 }
  0x3f   : > { %v6696_v26 = vpack.c.bf16 %v1302_v19, %v1302_v19  ;;  %1654 = vst.msk [vmem:[#allocation4 + $0x5c] sm:$0xf] %vm1250_vm4, %v6664_v18  ;;  %v6665_v27 = vpack.c.bf16 %v7762_v20, %v7762_v20  ;;  %v6792_v29 = vunpack.c.h.bf16 %v6840_v13  ;;  %v455_v34 = vadd.f32 %v7629_v10, %v416_v23 }
  0x40   : > { %v6666_v31 = vpack.c.bf16 %v502_v22, %v502_v22  ;;  %v1304_v33 = vmul.f32 %v6195_v21, %v502_v22  ;;  %v456_v36 = vadd.f32 %v7629_v10, %v417_v24  ;;  %v599_v38 = vand.u32 15, %v521_v25  ;;  %v6842_v24 = vld [vmem:[%s7585_s29 + $0x30] sm:$0xff]  }
  0x41   : > { %v7355_v37 = vld [vmem:[#allocation2 + $0x20] sm:$0xff]   ;;  %1462 = vst.msk [vmem:[#allocation3 + $0x5c] sm:$0xf] %vm1250_vm4, %v6696_v26  ;;  %1271 = vst.msk [vmem:[#allocation2 + $0x60] sm:$0xf] %vm1250_vm4, %v6665_v27  ;;  %v418_v39 = vmul.f32 %v6791_v28, %v7624_v9  ;;  %v419_v40 = vmul.f32 %v6792_v29, %v7624_v9  ;;  %v523_v42 = vadd.s32 72, %v7631_v11  ;;  %v6819_v46 = vunpack.c.l.bf16 %v6847_v30 }
  0x42   : > { %1463 = vst.msk [vmem:[#allocation3 + $0x60] sm:$0xf] %vm1250_vm4, %v6665_v27  ;;  %1272 = vst.msk [vmem:[#allocation2 + $0x64] sm:$0xf] %vm1250_vm4, %v6666_v31  ;;  %v6698_v43 = vpack.c.bf16 %v1304_v33, %v1304_v33  ;;  %v7784_v44 = vmax.f32 %v455_v34, 0.0  ;;  %v488_v45 = vmax.f32 %v456_v36, 0.0  ;;  %7012 = vmatmul.mubr.msk.bf16.gmra.mxu0 %vm1814_vm3, %v7355_v37  ;;  %v6820_v54 = vunpack.c.h.bf16 %v6847_v30 }
  0x43   : > { %1656 = vst.msk [vmem:[#allocation4 + $0x64] sm:$0xf] %vm1250_vm4, %v6666_v31  ;;  %vm937_vm14 = vcmp.lt.s32.totalorder %v599_v38, 15  ;;  %v457_v47 = vadd.f32 %v7629_v10, %v418_v39  ;;  %v458_v48 = vadd.f32 %v7629_v10, %v419_v40  ;;  %v613_v49 = vand.u32 15, %v523_v42  ;;  %v7825_v29 = vld [vmem:[%s7585_s29 + $0x68] sm:$0xff]  }
  0x44   : > { %1464 = vst.msk [vmem:[#allocation3 + $0x64] sm:$0xf] %vm1250_vm4, %v6698_v43  ;;  %v6188_v50 = vsel %vm937_vm14, 1.0, %v7528_v35  ;;  %v6651_v52 = vpack.c.bf16 %v7784_v44, %v7784_v44  ;;  %v6652_v53 = vpack.c.bf16 %v488_v45, %v488_v45  ;;  %v432_v63 = vmul.f32 %v6819_v46, %v7624_v9 }
  0x45   : > { %v1290_v55 = vmul.f32 %v6188_v50, %v488_v45  ;;  %v7793_v56 = vmax.f32 %v457_v47, 0.0  ;;  %v490_v57 = vmax.f32 %v458_v48, 0.0  ;;  %vm939_vm15 = vcmp.lt.s32.totalorder %v613_v49, 15  ;;  %v7356_v60 = vld [vmem:[#allocation2 + $0x58] sm:$0xff]  }
  0x46   : > { %1257 = vst.msk [vmem:[#allocation2 + $0x28] sm:$0xf] %vm1250_vm4, %v6651_v52  ;;  %1258 = vst.msk [vmem:[#allocation2 + $0x2c] sm:$0xf] %vm1250_vm4, %v6652_v53  ;;  %v6189_v62 = vsel %vm939_vm15, 1.0, %v7528_v35  ;;  %v433_v1 = vmul.f32 %v6820_v54, %v7624_v9  ;;  %v537_v2 = vadd.s32 184, %v7631_v11  ;;  %7027 = vmatprep.mubr.msk.bf16.mxu1 %vm1814_vm3, %v7356_v60  ;;  %v471_v8 = vadd.f32 %v7629_v10, %v432_v63 }
  0x47   : > { %1449 = vst.msk [vmem:[#allocation3 + $0x28] sm:$0xf] %vm1250_vm4, %v6651_v52  ;;  %1642 = vst.msk [vmem:[#allocation4 + $0x2c] sm:$0xf] %vm1250_vm4, %v6652_v53  ;;  %v6684_v4 = vpack.c.bf16 %v1290_v55, %v1290_v55  ;;  %v6653_v5 = vpack.c.bf16 %v7793_v56, %v7793_v56  ;;  %v6654_v6 = vpack.c.bf16 %v490_v57, %v490_v57  ;;  %v6823_v58 = vunpack.c.l.bf16 %v6848_v59 }
  0x48   : > { %v1292_v7 = vmul.f32 %v6189_v62, %v490_v57  ;;  %v472_v12 = vadd.f32 %v7629_v10, %v433_v1  ;;  %v711_v13 = vand.u32 15, %v537_v2  ;;  %v6824_v17 = vunpack.c.h.bf16 %v6848_v59 }
  0x49   : > { %v7357_v14 = vld [vmem:[#allocation2 + $0x60] sm:$0xff]   ;;  %1450 = vst.msk [vmem:[#allocation3 + $0x2c] sm:$0xf] %vm1250_vm4, %v6684_v4  ;;  %1259 = vst.msk [vmem:[#allocation2 + $0x30] sm:$0xf] %vm1250_vm4, %v6653_v5  ;;  %v539_v18 = vadd.s32 200, %v7631_v11  ;;  %v6795_v19 = vunpack.c.l.bf16 %v6841_v3  ;;  %v434_v23 = vmul.f32 %v6823_v58, %v7624_v9  ;;  %v6796_v28 = vunpack.c.h.bf16 %v6841_v3 }
  0x4a   : > { %1260 = vst.msk [vmem:[#allocation2 + $0x34] sm:$0xf] %vm1250_vm4, %v6654_v6  ;;  %v6686_v16 = vpack.c.bf16 %v1292_v7, %v1292_v7  ;;  %1451 = vst.msk [vmem:[#allocation3 + $0x30] sm:$0xf] %vm1250_vm4, %v6653_v5  ;;  %v7816_v21 = vmax.f32 %v471_v8, 0.0  ;;  %v504_v22 = vmax.f32 %v472_v12, 0.0  ;;  %7028 = vmatmul.mubr.msk.bf16.gmra.mxu1 %vm1814_vm3, %v7357_v14  ;;  %v435_v26 = vmul.f32 %v6824_v17, %v7624_v9 }
  0x4b   : > { %1644 = vst.msk [vmem:[#allocation4 + $0x34] sm:$0xf] %vm1250_vm4, %v6654_v6  ;;  %vm953_vm0 = vcmp.lt.s32.totalorder %v711_v13, 15  ;;  %v725_v27 = vand.u32 15, %v539_v18  ;;  %v473_v34 = vadd.f32 %v7629_v10, %v434_v23  ;;  %v420_v38 = vmul.f32 %v6795_v19, %v7624_v9  ;;  %v6850_v3 = vld [vmem:[%s7585_s29 + $0x70] sm:$0xff]  }
  0x4c   : > { %1452 = vst.msk [vmem:[#allocation3 + $0x34] sm:$0xf] %vm1250_vm4, %v6686_v16  ;;  %v6196_v25 = vsel %vm953_vm0, 1.0, %v7528_v35  ;;  %v6667_v30 = vpack.c.bf16 %v7816_v21, %v7816_v21  ;;  %v6668_v31 = vpack.c.bf16 %v504_v22, %v504_v22  ;;  %v474_v37 = vadd.f32 %v7629_v10, %v435_v26 }
  0x4d   : > { %v1306_v33 = vmul.f32 %v6196_v25, %v504_v22  ;;  %v7358_v36 = vld [vmem:[#allocation2 + $0x28] sm:$0xff]   ;;  %vm955_vm1 = vcmp.lt.s32.totalorder %v725_v27, 15  ;;  %v421_v39 = vmul.f32 %v6796_v28, %v7624_v9  ;;  %v7837_v42 = vmax.f32 %v473_v34, 0.0 }
  0x4e   : > { %1273 = vst.msk [vmem:[#allocation2 + $0x68] sm:$0xf] %vm1250_vm4, %v6667_v30  ;;  %1274 = vst.msk [vmem:[#allocation2 + $0x6c] sm:$0xf] %vm1250_vm4, %v6668_v31  ;;  %v6197_v43 = vsel %vm955_vm1, 1.0, %v7528_v35  ;;  %v525_v45 = vadd.s32 88, %v7631_v11  ;;  %7015 = vmatprep.mubr.msk.bf16.mxu0 %vm1814_vm3, %v7358_v36  ;;  %v459_v47 = vadd.f32 %v7629_v10, %v420_v38  ;;  %v6799_v49 = vunpack.c.l.bf16 %v6842_v24 }
  0x4f   : > { %v6700_v40 = vpack.c.bf16 %v1306_v33, %v1306_v33  ;;  %1465 = vst.msk [vmem:[#allocation3 + $0x68] sm:$0xf] %vm1250_vm4, %v6667_v30  ;;  %1658 = vst.msk [vmem:[#allocation4 + $0x6c] sm:$0xf] %vm1250_vm4, %v6668_v31  ;;  %v506_v46 = vmax.f32 %v474_v37, 0.0  ;;  %v460_v48 = vadd.f32 %v7629_v10, %v421_v39  ;;  %v6669_v52 = vpack.c.bf16 %v7837_v42, %v7837_v42 }
  0x50   : > { %v627_v53 = vand.u32 15, %v525_v45  ;;  %v6800_v54 = vunpack.c.h.bf16 %v6842_v24  ;;  %v6827_v55 = vunpack.c.l.bf16 %v7825_v29  ;;  %v7848_v60 = vmax.f32 %v459_v47, 0.0 }
  0x51   : > { %v7359_v50 = vld [vmem:[#allocation2 + $0x30] sm:$0xff]   ;;  %1466 = vst.msk [vmem:[#allocation3 + $0x6c] sm:$0xf] %vm1250_vm4, %v6700_v40  ;;  %v6670_v57 = vpack.c.bf16 %v506_v46, %v506_v46  ;;  %v1308_v59 = vmul.f32 %v6197_v43, %v506_v46  ;;  %v492_v62 = vmax.f32 %v460_v48, 0.0  ;;  %1275 = vst.msk [vmem:[#allocation2 + $0x70] sm:$0xf] %vm1250_vm4, %v6669_v52  ;;  %v422_v63 = vmul.f32 %v6799_v49, %v7624_v9 }
  0x52   : > { %7016 = vmatmul.mubr.msk.bf16.gmra.mxu0 %vm1814_vm3, %v7359_v50  ;;  %1467 = vst.msk [vmem:[#allocation3 + $0x70] sm:$0xf] %vm1250_vm4, %v6669_v52  ;;  %vm941_vm5 = vcmp.lt.s32.totalorder %v627_v53, 15  ;;  %v423_v1 = vmul.f32 %v6800_v54, %v7624_v9  ;;  %v527_v2 = vadd.s32 104, %v7631_v11  ;;  %v6655_v6 = vpack.c.bf16 %v7848_v60, %v7848_v60  ;;  %v7892_v46 = vld [vmem:[#allocation4 + $0x8] sm:$0xff]  }
  0x53   : > { %1276 = vst.msk [vmem:[#allocation2 + $0x74] sm:$0xf] %vm1250_vm4, %v6670_v57  ;;  %v6702_v4 = vpack.c.bf16 %v1308_v59, %v1308_v59  ;;  %1660 = vst.msk [vmem:[#allocation4 + $0x74] sm:$0xf] %vm1250_vm4, %v6670_v57  ;;  %v6190_v5 = vsel %vm941_vm5, 1.0, %v7528_v35  ;;  %v6656_v7 = vpack.c.bf16 %v492_v62, %v492_v62  ;;  %v461_v12 = vadd.f32 %v7629_v10, %v422_v63 }
  0x54   : > { %v1294_v8 = vmul.f32 %v6190_v5, %v492_v62  ;;  %v462_v13 = vadd.f32 %v7629_v10, %v423_v1  ;;  %v641_v58 = vand.u32 15, %v527_v2  ;;  %1261 = vst.msk [vmem:[#allocation2 + $0x38] sm:$0xf] %vm1250_vm4, %v6655_v6  ;;  %1453 = vst.msk [vmem:[#allocation3 + $0x38] sm:$0xf] %vm1250_vm4, %v6655_v6  ;;  %v6828_v16 = vunpack.c.h.bf16 %v7825_v29  ;;  %v7369_v1 = vld [vmem:[#allocation3 + $0xc] sm:$0xff]  }
  0x55   : > { %v7360_v14 = vld [vmem:[#allocation2 + $0x68] sm:$0xff]   ;;  %1468 = vst.msk [vmem:[#allocation3 + $0x74] sm:$0xf] %vm1250_vm4, %v6702_v4  ;;  %1262 = vst.msk [vmem:[#allocation2 + $0x3c] sm:$0xf] %vm1250_vm4, %v6656_v7  ;;  %v436_v17 = vmul.f32 %v6827_v55, %v7624_v9  ;;  %v541_v18 = vadd.s32 216, %v7631_v11  ;;  %v6831_v19 = vunpack.c.l.bf16 %v6850_v3  ;;  %v6832_v33 = vunpack.c.h.bf16 %v6850_v3 }
  0x56   : > { %1646 = vst.msk [vmem:[#allocation4 + $0x3c] sm:$0xf] %vm1250_vm4, %v6656_v7  ;;  %v6688_v22 = vpack.c.bf16 %v1294_v8, %v1294_v8  ;;  %v7872_v23 = vmax.f32 %v461_v12, 0.0  ;;  %v494_v24 = vmax.f32 %v462_v13, 0.0  ;;  %vm943_vm6 = vcmp.lt.s32.totalorder %v641_v58, 15  ;;  %7031 = vmatprep.mubr.msk.bf16.mxu1 %vm1814_vm3, %v7360_v14  ;;  %v7371_v2 = vld [vmem:[#allocation3 + $0x14] sm:$0xff]  }
  0x57   : > { %v6191_v25 = vsel %vm943_vm6, 1.0, %v7528_v35  ;;  %v437_v26 = vmul.f32 %v6828_v16, %v7624_v9  ;;  %v475_v27 = vadd.f32 %v7629_v10, %v436_v17  ;;  %v739_v28 = vand.u32 15, %v541_v18  ;;  %v7368_v52 = vld [vmem:[#allocation3 + $0x4] sm:$0xf8]   ;;  %v7908_v3 = vld [vmem:[%s7585_s29 + $0x78] sm:$0xff]  }
  0x58   : > { %1454 = vst.msk [vmem:[#allocation3 + $0x3c] sm:$0xf] %vm1250_vm4, %v6688_v22  ;;  %v6657_v29 = vpack.c.bf16 %v7872_v23, %v7872_v23  ;;  %v6658_v30 = vpack.c.bf16 %v494_v24, %v494_v24  ;;  %v1296_v31 = vmul.f32 %v6191_v25, %v494_v24  ;;  %v438_v37 = vmul.f32 %v6831_v19, %v7624_v9  ;;  %v7915_v6 = vld [vmem:[#allocation4 + $0x18] sm:$0xff]  }
  0x59   : > { %v476_v34 = vadd.f32 %v7629_v10, %v437_v26  ;;  %v7882_v36 = vmax.f32 %v475_v27, 0.0  ;;  %vm957_vm7 = vcmp.lt.s32.totalorder %v739_v28, 15  ;;  %v439_v43 = vmul.f32 %v6832_v33, %v7624_v9  ;;  %v7373_v17 = vld [vmem:[#allocation3 + $0x1c] sm:$0xff]  }
  0x5a   : > { %v7361_v38 = vld [vmem:[#allocation2 + $0x70] sm:$0xff]   ;;  %1263 = vst.msk [vmem:[#allocation2 + $0x40] sm:$0xf] %vm1250_vm4, %v6657_v29  ;;  %1264 = vst.msk [vmem:[#allocation2 + $0x44] sm:$0xf] %vm1250_vm4, %v6658_v30  ;;  %v6690_v39 = vpack.c.bf16 %v1296_v31, %v1296_v31  ;;  %v6198_v40 = vsel %vm957_vm7, 1.0, %v7528_v35  ;;  %v477_v49 = vadd.f32 %v7629_v10, %v438_v37 }
  0x5b   : > { %1455 = vst.msk [vmem:[#allocation3 + $0x40] sm:$0xf] %vm1250_vm4, %v6657_v29  ;;  %1648 = vst.msk [vmem:[#allocation4 + $0x44] sm:$0xf] %vm1250_vm4, %v6658_v30  ;;  %v543_v45 = vadd.s32 232, %v7631_v11  ;;  %v508_v47 = vmax.f32 %v476_v34, 0.0  ;;  %v6671_v48 = vpack.c.bf16 %v7882_v36, %v7882_v36  ;;  %7032 = vmatmul.mubr.msk.bf16.gmra.mxu1 %vm1814_vm3, %v7361_v38  ;;  %v478_v9 = vadd.f32 %v7629_v10, %v439_v43 }
  0x5c   : > { %v550_v50 = vand.u32 15, %v7631_v11  ;;  %v7362_v53 = vld [vmem:[#allocation2 + $0x38] sm:$0xff]   ;;  %1456 = vst.msk [vmem:[#allocation3 + $0x44] sm:$0xf] %vm1250_vm4, %v6690_v39  ;;  %v7903_v59 = vmax.f32 %v477_v49, 0.0  ;;  %v2595_v12 = vshrl.u32 %v7892_v46, 16 }
  0x5d   : > { %v753_v54 = vand.u32 15, %v543_v45  ;;  %v6672_v55 = vpack.c.bf16 %v508_v47, %v508_v47  ;;  %1277 = vst.msk [vmem:[#allocation2 + $0x78] sm:$0xf] %vm1250_vm4, %v6671_v48  ;;  %v1310_v57 = vmul.f32 %v6198_v40, %v508_v47  ;;  %1469 = vst.msk [vmem:[#allocation3 + $0x78] sm:$0xf] %vm1250_vm4, %v6671_v48  ;;  %7019 = vmatprep.mubr.msk.bf16.mxu0 %vm1814_vm3, %v7362_v53  ;;  %v510_v62 = vmax.f32 %v478_v9, 0.0 }
  0x5e   : > { %vm1026_vm8 = vcmp.gt.s32.totalorder %v550_v50, 0  ;;  %v6673_v4 = vpack.c.bf16 %v7903_v59, %v7903_v59  ;;  %v2597_v13 = vshll.u32 %v7892_v46, 16  ;;  %v2113_v16 = vshrl.u32 %v7368_v52, 16  ;;  %v7375_v34 = vld [vmem:[#allocation3 + $0x24] sm:$0xff]   ;;  %v7934_v39 = vld [vmem:[%s8986_s2] ss:$0 sm:$0xff] }
  0x5f   : > { %vm959_vm9 = vcmp.lt.s32.totalorder %v753_v54, 15  ;;  %v6201_v63 = vsel %vm1026_vm8, 1.0, %v7528_v35  ;;  %1278 = vst.msk [vmem:[#allocation2 + $0x7c] sm:$0xf] %vm1250_vm4, %v6672_v55  ;;  %v6704_v10 = vpack.c.bf16 %v1310_v57, %v1310_v57  ;;  %1662 = vst.msk [vmem:[#allocation4 + $0x7c] sm:$0xf] %vm1250_vm4, %v6672_v55  ;;  %v6674_v8 = vpack.c.bf16 %v510_v62, %v510_v62 }
  0x60   : > { %v1475_v5 = vmul.f32 %v6201_v63, %v7653_v32  ;;  %v6199_v7 = vsel %vm959_vm9, 1.0, %v7528_v35  ;;  %1279 = vst.msk [vmem:[#allocation2 + $0x80] sm:$0xf] %vm1250_vm4, %v6673_v4  ;;  %1471 = vst.msk [vmem:[#allocation3 + $0x80] sm:$0xf] %vm1250_vm4, %v6673_v4  ;;  %v6835_v32 = vunpack.c.l.bf16 %v7908_v3  ;;  %v2599_v18 = vrot.slane %v2597_v13, 1 }
  0x61   : > { %v7363_v58 = vld [vmem:[#allocation2 + $0x40] sm:$0xff]   ;;  %1470 = vst.msk [vmem:[#allocation3 + $0x7c] sm:$0xf] %vm1250_vm4, %v6704_v10  ;;  %1280 = vst.msk [vmem:[#allocation2 + $0x84] sm:$0xf] %vm1250_vm4, %v6674_v8  ;;  %v2116_v19 = vshll.u32 %v7368_v52, 16  ;;  %v7929_v29 = vmul.f32 %v6199_v7, %v510_v62 }
  0x62   : > { %v6709_v14 = vpack.c.bf16 %v1475_v5, %v1475_v5  ;;  %1664 = vst.msk [vmem:[#allocation4 + $0x84] sm:$0xf] %vm1250_vm4, %v6674_v8  ;;  %v2121_v22 = vshrl.u32 %v7369_v1, 16  ;;  %v2124_v24 = vshll.u32 %v7369_v1, 16  ;;  %7020 = vmatmul.mubr.msk.bf16.gmra.mxu0 %vm1814_vm3, %v7363_v58  ;;  %v2115_v25 = vrot.slane %v2113_v16, 3  ;;  %v7377_v62 = vld [vmem:[#allocation3 + $0x2c] sm:$0xff]  }
  0x63   : > { %v2610_v26 = vshll.u32 %v7915_v6, 16  ;;  %v2130_v27 = vshrl.u32 %v7371_v2, 16  ;;  %v2133_v28 = vshll.u32 %v7371_v2, 16  ;;  %v2118_v30 = vrot.slane %v2116_v19, 4 }
  0x64   : > { %1635 = vst.msk [vmem:[#allocation4 + $0x10] sm:$0xf] %vm1250_vm4, %v6709_v14  ;;  %v2123_v31 = vrot.slane %v2121_v22, 3  ;;  %v2126_v33 = vrot.slane %v2124_v24, 4  ;;  %vm2593_vm10 = vsmask.f32 7424  ;;  %v7937_v40 = vmul.f32 %v7934_v39, %v6835_v32 }
  0x65   : > { %vm2111_vm11 = vsmask.f32 4352  ;;  %v2132_v37 = vrot.slane %v2130_v27, 3  ;;  %v2135_v38 = vrot.slane %v2133_v28, 4  ;;  %v2600_v45 = vor.u32 %v2599_v18, %v2595_v12  ;;  %v7379_v32 = vld [vmem:[#allocation3 + $0x34] sm:$0xff]  }
  0x66   : > { %v7364_v43 = vld [vmem:[#allocation2 + $0x78] sm:$0xff]   ;;  %v2119_v46 = vor.u32 %v2118_v30, %v2115_v25  ;;  %v2127_v47 = vor.u32 %v2126_v33, %v2123_v31  ;;  %v518_v48 = vadd.s32 32, %v7631_v11  ;;  %v7940_v49 = vrot.slane %v2610_v26, 1 }
  0x67   : > { %v2136_v50 = vor.u32 %v2135_v38, %v2132_v37  ;;  %v2139_v52 = vshrl.u32 %v7373_v17, 16  ;;  %v2142_v53 = vshll.u32 %v7373_v17, 16  ;;  %7035 = vmatprep.mubr.msk.bf16.mxu1 %vm1814_vm3, %v7364_v43  ;;  %v7945_v9 = vsel %vm1863_vm2, %v7732_v51, 0  ;;  %v7381_v33 = vld [vmem:[#allocation3 + $0x3c] sm:$0xff]  }
  0x68   : > { %v7949_v54 = vsel %vm1863_vm2, %v7697_v15, 0  ;;  %v578_v55 = vand.u32 15, %v518_v48  ;;  %v520_v57 = vadd.s32 48, %v7631_v11  ;;  %v7365_v63 = vld [vmem:[#allocation2 + $0x80] sm:$0xff]   ;;  %v2128_v1 = vsel %vm2111_vm11, %v2119_v46, %v2127_v47 }
  0x69   : > { %v2141_v2 = vrot.slane %v2139_v52, 3  ;;  %v2144_v10 = vrot.slane %v2142_v53, 4  ;;  %v2148_v4 = vshrl.u32 %v7375_v34, 16  ;;  %v2137_v7 = vsel %vm2111_vm11, %v2127_v47, %v2136_v50  ;;  %7036 = vmatmul.mubr.msk.bf16.gmra.mxu1 %vm1814_vm3, %v7365_v63 }
  0x6a   : > { %vm1030_vm12 = vcmp.gt.s32.totalorder %v578_v55, 0  ;;  %v2614_v51 = vshrl.u32 %v7915_v6, 16  ;;  %v592_v8 = vand.u32 15, %v520_v57  ;;  %v2151_v13 = vshll.u32 %v7375_v34, 16  ;;  %7041 = vmatprep.mubr.msk.bf16.mxu1 %vm1814_vm3, %v2128_v1  ;;  %v7982_v57 = vld [vmem:[#allocation4 + $0x48] sm:$0xff]  }
  0x6b   : > { %v7367_v5 = vld [vmem:[#allocation4 + $0x10] sm:$0xff]   ;;  %v6203_v15 = vsel %vm1030_vm12, 1.0, %v7528_v35  ;;  %v2145_v12 = vor.u32 %v2144_v10, %v2141_v2  ;;  %v522_v58 = vadd.s32 64, %v7631_v11  ;;  %v2150_v6 = vrot.slane %v2148_v4, 3 }
  0x6c   : > { %v2602_v14 = vshll.u32 %v7367_v5, 16  ;;  %v2606_v16 = vshrl.u32 %v7367_v5, 16  ;;  %v1479_v17 = vmul.f32 %v6203_v15, %v7717_v41  ;;  %vm1032_vm13 = vcmp.gt.s32.totalorder %v592_v8, 0 }
  0x6d   : > { %v6204_v18 = vsel %vm1032_vm13, 1.0, %v7528_v35  ;;  %v2153_v19 = vrot.slane %v2151_v13, 4  ;;  %v606_v22 = vand.u32 15, %v522_v58  ;;  %v2157_v27 = vshrl.u32 %v7377_v62, 16 }
  0x6e   : > { %v2604_v24 = vrot.slane %v2602_v14, 1  ;;  %v6713_v25 = vpack.c.bf16 %v1479_v17, %v1479_v17  ;;  %v1481_v26 = vmul.f32 %v6204_v18, %v7784_v44  ;;  %v2146_v28 = vsel %vm2111_vm11, %v2136_v50, %v2145_v12  ;;  %v7970_v44 = vld [vmem:[%s8985_s1 + $0x14] sm:$0xf] }
  0x6f   : > { %vm1034_vm14 = vcmp.gt.s32.totalorder %v606_v22, 0  ;;  %v2160_v30 = vshll.u32 %v7377_v62, 16  ;;  %v524_v31 = vadd.s32 80, %v7631_v11  ;;  %v2154_v43 = vor.u32 %v2153_v19, %v2150_v6  ;;  %v7383_v62 = vld [vmem:[#allocation3 + $0x44] sm:$0xff]  }
  0x70   : > { %v2605_v41 = vsel %vm2593_vm10, %v2600_v45, %v2604_v24  ;;  %v2608_v34 = vor.u32 %v2606_v16, %v2604_v24  ;;  %1639 = vst.msk [vmem:[#allocation4 + $0x20] sm:$0xf] %vm1250_vm4, %v6713_v25  ;;  %v6715_v37 = vpack.c.bf16 %v1481_v26, %v1481_v26  ;;  %v6205_v38 = vsel %vm1034_vm14, 1.0, %v7528_v35  ;;  %v7977_v45 = vld [vmem:[%s8985_s1 + $0x18] sm:$0xf]  ;;  %v7385_v16 = vld [vmem:[#allocation3 + $0x4c] sm:$0xff]  }
  0x71   : > { %7075 = vmatprep.mubr.msk.bf16.mxu0 %vm1814_vm3, %v2605_v41  ;;  %v1483_v46 = vmul.f32 %v6205_v38, %v7793_v56  ;;  %v2159_v47 = vrot.slane %v2157_v27, 3  ;;  %v2162_v48 = vrot.slane %v2160_v30, 4  ;;  %v620_v52 = vand.u32 15, %v524_v31  ;;  %7042 = vmatmul.mubr.msk.bf16.vlgmr.msra.gmra.mxu1 %vm1814_vm3, %v2137_v7 }
  0x72   : > { %v2613_v50 = vsel %vm2593_vm10, %v2608_v34, %v7940_v49  ;;  %1641 = vst.msk [vmem:[#allocation4 + $0x28] sm:$0xf] %vm1250_vm4, %v6715_v37  ;;  %v2166_v53 = vshrl.u32 %v7379_v32, 16  ;;  %v2169_v55 = vshll.u32 %v7379_v32, 16  ;;  %v526_v1 = vadd.s32 96, %v7631_v11  ;;  %7108 = vmatpush3.bf16.msra.mxu1 %v7945_v9  ;;  %7045 = vmatprep.mubr.msk.bf16.mxu1 %vm1814_vm3, %v2146_v28  ;;  %v7387_v37 = vld [vmem:[#allocation3 + $0x54] sm:$0xff]  }
  0x73   : > { %7076 = vmatmul.mubr.msk.bf16.vlgmr.msra.gmra.mxu0 %vm1814_vm3, %v2613_v50  ;;  %v6717_v56 = vpack.c.bf16 %v1483_v46, %v1483_v46  ;;  %v2163_v63 = vor.u32 %v2162_v48, %v2159_v47  ;;  %v2175_v2 = vshrl.u32 %v7381_v33, 16  ;;  %vm1036_vm15 = vcmp.gt.s32.totalorder %v620_v52, 0  ;;  %7319 = vmatprep.subr.msk.bf16.mxu1 %vm1863_vm2, %v7970_v44 }
  0x74   : > { %7142 = vmatpush3.bf16.msra.mxu0 %v7949_v54  ;;  %v2168_v10 = vrot.slane %v2166_v53, 3  ;;  %v2171_v4 = vrot.slane %v2169_v55, 4  ;;  %v2178_v5 = vshll.u32 %v7381_v33, 16  ;;  %v2616_v8 = vor.u32 %v2614_v51, %v7940_v49 }
  0x75   : > { %v2155_v15 = vsel %vm2111_vm11, %v2145_v12, %v2154_v43  ;;  %1643 = vst.msk [vmem:[#allocation4 + $0x30] sm:$0xf] %vm1250_vm4, %v6717_v56  ;;  %v6206_v7 = vsel %vm1036_vm15, 1.0, %v7528_v35  ;;  %v634_v13 = vand.u32 15, %v526_v1  ;;  %v2177_v58 = vrot.slane %v2175_v2, 3  ;;  %7320 = vmatprep.subr.msk.bf16.mxu0 %vm1863_vm2, %v7977_v45 }
  0x76   : > { %v1485_v9 = vmul.f32 %v6206_v7, %v7848_v60  ;;  %v2172_v54 = vor.u32 %v2171_v4, %v2168_v10  ;;  %v2180_v14 = vrot.slane %v2178_v5, 4  ;;  %v2184_v51 = vshrl.u32 %v7383_v62, 16  ;;  %v7389_v7 = vld [vmem:[#allocation3 + $0x5c] sm:$0xff]  }
  0x77   : > { %v7372_v49 = vld [vmem:[#allocation4 + $0x20] sm:$0xff]   ;;  %vm1038_vm0 = vcmp.gt.s32.totalorder %v634_v13, 0  ;;  %v2187_v12 = vshll.u32 %v7383_v62, 16  ;;  %v6706_v17 = vpack.c.bf16 %v7929_v29, %v7929_v29  ;;  %v2164_v32 = vsel %vm2111_vm11, %v2154_v43, %v2163_v63 }
  0x78   : > { %v6719_v18 = vpack.c.bf16 %v1485_v9, %v1485_v9  ;;  %v6207_v6 = vsel %vm1038_vm0, 1.0, %v7528_v35  ;;  %v2658_v60 = vshll.u32 %v7982_v57, 16  ;;  %v2618_v19 = vshll.u32 %v7372_v49, 16 }
  0x79   : > { %v7374_v22 = vld [vmem:[#allocation4 + $0x28] sm:$0xff]   ;;  %v2622_v24 = vshrl.u32 %v7372_v49, 16  ;;  %v2173_v25 = vsel %vm2111_vm11, %v2163_v63, %v2172_v54  ;;  %v1487_v26 = vmul.f32 %v6207_v6, %v7872_v23  ;;  %1472 = vst.msk [vmem:[#allocation3 + $0x84] sm:$0xf] %vm1250_vm4, %v6706_v17  ;;  %v2181_v27 = vor.u32 %v2180_v14, %v2177_v58  ;;  %7046 = vmatmul.mubr.msk.bf16.gmra.mxu1 %vm1814_vm3, %v2155_v15 }
  0x7a   : > { %1645 = vst.msk [vmem:[#allocation4 + $0x38] sm:$0xf] %vm1250_vm4, %v6719_v18  ;;  %v2186_v29 = vrot.slane %v2184_v51, 3  ;;  %v2189_v28 = vrot.slane %v2187_v12, 4  ;;  %v530_v30 = vadd.s32 128, %v7631_v11  ;;  %v2620_v31 = vrot.slane %v2618_v19, 1  ;;  %7049 = vmatprep.mubr.msk.bf16.mxu1 %vm1814_vm3, %v2164_v32 }
  0x7b   : > { %v2626_v33 = vshll.u32 %v7374_v22, 16  ;;  %v2630_v41 = vshrl.u32 %v7374_v22, 16  ;;  %v6721_v34 = vpack.c.bf16 %v1487_v26, %v1487_v26  ;;  %v8011_v23 = vrot.slane %v2658_v60, 1  ;;  %v7391_v18 = vld [vmem:[#allocation3 + $0x64] sm:$0xff]  }
  0x7c   : > { %v7376_v38 = vld [vmem:[#allocation4 + $0x30] sm:$0xff]   ;;  %v2190_v43 = vor.u32 %v2189_v28, %v2186_v29  ;;  %v662_v46 = vand.u32 15, %v530_v30  ;;  %v2193_v47 = vshrl.u32 %v7385_v16, 16  ;;  %v2621_v48 = vsel %vm2593_vm10, %v2616_v8, %v2620_v31 }
  0x7d   : > { %v2624_v50 = vor.u32 %v2622_v24, %v2620_v31  ;;  %v2628_v52 = vrot.slane %v2626_v33, 1  ;;  %1647 = vst.msk [vmem:[#allocation4 + $0x40] sm:$0xf] %vm1250_vm4, %v6721_v34  ;;  %v2196_v53 = vshll.u32 %v7385_v16, 16  ;;  %7079 = vmatprep.mubr.msk.bf16.mxu0 %vm1814_vm3, %v2621_v48  ;;  %v2634_v55 = vshll.u32 %v7376_v38, 16 }
  0x7e   : > { %v2638_v62 = vshrl.u32 %v7376_v38, 16  ;;  %v2182_v56 = vsel %vm2111_vm11, %v2172_v54, %v2181_v27  ;;  %vm1042_vm1 = vcmp.gt.s32.totalorder %v662_v46, 0  ;;  %v2662_v10 = vshrl.u32 %v7982_v57, 16 }
  0x7f   : > { %v2629_v63 = vsel %vm2593_vm10, %v2624_v50, %v2628_v52  ;;  %v2632_v1 = vor.u32 %v2630_v41, %v2628_v52  ;;  %v6209_v2 = vsel %vm1042_vm1, 1.0, %v7528_v35  ;;  %v2636_v4 = vrot.slane %v2634_v55, 1 }
  0x80   : > { %7080 = vmatmul.mubr.msk.bf16.gmra.mxu0 %vm1814_vm3, %v2629_v63  ;;  %v1491_v5 = vmul.f32 %v6209_v2, %v7682_v61  ;;  %v2195_v8 = vrot.slane %v2193_v47, 3  ;;  %v2198_v15 = vrot.slane %v2196_v53, 4  ;;  %v2191_v9 = vsel %vm2111_vm11, %v2181_v27, %v2190_v43  ;;  %v7393_v63 = vld [vmem:[#allocation3 + $0x6c] sm:$0xff]  }
  0x81   : > { %v7378_v13 = vld [vmem:[#allocation4 + $0x38] sm:$0xff]   ;;  %v532_v54 = vadd.s32 144, %v7631_v11  ;;  %v2202_v58 = vshrl.u32 %v7387_v37, 16  ;;  %v2205_v14 = vshll.u32 %v7387_v37, 16  ;;  %v2637_v16 = vsel %vm2593_vm10, %v2632_v1, %v2636_v4  ;;  %7050 = vmatmul.mubr.msk.bf16.gmra.mxu1 %vm1814_vm3, %v2173_v25 }
  0x82   : > { %v2640_v49 = vor.u32 %v2638_v62, %v2636_v4  ;;  %v6725_v51 = vpack.c.bf16 %v1491_v5, %v1491_v5  ;;  %v2199_v57 = vor.u32 %v2198_v15, %v2195_v8  ;;  %7083 = vmatprep.mubr.msk.bf16.mxu0 %vm1814_vm3, %v2637_v16  ;;  %v2642_v12 = vshll.u32 %v7378_v13, 16  ;;  %7053 = vmatprep.mubr.msk.bf16.mxu1 %vm1814_vm3, %v2182_v56  ;;  %v7395_v4 = vld [vmem:[#allocation3 + $0x74] sm:$0xff]  }
  0x83   : > { %v2646_v61 = vshrl.u32 %v7378_v13, 16  ;;  %v676_v17 = vand.u32 15, %v532_v54  ;;  %v2204_v32 = vrot.slane %v2202_v58, 3  ;;  %v8030_v60 = vor.u32 %v2662_v10, %v8011_v23 }
  0x84   : > { %v7380_v6 = vld [vmem:[#allocation4 + $0x40] sm:$0xff]   ;;  %1651 = vst.msk [vmem:[#allocation4 + $0x50] sm:$0xf] %vm1250_vm4, %v6725_v51  ;;  %v2207_v19 = vrot.slane %v2205_v14, 4  ;;  %v534_v22 = vadd.s32 160, %v7631_v11  ;;  %v2211_v24 = vshrl.u32 %v7389_v7, 16  ;;  %v2200_v30 = vsel %vm2111_vm11, %v2190_v43, %v2199_v57 }
  0x85   : > { %v2644_v26 = vrot.slane %v2642_v12, 1  ;;  %vm1044_vm5 = vcmp.gt.s32.totalorder %v676_v17, 0  ;;  %v2214_v27 = vshll.u32 %v7389_v7, 16  ;;  %v536_v25 = vadd.s32 176, %v7631_v11 }
  0x86   : > { %v2650_v29 = vshll.u32 %v7380_v6, 16  ;;  %v2654_v28 = vshrl.u32 %v7380_v6, 16  ;;  %v6210_v31 = vsel %vm1044_vm5, 1.0, %v7528_v35  ;;  %v690_v37 = vand.u32 15, %v534_v22 }
  0x87   : > { %v2645_v33 = vsel %vm2593_vm10, %v2640_v49, %v2644_v26  ;;  %v2648_v41 = vor.u32 %v2646_v61, %v2644_v26  ;;  %v1493_v34 = vmul.f32 %v6210_v31, %v7744_v0  ;;  %v2208_v46 = vor.u32 %v2207_v19, %v2204_v32  ;;  %v7397_v61 = vld [vmem:[#allocation3 + $0x7c] sm:$0xff]  }
  0x88   : > { %7084 = vmatmul.mubr.msk.bf16.gmra.mxu0 %vm1814_vm3, %v2645_v33  ;;  %v2652_v38 = vrot.slane %v2650_v29, 1  ;;  %v2213_v47 = vrot.slane %v2211_v24, 3  ;;  %v2216_v48 = vrot.slane %v2214_v27, 4  ;;  %vm1046_vm6 = vcmp.gt.s32.totalorder %v690_v37, 0  ;;  %v8060_v24 = vld [vmem:[#allocation3 + $0x84] ss:$0 sps:$4 sm:$0xff]  }
  0x89   : > { %v6727_v50 = vpack.c.bf16 %v1493_v34, %v1493_v34  ;;  %v704_v52 = vand.u32 15, %v536_v25  ;;  %v2220_v53 = vshrl.u32 %v7391_v18, 16  ;;  %v6211_v62 = vsel %vm1046_vm6, 1.0, %v7528_v35  ;;  %7054 = vmatmul.mubr.msk.bf16.gmra.mxu1 %vm1814_vm3, %v2191_v9 }
  0x8a   : > { %v2653_v43 = vsel %vm2593_vm10, %v2648_v41, %v2652_v38  ;;  %v2656_v55 = vor.u32 %v2654_v28, %v2652_v38  ;;  %v2217_v56 = vor.u32 %v2216_v48, %v2213_v47  ;;  %v1495_v1 = vmul.f32 %v6211_v62, %v7762_v20  ;;  %7057 = vmatprep.mubr.msk.bf16.mxu1 %vm1814_vm3, %v2200_v30 }
  0x8b   : > { %7087 = vmatprep.mubr.msk.bf16.mxu0 %vm1814_vm3, %v2653_v43  ;;  %v7384_v0 = vld [vmem:[#allocation4 + $0x50] sm:$0xff]   ;;  %1653 = vst.msk [vmem:[#allocation4 + $0x58] sm:$0xf] %vm1250_vm4, %v6727_v50  ;;  %vm1048_vm7 = vcmp.gt.s32.totalorder %v704_v52, 0  ;;  %v2222_v2 = vrot.slane %v2220_v53, 3  ;;  %v2223_v10 = vshll.u32 %v7391_v18, 16  ;;  %v2209_v8 = vsel %vm2111_vm11, %v2199_v57, %v2208_v46 }
  0x8c   : > { %v2661_v5 = vsel %vm2593_vm10, %v2656_v55, %v8011_v23  ;;  %v6212_v15 = vsel %vm1048_vm7, 1.0, %v7528_v35  ;;  %v538_v7 = vadd.s32 192, %v7631_v11  ;;  %v2666_v13 = vshll.u32 %v7384_v0, 16 }
  0x8d   : > { %v2670_v9 = vshrl.u32 %v7384_v0, 16  ;;  %v6729_v54 = vpack.c.bf16 %v1495_v1, %v1495_v1  ;;  %v1497_v20 = vmul.f32 %v6212_v15, %v7816_v21  ;;  %v2225_v58 = vrot.slane %v2223_v10, 4 }
  0x8e   : > { %v718_v14 = vand.u32 15, %v538_v7  ;;  %v2229_v16 = vshrl.u32 %v7393_v63, 16  ;;  %v2232_v49 = vshll.u32 %v7393_v63, 16  ;;  %v2668_v51 = vrot.slane %v2666_v13, 1  ;;  %v7401_v63 = vld [vmem:[#allocation3 + $0xc] sm:$0xf8]  }
  0x8f   : > { %1655 = vst.msk [vmem:[#allocation4 + $0x60] sm:$0xf] %vm1250_vm4, %v6729_v54  ;;  %v2218_v23 = vsel %vm2111_vm11, %v2208_v46, %v2217_v56  ;;  %v6731_v12 = vpack.c.bf16 %v1497_v20, %v1497_v20  ;;  %v540_v57 = vadd.s32 208, %v7631_v11  ;;  %v2226_v17 = vor.u32 %v2225_v58, %v2222_v2 }
  0x90   : > { %7088 = vmatmul.mubr.msk.bf16.gmra.mxu0 %vm1814_vm3, %v2661_v5  ;;  %vm1050_vm8 = vcmp.gt.s32.totalorder %v718_v14, 0  ;;  %v2231_v32 = vrot.slane %v2229_v16, 3  ;;  %v2234_v18 = vrot.slane %v2232_v49, 4  ;;  %v2669_v21 = vsel %vm2593_vm10, %v8030_v60, %v2668_v51  ;;  %v8068_v60 = vld [vmem:[%s8987_s3] ss:$0 sm:$0xff] }
  0x91   : > { %1657 = vst.msk [vmem:[#allocation4 + $0x68] sm:$0xf] %vm1250_vm4, %v6731_v12  ;;  %v6213_v6 = vsel %vm1050_vm8, 1.0, %v7528_v35  ;;  %v732_v19 = vand.u32 15, %v540_v57  ;;  %v2238_v22 = vshrl.u32 %v7395_v4, 16  ;;  %7091 = vmatprep.mubr.msk.bf16.mxu0 %vm1814_vm3, %v2669_v21  ;;  %v2672_v27 = vor.u32 %v2670_v9, %v2668_v51  ;;  %7058 = vmatmul.mubr.msk.bf16.gmra.mxu1 %vm1814_vm3, %v2209_v8  ;;  %v7402_v57 = vld [vmem:[#allocation3 + $0x14] sm:$0xff]  }
  0x92   : > { %v7386_v26 = vld [vmem:[#allocation4 + $0x58] sm:$0xff]   ;;  %v2227_v25 = vsel %vm2111_vm11, %v2217_v56, %v2226_v17  ;;  %v1499_v29 = vmul.f32 %v6213_v6, %v7837_v42  ;;  %v479_v28 = vadd.f32 %v8068_v60, %v7937_v40  ;;  %v2241_v30 = vshll.u32 %v7395_v4, 16  ;;  %7061 = vmatprep.mubr.msk.bf16.mxu1 %vm1814_vm3, %v2218_v23 }
  0x93   : > { %vm1052_vm9 = vcmp.gt.s32.totalorder %v732_v19, 0  ;;  %v542_v31 = vadd.s32 224, %v7631_v11  ;;  %v2247_v33 = vshrl.u32 %v7397_v61, 16  ;;  %v2674_v41 = vshll.u32 %v7386_v26, 16 }
  0x94   : > { %v2678_v34 = vshrl.u32 %v7386_v26, 16  ;;  %v6733_v42 = vpack.c.bf16 %v1499_v29, %v1499_v29  ;;  %v2235_v37 = vor.u32 %v2234_v18, %v2231_v32  ;;  %v6214_v38 = vsel %vm1052_vm9, 1.0, %v7528_v35  ;;  %v7404_v18 = vld [vmem:[#allocation3 + $0x1c] sm:$0xff]  }
  0x95   : > { %v2240_v46 = vrot.slane %v2238_v22, 3  ;;  %v2243_v47 = vrot.slane %v2241_v30, 4  ;;  %v746_v48 = vand.u32 15, %v542_v31  ;;  %v2676_v50 = vrot.slane %v2674_v41, 1 }
  0x96   : > { %v7388_v40 = vld [vmem:[#allocation4 + $0x60] sm:$0xff]   ;;  %1659 = vst.msk [vmem:[#allocation4 + $0x70] sm:$0xf] %vm1250_vm4, %v6733_v42  ;;  %v1501_v52 = vmul.f32 %v6214_v38, %v7882_v36  ;;  %v2249_v53 = vrot.slane %v2247_v33, 3  ;;  %v2250_v43 = vshll.u32 %v7397_v61, 16  ;;  %v8078_v55 = vmax.f32 %v479_v28, 0.0 }
  0x97   : > { %vm1054_vm12 = vcmp.gt.s32.totalorder %v746_v48, 0  ;;  %v544_v62 = vadd.s32 240, %v7631_v11  ;;  %v2256_v56 = vshrl.u32 %v8060_v24, 16  ;;  %v2677_v0 = vsel %vm2593_vm10, %v2672_v27, %v2676_v50  ;;  %v7406_v42 = vld [vmem:[#allocation3 + $0x24] sm:$0xff]  }
  0x98   : > { %v2680_v1 = vor.u32 %v2678_v34, %v2676_v50  ;;  %v2682_v2 = vshll.u32 %v7388_v40, 16  ;;  %v7390_v10 = vld [vmem:[#allocation4 + $0x68] sm:$0xff]   ;;  %v2686_v4 = vshrl.u32 %v7388_v40, 16  ;;  %7092 = vmatmul.mubr.msk.bf16.gmra.mxu0 %vm1814_vm3, %v2677_v0  ;;  %v2236_v36 = vsel %vm2111_vm11, %v2226_v17, %v2235_v37 }
  0x99   : > { %v6735_v5 = vpack.c.bf16 %v1501_v52, %v1501_v52  ;;  %v6215_v8 = vsel %vm1054_vm12, 1.0, %v7528_v35  ;;  %v2252_v15 = vrot.slane %v2250_v43, 4  ;;  %v2690_v13 = vshll.u32 %v7390_v10, 16  ;;  %7062 = vmatmul.mubr.msk.bf16.gmra.mxu1 %vm1814_vm3, %v2227_v25 }
  0x9a   : > { %v2684_v7 = vrot.slane %v2682_v2, 1  ;;  %v2244_v9 = vor.u32 %v2243_v47, %v2240_v46  ;;  %v1503_v54 = vmul.f32 %v6215_v8, %v7903_v59  ;;  %v2694_v20 = vshrl.u32 %v7390_v10, 16  ;;  %7065 = vmatprep.mubr.msk.bf16.mxu1 %vm1814_vm3, %v2236_v36 }
  0x9b   : > { %1661 = vst.msk [vmem:[#allocation4 + $0x78] sm:$0xf] %vm1250_vm4, %v6735_v5  ;;  %v760_v58 = vand.u32 15, %v544_v62  ;;  %v8089_v14 = vrot.slane %v2256_v56, 3  ;;  %v2259_v16 = vshll.u32 %v8060_v24, 16  ;;  %v2692_v23 = vrot.slane %v2690_v13, 1 }
  0x9c   : > { %v2685_v49 = vsel %vm2593_vm10, %v2680_v1, %v2684_v7  ;;  %v2688_v51 = vor.u32 %v2686_v4, %v2684_v7  ;;  %v6737_v12 = vpack.c.bf16 %v1503_v54, %v1503_v54  ;;  %v2253_v61 = vor.u32 %v2252_v15, %v2249_v53 }
  0x9d   : > { %7095 = vmatprep.mubr.msk.bf16.mxu0 %vm1814_vm3, %v2685_v49  ;;  %v7392_v59 = vld [vmem:[#allocation4 + $0x70] sm:$0xff]   ;;  %vm1056_vm13 = vcmp.gt.s32.totalorder %v760_v58, 0  ;;  %v2261_v17 = vrot.slane %v2259_v16, 4  ;;  %v3088_v32 = vshrl.u32 %v7401_v63, 16  ;;  %v2245_v6 = vsel %vm2111_vm11, %v2235_v37, %v2244_v9 }
  0x9e   : > { %v2693_v21 = vsel %vm2593_vm10, %v2688_v51, %v2692_v23  ;;  %1663 = vst.msk [vmem:[#allocation4 + $0x80] sm:$0xf] %vm1250_vm4, %v6737_v12  ;;  %v6216_v19 = vsel %vm1056_vm13, 1.0, %v7528_v35  ;;  %v3091_v22 = vshll.u32 %v7401_v63, 16  ;;  %v2696_v24 = vor.u32 %v2694_v20, %v2692_v23 }
  0x9f   : > { %v2698_v26 = vshll.u32 %v7392_v59, 16  ;;  %v2702_v27 = vshrl.u32 %v7392_v59, 16  ;;  %v1505_v25 = vmul.f32 %v6216_v19, %v8078_v55  ;;  %v3090_v29 = vrot.slane %v3088_v32, 3 }
  0xa0   : > { %v3093_v28 = vrot.slane %v3091_v22, 4  ;;  %v3096_v30 = vshrl.u32 %v7402_v57, 16  ;;  %v3099_v31 = vshll.u32 %v7402_v57, 16  ;;  %7096 = vmatmul.mubr.msk.bf16.gmra.mxu0 %vm1814_vm3, %v2693_v21  ;;  %v2254_v41 = vsel %vm2111_vm11, %v2244_v9, %v2253_v61  ;;  %v7408_v9 = vld [vmem:[#allocation3 + $0x2c] sm:$0xff]   ;;  %v7412_v22 = vld [vmem:[#allocation3 + $0x3c] sm:$0xff]  }
  0xa1   : > { %v2700_v33 = vrot.slane %v2698_v26, 1  ;;  %v6739_v34 = vpack.c.bf16 %v1505_v25, %v1505_v25  ;;  %7066 = vmatmul.mubr.msk.bf16.gmra.mxu1 %vm1814_vm3, %v2245_v6  ;;  %v2262_v48 = vor.u32 %v2261_v17, %v8089_v14  ;;  %v3105_v50 = vshrl.u32 %v7404_v18, 16  ;;  %v7410_v14 = vld [vmem:[#allocation3 + $0x34] sm:$0xff]  }
  0xa2   : > { %v7394_v37 = vld [vmem:[#allocation4 + $0x78] sm:$0xff]   ;;  %v3098_v38 = vrot.slane %v3096_v30, 3  ;;  %v3101_v46 = vrot.slane %v3099_v31, 4  ;;  %v3108_v40 = vshll.u32 %v7404_v18, 16  ;;  %7069 = vmatprep.mubr.msk.bf16.mxu1 %vm1814_vm3, %v2254_v41  ;;  %v3094_v62 = vor.u32 %v3093_v28, %v3090_v29  ;;  %v7400_v21 = vld [vmem:[#allocation2 + $0x10] sm:$0xff]  }
  0xa3   : > { %v2701_v47 = vsel %vm2593_vm10, %v2696_v24, %v2700_v33  ;;  %1665 = vst.msk [vmem:[#allocation4 + $0x88] sm:$0xf] %vm1250_vm4, %v6739_v34  ;;  %v2704_v52 = vor.u32 %v2702_v27, %v2700_v33  ;;  %v2706_v53 = vshll.u32 %v7394_v37, 16  ;;  %v2710_v43 = vshrl.u32 %v7394_v37, 16  ;;  %v7414_v24 = vld [vmem:[#allocation3 + $0x44] sm:$0xff]  }
  0xa4   : > { %7099 = vmatprep.mubr.msk.bf16.mxu0 %vm1814_vm3, %v2701_v47  ;;  %v3102_v63 = vor.u32 %v3101_v46, %v3098_v38  ;;  %v3114_v0 = vshrl.u32 %v7406_v42, 16  ;;  %v3117_v1 = vshll.u32 %v7406_v42, 16  ;;  %v6675_v2 = vpack.c.bf16 %v8078_v55, %v8078_v55  ;;  %v7403_v42 = vld [vmem:[#allocation2 + $0x18] sm:$0xff]  }
  0xa5   : > { %v7396_v56 = vld [vmem:[#allocation4 + $0x80] sm:$0xff]   ;;  %v2708_v10 = vrot.slane %v2706_v53, 1  ;;  %v3107_v36 = vrot.slane %v3105_v50, 3  ;;  %v3110_v5 = vrot.slane %v3108_v40, 4  ;;  %v2263_v13 = vsel %vm2111_vm11, %v2253_v61, %v2262_v48  ;;  %v7416_v50 = vld [vmem:[#allocation3 + $0x4c] sm:$0xff]   ;;  %v7418_v40 = vld [vmem:[#allocation3 + $0x54] sm:$0xff]  }
  0xa6   : > { %v2714_v4 = vshll.u32 %v7396_v56, 16  ;;  %1473 = vst.msk [vmem:[#allocation3 + $0x88] sm:$0xf] %vm1250_vm4, %v6675_v2  ;;  %1281 = vst.msk [vmem:[#allocation2 + $0x88] sm:$0xf] %vm1250_vm4, %v6675_v2  ;;  %v2718_v7 = vshrl.u32 %v7396_v56, 16  ;;  %v3103_v55 = vsel %vm2111_vm11, %v3094_v62, %v3102_v63  ;;  %v6836_v6 = vunpack.c.h.bf16 %v7908_v3 }
  0xa7   : > { %v2709_v8 = vsel %vm2593_vm10, %v2704_v52, %v2708_v10  ;;  %v2712_v15 = vor.u32 %v2710_v43, %v2708_v10  ;;  %v3116_v20 = vrot.slane %v3114_v0, 3  ;;  %v3119_v58 = vrot.slane %v3117_v1, 4  ;;  %v8145_v62 = vld [vmem:[%s8985_s1 + $0x20] sm:$0xf] }
  0xa8   : > { %7100 = vmatmul.mubr.msk.bf16.gmra.mxu0 %vm1814_vm3, %v2709_v8  ;;  %v2716_v54 = vrot.slane %v2714_v4, 1  ;;  %v3111_v51 = vor.u32 %v3110_v5, %v3107_v36  ;;  %v3123_v57 = vshrl.u32 %v7408_v9, 16  ;;  %v3126_v59 = vshll.u32 %v7408_v9, 16  ;;  %v7407_v36 = vld [vmem:[#allocation2 + $0x28] sm:$0xff]  }
  0xa9   : > { %7070 = vmatmul.mubr.msk.bf16.gmra.mxu1 %vm1814_vm3, %v2263_v13  ;;  %v3120_v61 = vor.u32 %v3119_v58, %v3116_v20  ;;  %v3132_v17 = vshrl.u32 %v7410_v14, 16  ;;  %v3135_v32 = vshll.u32 %v7410_v14, 16  ;;  %v4138_v19 = vsel %vm1863_vm2, %v7970_v44, 0  ;;  %v8132_v44 = vld [vmem:[%s8985_s1 + $0x1c] sm:$0xf] }
  0xaa   : > { %v7398_v16 = vld [vmem:[#allocation4 + $0x88] ss:$0 sps:$4 sm:$0x11]   ;;  %v2717_v49 = vsel %vm2593_vm10, %v2712_v15, %v2716_v54  ;;  %v2720_v23 = vor.u32 %v2718_v7, %v2716_v54  ;;  %7109 = vmatprep.mubr.msk.bf16.mxu1 %vm1814_vm3, %v3103_v55  ;;  %v3112_v27 = vsel %vm2111_vm11, %v3102_v63, %v3111_v51  ;;  %v3125_v25 = vrot.slane %v3123_v57, 3  ;;  %v7409_v7 = vld [vmem:[#allocation2 + $0x30] sm:$0xff]   ;;  %v7420_v20 = vld [vmem:[#allocation3 + $0x5c] sm:$0xff]  }
  0xab   : > { %7103 = vmatprep.mubr.msk.bf16.mxu0 %vm1814_vm3, %v2717_v49  ;;  %v2722_v12 = vshll.u32 %v7398_v16, 16  ;;  %v3128_v29 = vrot.slane %v3126_v59, 4  ;;  %v3121_v28 = vsel %vm2111_vm11, %v3111_v51, %v3120_v61  ;;  %v3134_v30 = vrot.slane %v3132_v17, 3  ;;  %v7422_v16 = vld [vmem:[#allocation3 + $0x64] sm:$0xff]  }
  0xac   : > { %v3137_v31 = vrot.slane %v3135_v32, 4  ;;  %v441_v3 = vmul.f32 %v7934_v39, %v6836_v6  ;;  %v3141_v41 = vshrl.u32 %v7412_v22, 16  ;;  %v3144_v34 = vshll.u32 %v7412_v22, 16  ;;  %v7405_v39 = vld [vmem:[#allocation2 + $0x20] sm:$0xff]   ;;  %v7424_v22 = vld [vmem:[#allocation3 + $0x6c] sm:$0xff]  }
  0xad   : > { %v2724_v18 = vrot.slane %v2722_v12, 1  ;;  %v3129_v33 = vor.u32 %v3128_v29, %v3125_v25  ;;  %v3150_v38 = vshrl.u32 %v7414_v24, 16  ;;  %v3153_v46 = vshll.u32 %v7414_v24, 16  ;;  %v7426_v25 = vld [vmem:[#allocation3 + $0x74] sm:$0xff]  }
  0xae   : > { %v3138_v37 = vor.u32 %v3137_v31, %v3134_v30  ;;  %v480_v47 = vadd.f32 %v8068_v60, %v441_v3  ;;  %v4651_v48 = vsel %vm1863_vm2, %v7977_v45, 0  ;;  %v3143_v53 = vrot.slane %v3141_v41, 3  ;;  %v7415_v31 = vld [vmem:[#allocation2 + $0x48] sm:$0xff]  }
  0xaf   : > { %v2725_v26 = vsel %vm2593_vm10, %v2720_v23, %v2724_v18  ;;  %v3130_v52 = vsel %vm2111_vm11, %v3120_v61, %v3129_v33  ;;  %v3146_v43 = vrot.slane %v3144_v34, 4  ;;  %v3152_v63 = vrot.slane %v3150_v38, 3  ;;  %v7411_v61 = vld [vmem:[#allocation2 + $0x38] sm:$0xff]   ;;  %v7417_v34 = vld [vmem:[#allocation2 + $0x50] sm:$0xff]  }
  0xb0   : > { %7104 = vmatmul.mubr.msk.bf16.gmra.mxu0 %vm1814_vm3, %v2725_v26  ;;  %v3139_v56 = vsel %vm2111_vm11, %v3129_v33, %v3138_v37  ;;  %v3155_v60 = vrot.slane %v3153_v46, 4  ;;  %v512_v45 = vmax.f32 %v480_v47, 0.0  ;;  %v3159_v0 = vshrl.u32 %v7416_v50, 16  ;;  %v7428_v46 = vld [vmem:[#allocation3 + $0x7c] sm:$0xff]  }
  0xb1   : > { %7143 = vmatprep.mubr.msk.bf16.mxu0 %vm1814_vm3, %v7400_v21  ;;  %7110 = vmatmul.mubr.msk.bf16.vlgmr.msra.gmra.mxu1 %vm1814_vm3, %v3112_v27  ;;  %v3147_v1 = vor.u32 %v3146_v43, %v3143_v53  ;;  %v3162_v2 = vshll.u32 %v7416_v50, 16  ;;  %v545_v10 = vadd.s32 248, %v7631_v11  ;;  %v3168_v8 = vshrl.u32 %v7418_v40, 16  ;;  %v7413_v21 = vld [vmem:[#allocation2 + $0x40] sm:$0xff]  }
  0xb2   : > { %7176 = vmatpush3.bf16.msra.mxu1 %v4138_v19  ;;  %7113 = vmatprep.mubr.msk.bf16.mxu1 %vm1814_vm3, %v3121_v28  ;;  %v6676_v4 = vpack.c.bf16 %v512_v45, %v512_v45  ;;  %v3156_v5 = vor.u32 %v3155_v60, %v3152_v63  ;;  %v3171_v15 = vshll.u32 %v7418_v40, 16  ;;  %v3161_v54 = vrot.slane %v3159_v0, 3  ;;  %v7419_v40 = vld [vmem:[#allocation2 + $0x58] sm:$0xff]  }
  0xb3   : > { %7321 = vmatprep.subr.msk.bf16.mxu1 %vm1863_vm2, %v8132_v44  ;;  %v767_v13 = vand.u32 15, %v545_v10  ;;  %v3148_v9 = vsel %vm2111_vm11, %v3138_v37, %v3147_v1  ;;  %v3164_v55 = vrot.slane %v3162_v2, 4  ;;  %v3170_v58 = vrot.slane %v3168_v8, 3  ;;  %v7435_v8 = vld [vmem:[#allocation4 + $0x10] sm:$0xff]  }
  0xb4   : > { %1282 = vst.msk [vmem:[#allocation2 + $0x8c] sm:$0xf] %vm1250_vm4, %v6676_v4  ;;  %1666 = vst.msk [vmem:[#allocation4 + $0x8c] sm:$0xf] %vm1250_vm4, %v6676_v4  ;;  %v3157_v11 = vsel %vm2111_vm11, %v3147_v1, %v3156_v5  ;;  %v3173_v14 = vrot.slane %v3171_v15, 4  ;;  %v3177_v12 = vshrl.u32 %v7420_v20, 16 }
  0xb5   : > { %vm961_vm14 = vcmp.lt.s32.totalorder %v767_v13, 15  ;;  %v3165_v23 = vor.u32 %v3164_v55, %v3161_v54  ;;  %v3180_v57 = vshll.u32 %v7420_v20, 16  ;;  %v3186_v32 = vshrl.u32 %v7422_v16, 16  ;;  %v7423_v15 = vld [vmem:[#allocation2 + $0x68] sm:$0xff]   ;;  %v7436_v55 = vld [vmem:[#allocation4 + $0x18] sm:$0xff]  }
  0xb6   : > { %v6200_v49 = vsel %vm961_vm14, 1.0, %v7528_v35  ;;  %v3174_v17 = vor.u32 %v3173_v14, %v3170_v58  ;;  %v3189_v18 = vshll.u32 %v7422_v16, 16  ;;  %v3179_v6 = vrot.slane %v3177_v12, 3  ;;  %v7433_v58 = vld [vmem:[#allocation3 + $0x14] sm:$0xf8]   ;;  %v7434_v14 = vld [vmem:[#allocation3 + $0x1c] sm:$0xff]  }
  0xb7   : > { %v1314_v51 = vmul.f32 %v6200_v49, %v512_v45  ;;  %v3166_v35 = vsel %vm2111_vm11, %v3156_v5, %v3165_v23  ;;  %v3182_v19 = vrot.slane %v3180_v57, 4  ;;  %v3188_v26 = vrot.slane %v3186_v32, 3  ;;  %v7421_v45 = vld [vmem:[#allocation2 + $0x60] sm:$0xff]  }
  0xb8   : > { %7144 = vmatmul.mubr.msk.bf16.vlgmr.msra.gmra.mxu0 %vm1814_vm3, %v7403_v42  ;;  %v3175_v24 = vsel %vm2111_vm11, %v3165_v23, %v3174_v17  ;;  %v3191_v27 = vrot.slane %v3189_v18, 4  ;;  %v3195_v28 = vshrl.u32 %v7424_v22, 16  ;;  %v3198_v30 = vshll.u32 %v7424_v22, 16  ;;  %v7438_v32 = vld [vmem:[#allocation4 + $0x20] sm:$0xff]  }
  0xb9   : > { %7210 = vmatpush3.bf16.msra.mxu0 %v4651_v48  ;;  %7147 = vmatprep.mubr.msk.bf16.mxu0 %vm1814_vm3, %v7405_v39  ;;  %v6708_v59 = vpack.c.bf16 %v1314_v51, %v1314_v51  ;;  %v3183_v29 = vor.u32 %v3182_v19, %v3179_v6  ;;  %v3204_v33 = vshrl.u32 %v7426_v25, 16  ;;  %v3207_v41 = vshll.u32 %v7426_v25, 16  ;;  %v7430_v39 = vld [vmem:[#allocation3 + $0x84] sm:$0xff]  }
  0xba   : > { %7114 = vmatmul.mubr.msk.bf16.gmra.mxu1 %vm1814_vm3, %v3130_v52  ;;  %7322 = vmatprep.subr.msk.bf16.mxu0 %vm1863_vm2, %v8145_v62  ;;  %v3192_v3 = vor.u32 %v3191_v27, %v3188_v26  ;;  %v3197_v37 = vrot.slane %v3195_v28, 3  ;;  %v3200_v38 = vrot.slane %v3198_v30, 4  ;;  %v3213_v53 = vshrl.u32 %v7428_v46, 16  ;;  %v7429_v6 = vld [vmem:[#allocation2 + $0x80] sm:$0xff]   ;;  %v7440_v27 = vld [vmem:[#allocation4 + $0x28] sm:$0xff]  }
  0xbb   : > { %7117 = vmatprep.mubr.msk.bf16.mxu1 %vm1814_vm3, %v3139_v56  ;;  %1474 = vst.msk [vmem:[#allocation3 + $0x8c] sm:$0xf] %vm1250_vm4, %v6708_v59  ;;  %v3184_v42 = vsel %vm2111_vm11, %v3174_v17, %v3183_v29  ;;  %v3206_v48 = vrot.slane %v3204_v33, 3  ;;  %v3209_v50 = vrot.slane %v3207_v41, 4  ;;  %v3216_v43 = vshll.u32 %v7428_v46, 16  ;;  %v7437_v26 = vld [vmem:[#allocation3 + $0x24] sm:$0xff]  }
  0xbc   : > { %v3193_v47 = vsel %vm2111_vm11, %v3183_v29, %v3192_v3  ;;  %v3201_v52 = vor.u32 %v3200_v38, %v3197_v37  ;;  %v3222_v63 = vshrl.u32 %v7430_v39, 16  ;;  %v3225_v60 = vshll.u32 %v7430_v39, 16 }
  0xbd   : > { %v3210_v56 = vor.u32 %v3209_v50, %v3206_v48  ;;  %v3215_v1 = vrot.slane %v3213_v53, 3  ;;  %v3218_v2 = vrot.slane %v3216_v43, 4  ;;  %v3960_v20 = vshll.u32 %v7435_v8, 16  ;;  %v7441_v43 = vld [vmem:[#allocation3 + $0x34] sm:$0xff]  }
  0xbe   : > { %v3202_v0 = vsel %vm2111_vm11, %v3192_v3, %v3201_v52  ;;  %v3227_v5 = vrot.slane %v3225_v60, 4  ;;  %v3958_v23 = vshrl.u32 %v7435_v8, 16  ;;  %v3965_v59 = vshll.u32 %v7436_v55, 16  ;;  %v7439_v3 = vld [vmem:[#allocation3 + $0x2c] sm:$0xff]  }
  0xbf   : > { %v3211_v4 = vsel %vm2111_vm11, %v3201_v52, %v3210_v56  ;;  %v3962_v57 = vrot.slane %v3960_v20, 1  ;;  %v4454_v17 = vshll.u32 %v7433_v58, 16  ;;  %v4459_v18 = vshrl.u32 %v7434_v14, 16  ;;  %v7442_v52 = vld [vmem:[#allocation4 + $0x30] sm:$0xff]  }
  0xc0   : > { %7148 = vmatmul.mubr.msk.bf16.gmra.mxu0 %vm1814_vm3, %v7407_v36  ;;  %v3224_v36 = vrot.slane %v3222_v63, 3  ;;  %v3969_v41 = vshrl.u32 %v7436_v55, 16  ;;  %v3981_v37 = vshll.u32 %v7440_v27, 16  ;;  %v4468_v46 = vshrl.u32 %v7437_v26, 16 }
  0xc1   : > { %7151 = vmatprep.mubr.msk.bf16.mxu0 %vm1814_vm3, %v7409_v7  ;;  %v3219_v7 = vor.u32 %v3218_v2, %v3215_v1  ;;  %v3963_v22 = vor.u32 %v3962_v57, %v3958_v23  ;;  %v4456_v29 = vrot.slane %v4454_v17, 4  ;;  %v4461_v28 = vrot.slane %v4459_v18, 3 }
  0xc2   : > { %7118 = vmatmul.mubr.msk.bf16.gmra.mxu1 %vm1814_vm3, %v3148_v9  ;;  %v7432_v10 = vld [vmem:[#allocation3 + $0x8c] ss:$0 sps:$4 sm:$0xff]   ;;  %v3228_v54 = vor.u32 %v3227_v5, %v3224_v36  ;;  %v4471_v39 = vshll.u32 %v7437_v26, 16  ;;  %v4477_v50 = vshrl.u32 %v7439_v3, 16  ;;  %v3983_v60 = vrot.slane %v3981_v37, 1  ;;  %v7443_v5 = vld [vmem:[#allocation3 + $0x3c] sm:$0xff]  }
  0xc3   : > { %7121 = vmatprep.mubr.msk.bf16.mxu1 %vm1814_vm3, %v3157_v11  ;;  %v3231_v13 = vshrl.u32 %v7432_v10, 16  ;;  %v3234_v9 = vshll.u32 %v7432_v10, 16  ;;  %v7425_v11 = vld [vmem:[#allocation2 + $0x70] sm:$0xff]   ;;  %v3220_v16 = vsel %vm2111_vm11, %v3210_v56, %v3219_v7  ;;  %v7431_v56 = vld [vmem:[#allocation2 + $0x88] sm:$0xff]   ;;  %v3989_v36 = vshll.u32 %v7442_v52, 16 }
  0xc4   : > { %v3229_v12 = vsel %vm2111_vm11, %v3219_v7, %v3228_v54  ;;  %v4473_v1 = vrot.slane %v4471_v39, 4  ;;  %v4479_v10 = vrot.slane %v4477_v50, 3  ;;  %v5008_v7 = vsel %vm1863_vm2, %v8132_v44, 0  ;;  %v7450_v37 = vld [vmem:[#allocation4 + $0x50] sm:$0xff]   ;;  %v8229_v50 = vld [vmem:[#allocation4 + $0x58] sm:$0xff]  }
  0xc5   : > { %v3233_v49 = vrot.slane %v3231_v13, 3  ;;  %v3236_v51 = vrot.slane %v3234_v9, 4  ;;  %v3993_v9 = vshrl.u32 %v7442_v52, 16  ;;  %v4486_v20 = vshrl.u32 %v7441_v43, 16 }
  0xc6   : > { %v5501_v17 = vsel %vm1863_vm2, %v8145_v62, 0  ;;  %vm6030_vm2 = vcmask 57344  }
  0xc7   : > { %v3237_v19 = vor.u32 %v3236_v51, %v3233_v49  ;;  %v4498_v49 = vshll.u32 %v7443_v5, 16  ;;  %v7446_v51 = vld [vmem:[#allocation4 + $0x40] sm:$0xff]  }
  0xc8   : > { %7152 = vmatmul.mubr.msk.bf16.gmra.mxu0 %vm1814_vm3, %v7411_v61  ;;  %v4451_v61 = vshrl.u32 %v7433_v58, 16  ;;  %v4009_v62 = vshrl.u32 %v7446_v51, 16 }
  0xc9   : > { %7155 = vmatprep.mubr.msk.bf16.mxu0 %vm1814_vm3, %v7413_v21  ;;  %v4462_v21 = vshll.u32 %v7434_v14, 16  ;;  %v3238_v33 = vsel %vm2111_vm11, %v3228_v54, %v3237_v19  ;;  %v3991_v14 = vrot.slane %v3989_v36, 1  ;;  %v4500_v19 = vrot.slane %v4498_v49, 4 }
  0xca   : > { %7122 = vmatmul.mubr.msk.bf16.gmra.mxu1 %vm1814_vm3, %v3166_v35  ;;  %v7427_v35 = vld [vmem:[#allocation2 + $0x78] sm:$0xff]   ;;  %v4453_v25 = vrot.slane %v4451_v61, 3 }
  0xcb   : > { %7125 = vmatprep.mubr.msk.bf16.mxu1 %vm1814_vm3, %v3175_v24  ;;  %v3967_v24 = vrot.slane %v3965_v59, 1  ;;  %v4464_v30 = vrot.slane %v4462_v21, 4  ;;  %v8209_v59 = vld [vmem:[#allocation4 + $0x48] sm:$0xff]  }
  0xcc   : > { %v4457_v38 = vor.u32 %v4456_v29, %v4453_v25  ;;  %v7445_v21 = vld [vmem:[#allocation3 + $0x44] sm:$0xff]  }
  0xcd   : > { %v3971_v53 = vor.u32 %v3969_v41, %v3967_v24 }
  0xd0   : > { %7156 = vmatmul.mubr.msk.bf16.gmra.mxu0 %vm1814_vm3, %v7415_v31  ;;  %v3973_v31 = vshll.u32 %v7438_v32, 16 }
  0xd1   : > { %7159 = vmatprep.mubr.msk.bf16.mxu0 %vm1814_vm3, %v7417_v34  ;;  %v3968_v34 = vsel %vm2593_vm10, %v3963_v22, %v3967_v24  ;;  %v4005_v22 = vshll.u32 %v7446_v51, 16  ;;  %v7447_v24 = vld [vmem:[#allocation3 + $0x4c] sm:$0xff]  }
  0xd2   : > { %7126 = vmatmul.mubr.msk.bf16.gmra.mxu1 %vm1814_vm3, %v3184_v42  ;;  %v3977_v42 = vshrl.u32 %v7438_v32, 16  ;;  %v3975_v48 = vrot.slane %v3973_v31, 1  ;;  %v4488_v32 = vrot.slane %v4486_v20, 3  ;;  %v4504_v31 = vshrl.u32 %v7445_v21, 16 }
  0xd3   : > { %7129 = vmatprep.mubr.msk.bf16.mxu1 %vm1814_vm3, %v3193_v47  ;;  %v4465_v47 = vor.u32 %v4464_v30, %v4461_v28  ;;  %v4013_v28 = vshll.u32 %v8209_v59, 16  ;;  %v4007_v41 = vrot.slane %v4005_v22, 1  ;;  %v4033_v22 = vshrl.u32 %v8229_v50, 16 }
  0xd4   : > { %v3979_v63 = vor.u32 %v3977_v42, %v3975_v48  ;;  %v3976_v8 = vsel %vm2593_vm10, %v3971_v53, %v3975_v48  ;;  %v4516_v42 = vshll.u32 %v7447_v24, 16  ;;  %v4506_v52 = vrot.slane %v4504_v31, 3 }
  0xd5   : > { %v4466_v2 = vsel %vm2111_vm11, %v4457_v38, %v4465_v47  ;;  %v4015_v48 = vrot.slane %v4013_v28, 1 }
  0xd6   : > { %v3984_v13 = vsel %vm2593_vm10, %v3979_v63, %v3983_v60 }
  0xd8   : > { %7160 = vmatmul.mubr.msk.bf16.gmra.mxu0 %vm1814_vm3, %v7419_v40  ;;  %v4480_v40 = vshll.u32 %v7439_v3, 16  ;;  %v4507_v3 = vshll.u32 %v7445_v21, 16 }
  0xd9   : > { %7163 = vmatprep.mubr.msk.bf16.mxu0 %vm1814_vm3, %v7421_v45  ;;  %v8195_v45 = vld [vmem:[#allocation4 + $0x38] sm:$0xff]  }
  0xda   : > { %7130 = vmatmul.mubr.msk.bf16.gmra.mxu1 %vm1814_vm3, %v3202_v0  ;;  %v4470_v0 = vrot.slane %v4468_v46, 3  ;;  %v3997_v54 = vshll.u32 %v8195_v45, 16  ;;  %v4001_v25 = vshrl.u32 %v8195_v45, 16  ;;  %v4509_v53 = vrot.slane %v4507_v3, 4 }
  0xdb   : > { %7133 = vmatprep.mubr.msk.bf16.mxu1 %vm1814_vm3, %v3211_v4  ;;  %v4482_v4 = vrot.slane %v4480_v40, 4  ;;  %v4021_v45 = vshll.u32 %v7450_v37, 16 }
  0xdc   : > { %v4474_v55 = vor.u32 %v4473_v1, %v4470_v0  ;;  %v3999_v57 = vrot.slane %v3997_v54, 1  ;;  %v7451_v0 = vld [vmem:[#allocation3 + $0x5c] sm:$0xff]  }
  0xdd   : > { %v4483_v58 = vor.u32 %v4482_v4, %v4479_v10  ;;  %v4017_v10 = vshrl.u32 %v8209_v59, 16  ;;  %v4023_v54 = vrot.slane %v4021_v45, 1  ;;  %v4534_v20 = vshll.u32 %v7451_v0, 16 }
  0xde   : > { %v4475_v61 = vsel %vm2111_vm11, %v4465_v47, %v4474_v55  ;;  %v4003_v46 = vor.u32 %v4001_v25, %v3999_v57  ;;  %v4011_v47 = vor.u32 %v4009_v62, %v4007_v41 }
  0xe0   : > { %7164 = vmatmul.mubr.msk.bf16.gmra.mxu0 %vm1814_vm3, %v7423_v15  ;;  %v3985_v15 = vshrl.u32 %v7440_v27, 16  ;;  %v4016_v36 = vsel %vm2593_vm10, %v4011_v47, %v4015_v48 }
  0xe1   : > { %7167 = vmatprep.mubr.msk.bf16.mxu0 %vm1814_vm3, %v7425_v11  ;;  %v4489_v11 = vshll.u32 %v7441_v43, 16  ;;  %v7449_v43 = vld [vmem:[#allocation3 + $0x54] sm:$0xff]  }
  0xe2   : > { %7134 = vmatmul.mubr.msk.bf16.gmra.mxu1 %vm1814_vm3, %v3220_v16  ;;  %v4495_v16 = vshrl.u32 %v7443_v5, 16  ;;  %v3987_v44 = vor.u32 %v3985_v15, %v3983_v60  ;;  %v4518_v60 = vrot.slane %v4516_v42, 4  ;;  %v4025_v5 = vshrl.u32 %v7450_v37, 16 }
  0xe3   : > { %7137 = vmatprep.mubr.msk.bf16.mxu1 %vm1814_vm3, %v3229_v12  ;;  %v3995_v12 = vor.u32 %v3993_v9, %v3991_v14  ;;  %v4491_v18 = vrot.slane %v4489_v11, 4  ;;  %v4510_v15 = vor.u32 %v4509_v53, %v4506_v52  ;;  %v7454_v11 = vld [vmem:[#allocation4 + $0x60] sm:$0xff]  }
  0xe4   : > { %v3992_v27 = vsel %vm2593_vm10, %v3987_v44, %v3991_v14  ;;  %v4019_v14 = vor.u32 %v4017_v10, %v4015_v48  ;;  %v4027_v49 = vor.u32 %v4025_v5, %v4023_v54  ;;  %v8249_v44 = vld [vmem:[#allocation4 + $0x68] sm:$0xff]   ;;  %v4037_v21 = vshll.u32 %v7454_v11, 16 }
  0xe5   : > { %v4000_v29 = vsel %vm2593_vm10, %v3995_v12, %v3999_v57  ;;  %v4492_v30 = vor.u32 %v4491_v18, %v4488_v32  ;;  %v4536_v18 = vrot.slane %v4534_v20, 4  ;;  %v4041_v25 = vshrl.u32 %v7454_v11, 16 }
  0xe6   : > { %v4039_v3 = vrot.slane %v4037_v21, 1  ;;  %v7461_v21 = vld [vmem:[#allocation3 + $0x84] sm:$0xff]  }
  0xe7   : > { %v4493_v40 = vsel %vm2111_vm11, %v4483_v58, %v4492_v30 }
  0xe8   : > { %7168 = vmatmul.mubr.msk.bf16.gmra.mxu0 %vm1814_vm3, %v7427_v35  ;;  %v4484_v35 = vsel %vm2111_vm11, %v4474_v55, %v4483_v58  ;;  %v4531_v55 = vshrl.u32 %v7451_v0, 16  ;;  %v4043_v47 = vor.u32 %v4041_v25, %v4039_v3 }
  0xe9   : > { %7171 = vmatprep.mubr.msk.bf16.mxu0 %vm1814_vm3, %v7429_v6  ;;  %v4497_v6 = vrot.slane %v4495_v16, 3 }
  0xea   : > { %7138 = vmatmul.mubr.msk.bf16.gmra.mxu1 %vm1814_vm3, %v3238_v33  ;;  %v4533_v32 = vrot.slane %v4531_v55, 3 }
  0xeb   : > { %7177 = vmatprep.mubr.msk.bf16.mxu1 %vm1814_vm3, %v3968_v34  ;;  %v4501_v33 = vor.u32 %v4500_v19, %v4497_v6  ;;  %v4513_v34 = vshrl.u32 %v7447_v24, 16  ;;  %v4024_v19 = vsel %vm2593_vm10, %v4019_v14, %v4023_v54 }
  0xec   : > { %v4537_v31 = vor.u32 %v4536_v18, %v4533_v32 }
  0xed   : > { %v4515_v63 = vrot.slane %v4513_v34, 3  ;;  %v4511_v12 = vsel %vm2111_vm11, %v4501_v33, %v4510_v15  ;;  %v7458_v34 = vld [vmem:[#allocation4 + $0x70] sm:$0xff]  }
  0xee   : > { %v4053_v45 = vshll.u32 %v7458_v34, 16 }
  0xef   : > { %v4519_v9 = vor.u32 %v4518_v60, %v4515_v63 }
  0xf0   : > { %7172 = vmatmul.mubr.msk.bf16.gmra.mxu0 %vm1814_vm3, %v7431_v56  ;;  %v4502_v56 = vsel %vm2111_vm11, %v4492_v30, %v4501_v33  ;;  %v4055_v20 = vrot.slane %v4053_v45, 1 }
  0xf1   : > { %7211 = vmatprep.mubr.msk.bf16.mxu0 %vm1814_vm3, %v4466_v2  ;;  %v8206_v23 = vpop.f32.mrf.mxu0  ;;  %v4008_v2 = vsel %vm2593_vm10, %v4003_v46, %v4007_v41 }
  0xf2   : > { %7178 = vmatmul.mubr.msk.bf16.vlgmr.msra.gmra.mxu1 %vm1814_vm3, %v3976_v8  ;;  %v4029_v8 = vshll.u32 %v8229_v50, 16  ;;  %v8269_v50 = vld [vmem:[#allocation4 + $0x78] sm:$0xff]  }
  0xf3   : > { %7244 = vmatpush3.bf16.msra.mxu1 %v5008_v7  ;;  %7181 = vmatprep.mubr.msk.bf16.mxu1 %vm1814_vm3, %v3984_v13  ;;  %v8215_v26 = vpop.f32.mrf.mxu0  ;;  %v4522_v7 = vshrl.u32 %v7449_v43, 16  ;;  %v4525_v13 = vshll.u32 %v7449_v43, 16  ;;  %v7457_v43 = vld [vmem:[#allocation3 + $0x74] sm:$0xff]  }
  0xf4   : > { %v4031_v51 = vrot.slane %v4029_v8, 1  ;;  %v4561_v54 = vshll.u32 %v7457_v43, 16 }
  0xf5   : > { %v8224_v38 = vpop.f32.mrf.mxu0  ;;  %v4524_v57 = vrot.slane %v4522_v7, 3  ;;  %v4527_v59 = vrot.slane %v4525_v13, 4  ;;  %v4061_v7 = vshll.u32 %v8269_v50, 16 }
  0xf6   : > { %v4035_v37 = vor.u32 %v4033_v22, %v4031_v51  ;;  %v4563_v18 = vrot.slane %v4561_v54, 4  ;;  %v7467_v54 = vld [vmem:[#allocation4 + $0x18] sm:$0xff]  }
  0xf7   : > { %v8233_v1 = vpop.f32.mrf.mxu0  ;;  %v4528_v62 = vor.u32 %v4527_v59, %v4524_v57  ;;  %v4063_v59 = vrot.slane %v4061_v7, 1 }
  0xf8   : > { %7212 = vmatmul.mubr.msk.bf16.vlgmr.msra.gmra.mxu0 %vm1814_vm3, %v4475_v61  ;;  %v7453_v61 = vld [vmem:[#allocation3 + $0x64] sm:$0xff]   ;;  %v4040_v10 = vsel %vm2593_vm10, %v4035_v37, %v4039_v3  ;;  %v4579_v37 = vshll.u32 %v7461_v21, 16 }
  0xf9   : > { %7278 = vmatpush3.bf16.msra.mxu0 %v5501_v17  ;;  %7215 = vmatprep.mubr.msk.bf16.mxu0 %vm1814_vm3, %v4484_v35  ;;  %v8227_v39 = vpop.f32.mrf.mxu1  ;;  %v4520_v17 = vsel %vm2111_vm11, %v4510_v15, %v4519_v9  ;;  %v7455_v35 = vld [vmem:[#allocation3 + $0x6c] sm:$0xff]   ;;  %v4540_v28 = vshrl.u32 %v7453_v61, 16  ;;  %v4543_v30 = vshll.u32 %v7453_v61, 16  ;;  %v4057_v15 = vshrl.u32 %v7458_v34, 16 }
  0xfa   : > { %7182 = vmatmul.mubr.msk.bf16.gmra.mxu1 %vm1814_vm3, %v3992_v27  ;;  %v4032_v27 = vsel %vm2593_vm10, %v4027_v49, %v4031_v51  ;;  %v4549_v33 = vshrl.u32 %v7455_v35, 16  ;;  %v4552_v41 = vshll.u32 %v7455_v35, 16  ;;  %v7462_v51 = vld [vmem:[#allocation4 + $0x80] sm:$0xff]   ;;  %v7464_v61 = vld [vmem:[#allocation4 + $0x88] sm:$0xff]   ;;  %v4576_v34 = vshrl.u32 %v7461_v21, 16 }
  0xfb   : > { %7185 = vmatprep.mubr.msk.bf16.mxu1 %vm1814_vm3, %v4000_v29  ;;  %v8237_v4 = vpop.f32.mrf.mxu1  ;;  %v4045_v29 = vshll.u32 %v8249_v44, 16  ;;  %v4542_v52 = vrot.slane %v4540_v28, 3  ;;  %v4545_v53 = vrot.slane %v4543_v30, 4  ;;  %v4059_v57 = vor.u32 %v4057_v15, %v4055_v20 }
  0xfc   : > { %v4551_v63 = vrot.slane %v4549_v33, 3  ;;  %v4554_v60 = vrot.slane %v4552_v41, 4  ;;  %v4065_v30 = vshrl.u32 %v8269_v50, 16  ;;  %v4073_v3 = vshrl.u32 %v7462_v51, 16 }
  0xfd   : > { %v8247_v16 = vpop.f32.mrf.mxu1  ;;  %v4047_v48 = vrot.slane %v4045_v29, 1  ;;  %v4546_v13 = vor.u32 %v4545_v53, %v4542_v52  ;;  %v7463_v29 = vld [vmem:[#allocation3 + $0x8c] sm:$0xff]   ;;  %v4077_v33 = vshll.u32 %v7464_v61, 16  ;;  %v5323_v21 = vshll.u32 %v7467_v54, 16 }
  0xfe   : > { %v4555_v55 = vor.u32 %v4554_v60, %v4551_v63  ;;  %v4585_v52 = vshrl.u32 %v7463_v29, 16  ;;  %v4588_v53 = vshll.u32 %v7463_v29, 16 }
  0xff   : > { %v8257_v24 = vpop.f32.mrf.mxu1  ;;  %v4048_v8 = vsel %vm2593_vm10, %v4043_v47, %v4047_v48  ;;  %v4079_v60 = vrot.slane %v4077_v33, 1 }
 0x100   : > { %7216 = vmatmul.mubr.msk.bf16.gmra.mxu0 %vm1814_vm3, %v4493_v40  ;;  %v4529_v40 = vsel %vm2111_vm11, %v4519_v9, %v4528_v62  ;;  %v4558_v9 = vshrl.u32 %v7457_v43, 16  ;;  %v4556_v35 = vsel %vm2111_vm11, %v4546_v13, %v4555_v55  ;;  %v4067_v43 = vor.u32 %v4065_v30, %v4063_v59 }
 0x101   : > { %7219 = vmatprep.mubr.msk.bf16.mxu0 %vm1814_vm3, %v4502_v56  ;;  %v4538_v56 = vsel %vm2111_vm11, %v4528_v62, %v4537_v31 }
 0x102   : > { %7186 = vmatmul.mubr.msk.bf16.gmra.mxu1 %vm1814_vm3, %v4008_v2  ;;  %v8244_v58 = vpop.f32.mrf.mxu0  ;;  %v7459_v2 = vld [vmem:[#allocation3 + $0x7c] sm:$0xff]   ;;  %v4560_v32 = vrot.slane %v4558_v9, 3  ;;  %v4590_v9 = vrot.slane %v4588_v53, 4 }
 0x103   : > { %7189 = vmatprep.mubr.msk.bf16.mxu1 %vm1814_vm3, %v4016_v36  ;;  %v4049_v36 = vshrl.u32 %v8249_v44, 16  ;;  %v4567_v11 = vshrl.u32 %v7459_v2, 16  ;;  %v4570_v14 = vshll.u32 %v7459_v2, 16  ;;  %v4578_v2 = vrot.slane %v4576_v34, 3  ;;  %v7469_v34 = vld [vmem:[#allocation2 + $0x18] sm:$0xff]  }
 0x104   : > { %v8253_v6 = vpop.f32.mrf.mxu0  ;;  %v4564_v41 = vor.u32 %v4563_v18, %v4560_v32  ;;  %v7468_v18 = vld [vmem:[#allocation4 + $0x20] sm:$0xff]  }
 0x105   : > { %v4051_v44 = vor.u32 %v4049_v36, %v4047_v48  ;;  %v4572_v22 = vrot.slane %v4570_v14, 4  ;;  %v7465_v36 = vld [vmem:[#allocation3 + $0x94] ss:$0 sps:$4 sm:$0xff]   ;;  %v5328_v33 = vshll.u32 %v7468_v18, 16 }
 0x106   : > { %v8264_v42 = vpop.f32.mrf.mxu0  ;;  %v4565_v45 = vsel %vm2111_vm11, %v4555_v55, %v4564_v41 }
 0x107   : > { %v4056_v62 = vsel %vm2593_vm10, %v4051_v44, %v4055_v20  ;;  %v4594_v44 = vshrl.u32 %v7465_v36, 16 }
 0x108   : > { %7220 = vmatmul.mubr.msk.bf16.gmra.mxu0 %vm1814_vm3, %v4511_v12  ;;  %v8273_v0 = vpop.f32.mrf.mxu0 }
 0x109   : > { %7223 = vmatprep.mubr.msk.bf16.mxu0 %vm1814_vm3, %v4520_v17  ;;  %v4547_v17 = vsel %vm2111_vm11, %v4537_v31, %v4546_v13  ;;  %v4064_v31 = vsel %vm2593_vm10, %v4059_v57, %v4063_v59  ;;  %v4587_v13 = vrot.slane %v4585_v52, 3  ;;  %v4597_v57 = vshll.u32 %v7465_v36, 16 }
 0x10a   : > { %7190 = vmatmul.mubr.msk.bf16.gmra.mxu1 %vm1814_vm3, %v4024_v19  ;;  %v8267_v46 = vpop.f32.mrf.mxu1  ;;  %v4569_v19 = vrot.slane %v4567_v11, 3  ;;  %v4081_v11 = vshrl.u32 %v7464_v61, 16 }
 0x10b   : > { %7193 = vmatprep.mubr.msk.bf16.mxu1 %vm1814_vm3, %v4032_v27  ;;  %v4069_v27 = vshll.u32 %v7462_v51, 16 }
 0x10c   : > { %v8277_v5 = vpop.f32.mrf.mxu1  ;;  %v4573_v47 = vor.u32 %v4572_v22, %v4569_v19  ;;  %v4083_v61 = vor.u32 %v4081_v11, %v4079_v60  ;;  %v4596_v22 = vrot.slane %v4594_v44, 3 }
 0x10d   : > { %v4071_v48 = vrot.slane %v4069_v27, 1  ;;  %v4599_v27 = vrot.slane %v4597_v57, 4 }
 0x10e   : > { %v8287_v12 = vpop.f32.mrf.mxu1 }
 0x10f   : > { %v4075_v63 = vor.u32 %v4073_v3, %v4071_v48  ;;  %v4072_v20 = vsel %vm2593_vm10, %v4067_v43, %v4071_v48  ;;  %v5325_v3 = vrot.slane %v5323_v21, 1  ;;  %v5330_v43 = vrot.slane %v5328_v33, 1  ;;  %v7476_v21 = vld [vmem:[#allocation4 + $0x40] sm:$0xff]  }
 0x110   : > { %7224 = vmatmul.mubr.msk.bf16.gmra.mxu0 %vm1814_vm3, %v4529_v40  ;;  %v8294_v28 = vpop.f32.mrf.mxu1 }
 0x111   : > { %7227 = vmatprep.mubr.msk.bf16.mxu0 %vm1814_vm3, %v4538_v56  ;;  %v7466_v56 = vld [vmem:[#allocation4 + $0x90] ss:$0 sps:$4 sm:$0x11]   ;;  %v4080_v55 = vsel %vm2593_vm10, %v4075_v63, %v4079_v60 }
 0x112   : > { %7194 = vmatmul.mubr.msk.bf16.gmra.mxu1 %vm1814_vm3, %v4040_v10  ;;  %v8284_v49 = vpop.f32.mrf.mxu0  ;;  %v4581_v10 = vrot.slane %v4579_v37, 4  ;;  %v4085_v14 = vshll.u32 %v7466_v56, 16  ;;  %v7470_v37 = vld [vmem:[#allocation4 + $0x28] sm:$0xff]   ;;  %v7472_v56 = vld [vmem:[#allocation4 + $0x30] sm:$0xff]  }
 0x113   : > { %7197 = vmatprep.mubr.msk.bf16.mxu1 %vm1814_vm3, %v4048_v8  ;;  %v4574_v8 = vsel %vm2111_vm11, %v4564_v41, %v4573_v47  ;;  %v5336_v60 = vshll.u32 %v7470_v37, 16 }
 0x114   : > { %v8291_v25 = vpop.f32.mrf.mxu0  ;;  %v4582_v51 = vor.u32 %v4581_v10, %v4578_v2  ;;  %v5332_v2 = vshrl.u32 %v7468_v18, 16 }
 0x116   : > { %v8301_v40 = vpop.f32.mrf.mxu0  ;;  %v4583_v19 = vsel %vm2111_vm11, %v4573_v47, %v4582_v51  ;;  %v4600_v47 = vor.u32 %v4599_v27, %v4596_v22 }
 0x118   : > { %7228 = vmatmul.mubr.msk.bf16.gmra.mxu0 %vm1814_vm3, %v4547_v17  ;;  %v8310_v7 = vpop.f32.mrf.mxu0  ;;  %v4591_v17 = vor.u32 %v4590_v9, %v4587_v13  ;;  %v7471_v13 = vld [vmem:[#allocation2 + $0x20] sm:$0xff]   ;;  %v5340_v9 = vshrl.u32 %v7470_v37, 16  ;;  %v7475_v37 = vld [vmem:[#allocation2 + $0x30] sm:$0xff]  }
 0x119   : > { %7231 = vmatprep.mubr.msk.bf16.mxu0 %vm1814_vm3, %v4556_v35  ;;  %v4087_v35 = vrot.slane %v4085_v14, 1  ;;  %v5338_v14 = vrot.slane %v5336_v60, 1 }
 0x11a   : > { %7198 = vmatmul.mubr.msk.bf16.gmra.mxu1 %vm1814_vm3, %v4056_v62  ;;  %v4592_v62 = vsel %vm2111_vm11, %v4582_v51, %v4591_v17  ;;  %v5334_v51 = vor.u32 %v5332_v2, %v5330_v43 }
 0x11b   : > { %7201 = vmatprep.mubr.msk.bf16.mxu1 %vm1814_vm3, %v4064_v31  ;;  %v8304_v50 = vpop.f32.mrf.mxu1  ;;  %v5321_v31 = vshrl.u32 %v7467_v54, 16  ;;  %v4088_v41 = vsel %vm2593_vm10, %v4083_v61, %v4087_v35  ;;  %v5344_v54 = vshll.u32 %v7472_v56, 16 }
 0x11c   : > { %v5339_v27 = vsel %vm2593_vm10, %v5334_v51, %v5338_v14 }
 0x11d   : > { %v8308_v15 = vpop.f32.mrf.mxu1  ;;  %v5326_v53 = vor.u32 %v5325_v3, %v5321_v31  ;;  %v5346_v18 = vrot.slane %v5344_v54, 1  ;;  %v5348_v31 = vshrl.u32 %v7472_v56, 16 }
 0x11f   : > { %v8317_v59 = vpop.f32.mrf.mxu1 }
 0x120   : > { %7232 = vmatmul.mubr.msk.bf16.gmra.mxu0 %vm1814_vm3, %v4565_v45  ;;  %v4601_v45 = vsel %vm2111_vm11, %v4591_v17, %v4600_v47  ;;  %v5342_v17 = vor.u32 %v5340_v9, %v5338_v14  ;;  %v7480_v14 = vld [vmem:[#allocation4 + $0x50] sm:$0xff]  }
 0x121   : > { %7235 = vmatprep.mubr.msk.bf16.mxu0 %vm1814_vm3, %v4574_v8  ;;  %v8323_v29 = vpop.f32.mrf.mxu1  ;;  %v5331_v8 = vsel %vm2593_vm10, %v5326_v53, %v5330_v43  ;;  %v5360_v53 = vshll.u32 %v7476_v21, 16  ;;  %v7477_v43 = vld [vmem:[#allocation2 + $0x38] sm:$0xff]  }
 0x122   : > { %7202 = vmatmul.mubr.msk.bf16.gmra.mxu1 %vm1814_vm3, %v4072_v20  ;;  %v8319_v32 = vpop.f32.mrf.mxu0  ;;  %v7473_v20 = vld [vmem:[#allocation2 + $0x28] sm:$0xff]  }
 0x123   : > { %7205 = vmatprep.mubr.msk.bf16.mxu1 %vm1814_vm3, %v4080_v55  ;;  %v7474_v55 = vld [vmem:[#allocation4 + $0x38] sm:$0xff]  }
 0x124   : > { %v8326_v30 = vpop.f32.mrf.mxu0  ;;  %v5352_v22 = vshll.u32 %v7474_v55, 16  ;;  %v5356_v47 = vshrl.u32 %v7474_v55, 16 }
 0x126   : > { %v8334_v52 = vpop.f32.mrf.mxu0  ;;  %v5354_v2 = vrot.slane %v5352_v22, 1 }
 0x128   : > { %7236 = vmatmul.mubr.msk.bf16.gmra.mxu0 %vm1814_vm3, %v4583_v19  ;;  %v8342_v36 = vpop.f32.mrf.mxu0 }
 0x129   : > { %7239 = vmatprep.mubr.msk.bf16.mxu0 %vm1814_vm3, %v4592_v62  ;;  %v8331_v48 = vpop.f32.mrf.mxu1 }
 0x12a   : > { %7206 = vmatmul.mubr.msk.bf16.gmra.mxu1 %vm1814_vm3, %v4088_v41 }
 0x12b   : > { %7245 = vmatprep.mubr.msk.bf16.mxu1 %vm1814_vm3, %v7469_v34  ;;  %v8337_v63 = vpop.f32.mrf.mxu1  ;;  %v5347_v34 = vsel %vm2593_vm10, %v5342_v17, %v5346_v18 }
 0x12d   : > { %v8340_v10 = vpop.f32.mrf.mxu1 }
 0x12f   : > { %v8346_v11 = vpop.f32.mrf.mxu1 }
 0x130   : > { %7240 = vmatmul.mubr.msk.bf16.gmra.mxu0 %vm1814_vm3, %v4601_v45 }
 0x131   : > { %7279 = vmatprep.mubr.msk.bf16.mxu0 %vm1814_vm3, %v5331_v8  ;;  %v7043_v57 = vpop.f32.mrf.mxu1  ;;  %v5350_v8 = vor.u32 %v5348_v31, %v5346_v18  ;;  %v5364_v18 = vshrl.u32 %v7476_v21, 16  ;;  %v7481_v31 = vld [vmem:[#allocation2 + $0x48] sm:$0xff]  }
 0x132   : > { %7246 = vmatmul.mubr.msk.bf16.vlgmr.msra.gmra.mxu1 %vm1814_vm3, %v7471_v13  ;;  %v2358_v61 = vadd.f32 %v7043_v57, %v8206_v23 }
 0x133   : > { %v7077_v44 = vpop.f32.mrf.mxu0  ;;  %7249 = vmatprep.mubr.msk.bf16.mxu1 %vm1814_vm3, %v7473_v20  ;;  %v2349_v19 = vpop.f32.mrf.mxu1  ;;  %v5362_v20 = vrot.slane %v5360_v53, 1  ;;  %v5355_v57 = vsel %vm2593_vm10, %v5350_v8, %v5354_v2 }
 0x134   : > { %v2350_v62 = vadd.f32 %v2349_v19, %v8215_v26  ;;  %v8354_v3 = vadd.f32 %v7077_v44, %v2358_v61  ;;  %v7478_v26 = vld [vmem:[#allocation4 + $0x48] sm:$0xff]   ;;  %v7479_v19 = vld [vmem:[#allocation2 + $0x40] sm:$0xff]  }
 0x135   : > { %v2811_v35 = vpop.f32.mrf.mxu0  ;;  %v7044_v41 = vpop.f32.mrf.mxu1  ;;  %v5372_v22 = vshrl.u32 %v7478_v26, 16  ;;  %v5366_v21 = vor.u32 %v5364_v18, %v5362_v20 }
 0x136   : > { %v2361_v23 = vadd.f32 %v7044_v41, %v8224_v38  ;;  %v8358_v60 = vadd.f32 %v2811_v35, %v2350_v62  ;;  %v5358_v38 = vor.u32 %v5356_v47, %v5354_v2 }
 0x137   : > { %v7078_v33 = vpop.f32.mrf.mxu0  ;;  %v2352_v45 = vpop.f32.mrf.mxu1 }
 0x138   : > { %7280 = vmatmul.mubr.msk.bf16.vlgmr.msra.gmra.mxu0 %vm1814_vm3, %v5339_v27  ;;  %v2353_v56 = vadd.f32 %v2352_v45, %v8233_v1  ;;  %v8363_v13 = vadd.f32 %v7078_v33, %v2361_v23  ;;  %v5368_v1 = vshll.u32 %v7478_v26, 16  ;;  %v5363_v35 = vsel %vm2593_vm10, %v5358_v38, %v5362_v20 }
 0x139   : > { %7283 = vmatprep.mubr.msk.bf16.mxu0 %vm1814_vm3, %v5347_v34  ;;  %v2814_v9 = vpop.f32.mrf.mxu0  ;;  %v7047_v54 = vpop.f32.mrf.mxu1  ;;  %v5376_v27 = vshll.u32 %v7480_v14, 16  ;;  %v7482_v34 = vld [vmem:[#allocation4 + $0x58] sm:$0xff]   ;;  %v5380_v20 = vshrl.u32 %v7480_v14, 16 }
 0x13a   : > { %7250 = vmatmul.mubr.msk.bf16.gmra.mxu1 %vm1814_vm3, %v7475_v37  ;;  %v2374_v55 = vadd.f32 %v7047_v54, %v8244_v58  ;;  %v8368_v51 = vadd.f32 %v2814_v9, %v2353_v56  ;;  %v5370_v41 = vrot.slane %v5368_v1, 1  ;;  %v5384_v8 = vshll.u32 %v7482_v34, 16  ;;  %v7483_v1 = vld [vmem:[#allocation2 + $0x50] sm:$0xff]  }
 0x13b   : > { %7253 = vmatprep.mubr.msk.bf16.mxu1 %vm1814_vm3, %v7477_v43  ;;  %v2365_v44 = vpop.f32.mrf.mxu1  ;;  %v5378_v43 = vrot.slane %v5376_v27, 1  ;;  %v7486_v27 = vld [vmem:[#allocation4 + $0x68] sm:$0xff]  }
 0x13c   : > { %v2366_v17 = vadd.f32 %v2365_v44, %v8253_v6  ;;  %v5374_v23 = vor.u32 %v5372_v22, %v5370_v41  ;;  %v5371_v54 = vsel %vm2593_vm10, %v5366_v21, %v5370_v41  ;;  %v5386_v22 = vrot.slane %v5384_v8, 1 }
 0x13d   : > { %v7048_v61 = vpop.f32.mrf.mxu1 }
 0x13e   : > { %v2377_v58 = vadd.f32 %v7048_v61, %v8264_v42  ;;  %v8380_v42 = vld [vmem:[#allocation4 + $0x60] sm:$0xff]   ;;  %v5379_v44 = vsel %vm2593_vm10, %v5374_v23, %v5378_v43 }
 0x13f   : > { %v2368_v33 = vpop.f32.mrf.mxu1 }
 0x140   : > { %v7081_v62 = vpop.f32.mrf.mxu0  ;;  %7284 = vmatmul.mubr.msk.bf16.gmra.mxu0 %vm1814_vm3, %v5355_v57  ;;  %v2369_v6 = vadd.f32 %v2368_v33, %v8273_v0  ;;  %v5388_v57 = vshrl.u32 %v7482_v34, 16 }
 0x141   : > { %v8375_v37 = vadd.f32 %v7081_v62, %v2374_v55  ;;  %7287 = vmatprep.mubr.msk.bf16.mxu0 %vm1814_vm3, %v5363_v35  ;;  %v7051_v53 = vpop.f32.mrf.mxu1  ;;  %v7485_v35 = vld [vmem:[#allocation2 + $0x58] sm:$0xff]  }
 0x142   : > { %v2827_v47 = vpop.f32.mrf.mxu0  ;;  %7254 = vmatmul.mubr.msk.bf16.gmra.mxu1 %vm1814_vm3, %v7479_v19  ;;  %v2390_v26 = vadd.f32 %v7051_v53, %v8284_v49  ;;  %v5390_v33 = vor.u32 %v5388_v57, %v5386_v22  ;;  %v5400_v53 = vshll.u32 %v7486_v27, 16 }
 0x143   : > { %v8382_v45 = vadd.f32 %v2827_v47, %v2366_v17  ;;  %7257 = vmatprep.mubr.msk.bf16.mxu1 %vm1814_vm3, %v7481_v31  ;;  %v2381_v56 = vpop.f32.mrf.mxu1  ;;  %v5392_v17 = vshll.u32 %v8380_v42, 16 }
 0x144   : > { %v7082_v2 = vpop.f32.mrf.mxu0  ;;  %v2382_v38 = vadd.f32 %v2381_v56, %v8291_v25  ;;  %v5402_v57 = vrot.slane %v5400_v53, 1  ;;  %v7491_v53 = vld [vmem:[#allocation2 + $0x70] sm:$0xff]  }
 0x145   : > { %v8386_v0 = vadd.f32 %v7082_v2, %v2377_v58  ;;  %v7052_v55 = vpop.f32.mrf.mxu1  ;;  %v5382_v58 = vor.u32 %v5380_v20, %v5378_v43  ;;  %v5394_v41 = vrot.slane %v5392_v17, 1  ;;  %v7490_v17 = vld [vmem:[#allocation4 + $0x78] sm:$0xff]  }
 0x146   : > { %v2830_v9 = vpop.f32.mrf.mxu0  ;;  %v2393_v61 = vadd.f32 %v7052_v55, %v8301_v40  ;;  %v7488_v40 = vld [vmem:[#allocation4 + $0x70] sm:$0xff]  }
 0x147   : > { %v8392_v49 = vadd.f32 %v2830_v9, %v2369_v6  ;;  %v2384_v19 = vpop.f32.mrf.mxu1  ;;  %v5387_v43 = vsel %vm2593_vm10, %v5382_v58, %v5386_v22  ;;  %v5395_v8 = vsel %vm2593_vm10, %v5390_v33, %v5394_v41  ;;  %v7487_v9 = vld [vmem:[#allocation2 + $0x60] sm:$0xff]   ;;  %v5416_v58 = vshll.u32 %v7490_v17, 16 }
 0x148   : > { %v7085_v18 = vpop.f32.mrf.mxu0  ;;  %7288 = vmatmul.mubr.msk.bf16.gmra.mxu0 %vm1814_vm3, %v5371_v54  ;;  %v2385_v62 = vadd.f32 %v2384_v19, %v8310_v7  ;;  %v5404_v54 = vshrl.u32 %v7486_v27, 16 }
 0x149   : > { %v8396_v25 = vadd.f32 %v7085_v18, %v2390_v26  ;;  %7291 = vmatprep.mubr.msk.bf16.mxu0 %vm1814_vm3, %v5379_v44  ;;  %v7055_v31 = vpop.f32.mrf.mxu1  ;;  %v5396_v26 = vshrl.u32 %v8380_v42, 16  ;;  %v7489_v44 = vld [vmem:[#allocation2 + $0x68] sm:$0xff]  }
 0x14a   : > { %v2843_v14 = vpop.f32.mrf.mxu0  ;;  %7258 = vmatmul.mubr.msk.bf16.gmra.mxu1 %vm1814_vm3, %v7483_v1  ;;  %v2406_v6 = vadd.f32 %v7055_v31, %v8319_v32  ;;  %v5406_v19 = vor.u32 %v5404_v54, %v5402_v57  ;;  %v5418_v54 = vrot.slane %v5416_v58, 1 }
 0x14b   : > { %v8401_v34 = vadd.f32 %v2843_v14, %v2382_v38  ;;  %7261 = vmatprep.mubr.msk.bf16.mxu1 %vm1814_vm3, %v7485_v35  ;;  %v2397_v21 = vpop.f32.mrf.mxu1  ;;  %v5408_v38 = vshll.u32 %v7488_v40, 16 }
 0x14c   : > { %v7086_v47 = vpop.f32.mrf.mxu0  ;;  %v2398_v2 = vadd.f32 %v2397_v21, %v8326_v30 }
 0x14d   : > { %v8405_v23 = vadd.f32 %v7086_v47, %v2393_v61  ;;  %v7056_v56 = vpop.f32.mrf.mxu1  ;;  %v5398_v61 = vor.u32 %v5396_v26, %v5394_v41  ;;  %v5410_v22 = vrot.slane %v5408_v38, 1  ;;  %v5412_v47 = vshrl.u32 %v7488_v40, 16  ;;  %v7494_v38 = vld [vmem:[#allocation4 + $0x88] sm:$0xff]  }
 0x14e   : > { %v2846_v7 = vpop.f32.mrf.mxu0  ;;  %v2409_v55 = vadd.f32 %v7056_v56, %v8334_v52  ;;  %v7492_v52 = vld [vmem:[#allocation4 + $0x80] sm:$0xff]   ;;  %v7493_v56 = vld [vmem:[#allocation2 + $0x78] sm:$0xff]  }
 0x14f   : > { %v8411_v32 = vadd.f32 %v2846_v7, %v2385_v62  ;;  %v2400_v1 = vpop.f32.mrf.mxu1  ;;  %v5411_v21 = vsel %vm2593_vm10, %v5406_v19, %v5410_v22  ;;  %v5420_v7 = vshrl.u32 %v7490_v17, 16  ;;  %v5414_v40 = vor.u32 %v5412_v47, %v5410_v22 }
 0x150   : > { %v7089_v20 = vpop.f32.mrf.mxu0  ;;  %7292 = vmatmul.mubr.msk.bf16.gmra.mxu0 %vm1814_vm3, %v5387_v43  ;;  %v2401_v18 = vadd.f32 %v2400_v1, %v8342_v36  ;;  %v5403_v36 = vsel %vm2593_vm10, %v5398_v61, %v5402_v57  ;;  %v5424_v43 = vshll.u32 %v7492_v52, 16  ;;  %v7496_v57 = vld [vmem:[#allocation4 + $0x90] sm:$0xff]   ;;  %v5432_v61 = vshll.u32 %v7494_v38, 16 }
 0x151   : > { %v8415_v30 = vadd.f32 %v7089_v20, %v2406_v6  ;;  %7295 = vmatprep.mubr.msk.bf16.mxu0 %vm1814_vm3, %v5395_v8  ;;  %v7059_v35 = vpop.f32.mrf.mxu1  ;;  %v5422_v1 = vor.u32 %v5420_v7, %v5418_v54  ;;  %v5428_v22 = vshrl.u32 %v7492_v52, 16  ;;  %v7498_v52 = vld [vmem:[#allocation4 + $0x98] ss:$0 sps:$4 sm:$0x11]  }
 0x152   : > { %v2859_v42 = vpop.f32.mrf.mxu0  ;;  %7262 = vmatmul.mubr.msk.bf16.gmra.mxu1 %vm1814_vm3, %v7487_v9  ;;  %v2422_v41 = vadd.f32 %v7059_v35, %v8227_v39  ;;  %v5419_v35 = vsel %vm2593_vm10, %v5414_v40, %v5418_v54 }
 0x153   : > { %v8420_v27 = vadd.f32 %v2859_v42, %v2398_v2  ;;  %7265 = vmatprep.mubr.msk.bf16.mxu1 %vm1814_vm3, %v7489_v44  ;;  %v2413_v62 = vpop.f32.mrf.mxu1 }
 0x154   : > { %v7090_v14 = vpop.f32.mrf.mxu0  ;;  %v2414_v26 = vadd.f32 %v2413_v62, %v8237_v4  ;;  %v5426_v4 = vrot.slane %v5424_v43, 1 }
 0x155   : > { %v8423_v31 = vadd.f32 %v7090_v14, %v2409_v55  ;;  %v7060_v6 = vpop.f32.mrf.mxu1 }
 0x156   : > { %v2862_v33 = vpop.f32.mrf.mxu0  ;;  %v2425_v39 = vadd.f32 %v7060_v6, %v8247_v16  ;;  %v7497_v6 = vld [vmem:[#allocation2 + $0x88] sm:$0xff]  }
 0x157   : > { %v8428_v2 = vadd.f32 %v2862_v33, %v2401_v18  ;;  %v2416_v9 = vpop.f32.mrf.mxu1  ;;  %v5427_v33 = vsel %vm2593_vm10, %v5422_v1, %v5426_v4 }
 0x158   : > { %v7093_v8 = vpop.f32.mrf.mxu0  ;;  %7296 = vmatmul.mubr.msk.bf16.gmra.mxu0 %vm1814_vm3, %v5403_v36  ;;  %v2417_v17 = vadd.f32 %v2416_v9, %v8257_v24  ;;  %v7495_v36 = vld [vmem:[#allocation2 + $0x80] sm:$0xff]   ;;  %v5436_v24 = vshrl.u32 %v7494_v38, 16 }
 0x159   : > { %7299 = vmatprep.mubr.msk.bf16.mxu0 %vm1814_vm3, %v5411_v21  ;;  %v8434_v20 = vadd.f32 %v7093_v8, %v2422_v41  ;;  %v7063_v44 = vpop.f32.mrf.mxu1  ;;  %v5440_v41 = vshll.u32 %v7496_v57, 16 }
 0x15a   : > { %v2875_v55 = vpop.f32.mrf.mxu0  ;;  %7266 = vmatmul.mubr.msk.bf16.gmra.mxu1 %vm1814_vm3, %v7491_v53  ;;  %v2438_v19 = vadd.f32 %v7063_v44, %v8267_v46  ;;  %v5434_v46 = vrot.slane %v5432_v61, 1 }
 0x15b   : > { %7269 = vmatprep.mubr.msk.bf16.mxu1 %vm1814_vm3, %v7493_v56  ;;  %v8439_v42 = vadd.f32 %v2875_v55, %v2414_v26  ;;  %v2429_v16 = vpop.f32.mrf.mxu1  ;;  %v5430_v26 = vor.u32 %v5428_v22, %v5426_v4  ;;  %v5442_v54 = vrot.slane %v5440_v41, 1  ;;  %v5444_v4 = vshrl.u32 %v7496_v57, 16 }
 0x15c   : > { %v7094_v18 = vpop.f32.mrf.mxu0  ;;  %v2430_v47 = vadd.f32 %v2429_v16, %v8277_v5  ;;  %v5438_v5 = vor.u32 %v5436_v24, %v5434_v46 }
 0x15d   : > { %v8443_v14 = vadd.f32 %v7094_v18, %v2425_v39  ;;  %v7064_v58 = vpop.f32.mrf.mxu1  ;;  %v5435_v44 = vsel %vm2593_vm10, %v5430_v26, %v5434_v46  ;;  %v5446_v57 = vor.u32 %v5444_v4, %v5442_v54 }
 0x15e   : > { %v2878_v62 = vpop.f32.mrf.mxu0  ;;  %v2441_v43 = vadd.f32 %v7064_v58, %v8287_v12  ;;  %v5448_v12 = vshll.u32 %v7498_v52, 16  ;;  %v5443_v61 = vsel %vm2593_vm10, %v5438_v5, %v5442_v54 }
 0x15f   : > { %v8447_v21 = vadd.f32 %v2878_v62, %v2417_v17  ;;  %v2432_v7 = vpop.f32.mrf.mxu1 }
 0x160   : > { %v7097_v53 = vpop.f32.mrf.mxu0  ;;  %7300 = vmatmul.mubr.msk.bf16.gmra.mxu0 %vm1814_vm3, %v5419_v35  ;;  %v2433_v38 = vadd.f32 %v2432_v7, %v8294_v28  ;;  %v7499_v35 = vld [vmem:[#allocation2 + $0x90] sm:$0xff]   ;;  %v5450_v58 = vrot.slane %v5448_v12, 1 }
 0x161   : > { %7303 = vmatprep.mubr.msk.bf16.mxu0 %vm1814_vm3, %v5427_v33  ;;  %v8452_v56 = vadd.f32 %v7097_v53, %v2438_v19  ;;  %v7067_v9 = vpop.f32.mrf.mxu1 }
 0x162   : > { %v2891_v8 = vpop.f32.mrf.mxu0  ;;  %7270 = vmatmul.mubr.msk.bf16.gmra.mxu1 %vm1814_vm3, %v7495_v36  ;;  %v2454_v1 = vadd.f32 %v7067_v9, %v8304_v50  ;;  %v5451_v7 = vsel %vm2593_vm10, %v5446_v57, %v5450_v58 }
 0x163   : > { %7273 = vmatprep.mubr.msk.bf16.mxu1 %vm1814_vm3, %v7497_v6  ;;  %v8457_v39 = vadd.f32 %v2891_v8, %v2430_v47  ;;  %v2445_v55 = vpop.f32.mrf.mxu1 }
 0x164   : > { %v7098_v40 = vpop.f32.mrf.mxu0  ;;  %v2446_v28 = vadd.f32 %v2445_v55, %v8308_v15 }
 0x165   : > { %v8461_v17 = vadd.f32 %v7098_v40, %v2441_v43  ;;  %v7068_v16 = vpop.f32.mrf.mxu1 }
 0x166   : > { %v2894_v18 = vpop.f32.mrf.mxu0  ;;  %v2457_v33 = vadd.f32 %v7068_v16, %v8317_v59 }
 0x167   : > { %v8465_v19 = vadd.f32 %v2894_v18, %v2433_v38  ;;  %v2448_v62 = vpop.f32.mrf.mxu1 }
 0x168   : > { %v7101_v22 = vpop.f32.mrf.mxu0  ;;  %7304 = vmatmul.mubr.msk.bf16.gmra.mxu0 %vm1814_vm3, %v5435_v44  ;;  %v2449_v50 = vadd.f32 %v2448_v62, %v8323_v29 }
 0x169   : > { %7307 = vmatprep.mubr.msk.bf16.mxu0 %vm1814_vm3, %v5443_v61  ;;  %v8471_v36 = vadd.f32 %v7101_v22, %v2454_v1  ;;  %v7071_v41 = vpop.f32.mrf.mxu1 }
 0x16a   : > { %v2907_v24 = vpop.f32.mrf.mxu0  ;;  %7274 = vmatmul.mubr.msk.bf16.gmra.mxu1 %vm1814_vm3, %v7499_v35  ;;  %v2470_v15 = vadd.f32 %v7071_v41, %v8331_v48 }
 0x16b   : > { %v8475_v47 = vadd.f32 %v2907_v24, %v2446_v28  ;;  %v2461_v53 = vpop.f32.mrf.mxu1 }
 0x16c   : > { %v7102_v6 = vpop.f32.mrf.mxu0  ;;  %v2462_v59 = vadd.f32 %v2461_v53, %v8337_v63 }
 0x16d   : > { %v8479_v29 = vadd.f32 %v7102_v6, %v2457_v33  ;;  %v7072_v52 = vpop.f32.mrf.mxu1 }
 0x16e   : > { %v2910_v46 = vpop.f32.mrf.mxu0  ;;  %v2473_v43 = vadd.f32 %v7072_v52, %v8340_v10 }
 0x16f   : > { %v8482_v26 = vadd.f32 %v2910_v46, %v2449_v50  ;;  %v2464_v48 = vpop.f32.mrf.mxu1 }
 0x170   : > { %v7105_v8 = vpop.f32.mrf.mxu0  ;;  %7308 = vmatmul.mubr.msk.bf16.gmra.mxu0 %vm1814_vm3, %v5451_v7  ;;  %v2465_v9 = vadd.f32 %v2464_v48, %v8346_v11 }
 0x171   : > { %v8486_v5 = vadd.f32 %v7105_v8, %v2470_v15  ;;  %v7111_v38 = vpop.f32.mrf.mxu1 }
 0x172   : > { %v2923_v54 = vpop.f32.mrf.mxu0  ;;  %v3453_v63 = vadd.f32 %v7111_v38, %v8354_v3 }
 0x173   : > { %v8489_v40 = vadd.f32 %v2923_v54, %v2462_v59  ;;  %v3324_v12 = vpop.f32.mrf.mxu1 }
 0x174   : > { %v7106_v55 = vpop.f32.mrf.mxu0  ;;  %v3451_v10 = vadd.f32 %v3324_v12, %v8358_v60 }
 0x175   : > { %v8492_v44 = vadd.f32 %v7106_v55, %v2473_v43  ;;  %v7112_v4 = vpop.f32.mrf.mxu1 }
 0x176   : > { %v2926_v1 = vpop.f32.mrf.mxu0  ;;  %v3454_v18 = vadd.f32 %v7112_v4, %v8363_v13 }
 0x177   : > { %v8495_v16 = vadd.f32 %v2926_v1, %v2465_v9  ;;  %v3327_v61 = vpop.f32.mrf.mxu1 }
 0x178   : > { %v7145_v11 = vpop.f32.mrf.mxu0  ;;  %v3452_v35 = vadd.f32 %v3327_v61, %v8368_v51 }
 0x179   : > { %v8498_v28 = vadd.f32 %v7145_v11, %v3453_v63 }
 0x17a   : > { %v3681_v3 = vpop.f32.mrf.mxu0  ;;  %v7115_v22 = vpop.f32.mrf.mxu1 }
 0x17b   : > { %v3457_v62 = vadd.f32 %v7115_v22, %v8375_v37  ;;  %v8501_v58 = vadd.f32 %v3681_v3, %v3451_v10 }
 0x17c   : > { %v7146_v60 = vpop.f32.mrf.mxu0  ;;  %v3340_v33 = vpop.f32.mrf.mxu1 }
 0x17d   : > { %v3455_v50 = vadd.f32 %v3340_v33, %v8382_v45  ;;  %v8504_v57 = vadd.f32 %v7146_v60, %v3454_v18 }
 0x17e   : > { %v3684_v13 = vpop.f32.mrf.mxu0  ;;  %v7116_v24 = vpop.f32.mrf.mxu1 }
 0x17f   : > { %v3458_v41 = vadd.f32 %v7116_v24, %v8386_v0  ;;  %v8507_v15 = vadd.f32 %v3684_v13, %v3452_v35 }
 0x180   : > { %v7149_v51 = vpop.f32.mrf.mxu0  ;;  %v3343_v6 = vpop.f32.mrf.mxu1 }
 0x181   : > { %v3456_v53 = vadd.f32 %v3343_v6, %v8392_v49  ;;  %v8510_v7 = vadd.f32 %v7149_v51, %v3457_v62 }
 0x182   : > { %v3697_v37 = vpop.f32.mrf.mxu0  ;;  %v7119_v59 = vpop.f32.mrf.mxu1 }
 0x183   : > { %v3461_v46 = vadd.f32 %v7119_v59, %v8396_v25  ;;  %v8513_v52 = vadd.f32 %v3697_v37, %v3455_v50 }
 0x184   : > { %v7150_v45 = vpop.f32.mrf.mxu0  ;;  %v3356_v43 = vpop.f32.mrf.mxu1 }
 0x185   : > { %v3459_v8 = vadd.f32 %v3356_v43, %v8401_v34  ;;  %v8516_v48 = vadd.f32 %v7150_v45, %v3458_v41 }
 0x186   : > { %v3700_v0 = vpop.f32.mrf.mxu0  ;;  %v7120_v9 = vpop.f32.mrf.mxu1 }
 0x187   : > { %v3462_v54 = vadd.f32 %v7120_v9, %v8405_v23  ;;  %v8519_v38 = vadd.f32 %v3700_v0, %v3456_v53 }
 0x188   : > { %v7153_v49 = vpop.f32.mrf.mxu0  ;;  %v3359_v63 = vpop.f32.mrf.mxu1 }
 0x189   : > { %v3460_v55 = vadd.f32 %v3359_v63, %v8411_v32  ;;  %v8522_v12 = vadd.f32 %v7153_v49, %v3461_v46 }
 0x18a   : > { %v3713_v25 = vpop.f32.mrf.mxu0  ;;  %v7123_v10 = vpop.f32.mrf.mxu1 }
 0x18b   : > { %v3465_v1 = vadd.f32 %v7123_v10, %v8415_v30  ;;  %v8525_v4 = vadd.f32 %v3713_v25, %v3459_v8 }
 0x18c   : > { %v7154_v34 = vpop.f32.mrf.mxu0  ;;  %v3372_v18 = vpop.f32.mrf.mxu1 }
 0x18d   : > { %v3463_v11 = vadd.f32 %v3372_v18, %v8420_v27  ;;  %v8528_v61 = vadd.f32 %v7154_v34, %v3462_v54 }
 0x18e   : > { %v3716_v23 = vpop.f32.mrf.mxu0  ;;  %v7124_v35 = vpop.f32.mrf.mxu1 }
 0x18f   : > { %v3466_v3 = vadd.f32 %v7124_v35, %v8423_v31  ;;  %v8531_v22 = vadd.f32 %v3716_v23, %v3460_v55 }
 0x190   : > { %v7157_v32 = vpop.f32.mrf.mxu0  ;;  %v3375_v62 = vpop.f32.mrf.mxu1 }
 0x191   : > { %v3464_v60 = vadd.f32 %v3375_v62, %v8428_v2  ;;  %v8534_v33 = vadd.f32 %v7157_v32, %v3465_v1 }
 0x192   : > { %v3729_v30 = vpop.f32.mrf.mxu0  ;;  %v7127_v50 = vpop.f32.mrf.mxu1 }
 0x193   : > { %v3469_v13 = vadd.f32 %v7127_v50, %v8434_v20  ;;  %v8537_v24 = vadd.f32 %v3729_v30, %v3463_v11 }
 0x194   : > { %v7158_v27 = vpop.f32.mrf.mxu0  ;;  %v3388_v41 = vpop.f32.mrf.mxu1 }
 0x195   : > { %v3467_v51 = vadd.f32 %v3388_v41, %v8439_v42  ;;  %v8540_v6 = vadd.f32 %v7158_v27, %v3466_v3 }
 0x196   : > { %v3732_v31 = vpop.f32.mrf.mxu0  ;;  %v7128_v53 = vpop.f32.mrf.mxu1 }
 0x197   : > { %v3470_v37 = vadd.f32 %v7128_v53, %v8443_v14  ;;  %v8543_v59 = vadd.f32 %v3732_v31, %v3464_v60 }
 0x198   : > { %v7161_v2 = vpop.f32.mrf.mxu0  ;;  %v3391_v46 = vpop.f32.mrf.mxu1 }
 0x199   : > { %v3468_v45 = vadd.f32 %v3391_v46, %v8447_v21  ;;  %v8546_v43 = vadd.f32 %v7161_v2, %v3469_v13 }
 0x19a   : > { %v3745_v20 = vpop.f32.mrf.mxu0  ;;  %v7131_v8 = vpop.f32.mrf.mxu1 }
 0x19b   : > { %v3473_v0 = vadd.f32 %v7131_v8, %v8452_v56  ;;  %v8549_v9 = vadd.f32 %v3745_v20, %v3467_v51 }
 0x19c   : > { %v7162_v42 = vpop.f32.mrf.mxu0  ;;  %v3404_v54 = vpop.f32.mrf.mxu1 }
 0x19d   : > { %v3471_v49 = vadd.f32 %v3404_v54, %v8457_v39  ;;  %v8552_v63 = vadd.f32 %v7162_v42, %v3470_v37 }
 0x19e   : > { %v3748_v14 = vpop.f32.mrf.mxu0  ;;  %v7132_v55 = vpop.f32.mrf.mxu1 }
 0x19f   : > { %v3474_v25 = vadd.f32 %v7132_v55, %v8461_v17  ;;  %v8555_v10 = vadd.f32 %v3748_v14, %v3468_v45 }
 0x1a0   : > { %v7165_v21 = vpop.f32.mrf.mxu0  ;;  %v3407_v1 = vpop.f32.mrf.mxu1 }
 0x1a1   : > { %v3472_v34 = vadd.f32 %v3407_v1, %v8465_v19  ;;  %v8558_v18 = vadd.f32 %v7165_v21, %v3473_v0 }
 0x1a2   : > { %v3761_v56 = vpop.f32.mrf.mxu0  ;;  %v7135_v11 = vpop.f32.mrf.mxu1 }
 0x1a3   : > { %8991 = vst [vmem:[#allocation5_spill] sm:$0xff] %v8558_v18  ;;  %v3477_v23 = vadd.f32 %v7135_v11, %v8471_v36  ;;  %v8561_v35 = vadd.f32 %v3761_v56, %v3471_v49 }
 0x1a4   : > { %v7166_v39 = vpop.f32.mrf.mxu0  ;;  %v3420_v3 = vpop.f32.mrf.mxu1 }
 0x1a5   : > { %8992 = vst [vmem:[#allocation6_spill] sm:$0xff] %v8561_v35  ;;  %v3475_v32 = vadd.f32 %v3420_v3, %v8475_v47  ;;  %v8564_v62 = vadd.f32 %v7166_v39, %v3474_v25 }
 0x1a6   : > { %v3764_v17 = vpop.f32.mrf.mxu0  ;;  %v7136_v60 = vpop.f32.mrf.mxu1 }
 0x1a7   : > { %8993 = vst [vmem:[#allocation7_spill] sm:$0xff] %v8564_v62  ;;  %v3478_v30 = vadd.f32 %v7136_v60, %v8479_v29  ;;  %v8567_v50 = vadd.f32 %v3764_v17, %v3472_v34 }
 0x1a8   : > { %v7169_v19 = vpop.f32.mrf.mxu0  ;;  %v3423_v13 = vpop.f32.mrf.mxu1 }
 0x1a9   : > { %8994 = vst [vmem:[#allocation8_spill] sm:$0xff] %v8567_v50  ;;  %v3476_v27 = vadd.f32 %v3423_v13, %v8482_v26  ;;  %v8570_v41 = vadd.f32 %v7169_v19, %v3477_v23 }
 0x1aa   : > { %v3777_v36 = vpop.f32.mrf.mxu0  ;;  %v7139_v51 = vpop.f32.mrf.mxu1 }
 0x1ab   : > { %8995 = vst [vmem:[#allocation9_spill] sm:$0xff] %v8570_v41  ;;  %v3481_v31 = vadd.f32 %v7139_v51, %v8486_v5  ;;  %v8573_v53 = vadd.f32 %v3777_v36, %v3475_v32 }
 0x1ac   : > { %v7170_v47 = vpop.f32.mrf.mxu0  ;;  %v3436_v37 = vpop.f32.mrf.mxu1 }
 0x1ad   : > { %8996 = vst [vmem:[#allocation10_spill] sm:$0xff] %v8573_v53  ;;  %v3479_v2 = vadd.f32 %v3436_v37, %v8489_v40  ;;  %v8576_v46 = vadd.f32 %v7170_v47, %v3478_v30 }
 0x1ae   : > { %v3780_v29 = vpop.f32.mrf.mxu0  ;;  %v7140_v45 = vpop.f32.mrf.mxu1 }
 0x1af   : > { %8997 = vst [vmem:[#allocation11_spill] sm:$0xff] %v8576_v46  ;;  %v3482_v20 = vadd.f32 %v7140_v45, %v8492_v44  ;;  %v8579_v8 = vadd.f32 %v3780_v29, %v3476_v27 }
 0x1b0   : > { %v7173_v26 = vpop.f32.mrf.mxu0  ;;  %v3439_v0 = vpop.f32.mrf.mxu1 }
 0x1b1   : > { %8998 = vst [vmem:[#allocation12_spill] sm:$0xff] %v8579_v8  ;;  %v3480_v42 = vadd.f32 %v3439_v0, %v8495_v16  ;;  %v8582_v54 = vadd.f32 %v7173_v26, %v3481_v31 }
 0x1b2   : > { %v3793_v5 = vpop.f32.mrf.mxu0  ;;  %v7179_v49 = vpop.f32.mrf.mxu1 }
 0x1b3   : > { %8999 = vst [vmem:[#allocation13_spill] sm:$0xff] %v8582_v54  ;;  %v8584_v14 = vadd.f32 %v3793_v5, %v3479_v2 }
 0x1b4   : > { %v7174_v55 = vpop.f32.mrf.mxu0  ;;  %v4174_v40 = vpop.f32.mrf.mxu1 }
 0x1b5   : > { %9000 = vst [vmem:[#allocation14_spill] sm:$0xff] %v8584_v14  ;;  %v8586_v25 = vadd.f32 %v7174_v55, %v3482_v20 }
 0x1b6   : > { %v3796_v21 = vpop.f32.mrf.mxu0  ;;  %v7180_v1 = vpop.f32.mrf.mxu1 }
 0x1b7   : > { %9001 = vst [vmem:[#allocation15_spill] sm:$0xff] %v8586_v25  ;;  %v8588_v34 = vadd.f32 %v3796_v21, %v3480_v42 }
 0x1b8   : > { %v8590_v44 = vpop.f32.mrf.mxu0  ;;  %v4177_v56 = vpop.f32.mrf.mxu1 }
 0x1b9   : > { %9002 = vst [vmem:[#allocation16_spill] sm:$0xff] %v8588_v34 }
 0x1ba   : > { %v8592_v11 = vpop.f32.mrf.mxu0  ;;  %v7183_v16 = vpop.f32.mrf.mxu1 }
 0x1bc   : > { %v8594_v23 = vpop.f32.mrf.mxu0  ;;  %v4190_v39 = vpop.f32.mrf.mxu1 }
 0x1be   : > { %v8596_v3 = vpop.f32.mrf.mxu0  ;;  %v7184_v32 = vpop.f32.mrf.mxu1 }
 0x1c0   : > { %v8598_v17 = vpop.f32.mrf.mxu0  ;;  %v4193_v60 = vpop.f32.mrf.mxu1 }
 0x1c2   : > { %v8600_v30 = vpop.f32.mrf.mxu0  ;;  %v7187_v19 = vpop.f32.mrf.mxu1 }
 0x1c4   : > { %v8602_v13 = vpop.f32.mrf.mxu0  ;;  %v4206_v27 = vpop.f32.mrf.mxu1 }
 0x1c6   : > { %v8604_v36 = vpop.f32.mrf.mxu0  ;;  %v7188_v51 = vpop.f32.mrf.mxu1 }
 0x1c8   : > { %v8606_v31 = vpop.f32.mrf.mxu0  ;;  %v4209_v47 = vpop.f32.mrf.mxu1 }
 0x1ca   : > { %v8608_v37 = vpop.f32.mrf.mxu0  ;;  %v7191_v2 = vpop.f32.mrf.mxu1 }
 0x1cc   : > { %v8610_v29 = vpop.f32.mrf.mxu0  ;;  %v4222_v45 = vpop.f32.mrf.mxu1 }
 0x1ce   : > { %v8612_v20 = vpop.f32.mrf.mxu0  ;;  %v7192_v26 = vpop.f32.mrf.mxu1 }
 0x1d0   : > { %v8614_v0 = vpop.f32.mrf.mxu0  ;;  %v4225_v42 = vpop.f32.mrf.mxu1 }
 0x1d1   : > { %9003 = vst [vmem:[#allocation17_spill] sm:$0xff] %v8614_v0 }
 0x1d2   : > { %v8616_v5 = vpop.f32.mrf.mxu0  ;;  %v7195_v55 = vpop.f32.mrf.mxu1 }
 0x1d3   : > { %9004 = vst [vmem:[#allocation18_spill] sm:$0xff] %v8616_v5 }
 0x1d4   : > { %v8618_v21 = vpop.f32.mrf.mxu0  ;;  %v4238_v34 = vpop.f32.mrf.mxu1 }
 0x1d5   : > { %9005 = vst [vmem:[#allocation19_spill] sm:$0xff] %v8618_v21 }
 0x1d6   : > { %v8620_v25 = vpop.f32.mrf.mxu0  ;;  %v7196_v14 = vpop.f32.mrf.mxu1 }
 0x1d7   : > { %9006 = vst [vmem:[#allocation20_spill] sm:$0xff] %v8620_v25 }
 0x1d8   : > { %v8622_v54 = vpop.f32.mrf.mxu0  ;;  %v4241_v8 = vpop.f32.mrf.mxu1 }
 0x1d9   : > { %9007 = vst [vmem:[#allocation21_spill] sm:$0xff] %v8622_v54 }
 0x1da   : > { %v8624_v46 = vpop.f32.mrf.mxu0  ;;  %v7199_v53 = vpop.f32.mrf.mxu1 }
 0x1db   : > { %9008 = vst [vmem:[#allocation22_spill] sm:$0xff] %v8624_v46 }
 0x1dc   : > { %v8626_v41 = vpop.f32.mrf.mxu0  ;;  %v8628_v50 = vpop.f32.mrf.mxu1 }
 0x1dd   : > { %9009 = vst [vmem:[#allocation23_spill] sm:$0xff] %v8626_v41  ;;  %9010 = vst [vmem:[#allocation24_spill] sm:$0xff] %v8628_v50 }
 0x1de   : > { %v8630_v62 = vpop.f32.mrf.mxu0  ;;  %v8632_v35 = vpop.f32.mrf.mxu1 }
 0x1df   : > { %9011 = vst [vmem:[#allocation25_spill] sm:$0xff] %v8630_v62  ;;  %9012 = vst [vmem:[#allocation26_spill] sm:$0xff] %v8632_v35 }
 0x1e0   : > { %v8634_v5 = vpop.f32.mrf.mxu0  ;;  %v8636_v21 = vpop.f32.mrf.mxu1 }
 0x1e1   : > { %9013 = vst [vmem:[#allocation27_spill] sm:$0xff] %v8634_v5  ;;  %9014 = vst [vmem:[#allocation28_spill] sm:$0xff] %v8636_v21 }
 0x1e2   : > { %v8638_v25 = vpop.f32.mrf.mxu0  ;;  %v8640_v0 = vpop.f32.mrf.mxu1 }
 0x1e3   : > { %9015 = vst [vmem:[#allocation29_spill] sm:$0xff] %v8638_v25  ;;  %9016 = vst [vmem:[#allocation30_spill] sm:$0xff] %v8640_v0  ;;  %v4303_v25 = vadd.f32 %v7179_v49, %v8498_v28  ;;  %v4301_v0 = vadd.f32 %v4174_v40, %v8501_v58  ;;  %v4308_v28 = vadd.f32 %v7184_v32, %v8516_v48 }
 0x1e4   : > { %v8642_v54 = vpop.f32.mrf.mxu0  ;;  %v8644_v46 = vpop.f32.mrf.mxu1  ;;  %v4306_v58 = vadd.f32 %v4193_v60, %v8519_v38  ;;  %v4311_v40 = vadd.f32 %v7187_v19, %v8522_v12  ;;  %v4315_v12 = vadd.f32 %v7191_v2, %v8534_v33  ;;  %v4317_v33 = vadd.f32 %v4238_v34, %v8549_v9  ;;  %v9024_v9 = vld [vmem:[#allocation5_spill] sm:$0xff]  ;;  %v9032_v2 = vld [vmem:[#allocation7_spill] sm:$0xff] }
 0x1e5   : > { %9017 = vst [vmem:[#allocation31_spill] sm:$0xff] %v8642_v54  ;;  %9018 = vst [vmem:[#allocation32_spill] sm:$0xff] %v8644_v46  ;;  %v4816_v49 = vadd.f32 %v8590_v44, %v4303_v25  ;;  %v4323_v34 = vadd.f32 %v7199_v53, %v9024_v9  ;;  %v9031_v53 = vld [vmem:[#allocation21_spill] sm:$0xff] }
 0x1e6   : > { %v8646_v18 = vpop.f32.mrf.mxu0  ;;  %v8648_v41 = vpop.f32.mrf.mxu1 }
 0x1e7   : > { %9019 = vst [vmem:[#allocation33_spill] sm:$0xff] %v8646_v18  ;;  %9020 = vst [vmem:[#allocation34_spill] sm:$0xff] %v8648_v41  ;;  %v4304_v18 = vadd.f32 %v7180_v1, %v8504_v57  ;;  %v4302_v41 = vadd.f32 %v4177_v56, %v8507_v15  ;;  %v4309_v57 = vadd.f32 %v4206_v27, %v8525_v4 }
 0x1e8   : > { %v8650_v50 = vpop.f32.mrf.mxu0  ;;  %v8652_v62 = vpop.f32.mrf.mxu1  ;;  %v4312_v15 = vadd.f32 %v7188_v51, %v8528_v61  ;;  %v4310_v56 = vadd.f32 %v4209_v47, %v8531_v22  ;;  %v4313_v4 = vadd.f32 %v4222_v45, %v8537_v24  ;;  %v4316_v61 = vadd.f32 %v7192_v26, %v8540_v6  ;;  %v9035_v26 = vld [vmem:[#allocation28_spill] sm:$0xff] }
 0x1e9   : > { %9021 = vst [vmem:[#allocation35_spill] sm:$0xff] %v8650_v50  ;;  %9022 = vst [vmem:[#allocation36_spill] sm:$0xff] %v8652_v62  ;;  %v4307_v50 = vadd.f32 %v7183_v16, %v8510_v7  ;;  %v4305_v62 = vadd.f32 %v4190_v39, %v8513_v52  ;;  %v4814_v52 = vadd.f32 %v8592_v11, %v4301_v0 }
 0x1ea   : > { %v8654_v35 = vpop.f32.mrf.mxu0  ;;  %v8656_v5 = vpop.f32.mrf.mxu1  ;;  %v4817_v48 = vadd.f32 %v8594_v23, %v4304_v18  ;;  %v4815_v38 = vadd.f32 %v8596_v3, %v4302_v41  ;;  %v4314_v22 = vadd.f32 %v4225_v42, %v8543_v59  ;;  %v4319_v18 = vadd.f32 %v7195_v55, %v8546_v43  ;;  %v9036_v42 = vld [vmem:[#allocation9_spill] sm:$0xff]  ;;  %v9037_v55 = vld [vmem:[#allocation30_spill] sm:$0xff] }
 0x1eb   : > { %9023 = vst [vmem:[#allocation37_spill] sm:$0xff] %v8654_v35  ;;  %v4820_v25 = vadd.f32 %v8598_v17, %v4307_v50  ;;  %v8693_v39 = vadd.f32 %v8600_v30, %v4305_v62  ;;  %v8698_v41 = vadd.f32 %v8602_v13, %v4308_v28  ;;  %v8701_v50 = vadd.f32 %v8604_v36, %v4306_v58  ;;  %v9025_v30 = vld [vmem:[#allocation17_spill] sm:$0xff]  ;;  %v9026_v13 = vld [vmem:[#allocation18_spill] sm:$0xff]  ;;  %v9027_v36 = vld [vmem:[#allocation19_spill] sm:$0xff] }
 0x1ec   : > { %v8660_v21 = vpop.f32.mrf.mxu0  ;;  %v8662_v54 = vpop.f32.mrf.mxu1  ;;  %v8707_v11 = vadd.f32 %v8606_v31, %v4311_v40  ;;  %v8710_v62 = vadd.f32 %v8608_v37, %v4309_v57  ;;  %v8713_v59 = vadd.f32 %v8610_v29, %v4312_v15  ;;  %v4320_v43 = vadd.f32 %v7196_v14, %v8552_v63  ;;  %v9028_v63 = vld [vmem:[#allocation6_spill] sm:$0xff]  ;;  %v9030_v31 = vld [vmem:[#allocation20_spill] sm:$0xff] }
 0x1ed   : > { %v4318_v23 = vadd.f32 %v4241_v8, %v8555_v10  ;;  %v8718_v32 = vadd.f32 %v8612_v20, %v4310_v56  ;;  %v8724_v19 = vadd.f32 %v9025_v30, %v4315_v12  ;;  %v8727_v27 = vadd.f32 %v9026_v13, %v4313_v4  ;;  %v9029_v10 = vld [vmem:[#allocation24_spill] sm:$0xff]  ;;  %v9033_v29 = vld [vmem:[#allocation26_spill] sm:$0xff]  ;;  %v9041_v4 = vld [vmem:[#allocation23_spill] sm:$0xff] }
 0x1ee   : > { %v8668_v46 = vpop.f32.mrf.mxu0  ;;  %v8670_v35 = vpop.f32.mrf.mxu1  ;;  %v8730_v51 = vadd.f32 %v9027_v36, %v4316_v61  ;;  %v4321_v8 = vadd.f32 %v9029_v10, %v9028_v63  ;;  %v8735_v47 = vadd.f32 %v9030_v31, %v4314_v22  ;;  %v8738_v37 = vadd.f32 %v9031_v53, %v4319_v18  ;;  %v9034_v20 = vld [vmem:[#allocation8_spill] sm:$0xff]  ;;  %v9038_v40 = vld [vmem:[#allocation22_spill] sm:$0xff]  ;;  %v9043_v18 = vld [vmem:[#allocation11_spill] sm:$0xff] }
 0x1ef   : > { %v4324_v45 = vadd.f32 %v9033_v29, %v9032_v2  ;;  %v4322_v0 = vadd.f32 %v9035_v26, %v9034_v20  ;;  %v4327_v28 = vadd.f32 %v9037_v55, %v9036_v42  ;;  %v8747_v57 = vadd.f32 %v9038_v40, %v4317_v33  ;;  %v9039_v15 = vld [vmem:[#allocation10_spill] sm:$0xff]  ;;  %v9045_v30 = vld [vmem:[#allocation12_spill] sm:$0xff]  ;;  %v9047_v31 = vld [vmem:[#allocation27_spill] sm:$0xff] }
 0x1f0   : > { %v8678_v1 = vpop.f32.mrf.mxu0  ;;  %v8680_v7 = vpop.f32.mrf.mxu1  ;;  %v8752_v61 = vadd.f32 %v9041_v4, %v4320_v43  ;;  %v9046_v13 = vld [vmem:[#allocation36_spill] sm:$0xff]  ;;  %v8762_v53 = vadd.f32 %v9047_v31, %v4323_v34  ;;  %v9048_v29 = vld [vmem:[#allocation29_spill] sm:$0xff]  ;;  %v9052_v34 = vld [vmem:[#allocation35_spill] sm:$0xff] }
 0x1f1   : > { %v4326_v36 = vadd.f32 %v9046_v13, %v9045_v30  ;;  %v8765_v20 = vadd.f32 %v9048_v29, %v4321_v8  ;;  %v9055_v4 = vld [vmem:[#allocation15_spill] sm:$0xff] }
 0x1f2   : > { %v8690_v44 = vpop.f32.mrf.mxu0  ;;  %v7247_v16 = vpop.f32.mrf.mxu1 }
 0x1f3   : > { %v5173_v3 = vadd.f32 %v7247_v16, %v4816_v49  ;;  %v9042_v16 = vld [vmem:[#allocation25_spill] sm:$0xff] }
 0x1f4   : > { %v8704_v24 = vpop.f32.mrf.mxu0  ;;  %v5044_v6 = vpop.f32.mrf.mxu1  ;;  %v8755_v22 = vadd.f32 %v9042_v16, %v4318_v23  ;;  %v9049_v23 = vld [vmem:[#allocation13_spill] sm:$0xff] }
 0x1f5   : > { %v5171_v14 = vadd.f32 %v5044_v6, %v4814_v52  ;;  %v9040_v52 = vld [vmem:[#allocation32_spill] sm:$0xff]  ;;  %v9044_v6 = vld [vmem:[#allocation34_spill] sm:$0xff]  ;;  %v4331_v26 = vadd.f32 %v8656_v5, %v9049_v23  ;;  %v9054_v5 = vld [vmem:[#allocation37_spill] sm:$0xff] }
 0x1f6   : > { %v8721_v17 = vpop.f32.mrf.mxu0  ;;  %v7248_v60 = vpop.f32.mrf.mxu1  ;;  %v4325_v56 = vadd.f32 %v9040_v52, %v9039_v15  ;;  %v4328_v9 = vadd.f32 %v9044_v6, %v9043_v18  ;;  %v9051_v15 = vld [vmem:[#allocation33_spill] sm:$0xff] }
 0x1f7   : > { %v5174_v33 = vadd.f32 %v7248_v60, %v4817_v48  ;;  %v8773_v48 = vadd.f32 %v9051_v15, %v4322_v0  ;;  %v8776_v60 = vadd.f32 %v9052_v34, %v4327_v28  ;;  %v8791_v28 = vadd.f32 %v8668_v46, %v4326_v36 }
 0x1f8   : > { %v7281_v58 = vpop.f32.mrf.mxu0  ;;  %v5047_v49 = vpop.f32.mrf.mxu1  ;;  %v8783_v52 = vadd.f32 %v9054_v5, %v4325_v56  ;;  %v8788_v6 = vadd.f32 %v8660_v21, %v4328_v9  ;;  %v8807_v23 = vadd.f32 %v8678_v1, %v4331_v26 }
 0x1f9   : > { %v5666_v12 = vadd.f32 %v7281_v58, %v5173_v3  ;;  %v5172_v43 = vadd.f32 %v5047_v49, %v4815_v38  ;;  %v9050_v58 = vld [vmem:[#allocation31_spill] sm:$0xff] }
 0x1fa   : > { %v5537_v63 = vpop.f32.mrf.mxu0  ;;  %v7251_v10 = vpop.f32.mrf.mxu1  ;;  %v8770_v40 = vadd.f32 %v9050_v58, %v4324_v45  ;;  %v4332_v45 = vadd.f32 %v8670_v35, %v9055_v4 }
 0x1fb   : > { %v6743_v3 = vpack.c.bf16 %v5666_v12, %v5666_v12  ;;  %v5664_v2 = vadd.f32 %v5537_v63, %v5171_v14  ;;  %v9053_v14 = vld [vmem:[#allocation14_spill] sm:$0xff]  ;;  %v5177_v49 = vadd.f32 %v7251_v10, %v4820_v25  ;;  %v5928_v25 = vmul.f32 %v5666_v12, %v5666_v12 }
 0x1fc   : > { %v7282_v42 = vpop.f32.mrf.mxu0  ;;  %v5060_v55 = vpop.f32.mrf.mxu1  ;;  %v4329_v38 = vadd.f32 %v8662_v54, %v9053_v14  ;;  %v9056_v54 = vld [vmem:[#allocation16_spill] sm:$0xff] }
 0x1fd   : > { %5826 = vst.msk [vmem:[%s7590_s8 + $0x8] sm:$0xf] %vm1250_vm4, %v6743_v3  ;;  %v6741_v8 = vpack.c.bf16 %v5664_v2, %v5664_v2  ;;  %v5667_v16 = vadd.f32 %v7282_v42, %v5174_v33  ;;  %v8795_v30 = vadd.f32 %v8680_v7, %v9056_v54  ;;  %v5926_v56 = vmul.f32 %v5664_v2, %v5664_v2 }
 0x1fe   : > { %v5540_v18 = vpop.f32.mrf.mxu0  ;;  %v7252_v0 = vpop.f32.mrf.mxu1  ;;  %v5856_v35 = vsel %vm1814_vm3, %v5664_v2, 0.0  ;;  %v5175_v21 = vadd.f32 %v5060_v55, %v8693_v39  ;;  %v5859_v3 = vsel %vm1814_vm3, %v5666_v12, 0.0  ;;  %v8810_v39 = vadd.f32 %v8690_v44, %v4329_v38 }
 0x1ff   : > { %5824 = vst.msk [vmem:[%s7590_s8] sm:$0xf] %vm1250_vm4, %v6741_v8  ;;  %v5665_v13 = vadd.f32 %v5540_v18, %v5172_v43  ;;  %v6744_v63 = vpack.c.bf16 %v5667_v16, %v5667_v16  ;;  %v5178_v46 = vadd.f32 %v7252_v0, %v8698_v41  ;;  %v5958_v41 = vsel %vm1814_vm3, %v5926_v56, 0.0 }
 0x200   : > { %v7285_v33 = vpop.f32.mrf.mxu0  ;;  %v5063_v9 = vpop.f32.mrf.mxu1  ;;  %v5929_v42 = vmul.f32 %v5667_v16, %v5667_v16  ;;  %v5961_v1 = vsel %vm1814_vm3, %v5928_v25, 0.0  ;;  %v5861_v44 = vsel %vm1814_vm3, %v5667_v16, 0.0  ;;  %v8823_v56 = vadd.f32 %v8704_v24, %v4332_v45 }
 0x201   : > { %v6742_v36 = vpack.c.bf16 %v5665_v13, %v5665_v13  ;;  %v5857_v7 = vsel %vm1814_vm3, %v5665_v13, 0.0  ;;  %v5927_v10 = vmul.f32 %v5665_v13, %v5665_v13  ;;  %v5670_v31 = vadd.f32 %v7285_v33, %v5177_v49  ;;  %5827 = vst.msk [vmem:[%s7590_s8 + $0xc] sm:$0xf] %vm1250_vm4, %v6744_v63 }
 0x202   : > { %v5858_v43 = vadd.f32 %v5857_v7, %v5856_v35  ;;  %v5553_v29 = vpop.f32.mrf.mxu0  ;;  %v7255_v2 = vpop.f32.mrf.mxu1  ;;  %v5176_v8 = vadd.f32 %v5063_v9, %v8701_v50  ;;  %v5963_v50 = vsel %vm1814_vm3, %v5929_v42, 0.0 }
 0x203   : > { %5825 = vst.msk [vmem:[%s7590_s8 + $0x4] sm:$0xf] %vm1250_vm4, %v6742_v36  ;;  %v5959_v55 = vsel %vm1814_vm3, %v5927_v10, 0.0  ;;  %v6747_v12 = vpack.c.bf16 %v5670_v31, %v5670_v31  ;;  %v5668_v34 = vadd.f32 %v5553_v29, %v5175_v21  ;;  %v5181_v38 = vadd.f32 %v7255_v2, %v8707_v11 }
 0x204   : > { %v5860_v58 = vadd.f32 %v5859_v3, %v5858_v43  ;;  %v5960_v15 = vadd.f32 %v5959_v55, %v5958_v41  ;;  %v7286_v14 = vpop.f32.mrf.mxu0  ;;  %v5076_v49 = vpop.f32.mrf.mxu1  ;;  %v5932_v9 = vmul.f32 %v5670_v31, %v5670_v31  ;;  %v8837_v55 = vadd.f32 %v8721_v17, %v8795_v30 }
 0x205   : > { %5830 = vst.msk [vmem:[%s7590_s8 + $0x18] sm:$0xf] %vm1250_vm4, %v6747_v12  ;;  %v5671_v26 = vadd.f32 %v7286_v14, %v5178_v46  ;;  %v6745_v4 = vpack.c.bf16 %v5668_v34, %v5668_v34  ;;  %v5863_v25 = vsel %vm1814_vm3, %v5668_v34, 0.0  ;;  %v5930_v13 = vmul.f32 %v5668_v34, %v5668_v34 }
 0x206   : > { %v5962_v5 = vadd.f32 %v5961_v1, %v5960_v15  ;;  %v5862_v18 = vadd.f32 %v5861_v44, %v5860_v58  ;;  %v5556_v0 = vpop.f32.mrf.mxu0  ;;  %v7256_v54 = vpop.f32.mrf.mxu1  ;;  %v5179_v21 = vadd.f32 %v5076_v49, %v8710_v62  ;;  %v5867_v12 = vsel %vm1814_vm3, %v5670_v31, 0.0 }
 0x207   : > { %v6748_v16 = vpack.c.bf16 %v5671_v26, %v5671_v26  ;;  %5828 = vst.msk [vmem:[%s7590_s8 + $0x10] sm:$0xf] %vm1250_vm4, %v6745_v4  ;;  %v5669_v11 = vadd.f32 %v5556_v0, %v5176_v8  ;;  %v5965_v24 = vsel %vm1814_vm3, %v5930_v13, 0.0  ;;  %v5182_v36 = vadd.f32 %v7256_v54, %v8713_v59 }
 0x208   : > { %v5864_v35 = vadd.f32 %v5863_v25, %v5862_v18  ;;  %v5964_v63 = vadd.f32 %v5963_v50, %v5962_v5  ;;  %v7289_v33 = vpop.f32.mrf.mxu0  ;;  %v5079_v46 = vpop.f32.mrf.mxu1  ;;  %v5933_v41 = vmul.f32 %v5671_v26, %v5671_v26  ;;  %v5969_v30 = vsel %vm1814_vm3, %v5932_v9, 0.0 }
 0x209   : > { %5831 = vst.msk [vmem:[%s7590_s8 + $0x1c] sm:$0xf] %vm1250_vm4, %v6748_v16  ;;  %v5674_v45 = vadd.f32 %v7289_v33, %v5181_v38  ;;  %v6746_v10 = vpack.c.bf16 %v5669_v11, %v5669_v11  ;;  %v5865_v3 = vsel %vm1814_vm3, %v5669_v11, 0.0  ;;  %v5931_v43 = vmul.f32 %v5669_v11, %v5669_v11 }
 0x20a   : > { %v5966_v7 = vadd.f32 %v5965_v24, %v5964_v63  ;;  %v5569_v29 = vpop.f32.mrf.mxu0  ;;  %v7259_v2 = vpop.f32.mrf.mxu1  ;;  %v5866_v62 = vadd.f32 %v5865_v3, %v5864_v35  ;;  %v5180_v34 = vadd.f32 %v5079_v46, %v8718_v32  ;;  %v5869_v31 = vsel %vm1814_vm3, %v5671_v26, 0.0 }
 0x20b   : > { %v6751_v42 = vpack.c.bf16 %v5674_v45, %v5674_v45  ;;  %5829 = vst.msk [vmem:[%s7590_s8 + $0x14] sm:$0xf] %vm1250_vm4, %v6746_v10  ;;  %v5967_v59 = vsel %vm1814_vm3, %v5931_v43, 0.0  ;;  %v5672_v58 = vadd.f32 %v5569_v29, %v5179_v21  ;;  %v5185_v17 = vadd.f32 %v7259_v2, %v8724_v19 }
 0x20c   : > { %v7290_v15 = vpop.f32.mrf.mxu0  ;;  %v5092_v14 = vpop.f32.mrf.mxu1  ;;  %v5868_v8 = vadd.f32 %v5867_v12, %v5866_v62  ;;  %v5968_v49 = vadd.f32 %v5967_v59, %v5966_v7  ;;  %v5971_v32 = vsel %vm1814_vm3, %v5933_v41, 0.0  ;;  %v5936_v50 = vmul.f32 %v5674_v45, %v5674_v45 }
 0x20d   : > { %5834 = vst.msk [vmem:[%s7590_s8 + $0x28] sm:$0xf] %vm1250_vm4, %v6751_v42  ;;  %v5675_v1 = vadd.f32 %v7290_v15, %v5182_v36  ;;  %v6749_v44 = vpack.c.bf16 %v5672_v58, %v5672_v58  ;;  %v5934_v38 = vmul.f32 %v5672_v58, %v5672_v58  ;;  %v5871_v25 = vsel %vm1814_vm3, %v5672_v58, 0.0 }
 0x20e   : > { %v5572_v5 = vpop.f32.mrf.mxu0  ;;  %v7260_v4 = vpop.f32.mrf.mxu1  ;;  %v5970_v18 = vadd.f32 %v5969_v30, %v5968_v49  ;;  %v5870_v0 = vadd.f32 %v5869_v31, %v5868_v8  ;;  %v5183_v16 = vadd.f32 %v5092_v14, %v8727_v27  ;;  %v5875_v29 = vsel %vm1814_vm3, %v5674_v45, 0.0 }
 0x20f   : > { %v6752_v54 = vpack.c.bf16 %v5675_v1, %v5675_v1  ;;  %5832 = vst.msk [vmem:[%s7590_s8 + $0x20] sm:$0xf] %vm1250_vm4, %v6749_v44  ;;  %v5673_v19 = vadd.f32 %v5572_v5, %v5180_v34  ;;  %v5186_v33 = vadd.f32 %v7260_v4, %v8730_v51  ;;  %v5973_v21 = vsel %vm1814_vm3, %v5934_v38, 0.0 }
 0x210   : > { %v7293_v13 = vpop.f32.mrf.mxu0  ;;  %v5095_v26 = vpop.f32.mrf.mxu1  ;;  %v5872_v35 = vadd.f32 %v5871_v25, %v5870_v0  ;;  %v5972_v63 = vadd.f32 %v5971_v32, %v5970_v18  ;;  %v5937_v27 = vmul.f32 %v5675_v1, %v5675_v1  ;;  %v5977_v34 = vsel %vm1814_vm3, %v5936_v50, 0.0 }
 0x211   : > { %5835 = vst.msk [vmem:[%s7590_s8 + $0x2c] sm:$0xf] %vm1250_vm4, %v6752_v54  ;;  %v5678_v11 = vadd.f32 %v7293_v13, %v5185_v17  ;;  %v6750_v46 = vpack.c.bf16 %v5673_v19, %v5673_v19  ;;  %v5873_v9 = vsel %vm1814_vm3, %v5673_v19, 0.0  ;;  %v5935_v24 = vmul.f32 %v5673_v19, %v5673_v19 }
 0x212   : > { %v5585_v36 = vpop.f32.mrf.mxu0  ;;  %v7263_v7 = vpop.f32.mrf.mxu1  ;;  %v5974_v10 = vadd.f32 %v5973_v21, %v5972_v63  ;;  %v5874_v3 = vadd.f32 %v5873_v9, %v5872_v35  ;;  %v5184_v62 = vadd.f32 %v5095_v26, %v8735_v47  ;;  %v5877_v45 = vsel %vm1814_vm3, %v5675_v1, 0.0 }
 0x213   : > { %v6755_v43 = vpack.c.bf16 %v5678_v11, %v5678_v11  ;;  %5833 = vst.msk [vmem:[%s7590_s8 + $0x24] sm:$0xf] %vm1250_vm4, %v6750_v46  ;;  %v5975_v2 = vsel %vm1814_vm3, %v5935_v24, 0.0  ;;  %v5676_v51 = vadd.f32 %v5585_v36, %v5183_v16  ;;  %v5189_v15 = vadd.f32 %v7263_v7, %v8738_v37 }
 0x214   : > { %v7294_v41 = vpop.f32.mrf.mxu0  ;;  %v5108_v42 = vpop.f32.mrf.mxu1  ;;  %v5876_v12 = vadd.f32 %v5875_v29, %v5874_v3  ;;  %v5976_v59 = vadd.f32 %v5975_v2, %v5974_v10  ;;  %v5979_v47 = vsel %vm1814_vm3, %v5937_v27, 0.0  ;;  %v5940_v38 = vmul.f32 %v5678_v11, %v5678_v11 }
 0x215   : > { %5838 = vst.msk [vmem:[%s7590_s8 + $0x38] sm:$0xf] %vm1250_vm4, %v6755_v43  ;;  %v5679_v58 = vadd.f32 %v7294_v41, %v5186_v33  ;;  %v6753_v14 = vpack.c.bf16 %v5676_v51, %v5676_v51  ;;  %v5938_v8 = vmul.f32 %v5676_v51, %v5676_v51  ;;  %v5879_v5 = vsel %vm1814_vm3, %v5676_v51, 0.0 }
 0x216   : > { %v5588_v49 = vpop.f32.mrf.mxu0  ;;  %v7264_v17 = vpop.f32.mrf.mxu1  ;;  %v5978_v30 = vadd.f32 %v5977_v34, %v5976_v59  ;;  %v5878_v31 = vadd.f32 %v5877_v45, %v5876_v12  ;;  %v5187_v32 = vadd.f32 %v5108_v42, %v8747_v57  ;;  %v5883_v46 = vsel %vm1814_vm3, %v5678_v11, 0.0 }
 0x217   : > { %v6756_v44 = vpack.c.bf16 %v5679_v58, %v5679_v58  ;;  %5836 = vst.msk [vmem:[%s7590_s8 + $0x30] sm:$0xf] %vm1250_vm4, %v6753_v14  ;;  %v5677_v37 = vadd.f32 %v5588_v49, %v5184_v62  ;;  %v5190_v50 = vadd.f32 %v7264_v17, %v8752_v61  ;;  %v5981_v25 = vsel %vm1814_vm3, %v5938_v8, 0.0 }
 0x218   : > { %v7297_v4 = vpop.f32.mrf.mxu0  ;;  %v5111_v1 = vpop.f32.mrf.mxu1  ;;  %v5880_v18 = vadd.f32 %v5879_v5, %v5878_v31  ;;  %v5980_v0 = vadd.f32 %v5979_v47, %v5978_v30  ;;  %v5941_v57 = vmul.f32 %v5679_v58, %v5679_v58  ;;  %v5985_v29 = vsel %vm1814_vm3, %v5940_v38, 0.0 }
 0x219   : > { %5839 = vst.msk [vmem:[%s7590_s8 + $0x3c] sm:$0xf] %vm1250_vm4, %v6756_v44  ;;  %v5682_v54 = vadd.f32 %v7297_v4, %v5189_v15  ;;  %v6754_v19 = vpack.c.bf16 %v5677_v37, %v5677_v37  ;;  %v5881_v13 = vsel %vm1814_vm3, %v5677_v37, 0.0  ;;  %v5939_v16 = vmul.f32 %v5677_v37, %v5677_v37 }
 0x21a   : > { %v5601_v26 = vpop.f32.mrf.mxu0  ;;  %v7267_v35 = vpop.f32.mrf.mxu1  ;;  %v5982_v63 = vadd.f32 %v5981_v25, %v5980_v0  ;;  %v5882_v33 = vadd.f32 %v5881_v13, %v5880_v18  ;;  %v5188_v36 = vadd.f32 %v5111_v1, %v8755_v22  ;;  %v5885_v11 = vsel %vm1814_vm3, %v5679_v58, 0.0 }
 0x21b   : > { %v6759_v21 = vpack.c.bf16 %v5682_v54, %v5682_v54  ;;  %5837 = vst.msk [vmem:[%s7590_s8 + $0x34] sm:$0xf] %vm1250_vm4, %v6754_v19  ;;  %v5983_v9 = vsel %vm1814_vm3, %v5939_v16, 0.0  ;;  %v5680_v61 = vadd.f32 %v5601_v26, %v5187_v32  ;;  %v5193_v43 = vadd.f32 %v7267_v35, %v8762_v53 }
 0x21c   : > { %v7298_v24 = vpop.f32.mrf.mxu0  ;;  %v5124_v7 = vpop.f32.mrf.mxu1  ;;  %v5884_v10 = vadd.f32 %v5883_v46, %v5882_v33  ;;  %v5984_v27 = vadd.f32 %v5983_v9, %v5982_v63  ;;  %v5987_v22 = vsel %vm1814_vm3, %v5941_v57, 0.0  ;;  %v5944_v15 = vmul.f32 %v5682_v54, %v5682_v54 }
 0x21d   : > { %5842 = vst.msk [vmem:[%s7590_s8 + $0x48] sm:$0xf] %vm1250_vm4, %v6759_v21  ;;  %v5683_v3 = vadd.f32 %v7298_v24, %v5190_v50  ;;  %v6757_v2 = vpack.c.bf16 %v5680_v61, %v5680_v61  ;;  %v5942_v51 = vmul.f32 %v5680_v61, %v5680_v61  ;;  %v5887_v34 = vsel %vm1814_vm3, %v5680_v61, 0.0 }
 0x21e   : > { %v5604_v41 = vpop.f32.mrf.mxu0  ;;  %v7268_v62 = vpop.f32.mrf.mxu1  ;;  %v5986_v42 = vadd.f32 %v5985_v29, %v5984_v27  ;;  %v5886_v12 = vadd.f32 %v5885_v11, %v5884_v10  ;;  %v5191_v14 = vadd.f32 %v5124_v7, %v8765_v20  ;;  %v5891_v18 = vsel %vm1814_vm3, %v5682_v54, 0.0 }
 0x21f   : > { %v6760_v59 = vpack.c.bf16 %v5683_v3, %v5683_v3  ;;  %5840 = vst.msk [vmem:[%s7590_s8 + $0x40] sm:$0xf] %vm1250_vm4, %v6757_v2  ;;  %v5681_v53 = vadd.f32 %v5604_v41, %v5188_v36  ;;  %v5194_v47 = vadd.f32 %v7268_v62, %v8770_v40  ;;  %v5989_v30 = vsel %vm1814_vm3, %v5942_v51, 0.0 }
 0x220   : > { %v7301_v45 = vpop.f32.mrf.mxu0  ;;  %v5127_v58 = vpop.f32.mrf.mxu1  ;;  %v5888_v8 = vadd.f32 %v5887_v34, %v5886_v12  ;;  %v5988_v49 = vadd.f32 %v5987_v22, %v5986_v42  ;;  %v5945_v20 = vmul.f32 %v5683_v3, %v5683_v3  ;;  %v5993_v63 = vsel %vm1814_vm3, %v5944_v15, 0.0 }
 0x221   : > { %5843 = vst.msk [vmem:[%s7590_s8 + $0x4c] sm:$0xf] %vm1250_vm4, %v6760_v59  ;;  %v5686_v17 = vadd.f32 %v7301_v45, %v5193_v43  ;;  %v6758_v31 = vpack.c.bf16 %v5681_v53, %v5681_v53  ;;  %v5889_v44 = vsel %vm1814_vm3, %v5681_v53, 0.0  ;;  %v5943_v38 = vmul.f32 %v5681_v53, %v5681_v53 }
 0x222   : > { %v5617_v5 = vpop.f32.mrf.mxu0  ;;  %v7271_v37 = vpop.f32.mrf.mxu1  ;;  %v5990_v4 = vadd.f32 %v5989_v30, %v5988_v49  ;;  %v5890_v32 = vadd.f32 %v5889_v44, %v5888_v8  ;;  %v5192_v25 = vadd.f32 %v5127_v58, %v8773_v48  ;;  %v5893_v54 = vsel %vm1814_vm3, %v5683_v3, 0.0 }
 0x223   : > { %v6763_v1 = vpack.c.bf16 %v5686_v17, %v5686_v17  ;;  %5841 = vst.msk [vmem:[%s7590_s8 + $0x44] sm:$0xf] %vm1250_vm4, %v6758_v31  ;;  %v5991_v0 = vsel %vm1814_vm3, %v5943_v38, 0.0  ;;  %v5684_v40 = vadd.f32 %v5617_v5, %v5191_v14  ;;  %v5197_v35 = vadd.f32 %v7271_v37, %v8776_v60 }
 0x224   : > { %v7302_v50 = vpop.f32.mrf.mxu0  ;;  %v5140_v19 = vpop.f32.mrf.mxu1  ;;  %v5892_v13 = vadd.f32 %v5891_v18, %v5890_v32  ;;  %v5992_v16 = vadd.f32 %v5991_v0, %v5990_v4  ;;  %v5995_v48 = vsel %vm1814_vm3, %v5945_v20, 0.0  ;;  %v5948_v36 = vmul.f32 %v5686_v17, %v5686_v17 }
 0x225   : > { %5846 = vst.msk [vmem:[%s7590_s8 + $0x58] sm:$0xf] %vm1250_vm4, %v6763_v1  ;;  %v5687_v26 = vadd.f32 %v7302_v50, %v5194_v47  ;;  %v6761_v57 = vpack.c.bf16 %v5684_v40, %v5684_v40  ;;  %v5946_v33 = vmul.f32 %v5684_v40, %v5684_v40  ;;  %v5895_v7 = vsel %vm1814_vm3, %v5684_v40, 0.0 }
 0x226   : > { %v5620_v21 = vpop.f32.mrf.mxu0  ;;  %v7272_v46 = vpop.f32.mrf.mxu1  ;;  %v5994_v9 = vadd.f32 %v5993_v63, %v5992_v16  ;;  %v5894_v61 = vadd.f32 %v5893_v54, %v5892_v13  ;;  %v5195_v27 = vadd.f32 %v5140_v19, %v8783_v52  ;;  %v5899_v53 = vsel %vm1814_vm3, %v5686_v17, 0.0 }
 0x227   : > { %v6764_v24 = vpack.c.bf16 %v5687_v26, %v5687_v26  ;;  %5844 = vst.msk [vmem:[%s7590_s8 + $0x50] sm:$0xf] %vm1250_vm4, %v6761_v57  ;;  %v5685_v60 = vadd.f32 %v5620_v21, %v5192_v25  ;;  %v5198_v2 = vadd.f32 %v7272_v46, %v8788_v6  ;;  %v5997_v51 = vsel %vm1814_vm3, %v5946_v33, 0.0 }
 0x228   : > { %v7305_v10 = vpop.f32.mrf.mxu0  ;;  %v5143_v3 = vpop.f32.mrf.mxu1  ;;  %v5896_v43 = vadd.f32 %v5895_v7, %v5894_v61  ;;  %v5996_v29 = vadd.f32 %v5995_v48, %v5994_v9  ;;  %v5949_v52 = vmul.f32 %v5687_v26, %v5687_v26  ;;  %v6001_v44 = vsel %vm1814_vm3, %v5948_v36, 0.0 }
 0x229   : > { %5847 = vst.msk [vmem:[%s7590_s8 + $0x5c] sm:$0xf] %vm1250_vm4, %v6764_v24  ;;  %v5690_v11 = vadd.f32 %v7305_v10, %v5197_v35  ;;  %v6762_v41 = vpack.c.bf16 %v5685_v60, %v5685_v60  ;;  %v5897_v62 = vsel %vm1814_vm3, %v5685_v60, 0.0  ;;  %v5947_v22 = vmul.f32 %v5685_v60, %v5685_v60 }
 0x22a   : > { %v5633_v42 = vpop.f32.mrf.mxu0  ;;  %v7275_v12 = vpop.f32.mrf.mxu1  ;;  %v5998_v59 = vadd.f32 %v5997_v51, %v5996_v29  ;;  %v5898_v15 = vadd.f32 %v5897_v62, %v5896_v43  ;;  %v5196_v58 = vadd.f32 %v5143_v3, %v8791_v28  ;;  %v5901_v17 = vsel %vm1814_vm3, %v5687_v26, 0.0 }
 0x22b   : > { %v6767_v34 = vpack.c.bf16 %v5690_v11, %v5690_v11  ;;  %5845 = vst.msk [vmem:[%s7590_s8 + $0x54] sm:$0xf] %vm1250_vm4, %v6762_v41  ;;  %v5999_v45 = vsel %vm1814_vm3, %v5947_v22, 0.0  ;;  %v5688_v6 = vadd.f32 %v5633_v42, %v5195_v27  ;;  %v5201_v31 = vadd.f32 %v7275_v12, %v8807_v23 }
 0x22c   : > { %v7306_v14 = vpop.f32.mrf.mxu0  ;;  %v5156_v8 = vpop.f32.mrf.mxu1  ;;  %v5900_v49 = vadd.f32 %v5899_v53, %v5898_v15  ;;  %v6000_v47 = vadd.f32 %v5999_v45, %v5998_v59  ;;  %v6003_v28 = vsel %vm1814_vm3, %v5949_v52, 0.0  ;;  %v5952_v18 = vmul.f32 %v5690_v11, %v5690_v11 }
 0x22d   : > { %5850 = vst.msk [vmem:[%s7590_s8 + $0x68] sm:$0xf] %vm1250_vm4, %v6767_v34  ;;  %v5691_v30 = vadd.f32 %v7306_v14, %v5198_v2  ;;  %v6765_v38 = vpack.c.bf16 %v5688_v6, %v5688_v6  ;;  %v5950_v5 = vmul.f32 %v5688_v6, %v5688_v6  ;;  %v5903_v0 = vsel %vm1814_vm3, %v5688_v6, 0.0 }
 0x22e   : > { %v5636_v37 = vpop.f32.mrf.mxu0  ;;  %v7276_v4 = vpop.f32.mrf.mxu1  ;;  %v6002_v20 = vadd.f32 %v6001_v44, %v6000_v47  ;;  %v5902_v32 = vadd.f32 %v5901_v17, %v5900_v49  ;;  %v5199_v50 = vadd.f32 %v5156_v8, %v8810_v39  ;;  %v5907_v21 = vsel %vm1814_vm3, %v5690_v11, 0.0 }
 0x22f   : > { %v6768_v1 = vpack.c.bf16 %v5691_v30, %v5691_v30  ;;  %5848 = vst.msk [vmem:[%s7590_s8 + $0x60] sm:$0xf] %vm1250_vm4, %v6765_v38  ;;  %v5689_v23 = vadd.f32 %v5636_v37, %v5196_v58  ;;  %v5202_v16 = vadd.f32 %v7276_v4, %v8823_v56  ;;  %v6005_v35 = vsel %vm1814_vm3, %v5950_v5, 0.0 }
 0x230   : > { %v7309_v40 = vpop.f32.mrf.mxu0  ;;  %v5904_v25 = vadd.f32 %v5903_v0, %v5902_v32  ;;  %v6004_v19 = vadd.f32 %v6003_v28, %v6002_v20  ;;  %v5159_v26 = vpop.f32.mrf.mxu1  ;;  %v5953_v9 = vmul.f32 %v5691_v30, %v5691_v30  ;;  %v6009_v27 = vsel %vm1814_vm3, %v5952_v18, 0.0 }
 0x231   : > { %5851 = vst.msk [vmem:[%s7590_s8 + $0x6c] sm:$0xf] %vm1250_vm4, %v6768_v1  ;;  %v5694_v13 = vadd.f32 %v7309_v40, %v5201_v31  ;;  %v6766_v63 = vpack.c.bf16 %v5689_v23, %v5689_v23  ;;  %v5905_v54 = vsel %vm1814_vm3, %v5689_v23, 0.0  ;;  %v5951_v57 = vmul.f32 %v5689_v23, %v5689_v23  ;;  %v6028_v40 = vld [vmem:[%s8989_s5] sm:$0x1] }
 0x232   : > { %v5649_v33 = vpop.f32.mrf.mxu0  ;;  %v6006_v39 = vadd.f32 %v6005_v35, %v6004_v19  ;;  %v5906_v46 = vadd.f32 %v5905_v54, %v5904_v25  ;;  %v5200_v36 = vadd.f32 %v5159_v26, %v8837_v55  ;;  %v5909_v3 = vsel %vm1814_vm3, %v5691_v30, 0.0  ;;  %v6032_v19 = vld [vmem:[%s8990_s6] sm:$0x1] }
 0x233   : > { %v6771_v48 = vpack.c.bf16 %v5694_v13, %v5694_v13  ;;  %5849 = vst.msk [vmem:[%s7590_s8 + $0x64] sm:$0xf] %vm1250_vm4, %v6766_v63  ;;  %v6007_v61 = vsel %vm1814_vm3, %v5951_v57, 0.0  ;;  %v5692_v56 = vadd.f32 %v5649_v33, %v5199_v50  ;;  %v6011_v62 = vsel %vm1814_vm3, %v5953_v9, 0.0 }
 0x234   : > { %v7310_v24 = vpop.f32.mrf.mxu0  ;;  %v5908_v7 = vadd.f32 %v5907_v21, %v5906_v46  ;;  %v6008_v60 = vadd.f32 %v6007_v61, %v6006_v39  ;;  %v5956_v42 = vmul.f32 %v5694_v13, %v5694_v13  ;;  %v5915_v14 = vsel %vm1814_vm3, %v5694_v13, 0.0 }
 0x235   : > { %5854 = vst.msk [vmem:[%s7590_s8 + $0x78] sm:$0xf] %vm1250_vm4, %v6771_v48  ;;  %v5695_v10 = vadd.f32 %v7310_v24, %v5202_v16  ;;  %v6769_v43 = vpack.c.bf16 %v5692_v56, %v5692_v56  ;;  %v5954_v29 = vmul.f32 %v5692_v56, %v5692_v56  ;;  %v5911_v55 = vsel %vm1814_vm3, %v5692_v56, 0.0 }
 0x236   : > { %v6010_v11 = vadd.f32 %v6009_v27, %v6008_v60  ;;  %v5910_v2 = vadd.f32 %v5909_v3, %v5908_v7  ;;  %v5652_v41 = vpop.f32.mrf.mxu0  ;;  %v6017_v30 = vsel %vm1814_vm3, %v5956_v42, 0.0 }
 0x237   : > { %v6772_v51 = vpack.c.bf16 %v5695_v10, %v5695_v10  ;;  %5852 = vst.msk [vmem:[%s7590_s8 + $0x70] sm:$0xf] %vm1250_vm4, %v6769_v43  ;;  %v5693_v22 = vadd.f32 %v5652_v41, %v5200_v36  ;;  %v6013_v52 = vsel %vm1814_vm3, %v5954_v29, 0.0  ;;  %v5957_v58 = vmul.f32 %v5695_v10, %v5695_v10 }
 0x238   : > { %v5912_v12 = vadd.f32 %v5911_v55, %v5910_v2  ;;  %v6012_v59 = vadd.f32 %v6011_v62, %v6010_v11  ;;  %v5917_v31 = vsel %vm1814_vm3, %v5695_v10, 0.0 }
 0x239   : > { %5855 = vst.msk [vmem:[%s7590_s8 + $0x7c] sm:$0xf] %vm1250_vm4, %v6772_v51  ;;  %v6770_v15 = vpack.c.bf16 %v5693_v22, %v5693_v22  ;;  %v5913_v34 = vsel %vm1814_vm3, %v5693_v22, 0.0  ;;  %v5955_v53 = vmul.f32 %v5693_v22, %v5693_v22  ;;  %v6019_v38 = vsel %vm1814_vm3, %v5957_v58, 0.0 }
 0x23a   : > { %v6014_v45 = vadd.f32 %v6013_v52, %v6012_v59  ;;  %v5914_v6 = vadd.f32 %v5913_v34, %v5912_v12 }
 0x23b   : > { %5853 = vst.msk [vmem:[%s7590_s8 + $0x74] sm:$0xf] %vm1250_vm4, %v6770_v15  ;;  %v6015_v8 = vsel %vm1814_vm3, %v5955_v53, 0.0 }
 0x23c   : > { %v5916_v49 = vadd.f32 %v5915_v14, %v5914_v6  ;;  %v6016_v47 = vadd.f32 %v6015_v8, %v6014_v45 }
 0x23e   : > { %v5918_v44 = vadd.f32 %v5917_v31, %v5916_v49  ;;  %v6018_v17 = vadd.f32 %v6017_v30, %v6016_v47 }
 0x240   : > { %v5919_v5 = vrot.slane %v5918_v44, 4  ;;  %v6020_v37 = vadd.f32 %v6019_v38, %v6018_v17 }
 0x242   : > { %v5920_v4 = vadd.f32 %v5919_v5, %v5918_v44  ;;  %v6021_v28 = vrot.slane %v6020_v37, 4 }
 0x244   : > { %v5921_v20 = vrot.slane %v5920_v4, 2  ;;  %v6022_v32 = vadd.f32 %v6021_v28, %v6020_v37 }
 0x246   : > { %v5922_v1 = vadd.f32 %v5921_v20, %v5920_v4  ;;  %v6023_v18 = vrot.slane %v6022_v32, 2 }
 0x248   : > { %v5923_v0 = vrot.slane %v5922_v1, 1  ;;  %v6024_v23 = vadd.f32 %v6023_v18, %v6022_v32 }
 0x24a   : > { %v5924_v50 = vadd.f32 %v5923_v0, %v5922_v1  ;;  %v6025_v25 = vrot.slane %v6024_v23, 1 }
 0x24c   : > { %v6026_v13 = vadd.f32 %v6025_v25, %v6024_v23  ;;  %v6029_v16 = vadd.f32 %v6028_v40, %v5924_v50 }
 0x24e   : > { %6031 = vst.msk [vmem:[%s8989_s5] sm:$0x1] %vm6030_vm2, %v6029_v16  ;;  %v6033_v26 = vadd.f32 %v6032_v19, %v6026_v13 }
 0x250   : > { %6034 = vst.msk [vmem:[%s8990_s6] sm:$0x1] %vm6030_vm2, %v6033_v26 }
 0x251 PF: > { %s17_s23 = sadd.s32 1, %s7524_s23   ;;  %s9057_s21 = smov %s7520_s22 }
 0x252   : > { %p14_p6 = scmp.ge.s32.totalorder %s17_s23, 4   ;;  %s9058_s22 = smov %s9060_s24 }
 0x254   :  { %16 = sbr.rel (!%p14_p6) target bundleno = 2 (0x2), region = 97 }

</bundles_post_ra>
